<compile_context>
chip_gen: v7x
topology: tpu7x:2x2x1
jax: 0.10.0
libtpu: 0.0.40
codegen_flags: <defaults>
</compile_context>

<pallas_src>
import functools

import jax
import jax.numpy as jnp
from jax.experimental import pallas as pl
from jax.experimental.pallas import tpu as pltpu

N_LAYERS = 4      # net_params['L']  (4 GIN layers)
N_PRED = 3        # linears_prediction entries exposed in Learner.varstest
IN_DIM = 3        # net_params['in_dim'] = 3 (x, y, intensity)
HIDDEN = 32       # logical hidden_dim
N_CLASSES = 10    # n_classes

IN_PAD = 8        # feature dim zero-padded for clean sublane layout
HIDDEN_PAD = 128  # hidden dim zero-padded to a full 128-lane vreg / MXU tile
CLASS_PAD = 128   # class dim zero-padded so the output store is lane-dense


def gin_forward_kernel(x_ref, a_ref, mbd_ref, we_ref, be_ref,
                       w1_ref, b1_ref, w2_ref, b2_ref,
                       eps_ref, wp_ref, bp_ref, out_ref, h_ref):
    """One grid step == g_tile graphs (block-diagonal structure kept implicit)."""
    bf16, f32 = jnp.bfloat16, jnp.float32
    GT, Np, _ = a_ref.shape
    GTNp, Hp = h_ref.shape

    # ---- embedding_h : Linear(in_dim -> hidden) on all GT*Np node rows at once ----
    h_ref[...] = (jnp.dot(x_ref[...], we_ref[...], preferred_element_type=f32)
                  + be_ref[...])

    m_bd = mbd_ref[...]                       # [GT, GT*Np] bf16 block-diag sum-pool matrix

    # streamed readout + prediction head for stored representation 0 (embedding output)
    hg = jnp.dot(m_bd, h_ref[...].astype(bf16), preferred_element_type=f32)   # [GT, Hp]
    score = jnp.dot(hg.astype(bf16), wp_ref[0], preferred_element_type=f32)   # [GT, Cp]

    a = a_ref[...]                            # [GT, Np, Np] bf16 per-graph 0/1 adjacency

    # ---- GIN layers ----
    for l in range(N_LAYERS):
        h = h_ref[...]                                             # [GT*Np, Hp] f32
        h3 = h.astype(bf16).reshape(GT, Np, Hp)
        # sum neighbor aggregation, batched per graph (no block-diag zero FLOPs)
        agg = jnp.einsum('gnm,gmh->gnh', a, h3,
                         preferred_element_type=f32).reshape(GTNp, Hp)
        hin = (1.0 + eps_ref[l]) * h + agg                         # eps scalar from SMEM
        # 2-layer MLP with ReLU, then ApplyNodeFunc ReLU
        z = jnp.maximum(
            jnp.dot(hin.astype(bf16), w1_ref[l], preferred_element_type=f32)
            + b1_ref[l], 0.0)
        z = jnp.maximum(
            jnp.dot(z.astype(bf16), w2_ref[l], preferred_element_type=f32)
            + b2_ref[l], 0.0)
        # TODO(synk): graph_norm / batch_norm omitted (identity at deterministic init).
        h_ref[...] = z + h                                         # residual
        if l + 1 < N_PRED:
            hg = jnp.dot(m_bd, h_ref[...].astype(bf16), preferred_element_type=f32)
            score = score + jnp.dot(hg.astype(bf16), wp_ref[l + 1],
                                    preferred_element_type=f32)

    # one lane-dense (GT, 128) f32 store per step; wrapper slices back to n_classes
    out_ref[...] = score + bp_ref[...]


def prepare_params(params):
    """Pad/cast weights to MXU-native shapes. Call ONCE per parameter update."""
    we, be, w1, b1, w2, b2, eps, wp, bp = params
    F, H = we.shape
    L = w1.shape[0]
    P, _, C = wp.shape
    Fp, Hp, Cp = IN_PAD, HIDDEN_PAD, CLASS_PAD
    bf16, f32 = jnp.bfloat16, jnp.float32

    wep = jnp.pad(we, ((0, Fp - F), (0, Hp - H))).astype(bf16)
    bep = jnp.pad(be.reshape(1, H), ((0, 0), (0, Hp - H))).astype(f32)
    w1p = jnp.pad(w1, ((0, 0), (0, Hp - H), (0, Hp - H))).astype(bf16)
    b1p = jnp.pad(b1.reshape(L, 1, H), ((0, 0), (0, 0), (0, Hp - H))).astype(f32)
    w2p = jnp.pad(w2, ((0, 0), (0, Hp - H), (0, Hp - H))).astype(bf16)
    b2p = jnp.pad(b2.reshape(L, 1, H), ((0, 0), (0, 0), (0, Hp - H))).astype(f32)
    wpp = jnp.pad(wp, ((0, 0), (0, Hp - H), (0, Cp - C))).astype(bf16)   # [P, Hp, Cp]
    bpp = jnp.pad(jnp.sum(bp, axis=0).reshape(1, C), ((0, 0), (0, Cp - C))).astype(f32)
    epsv = eps.astype(f32)                                               # [L] -> SMEM
    return (wep, bep, w1p, b1p, w2p, b2p, epsv, wpp, bpp)


@functools.partial(jax.jit, static_argnames=("g_tile",))
def gin_forward(x, a, mask, prepped, *, g_tile):
    """x: [G, Np, IN_DIM] f32, a: [G, Np, Np] f32 0/1 per-graph adjacency,
    mask: [G, Np] f32 0/1 valid-node mask, prepped: output of prepare_params."""
    wep, bep, w1p, b1p, w2p, b2p, epsv, wpp, bpp = prepped
    G, Np, F = x.shape
    Fp, Hp, Cp = IN_PAD, HIDDEN_PAD, CLASS_PAD
    L = w1p.shape[0]
    P = wpp.shape[0]
    bf16 = jnp.bfloat16

    assert G % g_tile == 0 and (g_tile % 8 == 0 or g_tile == G)
    nsteps = G // g_tile
    GTNp = g_tile * Np

    # Per-call input prep (cheap, data-dependent).
    xp = jnp.pad(x, ((0, 0), (0, 0), (0, Fp - F))).astype(bf16).reshape(G * Np, Fp)
    ap = a.astype(bf16)
    # Block-diagonal sum-pool matrix per step: row g selects graph g's valid nodes.
    m3 = mask.reshape(nsteps, g_tile, Np)
    eye = jnp.eye(g_tile, dtype=mask.dtype)
    mbd = (eye[None, :, :, None] * m3[:, None, :, :]).reshape(
        nsteps, g_tile, GTNp).astype(bf16)

    inputs = (xp, ap, mbd, wep, bep, w1p, b1p, w2p, b2p, epsv, wpp, bpp)

    in_specs = [
        pl.BlockSpec((GTNp, Fp), lambda g: (g, 0)),              # node features (this step)
        pl.BlockSpec((g_tile, Np, Np), lambda g: (g, 0, 0)),     # adjacencies   (this step)
        pl.BlockSpec((None, g_tile, GTNp), lambda g: (g, 0, 0)), # block-diag readout matrix
        pl.BlockSpec((Fp, Hp), lambda g: (0, 0)),                # embedding weight
        pl.BlockSpec((1, Hp), lambda g: (0, 0)),                 # embedding bias
        pl.BlockSpec((L, Hp, Hp), lambda g: (0, 0, 0)),          # MLP linears[0] weights
        pl.BlockSpec((L, 1, Hp), lambda g: (0, 0, 0)),           # MLP linears[0] biases
        pl.BlockSpec((L, Hp, Hp), lambda g: (0, 0, 0)),          # MLP linears[1] weights
        pl.BlockSpec((L, 1, Hp), lambda g: (0, 0, 0)),           # MLP linears[1] biases
        pl.BlockSpec(memory_space=pltpu.MemorySpace.SMEM),       # eps scalars
        pl.BlockSpec((P, Hp, Cp), lambda g: (0, 0, 0)),          # prediction weights
        pl.BlockSpec((1, Cp), lambda g: (0, 0)),                 # summed prediction bias
    ]

    flops = int(2 * G * Np * Fp * Hp
                + N_LAYERS * (2 * G * Np * Np * Hp + 2 * (2 * G * Np * Hp * Hp))
                + N_PRED * (2 * g_tile * GTNp * Hp) * nsteps
                + N_PRED * 2 * G * Hp * Cp)
    bytes_accessed = int(sum(int(v.size) * v.dtype.itemsize for v in inputs)
                         + G * Cp * 4)

    out = pl.pallas_call(
        gin_forward_kernel,
        out_shape=jax.ShapeDtypeStruct((G, Cp), jnp.float32),
        grid_spec=pltpu.PrefetchScalarGridSpec(
            num_scalar_prefetch=0,
            grid=(nsteps,),
            in_specs=in_specs,
            out_specs=pl.BlockSpec((g_tile, Cp), lambda g: (g, 0)),
            scratch_shapes=[pltpu.VMEM((GTNp, Hp), jnp.float32)],   # carried node state h
        ),
        compiler_params=pltpu.CompilerParams(dimension_semantics=("parallel",)),
        cost_estimate=pl.CostEstimate(
            flops=flops, transcendentals=0, bytes_accessed=bytes_accessed),
    )(*inputs)
    return out[:, :N_CLASSES]


def gin_forward_ref(x, a, mask, params):
    """Pure-JAX reference at unpadded logical sizes, with the same bf16-matmul /
    f32-accumulate semantics as the kernel."""
    we, be, w1, b1, w2, b2, eps, wp, bp = params
    bf16, f32 = jnp.bfloat16, jnp.float32
    h = jnp.einsum('gnf,fh->gnh', x.astype(bf16), we.astype(bf16),
                   preferred_element_type=f32) + be
    reps = [h]
    for l in range(N_LAYERS):
        agg = jnp.einsum('gnm,gmh->gnh', a.astype(bf16), h.astype(bf16),
                         preferred_element_type=f32)
        hin = (1.0 + eps[l]) * h + agg
        z = jnp.maximum(jnp.einsum('gnh,hk->gnk', hin.astype(bf16), w1[l].astype(bf16),
                                   preferred_element_type=f32) + b1[l], 0.0)
        z = jnp.maximum(jnp.einsum('gnh,hk->gnk', z.astype(bf16), w2[l].astype(bf16),
                                   preferred_element_type=f32) + b2[l], 0.0)
        h = z + h
        if l + 1 < N_PRED:
            reps.append(h)
    score = jnp.zeros((x.shape[0], wp.shape[-1]), f32)
    for p in range(N_PRED):
        hg = jnp.einsum('gn,gnh->gh', mask.astype(bf16), reps[p].astype(bf16),
                        preferred_element_type=f32)
        score = score + jnp.einsum('gh,hc->gc', hg.astype(bf16), wp[p].astype(bf16),
                                   preferred_element_type=f32) + bp[p]
    return score


def make_params(key, in_dim=IN_DIM, hidden=HIDDEN, n_classes=N_CLASSES):
    """Deterministic synthetic parameters (shapes mirror Learner.varstest)."""
    ks = jax.random.split(key, 8)
    s_in = 1.0 / jnp.sqrt(jnp.float32(in_dim))
    s_h = 1.0 / jnp.sqrt(jnp.float32(hidden))
    we = jax.random.normal(ks[0], (in_dim, hidden), jnp.float32) * s_in
    be = jax.random.normal(ks[1], (hidden,), jnp.float32) * 0.01
    w1 = jax.random.normal(ks[2], (N_LAYERS, hidden, hidden), jnp.float32) * s_h
    b1 = jax.random.normal(ks[3], (N_LAYERS, hidden), jnp.float32) * 0.01
    w2 = jax.random.normal(ks[4], (N_LAYERS, hidden, hidden), jnp.float32) * s_h
    b2 = jax.random.normal(ks[5], (N_LAYERS, hidden), jnp.float32) * 0.01
    eps = jnp.zeros((N_LAYERS,), jnp.float32)               # learn_eps_GIN init = 0
    wp = jax.random.normal(ks[6], (N_PRED, hidden, n_classes), jnp.float32) * s_h
    bp = jax.random.normal(ks[7], (N_PRED, n_classes), jnp.float32) * 0.01
    return (we, be, w1, b1, w2, b2, eps, wp, bp)


if __name__ == "__main__":
    key = jax.random.PRNGKey(0)
    kx, ka, kn, kp = jax.random.split(key, 4)

    G = 16          # graphs in the batch
    NP = 64         # per-graph padded node count (MNIST superpixels ~75 nodes/graph)
    G_TILE = 8      # graphs per grid step -> grid=(2,), both v7x TCs busy; v5e/v6e fine

    # Valid-node counts per graph and the resulting sum-pool / masking row.
    n_valid = jax.random.randint(kn, (G,), NP // 2, NP + 1)
    node_mask = (jnp.arange(NP)[None, :] < n_valid[:, None]).astype(jnp.float32)   # [G, NP]

    # Node features (x, y, intensity); padded nodes zeroed.
    x = jax.random.normal(kx, (G, NP, IN_DIM), jnp.float32) * node_mask[..., None]

    # Per-graph symmetric 0/1 adjacency, no self-loops, zero on padded nodes
    # (block-diagonal structure is implicit in the per-graph layout).
    ar = jax.random.uniform(ka, (G, NP, NP))
    a = ((ar + jnp.swapaxes(ar, 1, 2)) > 1.4).astype(jnp.float32)
    a = a * (1.0 - jnp.eye(NP, dtype=jnp.float32)[None])
    a = a * node_mask[:, :, None] * node_mask[:, None, :]

    # Host-side sanity: padded nodes must have zero adjacency rows/columns, otherwise
    # the nonzero embedding bias of padded rows would leak into real nodes.
    pad = 1.0 - node_mask
    assert float(jnp.sum(jnp.abs(a) * pad[:, None, :])) == 0.0
    assert float(jnp.sum(jnp.abs(a) * pad[:, :, None])) == 0.0

    params = make_params(kp)
    prepped = prepare_params(params)        # hoisted: once per parameter update

    out = gin_forward(x, a, node_mask, prepped, g_tile=G_TILE)
    jax.block_until_ready(out)

    ref = gin_forward_ref(x, a, node_mask, params)
    assert out.shape == (G, N_CLASSES)
    assert jnp.allclose(out, ref, rtol=2e-2, atol=2e-2), "mismatch vs pure-JAX reference"

    print("KERNEL_OK")
</pallas_src>

<mosaic_0001>
module attributes {stable_mosaic.version = 11 : i64} {
  func.func @gin_forward_kernel(%arg0: i32, %arg1: memref<512x8xbf16, #tpu.memory_space<vmem>>, %arg2: memref<8x64x64xbf16, #tpu.memory_space<vmem>>, %arg3: memref<1x8x512xbf16, #tpu.memory_space<vmem>>, %arg4: memref<8x128xbf16, #tpu.memory_space<vmem>>, %arg5: memref<1x128xf32, #tpu.memory_space<vmem>>, %arg6: memref<4x128x128xbf16, #tpu.memory_space<vmem>>, %arg7: memref<4x1x128xf32, #tpu.memory_space<vmem>>, %arg8: memref<4x128x128xbf16, #tpu.memory_space<vmem>>, %arg9: memref<4x1x128xf32, #tpu.memory_space<vmem>>, %arg10: memref<4xf32, #tpu.memory_space<smem>>, %arg11: memref<3x128x128xbf16, #tpu.memory_space<vmem>>, %arg12: memref<1x128xf32, #tpu.memory_space<vmem>>, %arg13: memref<8x128xf32, #tpu.memory_space<vmem>>, %arg14: memref<512x128xf32, #tpu.memory_space<vmem>>) attributes {dimension_semantics = [#tpu.dimension_semantics<parallel>], iteration_bounds = array<i64: 2>, scalar_prefetch = 0 : i64, scratch_operands = 1 : i64, tpu.core_type = #tpu.core_type<tc>, window_params = [{transform_indices = @transform_0, window_bounds = array<i64: 512, 8>}, {transform_indices = @transform_1, window_bounds = array<i64: 8, 64, 64>}, {transform_indices = @transform_2, window_bounds = array<i64: 1, 8, 512>}, {pipeline_mode = #tpu.pipeline_mode<synchronous>, transform_indices = @transform_3, window_bounds = array<i64: 8, 128>}, {pipeline_mode = #tpu.pipeline_mode<synchronous>, transform_indices = @transform_4, window_bounds = array<i64: 1, 128>}, {pipeline_mode = #tpu.pipeline_mode<synchronous>, transform_indices = @transform_5, window_bounds = array<i64: 4, 128, 128>}, {pipeline_mode = #tpu.pipeline_mode<synchronous>, transform_indices = @transform_6, window_bounds = array<i64: 4, 1, 128>}, {pipeline_mode = #tpu.pipeline_mode<synchronous>, transform_indices = @transform_7, window_bounds = array<i64: 4, 128, 128>}, {pipeline_mode = #tpu.pipeline_mode<synchronous>, transform_indices = @transform_8, window_bounds = array<i64: 4, 1, 128>}, {transform_indices = @transform_9, window_bounds = array<i64: 4>}, {pipeline_mode = #tpu.pipeline_mode<synchronous>, transform_indices = @transform_10, window_bounds = array<i64: 3, 128, 128>}, {pipeline_mode = #tpu.pipeline_mode<synchronous>, transform_indices = @transform_11, window_bounds = array<i64: 1, 128>}, {transform_indices = @transform_12, window_bounds = array<i64: 8, 128>}]} {
    %c0 = arith.constant 0 : index
    %c0_0 = arith.constant 0 : index
    %0 = vector.load %arg1[%c0, %c0_0] : memref<512x8xbf16, #tpu.memory_space<vmem>>, vector<512x8xbf16>
    %c0_1 = arith.constant 0 : index
    %c0_2 = arith.constant 0 : index
    %1 = vector.load %arg4[%c0_1, %c0_2] : memref<8x128xbf16, #tpu.memory_space<vmem>>, vector<8x128xbf16>
    %cst = arith.constant dense<0.000000e+00> : vector<512x128xf32>
    %2 = tpu.matmul %0, %1, %cst {dimension_numbers = #tpu.dot_dimension_numbers<[1], [0], [0], [1], [0, 0, 1, 1], [], []>} : vector<512x8xbf16>, vector<8x128xbf16>, vector<512x128xf32> -> vector<512x128xf32>
    %c0_3 = arith.constant 0 : index
    %c0_4 = arith.constant 0 : index
    %3 = vector.load %arg5[%c0_3, %c0_4] : memref<1x128xf32, #tpu.memory_space<vmem>>, vector<1x128xf32>
    %4 = vector.broadcast %3 : vector<1x128xf32> to vector<512x128xf32>
    %5 = arith.addf %2, %4 : vector<512x128xf32>
    %c0_5 = arith.constant 0 : index
    %c0_6 = arith.constant 0 : index
    %6 = vector.load %arg14[%c0_5, %c0_6] : memref<512x128xf32, #tpu.memory_space<vmem>>, vector<512x128xf32>
    tpu.vector_store %arg14[%c0_5, %c0_6], %5 {strides = array<i32>} : memref<512x128xf32, #tpu.memory_space<vmem>>, vector<512x128xf32>,
    %c0_7 = arith.constant 0 : index
    %c0_8 = arith.constant 0 : index
    %c0_9 = arith.constant 0 : index
    %7 = vector.load %arg3[%c0_7, %c0_8, %c0_9] : memref<1x8x512xbf16, #tpu.memory_space<vmem>>, vector<1x8x512xbf16>
    %8 = vector.shape_cast %7 : vector<1x8x512xbf16> to vector<8x512xbf16>
    %c0_10 = arith.constant 0 : index
    %c0_11 = arith.constant 0 : index
    %9 = vector.load %arg14[%c0_10, %c0_11] : memref<512x128xf32, #tpu.memory_space<vmem>>, vector<512x128xf32>
    %10 = arith.truncf %9 : vector<512x128xf32> to vector<512x128xbf16>
    %cst_12 = arith.constant dense<0.000000e+00> : vector<8x128xf32>
    %11 = tpu.matmul %8, %10, %cst_12 {dimension_numbers = #tpu.dot_dimension_numbers<[1], [0], [0], [1], [0, 0, 1, 1], [], []>} : vector<8x512xbf16>, vector<512x128xbf16>, vector<8x128xf32> -> vector<8x128xf32>
    %12 = arith.truncf %11 : vector<8x128xf32> to vector<8x128xbf16>
    %c0_13 = arith.constant 0 : index
    %c0_14 = arith.constant 0 : index
    %c0_15 = arith.constant 0 : index
    %13 = vector.load %arg11[%c0_13, %c0_14, %c0_15] : memref<3x128x128xbf16, #tpu.memory_space<vmem>>, vector<1x128x128xbf16>
    %14 = vector.shape_cast %13 : vector<1x128x128xbf16> to vector<128x128xbf16>
    %cst_16 = arith.constant dense<0.000000e+00> : vector<8x128xf32>
    %15 = tpu.matmul %12, %14, %cst_16 {dimension_numbers = #tpu.dot_dimension_numbers<[1], [0], [0], [1], [0, 0, 1, 1], [], []>} : vector<8x128xbf16>, vector<128x128xbf16>, vector<8x128xf32> -> vector<8x128xf32>
    %c0_17 = arith.constant 0 : index
    %c0_18 = arith.constant 0 : index
    %c0_19 = arith.constant 0 : index
    %16 = vector.load %arg2[%c0_17, %c0_18, %c0_19] : memref<8x64x64xbf16, #tpu.memory_space<vmem>>, vector<8x64x64xbf16>
    %c0_20 = arith.constant 0 : index
    %c0_21 = arith.constant 0 : index
    %17 = vector.load %arg14[%c0_20, %c0_21] : memref<512x128xf32, #tpu.memory_space<vmem>>, vector<512x128xf32>
    %18 = arith.truncf %17 : vector<512x128xf32> to vector<512x128xbf16>
    %19 = vector.shape_cast %18 : vector<512x128xbf16> to vector<8x64x128xbf16>
    "tpu.trace_start"() <{level = 10 : i32, message = "gnm,gmh->gnh"}> : () -> ()
    %cst_22 = arith.constant dense<0.000000e+00> : vector<8x64x128xf32>
    %20 = tpu.matmul %16, %19, %cst_22 {dimension_numbers = #tpu.dot_dimension_numbers<[2], [1], [1], [2], [0, 0, 0, 1, 1, 2], [0], [0]>} : vector<8x64x64xbf16>, vector<8x64x128xbf16>, vector<8x64x128xf32> -> vector<8x64x128xf32>
    "tpu.trace_stop"() : () -> ()
    %21 = vector.shape_cast %20 : vector<8x64x128xf32> to vector<512x128xf32>
    %c0_23 = arith.constant 0 : index
    %22 = memref.load %arg10[%c0_23] : memref<4xf32, #tpu.memory_space<smem>>
    %cst_24 = arith.constant 1.000000e+00 : f32
    %23 = arith.addf %cst_24, %22 : f32
    %24 = vector.broadcast %23 : f32 to vector<512x128xf32>
    %25 = arith.mulf %24, %17 : vector<512x128xf32>
    %26 = arith.addf %25, %21 : vector<512x128xf32>
    %27 = arith.truncf %26 : vector<512x128xf32> to vector<512x128xbf16>
    %c0_25 = arith.constant 0 : index
    %c0_26 = arith.constant 0 : index
    %c0_27 = arith.constant 0 : index
    %28 = vector.load %arg6[%c0_25, %c0_26, %c0_27] : memref<4x128x128xbf16, #tpu.memory_space<vmem>>, vector<1x128x128xbf16>
    %29 = vector.shape_cast %28 : vector<1x128x128xbf16> to vector<128x128xbf16>
    %cst_28 = arith.constant dense<0.000000e+00> : vector<512x128xf32>
    %30 = tpu.matmul %27, %29, %cst_28 {dimension_numbers = #tpu.dot_dimension_numbers<[1], [0], [0], [1], [0, 0, 1, 1], [], []>} : vector<512x128xbf16>, vector<128x128xbf16>, vector<512x128xf32> -> vector<512x128xf32>
    %c0_29 = arith.constant 0 : index
    %c0_30 = arith.constant 0 : index
    %c0_31 = arith.constant 0 : index
    %31 = vector.load %arg7[%c0_29, %c0_30, %c0_31] : memref<4x1x128xf32, #tpu.memory_space<vmem>>, vector<1x1x128xf32>
    %32 = vector.shape_cast %31 : vector<1x1x128xf32> to vector<1x128xf32>
    %33 = vector.broadcast %32 : vector<1x128xf32> to vector<512x128xf32>
    %34 = arith.addf %30, %33 : vector<512x128xf32>
    %cst_32 = arith.constant 0.000000e+00 : f32
    %35 = vector.broadcast %cst_32 : f32 to vector<512x128xf32>
    %36 = arith.maximumf %34, %35 : vector<512x128xf32>
    %37 = arith.truncf %36 : vector<512x128xf32> to vector<512x128xbf16>
    %c0_33 = arith.constant 0 : index
    %c0_34 = arith.constant 0 : index
    %c0_35 = arith.constant 0 : index
    %38 = vector.load %arg8[%c0_33, %c0_34, %c0_35] : memref<4x128x128xbf16, #tpu.memory_space<vmem>>, vector<1x128x128xbf16>
    %39 = vector.shape_cast %38 : vector<1x128x128xbf16> to vector<128x128xbf16>
    %cst_36 = arith.constant dense<0.000000e+00> : vector<512x128xf32>
    %40 = tpu.matmul %37, %39, %cst_36 {dimension_numbers = #tpu.dot_dimension_numbers<[1], [0], [0], [1], [0, 0, 1, 1], [], []>} : vector<512x128xbf16>, vector<128x128xbf16>, vector<512x128xf32> -> vector<512x128xf32>
    %c0_37 = arith.constant 0 : index
    %c0_38 = arith.constant 0 : index
    %c0_39 = arith.constant 0 : index
    %41 = vector.load %arg9[%c0_37, %c0_38, %c0_39] : memref<4x1x128xf32, #tpu.memory_space<vmem>>, vector<1x1x128xf32>
    %42 = vector.shape_cast %41 : vector<1x1x128xf32> to vector<1x128xf32>
    %43 = vector.broadcast %42 : vector<1x128xf32> to vector<512x128xf32>
    %44 = arith.addf %40, %43 : vector<512x128xf32>
    %cst_40 = arith.constant 0.000000e+00 : f32
    %45 = vector.broadcast %cst_40 : f32 to vector<512x128xf32>
    %46 = arith.maximumf %44, %45 : vector<512x128xf32>
    %47 = arith.addf %46, %17 : vector<512x128xf32>
    %c0_41 = arith.constant 0 : index
    %c0_42 = arith.constant 0 : index
    %48 = vector.load %arg14[%c0_41, %c0_42] : memref<512x128xf32, #tpu.memory_space<vmem>>, vector<512x128xf32>
    tpu.vector_store %arg14[%c0_41, %c0_42], %47 {strides = array<i32>} : memref<512x128xf32, #tpu.memory_space<vmem>>, vector<512x128xf32>,
    %c0_43 = arith.constant 0 : index
    %c0_44 = arith.constant 0 : index
    %49 = vector.load %arg14[%c0_43, %c0_44] : memref<512x128xf32, #tpu.memory_space<vmem>>, vector<512x128xf32>
    %50 = arith.truncf %49 : vector<512x128xf32> to vector<512x128xbf16>
    %cst_45 = arith.constant dense<0.000000e+00> : vector<8x128xf32>
    %51 = tpu.matmul %8, %50, %cst_45 {dimension_numbers = #tpu.dot_dimension_numbers<[1], [0], [0], [1], [0, 0, 1, 1], [], []>} : vector<8x512xbf16>, vector<512x128xbf16>, vector<8x128xf32> -> vector<8x128xf32>
    %52 = arith.truncf %51 : vector<8x128xf32> to vector<8x128xbf16>
    %c1 = arith.constant 1 : index
    %c0_46 = arith.constant 0 : index
    %c0_47 = arith.constant 0 : index
    %53 = vector.load %arg11[%c1, %c0_46, %c0_47] : memref<3x128x128xbf16, #tpu.memory_space<vmem>>, vector<1x128x128xbf16>
    %54 = vector.shape_cast %53 : vector<1x128x128xbf16> to vector<128x128xbf16>
    %cst_48 = arith.constant dense<0.000000e+00> : vector<8x128xf32>
    %55 = tpu.matmul %52, %54, %cst_48 {dimension_numbers = #tpu.dot_dimension_numbers<[1], [0], [0], [1], [0, 0, 1, 1], [], []>} : vector<8x128xbf16>, vector<128x128xbf16>, vector<8x128xf32> -> vector<8x128xf32>
    %56 = arith.addf %15, %55 : vector<8x128xf32>
    %c0_49 = arith.constant 0 : index
    %c0_50 = arith.constant 0 : index
    %57 = vector.load %arg14[%c0_49, %c0_50] : memref<512x128xf32, #tpu.memory_space<vmem>>, vector<512x128xf32>
    %58 = arith.truncf %57 : vector<512x128xf32> to vector<512x128xbf16>
    %59 = vector.shape_cast %58 : vector<512x128xbf16> to vector<8x64x128xbf16>
    "tpu.trace_start"() <{level = 10 : i32, message = "gnm,gmh->gnh"}> : () -> ()
    %cst_51 = arith.constant dense<0.000000e+00> : vector<8x64x128xf32>
    %60 = tpu.matmul %16, %59, %cst_51 {dimension_numbers = #tpu.dot_dimension_numbers<[2], [1], [1], [2], [0, 0, 0, 1, 1, 2], [0], [0]>} : vector<8x64x64xbf16>, vector<8x64x128xbf16>, vector<8x64x128xf32> -> vector<8x64x128xf32>
    "tpu.trace_stop"() : () -> ()
    %61 = vector.shape_cast %60 : vector<8x64x128xf32> to vector<512x128xf32>
    %c1_52 = arith.constant 1 : index
    %62 = memref.load %arg10[%c1_52] : memref<4xf32, #tpu.memory_space<smem>>
    %cst_53 = arith.constant 1.000000e+00 : f32
    %63 = arith.addf %cst_53, %62 : f32
    %64 = vector.broadcast %63 : f32 to vector<512x128xf32>
    %65 = arith.mulf %64, %57 : vector<512x128xf32>
    %66 = arith.addf %65, %61 : vector<512x128xf32>
    %67 = arith.truncf %66 : vector<512x128xf32> to vector<512x128xbf16>
    %c1_54 = arith.constant 1 : index
    %c0_55 = arith.constant 0 : index
    %c0_56 = arith.constant 0 : index
    %68 = vector.load %arg6[%c1_54, %c0_55, %c0_56] : memref<4x128x128xbf16, #tpu.memory_space<vmem>>, vector<1x128x128xbf16>
    %69 = vector.shape_cast %68 : vector<1x128x128xbf16> to vector<128x128xbf16>
    %cst_57 = arith.constant dense<0.000000e+00> : vector<512x128xf32>
    %70 = tpu.matmul %67, %69, %cst_57 {dimension_numbers = #tpu.dot_dimension_numbers<[1], [0], [0], [1], [0, 0, 1, 1], [], []>} : vector<512x128xbf16>, vector<128x128xbf16>, vector<512x128xf32> -> vector<512x128xf32>
    %c1_58 = arith.constant 1 : index
    %c0_59 = arith.constant 0 : index
    %c0_60 = arith.constant 0 : index
    %71 = vector.load %arg7[%c1_58, %c0_59, %c0_60] : memref<4x1x128xf32, #tpu.memory_space<vmem>>, vector<1x1x128xf32>
    %72 = vector.shape_cast %71 : vector<1x1x128xf32> to vector<1x128xf32>
    %73 = vector.broadcast %72 : vector<1x128xf32> to vector<512x128xf32>
    %74 = arith.addf %70, %73 : vector<512x128xf32>
    %cst_61 = arith.constant 0.000000e+00 : f32
    %75 = vector.broadcast %cst_61 : f32 to vector<512x128xf32>
    %76 = arith.maximumf %74, %75 : vector<512x128xf32>
    %77 = arith.truncf %76 : vector<512x128xf32> to vector<512x128xbf16>
    %c1_62 = arith.constant 1 : index
    %c0_63 = arith.constant 0 : index
    %c0_64 = arith.constant 0 : index
    %78 = vector.load %arg8[%c1_62, %c0_63, %c0_64] : memref<4x128x128xbf16, #tpu.memory_space<vmem>>, vector<1x128x128xbf16>
    %79 = vector.shape_cast %78 : vector<1x128x128xbf16> to vector<128x128xbf16>
    %cst_65 = arith.constant dense<0.000000e+00> : vector<512x128xf32>
    %80 = tpu.matmul %77, %79, %cst_65 {dimension_numbers = #tpu.dot_dimension_numbers<[1], [0], [0], [1], [0, 0, 1, 1], [], []>} : vector<512x128xbf16>, vector<128x128xbf16>, vector<512x128xf32> -> vector<512x128xf32>
    %c1_66 = arith.constant 1 : index
    %c0_67 = arith.constant 0 : index
    %c0_68 = arith.constant 0 : index
    %81 = vector.load %arg9[%c1_66, %c0_67, %c0_68] : memref<4x1x128xf32, #tpu.memory_space<vmem>>, vector<1x1x128xf32>
    %82 = vector.shape_cast %81 : vector<1x1x128xf32> to vector<1x128xf32>
    %83 = vector.broadcast %82 : vector<1x128xf32> to vector<512x128xf32>
    %84 = arith.addf %80, %83 : vector<512x128xf32>
    %cst_69 = arith.constant 0.000000e+00 : f32
    %85 = vector.broadcast %cst_69 : f32 to vector<512x128xf32>
    %86 = arith.maximumf %84, %85 : vector<512x128xf32>
    %87 = arith.addf %86, %57 : vector<512x128xf32>
    %c0_70 = arith.constant 0 : index
    %c0_71 = arith.constant 0 : index
    %88 = vector.load %arg14[%c0_70, %c0_71] : memref<512x128xf32, #tpu.memory_space<vmem>>, vector<512x128xf32>
    tpu.vector_store %arg14[%c0_70, %c0_71], %87 {strides = array<i32>} : memref<512x128xf32, #tpu.memory_space<vmem>>, vector<512x128xf32>,
    %c0_72 = arith.constant 0 : index
    %c0_73 = arith.constant 0 : index
    %89 = vector.load %arg14[%c0_72, %c0_73] : memref<512x128xf32, #tpu.memory_space<vmem>>, vector<512x128xf32>
    %90 = arith.truncf %89 : vector<512x128xf32> to vector<512x128xbf16>
    %cst_74 = arith.constant dense<0.000000e+00> : vector<8x128xf32>
    %91 = tpu.matmul %8, %90, %cst_74 {dimension_numbers = #tpu.dot_dimension_numbers<[1], [0], [0], [1], [0, 0, 1, 1], [], []>} : vector<8x512xbf16>, vector<512x128xbf16>, vector<8x128xf32> -> vector<8x128xf32>
    %92 = arith.truncf %91 : vector<8x128xf32> to vector<8x128xbf16>
    %c2 = arith.constant 2 : index
    %c0_75 = arith.constant 0 : index
    %c0_76 = arith.constant 0 : index
    %93 = vector.load %arg11[%c2, %c0_75, %c0_76] : memref<3x128x128xbf16, #tpu.memory_space<vmem>>, vector<1x128x128xbf16>
    %94 = vector.shape_cast %93 : vector<1x128x128xbf16> to vector<128x128xbf16>
    %cst_77 = arith.constant dense<0.000000e+00> : vector<8x128xf32>
    %95 = tpu.matmul %92, %94, %cst_77 {dimension_numbers = #tpu.dot_dimension_numbers<[1], [0], [0], [1], [0, 0, 1, 1], [], []>} : vector<8x128xbf16>, vector<128x128xbf16>, vector<8x128xf32> -> vector<8x128xf32>
    %96 = arith.addf %56, %95 : vector<8x128xf32>
    %c0_78 = arith.constant 0 : index
    %c0_79 = arith.constant 0 : index
    %97 = vector.load %arg14[%c0_78, %c0_79] : memref<512x128xf32, #tpu.memory_space<vmem>>, vector<512x128xf32>
    %98 = arith.truncf %97 : vector<512x128xf32> to vector<512x128xbf16>
    %99 = vector.shape_cast %98 : vector<512x128xbf16> to vector<8x64x128xbf16>
    "tpu.trace_start"() <{level = 10 : i32, message = "gnm,gmh->gnh"}> : () -> ()
    %cst_80 = arith.constant dense<0.000000e+00> : vector<8x64x128xf32>
    %100 = tpu.matmul %16, %99, %cst_80 {dimension_numbers = #tpu.dot_dimension_numbers<[2], [1], [1], [2], [0, 0, 0, 1, 1, 2], [0], [0]>} : vector<8x64x64xbf16>, vector<8x64x128xbf16>, vector<8x64x128xf32> -> vector<8x64x128xf32>
    "tpu.trace_stop"() : () -> ()
    %101 = vector.shape_cast %100 : vector<8x64x128xf32> to vector<512x128xf32>
    %c2_81 = arith.constant 2 : index
    %102 = memref.load %arg10[%c2_81] : memref<4xf32, #tpu.memory_space<smem>>
    %cst_82 = arith.constant 1.000000e+00 : f32
    %103 = arith.addf %cst_82, %102 : f32
    %104 = vector.broadcast %103 : f32 to vector<512x128xf32>
    %105 = arith.mulf %104, %97 : vector<512x128xf32>
    %106 = arith.addf %105, %101 : vector<512x128xf32>
    %107 = arith.truncf %106 : vector<512x128xf32> to vector<512x128xbf16>
    %c2_83 = arith.constant 2 : index
    %c0_84 = arith.constant 0 : index
    %c0_85 = arith.constant 0 : index
    %108 = vector.load %arg6[%c2_83, %c0_84, %c0_85] : memref<4x128x128xbf16, #tpu.memory_space<vmem>>, vector<1x128x128xbf16>
    %109 = vector.shape_cast %108 : vector<1x128x128xbf16> to vector<128x128xbf16>
    %cst_86 = arith.constant dense<0.000000e+00> : vector<512x128xf32>
    %110 = tpu.matmul %107, %109, %cst_86 {dimension_numbers = #tpu.dot_dimension_numbers<[1], [0], [0], [1], [0, 0, 1, 1], [], []>} : vector<512x128xbf16>, vector<128x128xbf16>, vector<512x128xf32> -> vector<512x128xf32>
    %c2_87 = arith.constant 2 : index
    %c0_88 = arith.constant 0 : index
    %c0_89 = arith.constant 0 : index
    %111 = vector.load %arg7[%c2_87, %c0_88, %c0_89] : memref<4x1x128xf32, #tpu.memory_space<vmem>>, vector<1x1x128xf32>
    %112 = vector.shape_cast %111 : vector<1x1x128xf32> to vector<1x128xf32>
    %113 = vector.broadcast %112 : vector<1x128xf32> to vector<512x128xf32>
    %114 = arith.addf %110, %113 : vector<512x128xf32>
    %cst_90 = arith.constant 0.000000e+00 : f32
    %115 = vector.broadcast %cst_90 : f32 to vector<512x128xf32>
    %116 = arith.maximumf %114, %115 : vector<512x128xf32>
    %117 = arith.truncf %116 : vector<512x128xf32> to vector<512x128xbf16>
    %c2_91 = arith.constant 2 : index
    %c0_92 = arith.constant 0 : index
    %c0_93 = arith.constant 0 : index
    %118 = vector.load %arg8[%c2_91, %c0_92, %c0_93] : memref<4x128x128xbf16, #tpu.memory_space<vmem>>, vector<1x128x128xbf16>
    %119 = vector.shape_cast %118 : vector<1x128x128xbf16> to vector<128x128xbf16>
    %cst_94 = arith.constant dense<0.000000e+00> : vector<512x128xf32>
    %120 = tpu.matmul %117, %119, %cst_94 {dimension_numbers = #tpu.dot_dimension_numbers<[1], [0], [0], [1], [0, 0, 1, 1], [], []>} : vector<512x128xbf16>, vector<128x128xbf16>, vector<512x128xf32> -> vector<512x128xf32>
    %c2_95 = arith.constant 2 : index
    %c0_96 = arith.constant 0 : index
    %c0_97 = arith.constant 0 : index
    %121 = vector.load %arg9[%c2_95, %c0_96, %c0_97] : memref<4x1x128xf32, #tpu.memory_space<vmem>>, vector<1x1x128xf32>
    %122 = vector.shape_cast %121 : vector<1x1x128xf32> to vector<1x128xf32>
    %123 = vector.broadcast %122 : vector<1x128xf32> to vector<512x128xf32>
    %124 = arith.addf %120, %123 : vector<512x128xf32>
    %cst_98 = arith.constant 0.000000e+00 : f32
    %125 = vector.broadcast %cst_98 : f32 to vector<512x128xf32>
    %126 = arith.maximumf %124, %125 : vector<512x128xf32>
    %127 = arith.addf %126, %97 : vector<512x128xf32>
    %c0_99 = arith.constant 0 : index
    %c0_100 = arith.constant 0 : index
    %128 = vector.load %arg14[%c0_99, %c0_100] : memref<512x128xf32, #tpu.memory_space<vmem>>, vector<512x128xf32>
    tpu.vector_store %arg14[%c0_99, %c0_100], %127 {strides = array<i32>} : memref<512x128xf32, #tpu.memory_space<vmem>>, vector<512x128xf32>,
    %c0_101 = arith.constant 0 : index
    %c0_102 = arith.constant 0 : index
    %129 = vector.load %arg14[%c0_101, %c0_102] : memref<512x128xf32, #tpu.memory_space<vmem>>, vector<512x128xf32>
    %130 = arith.truncf %129 : vector<512x128xf32> to vector<512x128xbf16>
    %131 = vector.shape_cast %130 : vector<512x128xbf16> to vector<8x64x128xbf16>
    "tpu.trace_start"() <{level = 10 : i32, message = "gnm,gmh->gnh"}> : () -> ()
    %cst_103 = arith.constant dense<0.000000e+00> : vector<8x64x128xf32>
    %132 = tpu.matmul %16, %131, %cst_103 {dimension_numbers = #tpu.dot_dimension_numbers<[2], [1], [1], [2], [0, 0, 0, 1, 1, 2], [0], [0]>} : vector<8x64x64xbf16>, vector<8x64x128xbf16>, vector<8x64x128xf32> -> vector<8x64x128xf32>
    "tpu.trace_stop"() : () -> ()
    %133 = vector.shape_cast %132 : vector<8x64x128xf32> to vector<512x128xf32>
    %c3 = arith.constant 3 : index
    %134 = memref.load %arg10[%c3] : memref<4xf32, #tpu.memory_space<smem>>
    %cst_104 = arith.constant 1.000000e+00 : f32
    %135 = arith.addf %cst_104, %134 : f32
    %136 = vector.broadcast %135 : f32 to vector<512x128xf32>
    %137 = arith.mulf %136, %129 : vector<512x128xf32>
    %138 = arith.addf %137, %133 : vector<512x128xf32>
    %139 = arith.truncf %138 : vector<512x128xf32> to vector<512x128xbf16>
    %c3_105 = arith.constant 3 : index
    %c0_106 = arith.constant 0 : index
    %c0_107 = arith.constant 0 : index
    %140 = vector.load %arg6[%c3_105, %c0_106, %c0_107] : memref<4x128x128xbf16, #tpu.memory_space<vmem>>, vector<1x128x128xbf16>
    %141 = vector.shape_cast %140 : vector<1x128x128xbf16> to vector<128x128xbf16>
    %cst_108 = arith.constant dense<0.000000e+00> : vector<512x128xf32>
    %142 = tpu.matmul %139, %141, %cst_108 {dimension_numbers = #tpu.dot_dimension_numbers<[1], [0], [0], [1], [0, 0, 1, 1], [], []>} : vector<512x128xbf16>, vector<128x128xbf16>, vector<512x128xf32> -> vector<512x128xf32>
    %c3_109 = arith.constant 3 : index
    %c0_110 = arith.constant 0 : index
    %c0_111 = arith.constant 0 : index
    %143 = vector.load %arg7[%c3_109, %c0_110, %c0_111] : memref<4x1x128xf32, #tpu.memory_space<vmem>>, vector<1x1x128xf32>
    %144 = vector.shape_cast %143 : vector<1x1x128xf32> to vector<1x128xf32>
    %145 = vector.broadcast %144 : vector<1x128xf32> to vector<512x128xf32>
    %146 = arith.addf %142, %145 : vector<512x128xf32>
    %cst_112 = arith.constant 0.000000e+00 : f32
    %147 = vector.broadcast %cst_112 : f32 to vector<512x128xf32>
    %148 = arith.maximumf %146, %147 : vector<512x128xf32>
    %149 = arith.truncf %148 : vector<512x128xf32> to vector<512x128xbf16>
    %c3_113 = arith.constant 3 : index
    %c0_114 = arith.constant 0 : index
    %c0_115 = arith.constant 0 : index
    %150 = vector.load %arg8[%c3_113, %c0_114, %c0_115] : memref<4x128x128xbf16, #tpu.memory_space<vmem>>, vector<1x128x128xbf16>
    %151 = vector.shape_cast %150 : vector<1x128x128xbf16> to vector<128x128xbf16>
    %cst_116 = arith.constant dense<0.000000e+00> : vector<512x128xf32>
    %152 = tpu.matmul %149, %151, %cst_116 {dimension_numbers = #tpu.dot_dimension_numbers<[1], [0], [0], [1], [0, 0, 1, 1], [], []>} : vector<512x128xbf16>, vector<128x128xbf16>, vector<512x128xf32> -> vector<512x128xf32>
    %c3_117 = arith.constant 3 : index
    %c0_118 = arith.constant 0 : index
    %c0_119 = arith.constant 0 : index
    %153 = vector.load %arg9[%c3_117, %c0_118, %c0_119] : memref<4x1x128xf32, #tpu.memory_space<vmem>>, vector<1x1x128xf32>
    %154 = vector.shape_cast %153 : vector<1x1x128xf32> to vector<1x128xf32>
    %155 = vector.broadcast %154 : vector<1x128xf32> to vector<512x128xf32>
    %156 = arith.addf %152, %155 : vector<512x128xf32>
    %cst_120 = arith.constant 0.000000e+00 : f32
    %157 = vector.broadcast %cst_120 : f32 to vector<512x128xf32>
    %158 = arith.maximumf %156, %157 : vector<512x128xf32>
    %159 = arith.addf %158, %129 : vector<512x128xf32>
    %c0_121 = arith.constant 0 : index
    %c0_122 = arith.constant 0 : index
    %160 = vector.load %arg14[%c0_121, %c0_122] : memref<512x128xf32, #tpu.memory_space<vmem>>, vector<512x128xf32>
    tpu.vector_store %arg14[%c0_121, %c0_122], %159 {strides = array<i32>} : memref<512x128xf32, #tpu.memory_space<vmem>>, vector<512x128xf32>,
    %c0_123 = arith.constant 0 : index
    %c0_124 = arith.constant 0 : index
    %161 = vector.load %arg12[%c0_123, %c0_124] : memref<1x128xf32, #tpu.memory_space<vmem>>, vector<1x128xf32>
    %162 = vector.broadcast %161 : vector<1x128xf32> to vector<8x128xf32>
    %163 = arith.addf %96, %162 : vector<8x128xf32>
    %c0_125 = arith.constant 0 : index
    %c0_126 = arith.constant 0 : index
    %164 = vector.load %arg13[%c0_125, %c0_126] : memref<8x128xf32, #tpu.memory_space<vmem>>, vector<8x128xf32>
    tpu.vector_store %arg13[%c0_125, %c0_126], %163 {strides = array<i32>} : memref<8x128xf32, #tpu.memory_space<vmem>>, vector<8x128xf32>,
    return
  }
  func.func @transform_0(%arg0: i32) -> (i32, i32) {
    %c0_i32 = arith.constant 0 : i32
    %c0_i32_0 = arith.constant 0 : i32
    return %arg0, %c0_i32 : i32, i32
  }
  func.func @transform_1(%arg0: i32) -> (i32, i32, i32) {
    %c0_i32 = arith.constant 0 : i32
    %c0_i32_0 = arith.constant 0 : i32
    %c0_i32_1 = arith.constant 0 : i32
    return %arg0, %c0_i32, %c0_i32_0 : i32, i32, i32
  }
  func.func @transform_2(%arg0: i32) -> (i32, i32, i32) {
    %c0_i32 = arith.constant 0 : i32
    %c0_i32_0 = arith.constant 0 : i32
    %c0_i32_1 = arith.constant 0 : i32
    return %arg0, %c0_i32, %c0_i32_0 : i32, i32, i32
  }
  func.func @transform_3(%arg0: i32) -> (i32, i32) {
    %c0_i32 = arith.constant 0 : i32
    %c0_i32_0 = arith.constant 0 : i32
    %c0_i32_1 = arith.constant 0 : i32
    return %c0_i32, %c0_i32_0 : i32, i32
  }
  func.func @transform_4(%arg0: i32) -> (i32, i32) {
    %c0_i32 = arith.constant 0 : i32
    %c0_i32_0 = arith.constant 0 : i32
    %c0_i32_1 = arith.constant 0 : i32
    return %c0_i32, %c0_i32_0 : i32, i32
  }
  func.func @transform_5(%arg0: i32) -> (i32, i32, i32) {
    %c0_i32 = arith.constant 0 : i32
    %c0_i32_0 = arith.constant 0 : i32
    %c0_i32_1 = arith.constant 0 : i32
    %c0_i32_2 = arith.constant 0 : i32
    return %c0_i32, %c0_i32_0, %c0_i32_1 : i32, i32, i32
  }
  func.func @transform_6(%arg0: i32) -> (i32, i32, i32) {
    %c0_i32 = arith.constant 0 : i32
    %c0_i32_0 = arith.constant 0 : i32
    %c0_i32_1 = arith.constant 0 : i32
    %c0_i32_2 = arith.constant 0 : i32
    return %c0_i32, %c0_i32_0, %c0_i32_1 : i32, i32, i32
  }
  func.func @transform_7(%arg0: i32) -> (i32, i32, i32) {
    %c0_i32 = arith.constant 0 : i32
    %c0_i32_0 = arith.constant 0 : i32
    %c0_i32_1 = arith.constant 0 : i32
    %c0_i32_2 = arith.constant 0 : i32
    return %c0_i32, %c0_i32_0, %c0_i32_1 : i32, i32, i32
  }
  func.func @transform_8(%arg0: i32) -> (i32, i32, i32) {
    %c0_i32 = arith.constant 0 : i32
    %c0_i32_0 = arith.constant 0 : i32
    %c0_i32_1 = arith.constant 0 : i32
    %c0_i32_2 = arith.constant 0 : i32
    return %c0_i32, %c0_i32_0, %c0_i32_1 : i32, i32, i32
  }
  func.func @transform_9(%arg0: i32) -> i32 {
    %c0_i32 = arith.constant 0 : i32
    %c0_i32_0 = arith.constant 0 : i32
    return %c0_i32 : i32
  }
  func.func @transform_10(%arg0: i32) -> (i32, i32, i32) {
    %c0_i32 = arith.constant 0 : i32
    %c0_i32_0 = arith.constant 0 : i32
    %c0_i32_1 = arith.constant 0 : i32
    %c0_i32_2 = arith.constant 0 : i32
    return %c0_i32, %c0_i32_0, %c0_i32_1 : i32, i32, i32
  }
  func.func @transform_11(%arg0: i32) -> (i32, i32) {
    %c0_i32 = arith.constant 0 : i32
    %c0_i32_0 = arith.constant 0 : i32
    %c0_i32_1 = arith.constant 0 : i32
    return %c0_i32, %c0_i32_0 : i32, i32
  }
  func.func @transform_12(%arg0: i32) -> (i32, i32) {
    %c0_i32 = arith.constant 0 : i32
    %c0_i32_0 = arith.constant 0 : i32
    return %arg0, %c0_i32 : i32, i32
  }
}

</mosaic_0001>

<bundles_post_ra>
// kernel: gin_forward.1
= control target key start
LH: loop header
LB: loop body
LE: loop exit
PB: predicated region body
PF: predicated region fallthrough
CT: control target
= control target key end

     0   :  { %s16174_s0 = inlined_call_operand.vmem [shape: bf16[1024,8], index: 0, kind: input, shape index: {}]   ;;  %s16175_s1 = inlined_call_operand.vmem [shape: bf16[16,64,64], index: 1, kind: input, shape index: {}]   ;;  %s16176_s2 = inlined_call_operand.vmem [shape: bf16[2,8,512], index: 2, kind: input, shape index: {}]   ;;  %s16177_s3 = inlined_call_operand.vmem [shape: bf16[8,128], index: 3, kind: input, shape index: {}]   ;;  %s16178_s4 = inlined_call_operand.vmem [shape: f32[1,128], index: 4, kind: input, shape index: {}]   ;;  %s16179_s5 = inlined_call_operand.vmem [shape: bf16[4,128,128], index: 5, kind: input, shape index: {}]   ;;  %s16180_s6 = inlined_call_operand.vmem [shape: f32[4,1,128], index: 6, kind: input, shape index: {}]   ;;  %s16181_s7 = inlined_call_operand.vmem [shape: bf16[4,128,128], index: 7, kind: input, shape index: {}]   ;;  %s16182_s8 = inlined_call_operand.vmem [shape: f32[4,1,128], index: 8, kind: input, shape index: {}]   ;;  %s16183_s9 = inlined_call_operand.vmem [shape: f32[4], index: 9, kind: input, shape index: {}]   ;;  %s16184_s10 = inlined_call_operand.vmem [shape: bf16[3,128,128], index: 10, kind: input, shape index: {}]   ;;  %s16185_s11 = inlined_call_operand.vmem [shape: f32[1,128], index: 11, kind: input, shape index: {}]   ;;  %s16186_s12 = inlined_call_operand.hbm [shape: f32[16,128], index: 12, kind: output, shape index: {}]  }
   0x1   :  { %16501 = sst [smem:[#allocation79_spill]] %s16174_s0 }
   0x2   :  { %16502 = sst [smem:[#allocation80_spill]] %s16175_s1 }
   0x3   :  { %16503 = sst [smem:[#allocation81_spill]] %s16176_s2 }
   0x4   :  { %16504 = sst [smem:[#allocation82_spill]] %s16177_s3 }
   0x5   :  { %17 = vsyncpa [#allocation5], 0 }
   0x6   :  { %18 = vsyncpa [#allocation4], 0 }
   0x7   :  { %20 = vsyncpa [#allocation4 + $0x1], 0  ;;  %s12318_s21 = smov 0   ;;  %s12320_s22 = smov 0  }
   0x8   :  { %s12322_s23 = smov 0   ;;  %s12324_s24 = smov 0  }
   0x9 LB: > { %s12339_s25 = sadd.s32 4294967295, %s12247_s24   ;;  %s9333_s26 = sadd.s32 4294967294, %s12247_s24   ;;  %s12247_s24 = sphi %s12324_s24, %s17018_s24   ;;  %s12243_s23 = sphi %s12322_s23, %s17017_s23   ;;  %s12239_s22 = sphi %s12320_s22, %s17016_s22   ;;  %s12235_s21 = sphi %s12318_s21, %s17015_s21  }
   0xa   : > { %s12343_s27 = sadd.s32 1, %s12247_s24   ;;  %s300_s28 = sadd.s32 1, %s12243_s23 }
   0xb   : > { %s297_s29 = ssub.s32 %s12247_s24, %s12343_s27  ;;  %p310_p0 = scmp.ne.s32.totalorder %s12243_s23, %s12239_s22 }
   0xc   : > { %p298_p1 = scmp.eq.s32.totalorder %s297_s29, 0  ;;  %p311_p2 = scmp.eq.s32.totalorder %s12339_s25, 1 }
   0xd   : > { %p316_p3 = scmp.ne.s32.totalorder %s12239_s22, %s12235_s21  ;;  %p317_p4 = scmp.eq.s32.totalorder %s9333_s26, 1 }
   0xe   : > { %s12354_s30 = scalar_select %p298_p1, %s12243_s23, %s300_s28  }
   0xf   : > { %p12356_p5 = por %p311_p2, %p310_p0  ;;  %p12360_p6 = por %p317_p4, %p316_p3 }
  0x10   : > { %p9334_p7 = scmp.ge.s32.totalorder %s12247_s24, 1  ;;  %p324_p8 = scmp.lt.s32.totalorder %s12247_s24, 3 }
  0x11   : > { %p11877_p9 = scmp.eq.s32.totalorder %s12339_s25, 0  ;;  %s355_s18 = sshll.u32 %s16183_s9, 4  ;;  %s356_s18 = int_to_ptr.vmem [resolvable:$true] %s355_s18 }
  0x12   : > { %p12367_p10 = pnand %p9334_p7, %p324_p8  ;;  %s12166_s19 = scalar_lea.vmem %s356_s18, 16 }
  0x13   : > { %p12167_p13 = scmp.ne.s32.totalorder %s356_s18, %s12166_s19  ;;  %p12174_p3 = scmp.lt.s32.totalorder %s356_s18, %s356_s18 }
  0x14   : > { %p11869_p11 = pneg %p12367_p10  ;;  %p12175_p4 = scmp.lt.s32.totalorder %s12166_s19, %s12166_s19 }
  0x16   : > { %p11870_p12 = pnand %p11877_p9, %p11869_p11  ;;  %p12176_p7 = por %p12175_p4, %p12174_p3 }
  0x18   : > { %p12168_p0 = pneg %p11870_p12 }
  0x1a   : > { %p12169_p1 = pnand %p12168_p0, %p12167_p13 }
  0x1c   : > { %p12170_p2 = pneg %p12169_p1 }
  0x1e   : > { %p12177_p8 = pnand %p12176_p7, %p12170_p2 }
  0x20   : > { %12180 = shalt.err (!%p12177_p8)
}
  0x21   : > { %s12249_s20 = smov [#allocation3]   ;;  %401 = sbr.rel (%p12367_p10) target bundleno = 3899 (0xf3b), region = 68 }
  0x22   : > { %11872 = dma.vmem_to_smem (!%p11870_p12), %s356_s18, 16, %s12249_s20, [#allocation5]  }
  0x28   : > { %12226 = dma.done.wait (%p11877_p9), [#allocation5], 16  }
  0x29   : > { %12228 = vsyncadd (%p11877_p9), [#allocation5], 4294967280 }
  0x2a   : > { %407 = sfence }
  0x2b   : > { %s16508_s3 = sld [smem:[#allocation82_spill]]  ;;  %vm803_vm0 = vcmask 1043456   ;;  %s9340_s29 = sshll.u32 %s12339_s25, 6  ;;  %vm706_vm1 = vcmask 64512   ;;  %vm1453_vm2 = vcmask 523264   ;;  %vm12251_vm3 = vmmov 0  }
  0x2c   : > { %p456_p11 = scmp.lt.s32.totalorder %s9340_s29, 127  ;;  %s16509_s0 = sld [smem:[#allocation79_spill]]  ;;  %v12493_v55 = vld [vmem:[%s16178_s4] ss:$0 sm:$0xff] }
  0x2d   : > { %s9342_s19 = sshll.u32 %s12339_s25, 3  ;;  %s16510_s1 = sld [smem:[#allocation80_spill]] }
  0x2e   : > { %s17020_s29 = smov (!%p456_p11, %s9340_s29), 127  ;;  %p462_p9 = scmp.lt.s32.totalorder %s9342_s19, 15 }
  0x2f   : > { %s9341_s15 = sshll.u32 %s17020_s29, 2  ;;  %p468_p10 = scmp.lt.s32.totalorder %s12339_s25, 1 }
  0x30   : > { %s17022_s19 = smov (!%p462_p9, %s9342_s19), 15  ;;  %s16511_s2 = sld [smem:[#allocation81_spill]] }
  0x31   : > { %v538_v0 = vld [vmem:[%s16508_s3] sm:$0xf]  ;;  %s9814_s20 = sshll.u32 %s17022_s19, 5  ;;  %s2210_s19 = sld [smem:[#allocation3]] }
  0x32   : > { %11862 = vmatprep.subr.msk.bf16.mxu0 %vm803_vm0, %v538_v0  ;;  %v805_v1 = vsel %vm803_vm0, %v538_v0, 0  ;;  %s12391_s18 = scalar_lea.vmem %s16509_s0, %s9341_s15  ;;  %s16500_s17 = sand.u32 1, %s12239_s22  }
  0x33   : > { %10585 = vmatpush3.bf16.msra.mxu0 %v805_v1  ;;  %v11915_v2 = vld [vmem:[%s12391_s18] sm:$0xff]   ;;  %v11916_v3 = vld [vmem:[%s12391_s18 + $0x8] sm:$0xff]   ;;  %v11917_v4 = vld [vmem:[%s12391_s18 + $0x10] sm:$0xff]   ;;  %s12461_s29 = scalar_lea.vmem %s16510_s1, %s9814_s20  ;;  %s12252_s1 = smov [#allocation6]  }
  0x34   : > { %10586 = vmatprep.mubr.msk.bf16.mxu0 %vm706_vm1, %v11915_v2  ;;  %v11918_v5 = vld [vmem:[%s12391_s18 + $0x18] sm:$0xff]   ;;  %v11919_v6 = vld [vmem:[%s12391_s18 + $0x20] sm:$0xff]   ;;  %v11920_v7 = vld [vmem:[%s12391_s18 + $0x28] sm:$0xff]   ;;  %s469_s15 = scalar_select %p468_p10, %s12339_s25, 1 }
  0x35   : > { %v11921_v8 = vld [vmem:[%s12391_s18 + $0x30] sm:$0xff]   ;;  %v11922_v9 = vld [vmem:[%s12391_s18 + $0x38] sm:$0xff]   ;;  %v11923_v10 = vld [vmem:[%s12391_s18 + $0x40] sm:$0xff]  }
  0x36   : > { %10587 = vmatmul.mubr.msk.bf16.vlgmr.msra.gmra.mrb[0].mxu0 %vm706_vm1, %v11916_v3  ;;  %v11924_v11 = vld [vmem:[%s12391_s18 + $0x48] sm:$0xff]   ;;  %v11925_v12 = vld [vmem:[%s12391_s18 + $0x50] sm:$0xff]   ;;  %v11926_v13 = vld [vmem:[%s12391_s18 + $0x58] sm:$0xff]   ;;  %s9815_s16 = sshll.u32 %s469_s15, 4 }
  0x37   : > { %10590 = vmatprep.mubr.msk.bf16.mxu0 %vm706_vm1, %v11917_v4  ;;  %v11927_v14 = vld [vmem:[%s12391_s18 + $0x60] sm:$0xff]   ;;  %v11928_v15 = vld [vmem:[%s12391_s18 + $0x68] sm:$0xff]   ;;  %v11929_v16 = vld [vmem:[%s12391_s18 + $0x70] sm:$0xff]   ;;  %s12470_s0 = scalar_lea.vmem %s16511_s2, %s9815_s16  ;;  %s2211_s20 = sadd.f32 1.0, %s2210_s19 }
  0x38   : > { %v11930_v17 = vld [vmem:[%s12391_s18 + $0x78] sm:$0xff]   ;;  %v11931_v18 = vld [vmem:[%s12391_s18 + $0x80] sm:$0xff]   ;;  %v11932_v19 = vld [vmem:[%s12391_s18 + $0x88] sm:$0xff]   ;;  %s9562_s19 = sld [smem:[#allocation3 + $0x1]]  ;;  %s17014_s16 = sand.u32 1, %s12239_s22  }
  0x39   : > { %v11933_v20 = vld [vmem:[%s12391_s18 + $0x90] sm:$0xff]   ;;  %v11934_v21 = vld [vmem:[%s12391_s18 + $0x98] sm:$0xff]   ;;  %v11935_v22 = vld [vmem:[%s12391_s18 + $0xa0] sm:$0xff]   ;;  %s12185_s2 = sshll.u32 %s12252_s1, 4  ;;  %s12186_s2 = int_to_ptr.vmem [resolvable:$false] %s12185_s2 }
  0x3a   : > { %v11936_v23 = vld [vmem:[%s12391_s18 + $0xa8] sm:$0xff]   ;;  %v11937_v24 = vld [vmem:[%s12391_s18 + $0xb0] sm:$0xff]   ;;  %v11938_v25 = vld [vmem:[%s12391_s18 + $0xb8] sm:$0xff]   ;;  %s12187_s3 = scalar_lea.vmem %s12186_s2, 256 }
  0x3b   : > { %v11939_v26 = vld [vmem:[%s12391_s18 + $0xc0] sm:$0xff]   ;;  %v11940_v27 = vld [vmem:[%s12391_s18 + $0xc8] sm:$0xff]   ;;  %v11941_v28 = vld [vmem:[%s12391_s18 + $0xd0] sm:$0xff]  }
  0x3c   : > { %v11942_v29 = vld [vmem:[%s12391_s18 + $0xd8] sm:$0xff]   ;;  %v11943_v30 = vld [vmem:[%s12391_s18 + $0xe0] sm:$0xff]   ;;  %v11944_v31 = vld [vmem:[%s12391_s18 + $0xe8] sm:$0xff]  }
  0x3d   : > { %v11945_v32 = vld [vmem:[%s12391_s18 + $0xf0] sm:$0xff]   ;;  %v11946_v33 = vld [vmem:[%s12391_s18 + $0xf8] sm:$0xff]   ;;  %v11947_v34 = vld [vmem:[%s12461_s29 + $0x80] sm:$0xff]   ;;  %s15293_s18 = sshll.u32 %s16500_s17, 3 }
  0x3e   : > { %10591 = vmatmul.mubr.msk.bf16.gmra.mrb[4].mxu0 %vm706_vm1, %v11918_v5  ;;  %v12473_v35 = vld [vmem:[%s12470_s0] sm:$0xff] }
  0x3f   : > { %10594 = vmatprep.mubr.msk.bf16.mxu0 %vm706_vm1, %v11919_v6  ;;  %v12477_v36 = vcombine.high %v12473_v35, %v12473_v35 }
  0x41   : > { %16512 = vst [vmem:[#allocation9_spill] sm:$0xff] %v12477_v36  ;;  %1304 = vmatprep.mubr.bf16.mxu1 %v12477_v36 }
  0x46   : > { %10595 = vmatmul.mubr.msk.bf16.gmra.mrb[8].mxu0 %vm706_vm1, %v11920_v7 }
  0x47   : > { %10598 = vmatprep.mubr.msk.bf16.mxu0 %vm706_vm1, %v11921_v8 }
  0x4e   : > { %10599 = vmatmul.mubr.msk.bf16.gmra.mrb[12].mxu0 %vm706_vm1, %v11922_v9 }
  0x4f   : > { %10602 = vmatprep.mubr.msk.bf16.mxu0 %vm706_vm1, %v11923_v10 }
  0x56   : > { %10603 = vmatmul.mubr.msk.bf16.gmra.mrb[16].mxu0 %vm706_vm1, %v11924_v11 }
  0x57   : > { %10606 = vmatprep.mubr.msk.bf16.mxu0 %vm706_vm1, %v11925_v12 }
  0x5e   : > { %10607 = vmatmul.mubr.msk.bf16.gmra.mrb[20].mxu0 %vm706_vm1, %v11926_v13 }
  0x5f   : > { %10610 = vmatprep.mubr.msk.bf16.mxu0 %vm706_vm1, %v11927_v14 }
  0x66   : > { %10611 = vmatmul.mubr.msk.bf16.gmra.mrb[24].mxu0 %vm706_vm1, %v11928_v15 }
  0x67   : > { %10614 = vmatprep.mubr.msk.bf16.mxu0 %vm706_vm1, %v11929_v16 }
  0x6e   : > { %10615 = vmatmul.mubr.msk.bf16.gmra.mrb[28].mxu0 %vm706_vm1, %v11930_v17 }
  0x6f   : > { %10618 = vmatprep.mubr.msk.bf16.mxu0 %vm706_vm1, %v11931_v18 }
  0x76   : > { %10619 = vmatmul.mubr.msk.bf16.gmra.mrb[32].mxu0 %vm706_vm1, %v11932_v19 }
  0x77   : > { %10622 = vmatprep.mubr.msk.bf16.mxu0 %vm706_vm1, %v11933_v20 }
  0x7e   : > { %10623 = vmatmul.mubr.msk.bf16.gmra.mrb[36].mxu0 %vm706_vm1, %v11934_v21 }
  0x7f   : > { %10626 = vmatprep.mubr.msk.bf16.mxu0 %vm706_vm1, %v11935_v22 }
  0x86   : > { %10627 = vmatmul.mubr.msk.bf16.gmra.mrb[40].mxu0 %vm706_vm1, %v11936_v23 }
  0x87   : > { %10630 = vmatprep.mubr.msk.bf16.mxu0 %vm706_vm1, %v11937_v24 }
  0x8e   : > { %10631 = vmatmul.mubr.msk.bf16.gmra.mrb[44].mxu0 %vm706_vm1, %v11938_v25 }
  0x8f   : > { %10634 = vmatprep.mubr.msk.bf16.mxu0 %vm706_vm1, %v11939_v26 }
  0x96   : > { %10635 = vmatmul.mubr.msk.bf16.gmra.mrb[48].mxu0 %vm706_vm1, %v11940_v27 }
  0x97   : > { %10638 = vmatprep.mubr.msk.bf16.mxu0 %vm706_vm1, %v11941_v28 }
  0x9e   : > { %10639 = vmatmul.mubr.msk.bf16.gmra.mrb[52].mxu0 %vm706_vm1, %v11942_v29 }
  0x9f   : > { %10642 = vmatprep.mubr.msk.bf16.mxu0 %vm706_vm1, %v11943_v30 }
  0xa6   : > { %10643 = vmatmul.mubr.msk.bf16.gmra.mrb[56].mxu0 %vm706_vm1, %v11944_v31 }
  0xa7   : > { %10646 = vmatprep.mubr.msk.bf16.mxu0 %vm706_vm1, %v11945_v32 }
  0xae   : > { %10647 = vmatmul.mubr.msk.bf16.gmra.mrb[60].mxu0 %vm706_vm1, %v11946_v33 }
  0xaf   : > { %10722 = vmatprep.mubr.msk.bf16.mxu0 %vm1453_vm2, %v11947_v34 }
 0x109   : > { %v10588_v37 = vpop.f32.mrb[0].mxu0 }
 0x10a   : > { %v841_v38 = vpop.f32.mrb[1].mxu0  ;;  %v12530_v5 = vadd.f32 %v10588_v37, %v12493_v55 }
 0x10b   : > { %v10589_v39 = vpop.f32.mrb[2].mxu0  ;;  %v12508_v62 = vadd.f32 %v12493_v55, %v841_v38 }
 0x10c   : > { %v844_v40 = vpop.f32.mrb[3].mxu0  ;;  %v12518_v1 = vadd.f32 %v10589_v39, %v12493_v55 }
 0x10d   : > { %v12496_v57 = vadd.f32 %v12493_v55, %v844_v40 }
 0x10e   : > { %v12539_v10 = vpack.c.bf16 %v12518_v1, %v12530_v5 }
 0x10f   : > { %v12522_v2 = vpack.c.bf16 %v12496_v57, %v12508_v62 }
 0x111   : > { %v10592_v41 = vpop.f32.mrb[4].mxu0 }
 0x112   : > { %v857_v42 = vpop.f32.mrb[5].mxu0  ;;  %v12574_v21 = vadd.f32 %v10592_v41, %v12493_v55 }
 0x113   : > { %v10593_v43 = vpop.f32.mrb[6].mxu0  ;;  %v12551_v14 = vadd.f32 %v12493_v55, %v857_v42 }
 0x114   : > { %v860_v44 = vpop.f32.mrb[7].mxu0  ;;  %v12562_v17 = vadd.f32 %v10593_v43, %v12493_v55  ;;  %16521 = vst [vmem:[#allocation18_spill] sm:$0xff] %v12574_v21 }
 0x115   : > { %v12535_v8 = vadd.f32 %v12493_v55, %v860_v44 }
 0x116   : > { %v12583_v26 = vpack.c.bf16 %v12562_v17, %v12574_v21 }
 0x117   : > { %v12566_v18 = vpack.c.bf16 %v12535_v8, %v12551_v14 }
 0x119   : > { %v12480_v45 = vpop.f32.mrb[8].mxu0 }
 0x11a   : > { %v873_v46 = vpop.f32.mrb[9].mxu0  ;;  %v12619_v39 = vadd.f32 %v12480_v45, %v12493_v55 }
 0x11b   : > { %v10597_v47 = vpop.f32.mrb[10].mxu0  ;;  %v12595_v30 = vadd.f32 %v12493_v55, %v873_v46 }
 0x11c   : > { %v876_v48 = vpop.f32.mrb[11].mxu0  ;;  %v12606_v33 = vadd.f32 %v10597_v47, %v12493_v55  ;;  %16529 = vst [vmem:[#allocation26_spill] sm:$0xff] %v12619_v39 }
 0x11d   : > { %v12579_v24 = vadd.f32 %v12493_v55, %v876_v48  ;;  %16526 = vst [vmem:[#allocation23_spill] sm:$0xff] %v12595_v30 }
 0x11e   : > { %16528 = vst [vmem:[#allocation25_spill] sm:$0xff] %v12606_v33  ;;  %v12629_v44 = vpack.c.bf16 %v12606_v33, %v12619_v39  ;;  %v11954_v33 = vld [vmem:[%s12461_s29 + $0xc8] sm:$0xff]  }
 0x11f   : > { %16522 = vst [vmem:[#allocation19_spill] sm:$0xff] %v12579_v24  ;;  %v12610_v34 = vpack.c.bf16 %v12579_v24, %v12595_v30 }
 0x121   : > { %v12482_v49 = vpop.f32.mrb[12].mxu0 }
 0x122   : > { %v12484_v50 = vpop.f32.mrb[13].mxu0 }
 0x123   : > { %v12486_v51 = vpop.f32.mrb[14].mxu0  ;;  %v12642_v48 = vadd.f32 %v12493_v55, %v12484_v50 }
 0x124   : > { %v12488_v52 = vpop.f32.mrb[15].mxu0 }
 0x125   : > { %v12625_v42 = vadd.f32 %v12493_v55, %v12488_v52  ;;  %16534 = vst [vmem:[#allocation31_spill] sm:$0xff] %v12642_v48 }
 0x127   : > { %16530 = vst [vmem:[#allocation27_spill] sm:$0xff] %v12625_v42 }
 0x129   : > { %v10604_v53 = vpop.f32.mrb[16].mxu0 }
 0x12a   : > { %v905_v54 = vpop.f32.mrb[17].mxu0  ;;  %v12511_v63 = vadd.f32 %v10604_v53, %v12493_v55 }
 0x12b   : > { %v10605_v56 = vpop.f32.mrb[18].mxu0  ;;  %v12499_v59 = vadd.f32 %v12493_v55, %v905_v54  ;;  %v12654_v54 = vadd.f32 %v12486_v51, %v12493_v55 }
 0x12c   : > { %v908_v58 = vpop.f32.mrb[19].mxu0  ;;  %v12502_v60 = vadd.f32 %v10605_v56, %v12493_v55  ;;  %16516 = vst [vmem:[#allocation13_spill] sm:$0xff] %v12511_v63  ;;  %v12658_v56 = vpack.c.bf16 %v12625_v42, %v12642_v48 }
 0x12d   : > { %16513 = vst [vmem:[#allocation10_spill] sm:$0xff] %v12499_v59  ;;  %v12505_v61 = vadd.f32 %v12493_v55, %v908_v58  ;;  %16536 = vst [vmem:[#allocation33_spill] sm:$0xff] %v12654_v54 }
 0x12e   : > { %16514 = vst [vmem:[#allocation11_spill] sm:$0xff] %v12502_v60  ;;  %v12527_v4 = vpack.c.bf16 %v12502_v60, %v12511_v63 }
 0x12f   : > { %16515 = vst [vmem:[#allocation12_spill] sm:$0xff] %v12505_v61  ;;  %v12515_v0 = vpack.c.bf16 %v12505_v61, %v12499_v59 }
 0x131   : > { %v10608_v3 = vpop.f32.mrb[20].mxu0  ;;  %9849 = vmatprep.subr.bf16.mxu1 %v12515_v0 }
 0x132   : > { %v921_v6 = vpop.f32.mrb[21].mxu0  ;;  %9850 = vmatpush3.bf16.msra.mxu1 %v12522_v2  ;;  %v12555_v15 = vadd.f32 %v10608_v3, %v12493_v55  ;;  %v12667_v3 = vadd.f32 %v12482_v49, %v12493_v55 }
 0x133   : > { %v10609_v7 = vpop.f32.mrb[22].mxu0  ;;  %9851 = vmatprep.subr.bf16.mxu1 %v12527_v4  ;;  %v12542_v11 = vadd.f32 %v12493_v55, %v921_v6 }
 0x134   : > { %v924_v9 = vpop.f32.mrb[23].mxu0  ;;  %v12545_v12 = vadd.f32 %v10609_v7, %v12493_v55  ;;  %16520 = vst [vmem:[#allocation17_spill] sm:$0xff] %v12555_v15  ;;  %16537 = vst [vmem:[#allocation34_spill] sm:$0xff] %v12667_v3  ;;  %v12672_v7 = vld [vmem:[%s12470_s0 + $0x8] sm:$0xff]  ;;  %s454_s0 = scalar_lea.vmem [#allocation6], %s15293_s18 }
 0x135   : > { %16517 = vst [vmem:[#allocation14_spill] sm:$0xff] %v12542_v11  ;;  %v12548_v13 = vadd.f32 %v12493_v55, %v924_v9  ;;  %s9238_s17 = sshll.u32 %s454_s0, 4  ;;  %s9239_s17 = int_to_ptr.vmem [resolvable:$true] %s9238_s17 }
 0x136   : > { %16518 = vst [vmem:[#allocation15_spill] sm:$0xff] %v12545_v12  ;;  %9852 = vmatpush3.bf16.msra.mxu1 %v12539_v10  ;;  %v12571_v20 = vpack.c.bf16 %v12545_v12, %v12555_v15  ;;  %p12188_p1 = scmp.lt.s32.totalorder %s9239_s17, %s12186_s2 }
 0x137   : > { %16519 = vst [vmem:[#allocation16_spill] sm:$0xff] %v12548_v13  ;;  %v12559_v16 = vpack.c.bf16 %v12548_v13, %v12542_v11  ;;  %v11950_v13 = vld [vmem:[%s12461_s29 + $0x98] sm:$0xff]   ;;  %v11953_v11 = vld [vmem:[%s12461_s29 + $0xc0] sm:$0xff]  }
 0x139   : > { %v10612_v19 = vpop.f32.mrb[24].mxu0  ;;  %9853 = vmatprep.subr.bf16.mxu1 %v12559_v16 }
 0x13a   : > { %v937_v22 = vpop.f32.mrb[25].mxu0  ;;  %9854 = vmatpush3.bf16.msra.mxu1 %v12566_v18  ;;  %v12599_v31 = vadd.f32 %v10612_v19, %v12493_v55  ;;  %v12676_v19 = vpack.c.bf16 %v12654_v54, %v12667_v3 }
 0x13b   : > { %v10613_v23 = vpop.f32.mrb[26].mxu0  ;;  %9855 = vmatprep.subr.bf16.mxu1 %v12571_v20  ;;  %v12586_v27 = vadd.f32 %v12493_v55, %v937_v22 }
 0x13c   : > { %v940_v25 = vpop.f32.mrb[27].mxu0  ;;  %v12589_v28 = vadd.f32 %v10613_v23, %v12493_v55  ;;  %16527 = vst [vmem:[#allocation24_spill] sm:$0xff] %v12599_v31 }
 0x13d   : > { %16523 = vst [vmem:[#allocation20_spill] sm:$0xff] %v12586_v27  ;;  %v12592_v29 = vadd.f32 %v12493_v55, %v940_v25  ;;  %v12689_v25 = vcombine.low %v12473_v35, %v12473_v35 }
 0x13e   : > { %16524 = vst [vmem:[#allocation21_spill] sm:$0xff] %v12589_v28  ;;  %9856 = vmatpush3.bf16.msra.mxu1 %v12583_v26  ;;  %v12615_v38 = vpack.c.bf16 %v12589_v28, %v12599_v31 }
 0x13f   : > { %16525 = vst [vmem:[#allocation22_spill] sm:$0xff] %v12592_v29  ;;  %v12603_v32 = vpack.c.bf16 %v12592_v29, %v12586_v27  ;;  %16541 = vst [vmem:[#allocation38_spill] sm:$0xff] %v12689_v25 }
 0x141   : > { %v10616_v37 = vpop.f32.mrb[28].mxu0  ;;  %9857 = vmatprep.subr.bf16.mxu1 %v12603_v32 }
 0x142   : > { %v953_v40 = vpop.f32.mrb[29].mxu0  ;;  %9858 = vmatpush3.bf16.msra.mxu1 %v12610_v34  ;;  %v12646_v52 = vadd.f32 %v10616_v37, %v12493_v55  ;;  %v12694_v37 = vcombine.high %v12672_v7, %v12672_v7 }
 0x143   : > { %v10617_v41 = vpop.f32.mrb[30].mxu0  ;;  %9859 = vmatprep.subr.bf16.mxu1 %v12615_v38  ;;  %v12632_v46 = vadd.f32 %v12493_v55, %v953_v40 }
 0x144   : > { %v956_v43 = vpop.f32.mrb[31].mxu0  ;;  %v12635_v45 = vadd.f32 %v10617_v41, %v12493_v55  ;;  %16535 = vst [vmem:[#allocation32_spill] sm:$0xff] %v12646_v52  ;;  %16542 = vst [vmem:[#allocation39_spill] sm:$0xff] %v12694_v37 }
 0x145   : > { %16531 = vst [vmem:[#allocation28_spill] sm:$0xff] %v12632_v46  ;;  %v12638_v47 = vadd.f32 %v12493_v55, %v956_v43 }
 0x146   : > { %16532 = vst [vmem:[#allocation29_spill] sm:$0xff] %v12635_v45  ;;  %9860 = vmatpush3.bf16.msra.mxu1 %v12629_v44  ;;  %v12663_v50 = vpack.c.bf16 %v12635_v45, %v12646_v52  ;;  %v11948_v45 = vld [vmem:[%s12461_s29 + $0x88] sm:$0xff]   ;;  %v11949_v52 = vld [vmem:[%s12461_s29 + $0x90] sm:$0xff]  }
 0x147   : > { %16533 = vst [vmem:[#allocation30_spill] sm:$0xff] %v12638_v47  ;;  %v12650_v53 = vpack.c.bf16 %v12638_v47, %v12632_v46 }
 0x149   : > { %v10620_v58 = vpop.f32.mrb[32].mxu0  ;;  %9861 = vmatprep.subr.bf16.mxu1 %v12650_v53 }
 0x14a   : > { %v969_v6 = vpop.f32.mrb[33].mxu0  ;;  %9862 = vmatpush3.bf16.msra.mxu1 %v12658_v56  ;;  %v12697_v40 = vadd.f32 %v10620_v58, %v12493_v55 }
 0x14b   : > { %v10621_v51 = vpop.f32.mrb[34].mxu0  ;;  %9863 = vmatprep.subr.bf16.mxu1 %v12663_v50  ;;  %v12679_v22 = vadd.f32 %v12493_v55, %v969_v6 }
 0x14c   : > { %v972_v9 = vpop.f32.mrb[35].mxu0  ;;  %v12682_v23 = vadd.f32 %v10621_v51, %v12493_v55  ;;  %16543 = vst [vmem:[#allocation40_spill] sm:$0xff] %v12697_v40 }
 0x14d   : > { %16538 = vst [vmem:[#allocation35_spill] sm:$0xff] %v12679_v22  ;;  %v12685_v49 = vadd.f32 %v12493_v55, %v972_v9 }
 0x14e   : > { %16539 = vst [vmem:[#allocation36_spill] sm:$0xff] %v12682_v23  ;;  %9864 = vmatpush3.bf16.msra.mxu1 %v12676_v19  ;;  %v1243_v6 = vpack.c.bf16 %v12682_v23, %v12697_v40 }
 0x14f   : > { %16540 = vst [vmem:[#allocation37_spill] sm:$0xff] %v12685_v49  ;;  %v1242_v41 = vpack.c.bf16 %v12685_v49, %v12679_v22 }
 0x151   : > { %v10624_v43 = vpop.f32.mrb[36].mxu0  ;;  %10714 = vmatprep.subr.bf16.mxu0 %v1242_v41  ;;  %1305 = vmatmul.mubr.bf16.vlgmr.msra.gmra.mrb[0].mxu1 %v12689_v25 }
 0x152   : > { %v985_v35 = vpop.f32.mrb[37].mxu0  ;;  %10715 = vmatpush3.bf16.msra.mxu0 %v1242_v41  ;;  %1344 = vmatprep.mubr.bf16.mxu1 %v12694_v37  ;;  %v12715_v25 = vadd.f32 %v10624_v43, %v12493_v55 }
 0x153   : > { %v10625_v51 = vpop.f32.mrb[38].mxu0  ;;  %10716 = vmatprep.subr.bf16.mxu0 %v1243_v6  ;;  %v12706_v58 = vadd.f32 %v12493_v55, %v985_v35 }
 0x154   : > { %v988_v9 = vpop.f32.mrb[39].mxu0  ;;  %v12709_v36 = vadd.f32 %v10625_v51, %v12493_v55  ;;  %16547 = vst [vmem:[#allocation44_spill] sm:$0xff] %v12715_v25 }
 0x155   : > { %16544 = vst [vmem:[#allocation41_spill] sm:$0xff] %v12706_v58  ;;  %v12712_v47 = vadd.f32 %v12493_v55, %v988_v9 }
 0x156   : > { %16545 = vst [vmem:[#allocation42_spill] sm:$0xff] %v12709_v36  ;;  %10717 = vmatpush3.bf16.msra.mxu0 %v1243_v6  ;;  %v12723_v35 = vpack.c.bf16 %v12709_v36, %v12715_v25 }
 0x157   : > { %16546 = vst [vmem:[#allocation43_spill] sm:$0xff] %v12712_v47  ;;  %v1244_v37 = vpack.c.bf16 %v12712_v47, %v12706_v58 }
 0x159   : > { %v12719_v46 = vpop.f32.mrb[40].mxu0  ;;  %10718 = vmatprep.subr.bf16.mxu0 %v1244_v37 }
 0x15a   : > { %v1001_v51 = vpop.f32.mrb[41].mxu0  ;;  %10719 = vmatpush3.bf16.msra.mxu0 %v1244_v37 }
 0x15b   : > { %v12725_v9 = vpop.f32.mrb[42].mxu0  ;;  %10720 = vmatprep.subr.bf16.mxu0 %v12723_v35 }
 0x15c   : > { %v1004_v43 = vpop.f32.mrb[43].mxu0 }
 0x15e   : > { %10721 = vmatpush3.bf16.msra.mxu0 %v12723_v35 }
 0x161   : > { %v12731_v29 = vpop.f32.mrb[44].mxu0  ;;  %10723 = vmatmul.mubr.msk.bf16.vlgmr.msra.gmra.mrb[64].mxu0 %vm1453_vm2, %v11948_v45 }
 0x162   : > { %v12734_v27 = vpop.f32.mrb[45].mxu0  ;;  %10726 = vmatprep.mubr.msk.bf16.mxu0 %vm1453_vm2, %v11949_v52 }
 0x163   : > { %v12737_v28 = vpop.f32.mrb[46].mxu0 }
 0x164   : > { %v12739_v31 = vpop.f32.mrb[47].mxu0 }
 0x169   : > { %v10636_v12 = vpop.f32.mrb[48].mxu0  ;;  %10727 = vmatmul.mubr.msk.bf16.gmra.mrb[68].mxu0 %vm1453_vm2, %v11950_v13 }
 0x16a   : > { %v1033_v15 = vpop.f32.mrb[49].mxu0  ;;  %10754 = vmatprep.mubr.msk.bf16.mxu0 %vm1453_vm2, %v11953_v11  ;;  %v12755_v63 = vadd.f32 %v10636_v12, %v12493_v55 }
 0x16b   : > { %v10637_v61 = vpop.f32.mrb[50].mxu0  ;;  %v12746_v45 = vadd.f32 %v12493_v55, %v1033_v15 }
 0x16c   : > { %v1036_v59 = vpop.f32.mrb[51].mxu0  ;;  %v12749_v60 = vadd.f32 %v10637_v61, %v12493_v55  ;;  %16551 = vst [vmem:[#allocation48_spill] sm:$0xff] %v12755_v63 }
 0x16d   : > { %16548 = vst [vmem:[#allocation45_spill] sm:$0xff] %v12746_v45  ;;  %v12752_v52 = vadd.f32 %v12493_v55, %v1036_v59 }
 0x16e   : > { %16549 = vst [vmem:[#allocation46_spill] sm:$0xff] %v12749_v60  ;;  %v1251_v11 = vpack.c.bf16 %v12749_v60, %v12755_v63 }
 0x16f   : > { %16550 = vst [vmem:[#allocation47_spill] sm:$0xff] %v12752_v52  ;;  %v1250_v13 = vpack.c.bf16 %v12752_v52, %v12746_v45 }
 0x171   : > { %v10640_v42 = vpop.f32.mrb[52].mxu0  ;;  %9871 = vmatprep.subr.bf16.mxu1 %v1250_v13  ;;  %10746 = vmatprep.subr.bf16.mxu0 %v1250_v13 }
 0x172   : > { %v1049_v15 = vpop.f32.mrb[53].mxu0  ;;  %9872 = vmatpush3.bf16.msra.mxu1 %v1242_v41  ;;  %10747 = vmatpush3.bf16.msra.mxu0 %v1250_v13  ;;  %v12771_v3 = vadd.f32 %v10640_v42, %v12493_v55  ;;  %v12778_v42 = vadd.f32 %v12493_v55, %v1004_v43 }
 0x173   : > { %v10641_v61 = vpop.f32.mrb[54].mxu0  ;;  %9873 = vmatprep.subr.bf16.mxu1 %v1251_v11  ;;  %10748 = vmatprep.subr.bf16.mxu0 %v1251_v11  ;;  %v12762_v48 = vadd.f32 %v12493_v55, %v1049_v15 }
 0x174   : > { %v1052_v59 = vpop.f32.mrb[55].mxu0  ;;  %v12765_v12 = vadd.f32 %v10641_v61, %v12493_v55  ;;  %16555 = vst [vmem:[#allocation52_spill] sm:$0xff] %v12771_v3  ;;  %16556 = vst [vmem:[#allocation53_spill] sm:$0xff] %v12778_v42 }
 0x175   : > { %16552 = vst [vmem:[#allocation49_spill] sm:$0xff] %v12762_v48  ;;  %v12768_v54 = vadd.f32 %v12493_v55, %v1052_v59 }
 0x176   : > { %16553 = vst [vmem:[#allocation50_spill] sm:$0xff] %v12765_v12  ;;  %9874 = vmatpush3.bf16.msra.mxu1 %v1243_v6  ;;  %10749 = vmatpush3.bf16.msra.mxu0 %v1251_v11  ;;  %v1253_v15 = vpack.c.bf16 %v12765_v12, %v12771_v3 }
 0x177   : > { %16554 = vst [vmem:[#allocation51_spill] sm:$0xff] %v12768_v54  ;;  %v1252_v41 = vpack.c.bf16 %v12768_v54, %v12762_v48 }
 0x179   : > { %v10644_v13 = vpop.f32.mrb[56].mxu0  ;;  %9875 = vmatprep.subr.bf16.mxu1 %v1252_v41  ;;  %10750 = vmatprep.subr.bf16.mxu0 %v1252_v41 }
 0x17a   : > { %v1065_v61 = vpop.f32.mrb[57].mxu0  ;;  %9876 = vmatpush3.bf16.msra.mxu1 %v1244_v37  ;;  %10751 = vmatpush3.bf16.msra.mxu0 %v1252_v41  ;;  %v12791_v37 = vadd.f32 %v12493_v55, %v1001_v51  ;;  %v11955_v41 = vld [vmem:[%s12461_s29 + $0xd0] sm:$0xff]   ;;  %v12796_v43 = vadd.f32 %v10644_v13, %v12493_v55  ;;  %v12818_v13 = vadd.f32 %v12719_v46, %v12493_v55 }
 0x17b   : > { %v10645_v59 = vpop.f32.mrb[58].mxu0  ;;  %9877 = vmatprep.subr.bf16.mxu1 %v1253_v15  ;;  %10752 = vmatprep.subr.bf16.mxu0 %v1253_v15  ;;  %v12781_v11 = vadd.f32 %v12493_v55, %v1065_v61 }
 0x17c   : > { %v1068_v6 = vpop.f32.mrb[59].mxu0  ;;  %v12784_v24 = vadd.f32 %v10645_v59, %v12493_v55  ;;  %16560 = vst [vmem:[#allocation57_spill] sm:$0xff] %v12796_v43  ;;  %v12804_v59 = vadd.f32 %v12725_v9, %v12493_v55  ;;  %16561 = vst [vmem:[#allocation58_spill] sm:$0xff] %v12818_v13 }
 0x17d   : > { %16557 = vst [vmem:[#allocation54_spill] sm:$0xff] %v12781_v11  ;;  %v12787_v30 = vadd.f32 %v12493_v55, %v1068_v6  ;;  %v12808_v6 = vpack.c.bf16 %v12778_v42, %v12791_v37 }
 0x17e   : > { %16558 = vst [vmem:[#allocation55_spill] sm:$0xff] %v12784_v24  ;;  %9878 = vmatpush3.bf16.msra.mxu1 %v12723_v35  ;;  %10753 = vmatpush3.bf16.msra.mxu0 %v1253_v15  ;;  %v12814_v35 = vpack.c.bf16 %v12784_v24, %v12796_v43  ;;  %v11956_v43 = vld [vmem:[%s12461_s29 + $0xd8] sm:$0xff]  }
 0x17f   : > { %16559 = vst [vmem:[#allocation56_spill] sm:$0xff] %v12787_v30  ;;  %v12800_v61 = vpack.c.bf16 %v12787_v30, %v12781_v11  ;;  %v12825_v30 = vadd.f32 %v12493_v55, %v12739_v31  ;;  %v12829_v11 = vpack.c.bf16 %v12804_v59, %v12818_v13  ;;  %v12843_v31 = vadd.f32 %v12493_v55, %v12734_v27 }
 0x181   : > { %v10648_v51 = vpop.f32.mrb[60].mxu0  ;;  %9879 = vmatprep.subr.bf16.mxu1 %v12800_v61  ;;  %10755 = vmatmul.mubr.msk.bf16.vlgmr.msra.gmra.mrb[72].mxu0 %vm1453_vm2, %v11954_v33 }
 0x182   : > { %v1081_v9 = vpop.f32.mrb[61].mxu0  ;;  %9880 = vmatpush3.bf16.msra.mxu1 %v12808_v6  ;;  %10758 = vmatprep.mubr.msk.bf16.mxu0 %vm1453_vm2, %v11955_v41  ;;  %v12847_v42 = vadd.f32 %v10648_v51, %v12493_v55  ;;  %v12869_v51 = vadd.f32 %v12731_v29, %v12493_v55  ;;  %v11961_v29 = vld [vmem:[%s12461_s29 + $0x10] sm:$0xff]  }
 0x183   : > { %v10649_v15 = vpop.f32.mrb[62].mxu0  ;;  %9881 = vmatprep.subr.bf16.mxu1 %v12814_v35  ;;  %v12832_v46 = vadd.f32 %v12493_v55, %v1081_v9 }
 0x184   : > { %v1084_v33 = vpop.f32.mrb[63].mxu0  ;;  %v12835_v24 = vadd.f32 %v10649_v15, %v12493_v55  ;;  %16563 = vst [vmem:[#allocation60_spill] sm:$0xff] %v12847_v42  ;;  %v12855_v15 = vadd.f32 %v12737_v28, %v12493_v55  ;;  %16565 = vst [vmem:[#allocation62_spill] sm:$0xff] %v12869_v51 }
 0x185   : > { %v12838_v41 = vadd.f32 %v12493_v55, %v1084_v33  ;;  %v12859_v33 = vpack.c.bf16 %v12825_v30, %v12843_v31  ;;  %v11960_v55 = vld [vmem:[%s12461_s29 + $0x8] sm:$0xff]  }
 0x186   : > { %9882 = vmatpush3.bf16.msra.mxu1 %v12829_v11  ;;  %16564 = vst [vmem:[#allocation61_spill] sm:$0xff] %v12855_v15  ;;  %v12865_v27 = vpack.c.bf16 %v12835_v24, %v12847_v42  ;;  %v12875_v28 = vpack.c.bf16 %v12855_v15, %v12869_v51 }
 0x187   : > { %16562 = vst [vmem:[#allocation59_spill] sm:$0xff] %v12838_v41  ;;  %v12851_v9 = vpack.c.bf16 %v12838_v41, %v12832_v46  ;;  %v11959_v41 = vld [vmem:[%s12461_s29] sm:$0xff]  }
 0x189   : > { %9883 = vmatprep.subr.bf16.mxu1 %v12851_v9  ;;  %10759 = vmatmul.mubr.msk.bf16.gmra.mrb[76].mxu0 %vm1453_vm2, %v11956_v43  ;;  %v12879_v43 = vcombine.low %v12672_v7, %v12672_v7  ;;  %v11976_v7 = vld [vmem:[%s12461_s29 + $0xa8] sm:$0xff]  }
 0x18a   : > { %9884 = vmatpush3.bf16.msra.mxu1 %v12859_v33 }
 0x18b   : > { %9885 = vmatprep.subr.bf16.mxu1 %v12865_v27  ;;  %16566 = vst [vmem:[#allocation63_spill] sm:$0xff] %v12879_v43 }
 0x18e   : > { %9886 = vmatpush3.bf16.msra.mxu1 %v12875_v28 }
 0x18f   : > { %10650 = vmatprep.subr.bf16.mxu1 %v12522_v2 }
 0x191   : > { %1345 = vmatmul.mubr.bf16.vlgmr.msra.gmra.mrb[4].mxu1 %v12879_v43 }
 0x192   : > { %10651 = vmatpush3.bf16.msra.mxu1 %v12522_v2  ;;  %10658 = vmatprep.mubr.msk.bf16.mxu1 %vm1453_vm2, %v11959_v41  ;;  %v11962_v2 = vld [vmem:[%s12461_s29 + $0x18] sm:$0xff]  }
 0x193   : > { %10652 = vmatprep.subr.bf16.mxu1 %v12539_v10  ;;  %v11978_v41 = vld [vmem:[%s12461_s29 + $0xb8] sm:$0xff]  }
 0x196   : > { %10653 = vmatpush3.bf16.msra.mxu1 %v12539_v10  ;;  %v11963_v10 = vld [vmem:[%s12461_s29 + $0x20] sm:$0xff]  }
 0x197   : > { %10654 = vmatprep.subr.bf16.mxu1 %v12566_v18 }
 0x19a   : > { %10655 = vmatpush3.bf16.msra.mxu1 %v12566_v18  ;;  %v11964_v18 = vld [vmem:[%s12461_s29 + $0x28] sm:$0xff]  }
 0x19b   : > { %10656 = vmatprep.subr.bf16.mxu1 %v12583_v26 }
 0x19e   : > { %10657 = vmatpush3.bf16.msra.mxu1 %v12583_v26  ;;  %v11965_v26 = vld [vmem:[%s12461_s29 + $0x30] sm:$0xff]  }
 0x19f   : > { %10666 = vmatprep.subr.bf16.mxu1 %v12610_v34 }
 0x1a1   : > { %10659 = vmatmul.mubr.msk.bf16.vlgmr.msra.gmra.mrb[8].mxu1 %vm1453_vm2, %v11960_v55  ;;  %v11980_v55 = vld [vmem:[%s12461_s29 + $0xe8] sm:$0xff]  }
 0x1a2   : > { %10667 = vmatpush3.bf16.msra.mxu1 %v12610_v34  ;;  %10662 = vmatprep.mubr.msk.bf16.mxu1 %vm1453_vm2, %v11961_v29  ;;  %v11966_v34 = vld [vmem:[%s12461_s29 + $0x38] sm:$0xff]   ;;  %v11981_v29 = vld [vmem:[%s12461_s29 + $0xf0] sm:$0xff]  }
 0x1a3   : > { %10668 = vmatprep.subr.bf16.mxu1 %v12629_v44 }
 0x1a6   : > { %10669 = vmatpush3.bf16.msra.mxu1 %v12629_v44  ;;  %v11967_v44 = vld [vmem:[%s12461_s29 + $0x40] sm:$0xff]  }
 0x1a7   : > { %10670 = vmatprep.subr.bf16.mxu1 %v12658_v56 }
 0x1a9   : > { %10663 = vmatmul.mubr.msk.bf16.gmra.mrb[12].mxu1 %vm1453_vm2, %v11962_v2  ;;  %v11982_v2 = vld [vmem:[%s12461_s29 + $0xf8] sm:$0xff]  }
 0x1aa   : > { %10671 = vmatpush3.bf16.msra.mxu1 %v12658_v56  ;;  %10674 = vmatprep.mubr.msk.bf16.mxu1 %vm1453_vm2, %v11963_v10  ;;  %v11969_v56 = vld [vmem:[%s12461_s29 + $0x50] sm:$0xff]   ;;  %v11990_v10 = vld [vmem:[%s16179_s5 + $0x38] sm:$0xff]  }
 0x1ab   : > { %10672 = vmatprep.subr.bf16.mxu1 %v12676_v19 }
 0x1ae   : > { %10673 = vmatpush3.bf16.msra.mxu1 %v12676_v19  ;;  %v11977_v19 = vld [vmem:[%s12461_s29 + $0xb0] sm:$0xff]  }
 0x1af   : > { %10682 = vmatprep.subr.bf16.mxu1 %v12515_v0 }
 0x1b1   : > { %10675 = vmatmul.mubr.msk.bf16.vlgmr.msra.gmra.mrb[16].mxu1 %vm1453_vm2, %v11964_v18 }
 0x1b2   : > { %10683 = vmatpush3.bf16.msra.mxu1 %v12515_v0  ;;  %10678 = vmatprep.mubr.msk.bf16.mxu1 %vm1453_vm2, %v11965_v26  ;;  %v11968_v0 = vld [vmem:[%s12461_s29 + $0x48] sm:$0xff]  }
 0x1b3   : > { %10684 = vmatprep.subr.bf16.mxu1 %v12527_v4 }
 0x1b6   : > { %10685 = vmatpush3.bf16.msra.mxu1 %v12527_v4  ;;  %v11970_v4 = vld [vmem:[%s12461_s29 + $0x58] sm:$0xff]  }
 0x1b7   : > { %10686 = vmatprep.subr.bf16.mxu1 %v12559_v16 }
 0x1b9   : > { %10679 = vmatmul.mubr.msk.bf16.gmra.mrb[20].mxu1 %vm1453_vm2, %v11966_v34 }
 0x1ba   : > { %10687 = vmatpush3.bf16.msra.mxu1 %v12559_v16  ;;  %10690 = vmatprep.mubr.msk.bf16.mxu1 %vm1453_vm2, %v11967_v44  ;;  %v11971_v16 = vld [vmem:[%s12461_s29 + $0x60] sm:$0xff]  }
 0x1bb   : > { %10688 = vmatprep.subr.bf16.mxu1 %v12571_v20 }
 0x1be   : > { %10689 = vmatpush3.bf16.msra.mxu1 %v12571_v20  ;;  %v11972_v20 = vld [vmem:[%s12461_s29 + $0x68] sm:$0xff]  }
 0x1bf   : > { %10698 = vmatprep.subr.bf16.mxu1 %v12603_v32 }
 0x1c1   : > { %10691 = vmatmul.mubr.msk.bf16.vlgmr.msra.gmra.mrb[24].mxu1 %vm1453_vm2, %v11968_v0 }
 0x1c2   : > { %10699 = vmatpush3.bf16.msra.mxu1 %v12603_v32  ;;  %10694 = vmatprep.mubr.msk.bf16.mxu1 %vm1453_vm2, %v11969_v56  ;;  %v11973_v32 = vld [vmem:[%s12461_s29 + $0x70] sm:$0xff]   ;;  %v13005_v56 = vstv %s2211_s20  ;;  %s4272_s20 = sadd.f32 1.0, %s9562_s19  ;;  %s9671_s19 = sld [smem:[#allocation3 + $0x2]] }
 0x1c3   : > { %10700 = vmatprep.subr.bf16.mxu1 %v12615_v38 }
 0x1c6   : > { %10701 = vmatpush3.bf16.msra.mxu1 %v12615_v38  ;;  %v11974_v38 = vld [vmem:[%s12461_s29 + $0x78] sm:$0xff]  }
 0x1c7   : > { %10702 = vmatprep.subr.bf16.mxu1 %v12650_v53 }
 0x1c9   : > { %10695 = vmatmul.mubr.msk.bf16.gmra.mrb[28].mxu1 %vm1453_vm2, %v11970_v4  ;;  %v2247_v4 = vmul.f32 %v13005_v56, %v12697_v40  ;;  %v16571_v40 = vld [vmem:[#allocation34_spill] sm:$0xff] }
 0x1ca   : > { %10703 = vmatpush3.bf16.msra.mxu1 %v12650_v53  ;;  %10706 = vmatprep.mubr.msk.bf16.mxu1 %vm1453_vm2, %v11971_v16  ;;  %v11975_v53 = vld [vmem:[%s12461_s29 + $0xa0] sm:$0xff]  }
 0x1cb   : > { %10704 = vmatprep.subr.bf16.mxu1 %v12663_v50 }
 0x1ce   : > { %10705 = vmatpush3.bf16.msra.mxu1 %v12663_v50  ;;  %v11983_v50 = vld [vmem:[%s16179_s5] sm:$0xff]  }
 0x1cf   : > { %10730 = vmatprep.subr.bf16.mxu1 %v12808_v6  ;;  %10778 = vmatprep.subr.bf16.mxu0 %v11983_v50 }
 0x1d0   : > { %10779 = vmatpush3.bf16.msra.mxu0 %v11983_v50 }
 0x1d1   : > { %10707 = vmatmul.mubr.msk.bf16.vlgmr.msra.gmra.mrb[32].mxu1 %vm1453_vm2, %v11972_v20  ;;  %v2248_v20 = vmul.f32 %v13005_v56, %v12682_v23 }
 0x1d2   : > { %10731 = vmatpush3.bf16.msra.mxu1 %v12808_v6  ;;  %10710 = vmatprep.mubr.msk.bf16.mxu1 %vm1453_vm2, %v11973_v32  ;;  %v11985_v6 = vld [vmem:[%s16179_s5 + $0x10] sm:$0xff]   ;;  %v2245_v32 = vmul.f32 %v13005_v56, %v12679_v22 }
 0x1d3   : > { %10732 = vmatprep.subr.bf16.mxu1 %v12829_v11  ;;  %v16572_v22 = vld [vmem:[#allocation33_spill] sm:$0xff] }
 0x1d6   : > { %10733 = vmatpush3.bf16.msra.mxu1 %v12829_v11  ;;  %v11984_v11 = vld [vmem:[%s16179_s5 + $0x8] sm:$0xff]  }
 0x1d7   : > { %10734 = vmatprep.subr.bf16.mxu1 %v12859_v33  ;;  %10780 = vmatprep.subr.bf16.mxu0 %v11984_v11 }
 0x1d8   : > { %10781 = vmatpush3.bf16.msra.mxu0 %v11984_v11 }
 0x1d9   : > { %10711 = vmatmul.mubr.msk.bf16.gmra.mrb[36].mxu1 %vm1453_vm2, %v11974_v38  ;;  %10782 = vmatprep.subr.bf16.mxu0 %v11985_v6 }
 0x1da   : > { %10735 = vmatpush3.bf16.msra.mxu1 %v12859_v33  ;;  %10738 = vmatprep.mubr.msk.bf16.mxu1 %vm1453_vm2, %v11975_v53  ;;  %v11979_v33 = vld [vmem:[%s12461_s29 + $0xe0] sm:$0xff]   ;;  %v2246_v53 = vmul.f32 %v13005_v56, %v12685_v49  ;;  %v16577_v49 = vld [vmem:[#allocation10_spill] sm:$0xff] }
 0x1db   : > { %10736 = vmatprep.subr.bf16.mxu1 %v12875_v28 }
 0x1dc   : > { %10783 = vmatpush3.bf16.msra.mxu0 %v11985_v6 }
 0x1de   : > { %10737 = vmatpush3.bf16.msra.mxu1 %v12875_v28  ;;  %v11988_v28 = vld [vmem:[%s16179_s5 + $0x28] sm:$0xff]  }
 0x1df   : > { %10762 = vmatprep.subr.bf16.mxu1 %v12800_v61 }
 0x1e1   : > { %10739 = vmatmul.mubr.msk.bf16.vlgmr.msra.gmra.mrb[40].mxu1 %vm1453_vm2, %v11976_v7 }
 0x1e2   : > { %10763 = vmatpush3.bf16.msra.mxu1 %v12800_v61  ;;  %10742 = vmatprep.mubr.msk.bf16.mxu1 %vm1453_vm2, %v11977_v19  ;;  %v11986_v61 = vld [vmem:[%s16179_s5 + $0x18] sm:$0xff]  }
 0x1e3   : > { %10764 = vmatprep.subr.bf16.mxu1 %v12814_v35  ;;  %10784 = vmatprep.subr.bf16.mxu0 %v11986_v61 }
 0x1e4   : > { %10785 = vmatpush3.bf16.msra.mxu0 %v11986_v61 }
 0x1e6   : > { %10765 = vmatpush3.bf16.msra.mxu1 %v12814_v35  ;;  %v11987_v35 = vld [vmem:[%s16179_s5 + $0x20] sm:$0xff]  }
 0x1e7   : > { %10766 = vmatprep.subr.bf16.mxu1 %v12851_v9  ;;  %10786 = vmatprep.subr.bf16.mxu0 %v11987_v35 }
 0x1e8   : > { %10787 = vmatpush3.bf16.msra.mxu0 %v11987_v35  ;;  %v2251_v35 = vmul.f32 %v13005_v56, %v12715_v25 }
 0x1e9   : > { %10743 = vmatmul.mubr.msk.bf16.gmra.mrb[44].mxu1 %vm1453_vm2, %v11978_v41  ;;  %10788 = vmatprep.subr.bf16.mxu0 %v11988_v28 }
 0x1ea   : > { %10767 = vmatpush3.bf16.msra.mxu1 %v12851_v9  ;;  %10770 = vmatprep.mubr.msk.bf16.mxu1 %vm1453_vm2, %v11979_v33  ;;  %v11989_v9 = vld [vmem:[%s16179_s5 + $0x30] sm:$0xff]  }
 0x1eb   : > { %10768 = vmatprep.subr.bf16.mxu1 %v12865_v27 }
 0x1ec   : > { %10789 = vmatpush3.bf16.msra.mxu0 %v11988_v28 }
 0x1ed   : > { %10790 = vmatprep.subr.bf16.mxu0 %v11989_v9 }
 0x1ee   : > { %10769 = vmatpush3.bf16.msra.mxu1 %v12865_v27 }
 0x1f0   : > { %10791 = vmatpush3.bf16.msra.mxu0 %v11989_v9 }
 0x1f1   : > { %10771 = vmatmul.mubr.msk.bf16.vlgmr.msra.gmra.mrb[48].mxu1 %vm1453_vm2, %v11980_v55  ;;  %10792 = vmatprep.subr.bf16.mxu0 %v11990_v10  ;;  %v2252_v55 = vmul.f32 %v13005_v56, %v12709_v36 }
 0x1f2   : > { %10774 = vmatprep.mubr.msk.bf16.mxu1 %vm1453_vm2, %v11981_v29  ;;  %v2249_v29 = vmul.f32 %v13005_v56, %v12706_v58 }
 0x1f4   : > { %10793 = vmatpush3.bf16.msra.mxu0 %v11990_v10 }
 0x1f9   : > { %10775 = vmatmul.mubr.msk.bf16.gmra.mrb[52].mxu1 %vm1453_vm2, %v11982_v2  ;;  %v2250_v2 = vmul.f32 %v13005_v56, %v12712_v47 }
 0x224   : > { %v9865_v27 = vpop.f32.mrb[0].mxu1 }
 0x225   : > { %v9866_v18 = vpop.f32.mrb[1].mxu1 }
 0x226   : > { %v13003_v26 = vadd.f32 %v9866_v18, %v9865_v27  ;;  %v9868_v34 = vpop.f32.mrb[2].mxu1 }
 0x227   : > { %v9869_v44 = vpop.f32.mrb[3].mxu1 }
 0x234   : > { %v10724_v0 = vpop.f32.mrb[64].mxu0 }
 0x235   : > { %v1888_v16 = vpop.f32.mrb[65].mxu0  ;;  %v13015_v50 = vadd.f32 %v10724_v0, %v2247_v4  ;;  %v2267_v4 = vmul.f32 %v13005_v56, %v12771_v3 }
 0x236   : > { %v10725_v38 = vpop.f32.mrb[66].mxu0  ;;  %v13019_v11 = vadd.f32 %v2245_v32, %v1888_v16 }
 0x237   : > { %v13017_v7 = vadd.f32 %v10725_v38, %v2248_v20  ;;  %v1891_v19 = vpop.f32.mrb[67].mxu0  ;;  %v2263_v20 = vmul.f32 %v13005_v56, %v12755_v63  ;;  %v2264_v38 = vmul.f32 %v13005_v56, %v12749_v60  ;;  %v2227_v63 = vmul.f32 %v13005_v56, %v16571_v40  ;;  %v16576_v60 = vld [vmem:[#allocation11_spill] sm:$0xff] }
 0x238   : > { %v13021_v6 = vadd.f32 %v2246_v53, %v1891_v19  ;;  %v2261_v53 = vmul.f32 %v13005_v56, %v12746_v45  ;;  %v2232_v45 = vmul.f32 %v13005_v56, %v16576_v60  ;;  %v2229_v40 = vmul.f32 %v13005_v56, %v16577_v49 }
 0x23c   : > { %v10728_v61 = vpop.f32.mrb[68].mxu0 }
 0x23d   : > { %v1904_v28 = vpop.f32.mrb[69].mxu0  ;;  %v13035_v10 = vadd.f32 %v10728_v61, %v2251_v35  ;;  %v2262_v61 = vmul.f32 %v13005_v56, %v12752_v52  ;;  %v2228_v52 = vmul.f32 %v13005_v56, %v16572_v22  ;;  %v16580_v22 = vld [vmem:[#allocation15_spill] sm:$0xff] }
 0x23e   : > { %v10729_v9 = vpop.f32.mrb[70].mxu0  ;;  %v13039_v34 = vadd.f32 %v2249_v29, %v1904_v28 }
 0x23f   : > { %v13037_v27 = vadd.f32 %v10729_v9, %v2252_v55  ;;  %v1907_v18 = vpop.f32.mrb[71].mxu0 }
 0x240   : > { %v13041_v44 = vadd.f32 %v2250_v2, %v1907_v18 }
 0x254   : > { %v10756_v16 = vpop.f32.mrb[72].mxu0 }
 0x255   : > { %v2082_v32 = vpop.f32.mrb[73].mxu0  ;;  %v13055_v35 = vadd.f32 %v10756_v16, %v2263_v20  ;;  %v2268_v16 = vmul.f32 %v13005_v56, %v12765_v12  ;;  %v2265_v20 = vmul.f32 %v13005_v56, %v12762_v48  ;;  %v2219_v48 = vmul.f32 %v13005_v56, %v12574_v21 }
 0x256   : > { %v10757_v19 = vpop.f32.mrb[74].mxu0  ;;  %v13059_v29 = vadd.f32 %v2261_v53, %v2082_v32 }
 0x257   : > { %v13057_v28 = vadd.f32 %v10757_v19, %v2264_v38  ;;  %v2085_v55 = vpop.f32.mrb[75].mxu0  ;;  %v2266_v38 = vmul.f32 %v13005_v56, %v12768_v54 }
 0x258   : > { %v13061_v9 = vadd.f32 %v2262_v61, %v2085_v55 }
 0x25c   : > { %v10760_v0 = vpop.f32.mrb[76].mxu0 }
 0x25d   : > { %v2098_v41 = vpop.f32.mrb[77].mxu0  ;;  %v13075_v53 = vadd.f32 %v10760_v0, %v2267_v4 }
 0x25e   : > { %v10761_v32 = vpop.f32.mrb[78].mxu0  ;;  %v13079_v55 = vadd.f32 %v2265_v20, %v2098_v41  ;;  %v2215_v41 = vmul.f32 %v13005_v56, %v12530_v5  ;;  %v2216_v20 = vmul.f32 %v13005_v56, %v12518_v1 }
 0x25f   : > { %v13077_v19 = vadd.f32 %v10761_v32, %v2268_v16  ;;  %v2101_v61 = vpop.f32.mrb[79].mxu0  ;;  %v11991_v32 = vld [vmem:[%s16181_s7] sm:$0xff]  }
 0x260   : > { %v13081_v2 = vadd.f32 %v2266_v38, %v2101_v61  ;;  %10858 = vmatprep.subr.bf16.mxu1 %v11991_v32 }
 0x261   : > { %10859 = vmatpush3.bf16.msra.mxu1 %v11991_v32 }
 0x264   : > { %v9887_v43 = vpop.f32.mrb[4].mxu1 }
 0x265   : > { %v9888_v25 = vpop.f32.mrb[5].mxu1 }
 0x266   : > { %v9889_v36 = vadd.f32 %v9888_v25, %v9887_v43  ;;  %v9890_v3 = vpop.f32.mrb[6].mxu1 }
 0x267   : > { %v9891_v58 = vpop.f32.mrb[7].mxu1  ;;  %v11992_v3 = vld [vmem:[%s16181_s7 + $0x8] sm:$0xff]  }
 0x268   : > { %v13088_v0 = vadd.f32 %v9889_v36, %v13003_v26  ;;  %v2213_v36 = vmul.f32 %v13005_v56, %v12508_v62  ;;  %v2214_v58 = vmul.f32 %v13005_v56, %v12496_v57  ;;  %10860 = vmatprep.subr.bf16.mxu1 %v11992_v3 }
 0x269   : > { %10861 = vmatpush3.bf16.msra.mxu1 %v11992_v3 }
 0x26a   : > { %16567 = vst [vmem:[#allocation64_spill] sm:$0xff] %v13088_v0  ;;  %v11993_v0 = vld [vmem:[%s16181_s7 + $0x10] sm:$0xff]  }
 0x26b   : > { %10862 = vmatprep.subr.bf16.mxu1 %v11993_v0 }
 0x26d   : > { %10863 = vmatpush3.bf16.msra.mxu1 %v11993_v0  ;;  %v11996_v0 = vld [vmem:[%s16181_s7 + $0x28] sm:$0xff]  }
 0x274   : > { %v10660_v4 = vpop.f32.mrb[8].mxu1 }
 0x275   : > { %v1500_v16 = vpop.f32.mrb[9].mxu1  ;;  %v2279_v43 = vadd.f32 %v10660_v4, %v2215_v41  ;;  %v2220_v41 = vmul.f32 %v13005_v56, %v12562_v17 }
 0x276   : > { %v10661_v25 = vpop.f32.mrb[10].mxu1  ;;  %v2277_v61 = vadd.f32 %v2213_v36, %v1500_v16  ;;  %v11994_v16 = vld [vmem:[%s16181_s7 + $0x18] sm:$0xff]  }
 0x277   : > { %v2280_v26 = vadd.f32 %v10661_v25, %v2216_v20  ;;  %v1503_v38 = vpop.f32.mrb[11].mxu1  ;;  %v2217_v20 = vmul.f32 %v13005_v56, %v12551_v14  ;;  %10864 = vmatprep.subr.bf16.mxu1 %v11994_v16 }
 0x278   : > { %v2278_v18 = vadd.f32 %v2214_v58, %v1503_v38  ;;  %10865 = vmatpush3.bf16.msra.mxu1 %v11994_v16 }
 0x279   : > { %v2342_v33 = vpack.c.bf16 %v2280_v26, %v2279_v43  ;;  %v11995_v43 = vld [vmem:[%s16181_s7 + $0x20] sm:$0xff]  }
 0x27a   : > { %v2341_v54 = vpack.c.bf16 %v2278_v18, %v2277_v61  ;;  %v2223_v61 = vmul.f32 %v13005_v56, %v12619_v39  ;;  %10866 = vmatprep.subr.bf16.mxu1 %v11995_v43 }
 0x27c   : > { %v10664_v12 = vpop.f32.mrb[12].mxu1  ;;  %10794 = vmatprep.mubr.bf16.mxu0 %v2341_v54  ;;  %v2218_v54 = vmul.f32 %v13005_v56, %v12535_v8  ;;  %10867 = vmatpush3.bf16.msra.mxu1 %v11995_v43 }
 0x27d   : > { %v1516_v4 = vpop.f32.mrb[13].mxu1  ;;  %10795 = vmatmul.mubr.bf16.vlgmr.msra.gmra.mrb[80].mxu0 %v2342_v33  ;;  %v2283_v32 = vadd.f32 %v10664_v12, %v2219_v48  ;;  %v16568_v48 = vld [vmem:[#allocation25_spill] sm:$0xff]  ;;  %10868 = vmatprep.subr.bf16.mxu1 %v11996_v0 }
 0x27e   : > { %v10665_v18 = vpop.f32.mrb[14].mxu1  ;;  %v2281_v25 = vadd.f32 %v2217_v20, %v1516_v4  ;;  %v2224_v12 = vmul.f32 %v13005_v56, %v16568_v48  ;;  %v16569_v4 = vld [vmem:[#allocation23_spill] sm:$0xff]  ;;  %v16584_v48 = vld [vmem:[#allocation21_spill] sm:$0xff] }
 0x27f   : > { %v2284_v3 = vadd.f32 %v10665_v18, %v2220_v41  ;;  %v1519_v36 = vpop.f32.mrb[15].mxu1  ;;  %v2221_v41 = vmul.f32 %v13005_v56, %v16569_v4  ;;  %v16570_v18 = vld [vmem:[#allocation19_spill] sm:$0xff]  ;;  %v2240_v4 = vmul.f32 %v13005_v56, %v16584_v48 }
 0x280   : > { %v2282_v33 = vadd.f32 %v2218_v54, %v1519_v36  ;;  %v2222_v16 = vmul.f32 %v13005_v56, %v16570_v18  ;;  %10869 = vmatpush3.bf16.msra.mxu1 %v11996_v0  ;;  %v16585_v18 = vld [vmem:[#allocation20_spill] sm:$0xff] }
 0x281   : > { %v2344_v58 = vpack.c.bf16 %v2284_v3, %v2283_v32  ;;  %v2237_v21 = vmul.f32 %v13005_v56, %v16585_v18  ;;  %v16589_v18 = vld [vmem:[#allocation28_spill] sm:$0xff] }
 0x282   : > { %v2343_v26 = vpack.c.bf16 %v2282_v33, %v2281_v25 }
 0x284   : > { %v10676_v38 = vpop.f32.mrb[16].mxu1  ;;  %10798 = vmatprep.mubr.bf16.mxu0 %v2343_v26 }
 0x285   : > { %v1597_v47 = vpop.f32.mrb[17].mxu1  ;;  %10799 = vmatmul.mubr.bf16.gmra.mrb[84].mxu0 %v2344_v58  ;;  %v2287_v54 = vadd.f32 %v10676_v38, %v2223_v61  ;;  %v16573_v38 = vld [vmem:[#allocation31_spill] sm:$0xff] }
 0x286   : > { %v10677_v20 = vpop.f32.mrb[18].mxu1  ;;  %v2285_v36 = vadd.f32 %v2221_v41, %v1597_v47  ;;  %v2225_v61 = vmul.f32 %v13005_v56, %v16573_v38  ;;  %v2236_v38 = vmul.f32 %v13005_v56, %v16580_v22 }
 0x287   : > { %v2288_v32 = vadd.f32 %v10677_v20, %v2224_v12  ;;  %v1600_v3 = vpop.f32.mrb[19].mxu1  ;;  %v16574_v12 = vld [vmem:[#allocation27_spill] sm:$0xff] }
 0x288   : > { %v2286_v25 = vadd.f32 %v2222_v16, %v1600_v3  ;;  %v2226_v43 = vmul.f32 %v13005_v56, %v16574_v12  ;;  %v16581_v12 = vld [vmem:[#allocation14_spill] sm:$0xff] }
 0x289   : > { %v2346_v33 = vpack.c.bf16 %v2288_v32, %v2287_v54  ;;  %v2233_v39 = vmul.f32 %v13005_v56, %v16581_v12 }
 0x28a   : > { %v2345_v58 = vpack.c.bf16 %v2286_v25, %v2285_v36  ;;  %v16575_v25 = vld [vmem:[#allocation13_spill] sm:$0xff] }
 0x28c   : > { %v10680_v26 = vpop.f32.mrb[20].mxu1  ;;  %10802 = vmatprep.mubr.bf16.mxu0 %v2345_v58 }
 0x28d   : > { %v1613_v23 = vpop.f32.mrb[21].mxu1  ;;  %10803 = vmatmul.mubr.bf16.gmra.mrb[88].mxu0 %v2346_v33  ;;  %v2291_v41 = vadd.f32 %v10680_v26, %v2227_v63  ;;  %v2231_v33 = vmul.f32 %v13005_v56, %v16575_v25 }
 0x28e   : > { %v10681_v47 = vpop.f32.mrb[22].mxu1  ;;  %v2289_v54 = vadd.f32 %v2225_v61, %v1613_v23 }
 0x28f   : > { %v2292_v20 = vadd.f32 %v10681_v47, %v2228_v52  ;;  %v1616_v16 = vpop.f32.mrb[23].mxu1  ;;  %v16578_v52 = vld [vmem:[#allocation12_spill] sm:$0xff] }
 0x290   : > { %v2290_v0 = vadd.f32 %v2226_v43, %v1616_v16  ;;  %v2230_v23 = vmul.f32 %v13005_v56, %v16578_v52 }
 0x291   : > { %v2348_v32 = vpack.c.bf16 %v2292_v20, %v2291_v41 }
 0x292   : > { %v2347_v3 = vpack.c.bf16 %v2290_v0, %v2289_v54  ;;  %v16579_v0 = vld [vmem:[#allocation17_spill] sm:$0xff] }
 0x294   : > { %v10692_v36 = vpop.f32.mrb[24].mxu1  ;;  %10806 = vmatprep.mubr.bf16.mxu0 %v2347_v3 }
 0x295   : > { %v1694_v58 = vpop.f32.mrb[25].mxu1  ;;  %10807 = vmatmul.mubr.bf16.gmra.mrb[92].mxu0 %v2348_v32  ;;  %v2295_v26 = vadd.f32 %v10692_v36, %v2231_v33  ;;  %v2235_v32 = vmul.f32 %v13005_v56, %v16579_v0 }
 0x296   : > { %v10693_v63 = vpop.f32.mrb[26].mxu1  ;;  %v2293_v43 = vadd.f32 %v2229_v40, %v1694_v58 }
 0x297   : > { %v2296_v61 = vadd.f32 %v10693_v63, %v2232_v45  ;;  %v1697_v47 = vpop.f32.mrb[27].mxu1  ;;  %v16582_v45 = vld [vmem:[#allocation16_spill] sm:$0xff] }
 0x298   : > { %v2294_v41 = vadd.f32 %v2230_v23, %v1697_v47  ;;  %v2234_v40 = vmul.f32 %v13005_v56, %v16582_v45 }
 0x299   : > { %v2350_v20 = vpack.c.bf16 %v2296_v61, %v2295_v26 }
 0x29a   : > { %v2349_v16 = vpack.c.bf16 %v2294_v41, %v2293_v43  ;;  %v16583_v41 = vld [vmem:[#allocation24_spill] sm:$0xff] }
 0x29c   : > { %v10696_v54 = vpop.f32.mrb[28].mxu1  ;;  %10810 = vmatprep.mubr.bf16.mxu0 %v2349_v16 }
 0x29d   : > { %v1710_v3 = vpop.f32.mrb[29].mxu1  ;;  %10811 = vmatmul.mubr.bf16.gmra.mrb[96].mxu0 %v2350_v20  ;;  %v2299_v33 = vadd.f32 %v10696_v54, %v2235_v32  ;;  %v2239_v20 = vmul.f32 %v13005_v56, %v16583_v41  ;;  %v16588_v41 = vld [vmem:[#allocation29_spill] sm:$0xff] }
 0x29e   : > { %v10697_v36 = vpop.f32.mrb[30].mxu1  ;;  %v2297_v23 = vadd.f32 %v2233_v39, %v1710_v3  ;;  %v2244_v48 = vmul.f32 %v13005_v56, %v16588_v41 }
 0x29f   : > { %v2300_v58 = vadd.f32 %v10697_v36, %v2236_v38  ;;  %v1713_v63 = vpop.f32.mrb[31].mxu1  ;;  %v16586_v38 = vld [vmem:[#allocation22_spill] sm:$0xff] }
 0x2a0   : > { %v2298_v26 = vadd.f32 %v2234_v40, %v1713_v63  ;;  %v2238_v39 = vmul.f32 %v13005_v56, %v16586_v38  ;;  %v2241_v38 = vmul.f32 %v13005_v56, %v16589_v18 }
 0x2a1   : > { %v2352_v61 = vpack.c.bf16 %v2300_v58, %v2299_v33 }
 0x2a2   : > { %v2351_v47 = vpack.c.bf16 %v2298_v26, %v2297_v23  ;;  %v16587_v26 = vld [vmem:[#allocation32_spill] sm:$0xff] }
 0x2a4   : > { %v10708_v43 = vpop.f32.mrb[32].mxu1  ;;  %10814 = vmatprep.mubr.bf16.mxu0 %v2351_v47 }
 0x2a5   : > { %v1791_v16 = vpop.f32.mrb[33].mxu1  ;;  %10815 = vmatmul.mubr.bf16.gmra.mrb[100].mxu0 %v2352_v61  ;;  %v2303_v32 = vadd.f32 %v10708_v43, %v2239_v20  ;;  %v2243_v61 = vmul.f32 %v13005_v56, %v16587_v26  ;;  %v2253_v26 = vmul.f32 %v13005_v56, %v12791_v37 }
 0x2a6   : > { %v10709_v54 = vpop.f32.mrb[34].mxu1  ;;  %v2301_v40 = vadd.f32 %v2237_v21, %v1791_v16 }
 0x2a7   : > { %v2304_v3 = vadd.f32 %v10709_v54, %v2240_v4  ;;  %v1794_v36 = vpop.f32.mrb[35].mxu1  ;;  %v16590_v4 = vld [vmem:[#allocation30_spill] sm:$0xff] }
 0x2a8   : > { %v2302_v33 = vadd.f32 %v2238_v39, %v1794_v36  ;;  %v2242_v21 = vmul.f32 %v13005_v56, %v16590_v4 }
 0x2a9   : > { %v2354_v58 = vpack.c.bf16 %v2304_v3, %v2303_v32 }
 0x2aa   : > { %v2353_v63 = vpack.c.bf16 %v2302_v33, %v2301_v40  ;;  %v2255_v33 = vmul.f32 %v13005_v56, %v12818_v13  ;;  %v16593_v13 = vpack.c.bf16 %v13017_v7, %v13015_v50 }
 0x2ac   : > { %v10712_v23 = vpop.f32.mrb[36].mxu1  ;;  %10818 = vmatprep.mubr.bf16.mxu0 %v2353_v63  ;;  %v2256_v63 = vmul.f32 %v13005_v56, %v12804_v59 }
 0x2ad   : > { %v1807_v47 = vpop.f32.mrb[37].mxu1  ;;  %10819 = vmatmul.mubr.bf16.gmra.mrb[104].mxu0 %v2354_v58  ;;  %v2307_v20 = vadd.f32 %v10712_v23, %v2243_v61 }
 0x2ae   : > { %v10713_v43 = vpop.f32.mrb[38].mxu1  ;;  %v2305_v39 = vadd.f32 %v2241_v38, %v1807_v47  ;;  %v16592_v38 = vld [vmem:[#allocation53_spill] sm:$0xff] }
 0x2af   : > { %v2308_v16 = vadd.f32 %v10713_v43, %v2244_v48  ;;  %v1810_v54 = vpop.f32.mrb[39].mxu1  ;;  %v16591_v48 = vpack.c.bf16 %v13021_v6, %v13019_v11  ;;  %v2254_v61 = vmul.f32 %v13005_v56, %v16592_v38  ;;  %v2260_v11 = vmul.f32 %v13005_v56, %v12855_v15 }
 0x2b0   : > { %v2306_v32 = vadd.f32 %v2242_v21, %v1810_v54  ;;  %v2257_v6 = vmul.f32 %v13005_v56, %v12843_v31 }
 0x2b1   : > { %v2356_v3 = vpack.c.bf16 %v2308_v16, %v2307_v20 }
 0x2b2   : > { %v2355_v36 = vpack.c.bf16 %v2306_v32, %v2305_v39 }
 0x2b4   : > { %v10740_v40 = vpop.f32.mrb[40].mxu1  ;;  %10822 = vmatprep.mubr.bf16.mxu0 %v2355_v36 }
 0x2b5   : > { %v1985_v58 = vpop.f32.mrb[41].mxu1  ;;  %10823 = vmatmul.mubr.bf16.gmra.mrb[108].mxu0 %v2356_v3  ;;  %v2319_v47 = vadd.f32 %v10740_v40, %v2255_v33  ;;  %v2259_v3 = vmul.f32 %v13005_v56, %v12869_v51  ;;  %v2258_v33 = vmul.f32 %v13005_v56, %v12825_v30 }
 0x2b6   : > { %v10741_v23 = vpop.f32.mrb[42].mxu1  ;;  %10826 = vmatprep.mubr.bf16.mxu0 %v16591_v48  ;;  %v2317_v20 = vadd.f32 %v2253_v26, %v1985_v58  ;;  %v16594_v26 = vpack.c.bf16 %v13041_v44, %v13039_v34  ;;  %v16597_v34 = vld [vmem:[#allocation55_spill] sm:$0xff] }
 0x2b7   : > { %v2320_v43 = vadd.f32 %v10741_v23, %v2256_v63  ;;  %v1988_v21 = vpop.f32.mrb[43].mxu1  ;;  %v2272_v44 = vmul.f32 %v13005_v56, %v16597_v34 }
 0x2b8   : > { %v2318_v16 = vadd.f32 %v2254_v61, %v1988_v21 }
 0x2b9   : > { %v2362_v54 = vpack.c.bf16 %v2320_v43, %v2319_v47  ;;  %v16595_v47 = vld [vmem:[#allocation57_spill] sm:$0xff] }
 0x2ba   : > { %v2361_v39 = vpack.c.bf16 %v2318_v16, %v2317_v20  ;;  %v2271_v43 = vmul.f32 %v13005_v56, %v16595_v47  ;;  %v16596_v20 = vpack.c.bf16 %v13037_v27, %v13035_v10  ;;  %v16598_v16 = vld [vmem:[#allocation54_spill] sm:$0xff]  ;;  %v2275_v27 = vmul.f32 %v13005_v56, %v12847_v42 }
 0x2bc   : > { %v10744_v32 = vpop.f32.mrb[44].mxu1 }
 0x2bd   : > { %v2001_v36 = vpop.f32.mrb[45].mxu1  ;;  %10827 = vmatmul.mubr.bf16.gmra.mrb[112].mxu0 %v16593_v13  ;;  %v2323_v58 = vadd.f32 %v10744_v32, %v2259_v3  ;;  %v2269_v32 = vmul.f32 %v13005_v56, %v16598_v16 }
 0x2be   : > { %v10745_v40 = vpop.f32.mrb[46].mxu1  ;;  %10830 = vmatprep.mubr.bf16.mxu0 %v16594_v26  ;;  %v2321_v48 = vadd.f32 %v2257_v6, %v2001_v36  ;;  %v16599_v36 = vld [vmem:[#allocation56_spill] sm:$0xff] }
 0x2bf   : > { %v2324_v63 = vadd.f32 %v10745_v40, %v2260_v11  ;;  %v2004_v23 = vpop.f32.mrb[47].mxu1  ;;  %v2270_v11 = vmul.f32 %v13005_v56, %v16599_v36 }
 0x2c0   : > { %v2322_v50 = vadd.f32 %v2258_v33, %v2004_v23 }
 0x2c1   : > { %v2364_v13 = vpack.c.bf16 %v2324_v63, %v2323_v58 }
 0x2c2   : > { %v2363_v7 = vpack.c.bf16 %v2322_v50, %v2321_v48  ;;  %v2276_v50 = vmul.f32 %v13005_v56, %v12835_v24 }
 0x2c4   : > { %v10772_v61 = vpop.f32.mrb[48].mxu1 }
 0x2c5   : > { %v2179_v21 = vpop.f32.mrb[49].mxu1  ;;  %10831 = vmatmul.mubr.bf16.gmra.mrb[116].mxu0 %v16596_v20  ;;  %v2335_v6 = vadd.f32 %v10772_v61, %v2271_v43  ;;  %v16600_v61 = vld [vmem:[#allocation59_spill] sm:$0xff] }
 0x2c6   : > { %v10773_v3 = vpop.f32.mrb[50].mxu1  ;;  %10834 = vmatprep.mubr.bf16.mxu0 %v2361_v39  ;;  %v2333_v33 = vadd.f32 %v2269_v32, %v2179_v21  ;;  %v2273_v39 = vmul.f32 %v13005_v56, %v12832_v46  ;;  %v2274_v43 = vmul.f32 %v13005_v56, %v16600_v61  ;;  %v16601_v56 = vpack.c.bf16 %v13061_v9, %v13059_v29  ;;  %v16605_v29 = vld [vmem:[#allocation9_spill] sm:$0xff]  ;;  %v13238_v9 = vld [vmem:[%s16180_s6] ss:$0 sm:$0xff] }
 0x2c7   : > { %v2336_v40 = vadd.f32 %v10773_v3, %v2272_v44  ;;  %v2182_v26 = vpop.f32.mrb[51].mxu1 }
 0x2c8   : > { %v2334_v58 = vadd.f32 %v2270_v11, %v2182_v26  ;;  %v16602_v26 = vpack.c.bf16 %v13057_v28, %v13055_v35 }
 0x2c9   : > { %v2370_v63 = vpack.c.bf16 %v2336_v40, %v2335_v6 }
 0x2ca   : > { %v2369_v23 = vpack.c.bf16 %v2334_v58, %v2333_v33  ;;  %v16603_v33 = vpack.c.bf16 %v13081_v2, %v13079_v55 }
 0x2cc   : > { %v10776_v10 = vpop.f32.mrb[52].mxu1 }
 0x2cd   : > { %v2195_v48 = vpop.f32.mrb[53].mxu1  ;;  %10835 = vmatmul.mubr.bf16.gmra.mrb[120].mxu0 %v2362_v54  ;;  %v2339_v21 = vadd.f32 %v10776_v10, %v2275_v27  ;;  %v11997_v54 = vld [vmem:[%s16181_s7 + $0x30] sm:$0xff]  }
 0x2ce   : > { %v10777_v20 = vpop.f32.mrb[54].mxu1  ;;  %10838 = vmatprep.mubr.bf16.mxu0 %v2363_v7  ;;  %v2337_v3 = vadd.f32 %v2273_v39, %v2195_v48  ;;  %10870 = vmatprep.subr.bf16.mxu1 %v11997_v54  ;;  %v11998_v7 = vld [vmem:[%s16181_s7 + $0x38] sm:$0xff]  }
 0x2cf   : > { %v2340_v44 = vadd.f32 %v10777_v20, %v2276_v50  ;;  %v2198_v32 = vpop.f32.mrb[55].mxu1  ;;  %10871 = vmatpush3.bf16.msra.mxu1 %v11997_v54 }
 0x2d0   : > { %v2338_v11 = vadd.f32 %v2274_v43, %v2198_v32  ;;  %10872 = vmatprep.subr.bf16.mxu1 %v11998_v7 }
 0x2d1   : > { %v2372_v6 = vpack.c.bf16 %v2340_v44, %v2339_v21 }
 0x2d2   : > { %v2371_v40 = vpack.c.bf16 %v2338_v11, %v2337_v3 }
 0x2d3   : > { %10873 = vmatpush3.bf16.msra.mxu1 %v11998_v7 }
 0x2d5   : > { %10839 = vmatmul.mubr.bf16.gmra.mrb[124].mxu0 %v2364_v13  ;;  %v16604_v13 = vpack.c.bf16 %v13077_v19, %v13075_v53 }
 0x2d6   : > { %10842 = vmatprep.mubr.bf16.mxu0 %v16601_v56 }
 0x2dd   : > { %10843 = vmatmul.mubr.bf16.gmra.mrb[128].mxu0 %v16602_v26 }
 0x2de   : > { %10846 = vmatprep.mubr.bf16.mxu0 %v16603_v33 }
 0x2e5   : > { %10847 = vmatmul.mubr.bf16.gmra.mrb[132].mxu0 %v16604_v13 }
 0x2e6   : > { %10850 = vmatprep.mubr.bf16.mxu0 %v2369_v23 }
 0x2ed   : > { %10851 = vmatmul.mubr.bf16.gmra.mrb[136].mxu0 %v2370_v63 }
 0x2ee   : > { %10854 = vmatprep.mubr.bf16.mxu0 %v2371_v40 }
 0x2f5   : > { %10855 = vmatmul.mubr.bf16.gmra.mrb[140].mxu0 %v2372_v6 }
 0x2f6   : > { %3509 = vmatprep.mubr.bf16.mxu0 %v16605_v29 }
 0x350   : > { %v10796_v35 = vpop.f32.mrb[80].mxu0 }
 0x351   : > { %v2487_v28 = vadd.f32 %v10796_v35, %v13238_v9  ;;  %v2478_v2 = vpop.f32.mrb[81].mxu0 }
 0x352   : > { %v2479_v55 = vadd.f32 %v13238_v9, %v2478_v2  ;;  %v10797_v58 = vpop.f32.mrb[82].mxu0 }
 0x353   : > { %v2490_v53 = vadd.f32 %v10797_v58, %v13238_v9  ;;  %v2481_v19 = vpop.f32.mrb[83].mxu0  ;;  %v2735_v23 = vmax.f32 %v2487_v28, 0.0 }
 0x354   : > { %v2482_v63 = vadd.f32 %v13238_v9, %v2481_v19  ;;  %v2733_v27 = vmax.f32 %v2479_v55, 0.0 }
 0x355   : > { %v2736_v10 = vmax.f32 %v2490_v53, 0.0 }
 0x356   : > { %v2734_v48 = vmax.f32 %v2482_v63, 0.0 }
 0x357   : > { %v2798_v50 = vpack.c.bf16 %v2736_v10, %v2735_v23 }
 0x358   : > { %v10800_v39 = vpop.f32.mrb[84].mxu0  ;;  %v2797_v20 = vpack.c.bf16 %v2734_v48, %v2733_v27 }
 0x359   : > { %v2503_v43 = vadd.f32 %v10800_v39, %v13238_v9  ;;  %v2494_v21 = vpop.f32.mrb[85].mxu0 }
 0x35a   : > { %v2495_v44 = vadd.f32 %v13238_v9, %v2494_v21  ;;  %v10801_v32 = vpop.f32.mrb[86].mxu0  ;;  %10874 = vmatprep.mubr.bf16.mxu1 %v2797_v20 }
 0x35b   : > { %v2506_v3 = vadd.f32 %v10801_v32, %v13238_v9  ;;  %v2497_v11 = vpop.f32.mrb[87].mxu0  ;;  %10875 = vmatmul.mubr.bf16.vlgmr.msra.gmra.mrb[56].mxu1 %v2798_v50  ;;  %v2739_v54 = vmax.f32 %v2503_v43, 0.0 }
 0x35c   : > { %v2498_v6 = vadd.f32 %v13238_v9, %v2497_v11  ;;  %v2737_v7 = vmax.f32 %v2495_v44, 0.0 }
 0x35d   : > { %v2740_v40 = vmax.f32 %v2506_v3, 0.0 }
 0x35e   : > { %v2738_v56 = vmax.f32 %v2498_v6, 0.0 }
 0x35f   : > { %v2800_v26 = vpack.c.bf16 %v2740_v40, %v2739_v54 }
 0x360   : > { %v10804_v33 = vpop.f32.mrb[88].mxu0  ;;  %v2799_v13 = vpack.c.bf16 %v2738_v56, %v2737_v7 }
 0x361   : > { %v2519_v35 = vadd.f32 %v10804_v33, %v13238_v9  ;;  %v2510_v28 = vpop.f32.mrb[89].mxu0 }
 0x362   : > { %v2511_v2 = vadd.f32 %v13238_v9, %v2510_v28  ;;  %v10805_v55 = vpop.f32.mrb[90].mxu0  ;;  %10878 = vmatprep.mubr.bf16.mxu1 %v2799_v13 }
 0x363   : > { %v2522_v58 = vadd.f32 %v10805_v55, %v13238_v9  ;;  %v2513_v53 = vpop.f32.mrb[91].mxu0  ;;  %10879 = vmatmul.mubr.bf16.gmra.mrb[60].mxu1 %v2800_v26  ;;  %v2743_v63 = vmax.f32 %v2519_v35, 0.0 }
 0x364   : > { %v2514_v19 = vadd.f32 %v13238_v9, %v2513_v53  ;;  %v2741_v10 = vmax.f32 %v2511_v2, 0.0 }
 0x365   : > { %v2744_v23 = vmax.f32 %v2522_v58, 0.0 }
 0x366   : > { %v2742_v27 = vmax.f32 %v2514_v19, 0.0 }
 0x367   : > { %v2802_v48 = vpack.c.bf16 %v2744_v23, %v2743_v63 }
 0x368   : > { %v10808_v50 = vpop.f32.mrb[92].mxu0  ;;  %v2801_v39 = vpack.c.bf16 %v2742_v27, %v2741_v10 }
 0x369   : > { %v2535_v20 = vadd.f32 %v10808_v50, %v13238_v9  ;;  %v2526_v43 = vpop.f32.mrb[93].mxu0 }
 0x36a   : > { %v2527_v21 = vadd.f32 %v13238_v9, %v2526_v43  ;;  %v10809_v44 = vpop.f32.mrb[94].mxu0  ;;  %10882 = vmatprep.mubr.bf16.mxu1 %v2801_v39 }
 0x36b   : > { %v2538_v32 = vadd.f32 %v10809_v44, %v13238_v9  ;;  %v2529_v3 = vpop.f32.mrb[95].mxu0  ;;  %10883 = vmatmul.mubr.bf16.gmra.mrb[64].mxu1 %v2802_v48  ;;  %v2747_v6 = vmax.f32 %v2535_v20, 0.0 }
 0x36c   : > { %v2530_v11 = vadd.f32 %v13238_v9, %v2529_v3  ;;  %v2745_v40 = vmax.f32 %v2527_v21, 0.0 }
 0x36d   : > { %v2748_v54 = vmax.f32 %v2538_v32, 0.0 }
 0x36e   : > { %v2746_v7 = vmax.f32 %v2530_v11, 0.0 }
 0x36f   : > { %v2804_v56 = vpack.c.bf16 %v2748_v54, %v2747_v6 }
 0x370   : > { %v10812_v26 = vpop.f32.mrb[96].mxu0  ;;  %v2803_v33 = vpack.c.bf16 %v2746_v7, %v2745_v40 }
 0x371   : > { %v2551_v13 = vadd.f32 %v10812_v26, %v13238_v9  ;;  %v2542_v35 = vpop.f32.mrb[97].mxu0 }
 0x372   : > { %v2543_v28 = vadd.f32 %v13238_v9, %v2542_v35  ;;  %v10813_v2 = vpop.f32.mrb[98].mxu0  ;;  %10886 = vmatprep.mubr.bf16.mxu1 %v2803_v33 }
 0x373   : > { %v2554_v55 = vadd.f32 %v10813_v2, %v13238_v9  ;;  %v2545_v58 = vpop.f32.mrb[99].mxu0  ;;  %10887 = vmatmul.mubr.bf16.gmra.mrb[68].mxu1 %v2804_v56  ;;  %v2751_v19 = vmax.f32 %v2551_v13, 0.0 }
 0x374   : > { %v2546_v53 = vadd.f32 %v13238_v9, %v2545_v58  ;;  %v2749_v23 = vmax.f32 %v2543_v28, 0.0 }
 0x375   : > { %v2752_v63 = vmax.f32 %v2554_v55, 0.0 }
 0x376   : > { %v2750_v10 = vmax.f32 %v2546_v53, 0.0 }
 0x377   : > { %v2806_v27 = vpack.c.bf16 %v2752_v63, %v2751_v19 }
 0x378   : > { %v10816_v48 = vpop.f32.mrb[100].mxu0  ;;  %v2805_v50 = vpack.c.bf16 %v2750_v10, %v2749_v23 }
 0x379   : > { %v2567_v39 = vadd.f32 %v10816_v48, %v13238_v9  ;;  %v2558_v20 = vpop.f32.mrb[101].mxu0 }
 0x37a   : > { %v2559_v43 = vadd.f32 %v13238_v9, %v2558_v20  ;;  %v10817_v21 = vpop.f32.mrb[102].mxu0  ;;  %10890 = vmatprep.mubr.bf16.mxu1 %v2805_v50 }
 0x37b   : > { %v2570_v44 = vadd.f32 %v10817_v21, %v13238_v9  ;;  %v2561_v32 = vpop.f32.mrb[103].mxu0  ;;  %10891 = vmatmul.mubr.bf16.gmra.mrb[72].mxu1 %v2806_v27  ;;  %v2755_v11 = vmax.f32 %v2567_v39, 0.0 }
 0x37c   : > { %v2562_v3 = vadd.f32 %v13238_v9, %v2561_v32  ;;  %v2753_v54 = vmax.f32 %v2559_v43, 0.0 }
 0x37d   : > { %v2756_v6 = vmax.f32 %v2570_v44, 0.0 }
 0x37e   : > { %v2754_v40 = vmax.f32 %v2562_v3, 0.0 }
 0x37f   : > { %v2808_v7 = vpack.c.bf16 %v2756_v6, %v2755_v11 }
 0x380   : > { %v10820_v56 = vpop.f32.mrb[104].mxu0  ;;  %v2807_v26 = vpack.c.bf16 %v2754_v40, %v2753_v54 }
 0x381   : > { %v2583_v33 = vadd.f32 %v10820_v56, %v13238_v9  ;;  %v2574_v13 = vpop.f32.mrb[105].mxu0 }
 0x382   : > { %v2575_v35 = vadd.f32 %v13238_v9, %v2574_v13  ;;  %v10821_v28 = vpop.f32.mrb[106].mxu0  ;;  %10894 = vmatprep.mubr.bf16.mxu1 %v2807_v26 }
 0x383   : > { %v2586_v2 = vadd.f32 %v10821_v28, %v13238_v9  ;;  %v2577_v55 = vpop.f32.mrb[107].mxu0  ;;  %10895 = vmatmul.mubr.bf16.gmra.mrb[76].mxu1 %v2808_v7  ;;  %v2759_v53 = vmax.f32 %v2583_v33, 0.0 }
 0x384   : > { %v2578_v58 = vadd.f32 %v13238_v9, %v2577_v55  ;;  %v2757_v63 = vmax.f32 %v2575_v35, 0.0 }
 0x385   : > { %v2760_v19 = vmax.f32 %v2586_v2, 0.0 }
 0x386   : > { %v2758_v23 = vmax.f32 %v2578_v58, 0.0 }
 0x387   : > { %v2810_v10 = vpack.c.bf16 %v2760_v19, %v2759_v53 }
 0x388   : > { %v10824_v27 = vpop.f32.mrb[108].mxu0  ;;  %v2809_v48 = vpack.c.bf16 %v2758_v23, %v2757_v63 }
 0x389   : > { %v2599_v50 = vadd.f32 %v10824_v27, %v13238_v9  ;;  %v2590_v39 = vpop.f32.mrb[109].mxu0 }
 0x38a   : > { %v2591_v20 = vadd.f32 %v13238_v9, %v2590_v39  ;;  %v10825_v43 = vpop.f32.mrb[110].mxu0  ;;  %10898 = vmatprep.mubr.bf16.mxu1 %v2809_v48 }
 0x38b   : > { %v2602_v21 = vadd.f32 %v10825_v43, %v13238_v9  ;;  %v2593_v44 = vpop.f32.mrb[111].mxu0  ;;  %10899 = vmatmul.mubr.bf16.gmra.mrb[80].mxu1 %v2810_v10  ;;  %v2763_v3 = vmax.f32 %v2599_v50, 0.0 }
 0x38c   : > { %v2594_v32 = vadd.f32 %v13238_v9, %v2593_v44  ;;  %v2761_v6 = vmax.f32 %v2591_v20, 0.0 }
 0x38d   : > { %v2764_v11 = vmax.f32 %v2602_v21, 0.0 }
 0x38e   : > { %v2762_v54 = vmax.f32 %v2594_v32, 0.0 }
 0x38f   : > { %v2812_v40 = vpack.c.bf16 %v2764_v11, %v2763_v3 }
 0x390   : > { %v10828_v7 = vpop.f32.mrb[112].mxu0  ;;  %v2811_v56 = vpack.c.bf16 %v2762_v54, %v2761_v6 }
 0x391   : > { %v2615_v26 = vadd.f32 %v10828_v7, %v13238_v9  ;;  %v2606_v33 = vpop.f32.mrb[113].mxu0 }
 0x392   : > { %v2607_v13 = vadd.f32 %v13238_v9, %v2606_v33  ;;  %v10829_v35 = vpop.f32.mrb[114].mxu0  ;;  %10902 = vmatprep.mubr.bf16.mxu1 %v2811_v56 }
 0x393   : > { %v2618_v28 = vadd.f32 %v10829_v35, %v13238_v9  ;;  %v2609_v2 = vpop.f32.mrb[115].mxu0  ;;  %10903 = vmatmul.mubr.bf16.gmra.mrb[84].mxu1 %v2812_v40  ;;  %v2767_v58 = vmax.f32 %v2615_v26, 0.0 }
 0x394   : > { %v2610_v55 = vadd.f32 %v13238_v9, %v2609_v2  ;;  %v2765_v19 = vmax.f32 %v2607_v13, 0.0 }
 0x395   : > { %v2768_v53 = vmax.f32 %v2618_v28, 0.0 }
 0x396   : > { %v2766_v63 = vmax.f32 %v2610_v55, 0.0 }
 0x397   : > { %v2814_v23 = vpack.c.bf16 %v2768_v53, %v2767_v58 }
 0x398   : > { %v10832_v10 = vpop.f32.mrb[116].mxu0  ;;  %v2813_v27 = vpack.c.bf16 %v2766_v63, %v2765_v19 }
 0x399   : > { %v2631_v48 = vadd.f32 %v10832_v10, %v13238_v9  ;;  %v2622_v50 = vpop.f32.mrb[117].mxu0 }
 0x39a   : > { %v2623_v39 = vadd.f32 %v13238_v9, %v2622_v50  ;;  %v10833_v20 = vpop.f32.mrb[118].mxu0  ;;  %10906 = vmatprep.mubr.bf16.mxu1 %v2813_v27 }
 0x39b   : > { %v2634_v43 = vadd.f32 %v10833_v20, %v13238_v9  ;;  %v2625_v21 = vpop.f32.mrb[119].mxu0  ;;  %10907 = vmatmul.mubr.bf16.gmra.mrb[88].mxu1 %v2814_v23  ;;  %v2771_v32 = vmax.f32 %v2631_v48, 0.0 }
 0x39c   : > { %v2626_v44 = vadd.f32 %v13238_v9, %v2625_v21  ;;  %v2769_v11 = vmax.f32 %v2623_v39, 0.0 }
 0x39d   : > { %v2772_v3 = vmax.f32 %v2634_v43, 0.0 }
 0x39e   : > { %v2770_v6 = vmax.f32 %v2626_v44, 0.0 }
 0x39f   : > { %v2816_v54 = vpack.c.bf16 %v2772_v3, %v2771_v32 }
 0x3a0   : > { %v10836_v40 = vpop.f32.mrb[120].mxu0  ;;  %v2815_v7 = vpack.c.bf16 %v2770_v6, %v2769_v11 }
 0x3a1   : > { %v2647_v56 = vadd.f32 %v10836_v40, %v13238_v9  ;;  %v2638_v26 = vpop.f32.mrb[121].mxu0 }
 0x3a2   : > { %v2639_v33 = vadd.f32 %v13238_v9, %v2638_v26  ;;  %v10837_v13 = vpop.f32.mrb[122].mxu0  ;;  %10910 = vmatprep.mubr.bf16.mxu1 %v2815_v7 }
 0x3a3   : > { %v2650_v35 = vadd.f32 %v10837_v13, %v13238_v9  ;;  %v2641_v28 = vpop.f32.mrb[123].mxu0  ;;  %10911 = vmatmul.mubr.bf16.gmra.mrb[92].mxu1 %v2816_v54  ;;  %v2775_v55 = vmax.f32 %v2647_v56, 0.0 }
 0x3a4   : > { %v2642_v2 = vadd.f32 %v13238_v9, %v2641_v28  ;;  %v2773_v53 = vmax.f32 %v2639_v33, 0.0 }
 0x3a5   : > { %v2776_v58 = vmax.f32 %v2650_v35, 0.0 }
 0x3a6   : > { %v2774_v19 = vmax.f32 %v2642_v2, 0.0 }
 0x3a7   : > { %v2818_v63 = vpack.c.bf16 %v2776_v58, %v2775_v55 }
 0x3a8   : > { %v10840_v23 = vpop.f32.mrb[124].mxu0  ;;  %v2817_v10 = vpack.c.bf16 %v2774_v19, %v2773_v53 }
 0x3a9   : > { %v2663_v27 = vadd.f32 %v10840_v23, %v13238_v9  ;;  %v2654_v48 = vpop.f32.mrb[125].mxu0 }
 0x3aa   : > { %v2655_v50 = vadd.f32 %v13238_v9, %v2654_v48  ;;  %v10841_v39 = vpop.f32.mrb[126].mxu0  ;;  %10914 = vmatprep.mubr.bf16.mxu1 %v2817_v10 }
 0x3ab   : > { %v2666_v20 = vadd.f32 %v10841_v39, %v13238_v9  ;;  %v2657_v43 = vpop.f32.mrb[127].mxu0  ;;  %10915 = vmatmul.mubr.bf16.gmra.mrb[96].mxu1 %v2818_v63  ;;  %v2779_v44 = vmax.f32 %v2663_v27, 0.0 }
 0x3ac   : > { %v2658_v21 = vadd.f32 %v13238_v9, %v2657_v43  ;;  %v2777_v3 = vmax.f32 %v2655_v50, 0.0 }
 0x3ad   : > { %v2780_v32 = vmax.f32 %v2666_v20, 0.0 }
 0x3ae   : > { %v2778_v11 = vmax.f32 %v2658_v21, 0.0 }
 0x3af   : > { %v2820_v6 = vpack.c.bf16 %v2780_v32, %v2779_v44 }
 0x3b0   : > { %v10844_v54 = vpop.f32.mrb[128].mxu0  ;;  %v2819_v40 = vpack.c.bf16 %v2778_v11, %v2777_v3 }
 0x3b1   : > { %v2679_v7 = vadd.f32 %v10844_v54, %v13238_v9  ;;  %v2670_v56 = vpop.f32.mrb[129].mxu0 }
 0x3b2   : > { %v2671_v26 = vadd.f32 %v13238_v9, %v2670_v56  ;;  %v10845_v33 = vpop.f32.mrb[130].mxu0  ;;  %10918 = vmatprep.mubr.bf16.mxu1 %v2819_v40 }
 0x3b3   : > { %v2682_v13 = vadd.f32 %v10845_v33, %v13238_v9  ;;  %v2673_v35 = vpop.f32.mrb[131].mxu0  ;;  %10919 = vmatmul.mubr.bf16.gmra.mrb[100].mxu1 %v2820_v6  ;;  %v2783_v2 = vmax.f32 %v2679_v7, 0.0 }
 0x3b4   : > { %v2674_v28 = vadd.f32 %v13238_v9, %v2673_v35  ;;  %v2781_v58 = vmax.f32 %v2671_v26, 0.0 }
 0x3b5   : > { %v2784_v55 = vmax.f32 %v2682_v13, 0.0 }
 0x3b6   : > { %v2782_v53 = vmax.f32 %v2674_v28, 0.0 }
 0x3b7   : > { %v2822_v19 = vpack.c.bf16 %v2784_v55, %v2783_v2 }
 0x3b8   : > { %v10848_v63 = vpop.f32.mrb[132].mxu0  ;;  %v2821_v23 = vpack.c.bf16 %v2782_v53, %v2781_v58 }
 0x3b9   : > { %v2695_v10 = vadd.f32 %v10848_v63, %v13238_v9  ;;  %v2686_v27 = vpop.f32.mrb[133].mxu0 }
 0x3ba   : > { %v2687_v48 = vadd.f32 %v13238_v9, %v2686_v27  ;;  %v10849_v50 = vpop.f32.mrb[134].mxu0  ;;  %10922 = vmatprep.mubr.bf16.mxu1 %v2821_v23 }
 0x3bb   : > { %v2698_v39 = vadd.f32 %v10849_v50, %v13238_v9  ;;  %v2689_v20 = vpop.f32.mrb[135].mxu0  ;;  %10923 = vmatmul.mubr.bf16.gmra.mrb[104].mxu1 %v2822_v19  ;;  %v2787_v21 = vmax.f32 %v2695_v10, 0.0 }
 0x3bc   : > { %v2690_v43 = vadd.f32 %v13238_v9, %v2689_v20  ;;  %v2785_v32 = vmax.f32 %v2687_v48, 0.0 }
 0x3bd   : > { %v2788_v44 = vmax.f32 %v2698_v39, 0.0 }
 0x3be   : > { %v2786_v3 = vmax.f32 %v2690_v43, 0.0 }
 0x3bf   : > { %v2824_v11 = vpack.c.bf16 %v2788_v44, %v2787_v21 }
 0x3c0   : > { %v10852_v6 = vpop.f32.mrb[136].mxu0  ;;  %v2823_v54 = vpack.c.bf16 %v2786_v3, %v2785_v32 }
 0x3c1   : > { %v2711_v40 = vadd.f32 %v10852_v6, %v13238_v9  ;;  %v2702_v7 = vpop.f32.mrb[137].mxu0  ;;  %v16606_v6 = vld [vmem:[#allocation39_spill] sm:$0xff] }
 0x3c2   : > { %v2703_v56 = vadd.f32 %v13238_v9, %v2702_v7  ;;  %v10853_v26 = vpop.f32.mrb[138].mxu0  ;;  %10926 = vmatprep.mubr.bf16.mxu1 %v2823_v54 }
 0x3c3   : > { %v2714_v33 = vadd.f32 %v10853_v26, %v13238_v9  ;;  %v2705_v13 = vpop.f32.mrb[139].mxu0  ;;  %10927 = vmatmul.mubr.bf16.gmra.mrb[108].mxu1 %v2824_v11  ;;  %v2791_v28 = vmax.f32 %v2711_v40, 0.0 }
 0x3c4   : > { %v2706_v35 = vadd.f32 %v13238_v9, %v2705_v13  ;;  %v2789_v55 = vmax.f32 %v2703_v56, 0.0 }
 0x3c5   : > { %v2792_v2 = vmax.f32 %v2714_v33, 0.0 }
 0x3c6   : > { %v2790_v58 = vmax.f32 %v2706_v35, 0.0 }
 0x3c7   : > { %v2826_v53 = vpack.c.bf16 %v2792_v2, %v2791_v28 }
 0x3c8   : > { %v10856_v19 = vpop.f32.mrb[140].mxu0  ;;  %v2825_v63 = vpack.c.bf16 %v2790_v58, %v2789_v55 }
 0x3c9   : > { %v2727_v23 = vadd.f32 %v10856_v19, %v13238_v9  ;;  %v2718_v10 = vpop.f32.mrb[141].mxu0 }
 0x3ca   : > { %v2719_v27 = vadd.f32 %v13238_v9, %v2718_v10  ;;  %v10857_v48 = vpop.f32.mrb[142].mxu0  ;;  %10930 = vmatprep.mubr.bf16.mxu1 %v2825_v63 }
 0x3cb   : > { %v2730_v50 = vadd.f32 %v10857_v48, %v13238_v9  ;;  %v2721_v39 = vpop.f32.mrb[143].mxu0  ;;  %10931 = vmatmul.mubr.bf16.gmra.mrb[112].mxu1 %v2826_v53  ;;  %v2795_v43 = vmax.f32 %v2727_v23, 0.0  ;;  %v13322_v23 = vld [vmem:[%s16182_s8] ss:$0 sm:$0xff] }
 0x3cc   : > { %v2722_v20 = vadd.f32 %v13238_v9, %v2721_v39  ;;  %v2793_v44 = vmax.f32 %v2719_v27, 0.0 }
 0x3cd   : > { %v2796_v21 = vmax.f32 %v2730_v50, 0.0 }
 0x3ce   : > { %v2794_v32 = vmax.f32 %v2722_v20, 0.0 }
 0x3cf   : > { %v2828_v3 = vpack.c.bf16 %v2796_v21, %v2795_v43 }
 0x3d0   : > { %v2827_v11 = vpack.c.bf16 %v2794_v32, %v2793_v44 }
 0x3d2   : > { %10934 = vmatprep.mubr.bf16.mxu1 %v2827_v11 }
 0x3d3   : > { %10935 = vmatmul.mubr.bf16.gmra.mrb[116].mxu1 %v2828_v3 }
 0x3d4   : > { %3549 = vmatprep.mubr.bf16.mxu1 %v16606_v6 }
 0x42e   : > { %v10876_v54 = vpop.f32.mrb[56].mxu1 }
 0x42f   : > { %v2934_v40 = vpop.f32.mrb[57].mxu1 }
 0x430   : > { %v10877_v7 = vpop.f32.mrb[58].mxu1  ;;  %v2935_v48 = vadd.f32 %v13322_v23, %v2934_v40 }
 0x431   : > { %v2937_v56 = vpop.f32.mrb[59].mxu1  ;;  %v2946_v50 = vadd.f32 %v10877_v7, %v13322_v23 }
 0x432   : > { %v2938_v10 = vadd.f32 %v13322_v23, %v2937_v56  ;;  %v2943_v56 = vadd.f32 %v10876_v54, %v13322_v23  ;;  %v3189_v29 = vmax.f32 %v2935_v48, 0.0 }
 0x433   : > { %v3192_v51 = vmax.f32 %v2946_v50, 0.0 }
 0x434   : > { %v3190_v44 = vmax.f32 %v2938_v10, 0.0  ;;  %v3191_v48 = vmax.f32 %v2943_v56, 0.0  ;;  %v13346_v50 = vadd.f32 %v3189_v29, %v12508_v62 }
 0x436   : > { %v10880_v26 = vpop.f32.mrb[60].mxu1  ;;  %v13333_v42 = vadd.f32 %v3190_v44, %v12496_v57  ;;  %16611 = vst [vmem:[#allocation17_spill] sm:$0xff] %v13346_v50 }
 0x437   : > { %v2950_v33 = vpop.f32.mrb[61].mxu1 }
 0x438   : > { %v10881_v13 = vpop.f32.mrb[62].mxu1  ;;  %16607 = vst [vmem:[#allocation13_spill] sm:$0xff] %v13333_v42  ;;  %v2951_v57 = vadd.f32 %v13322_v23, %v2950_v33  ;;  %v13365_v33 = vpack.c.bf16 %v13333_v42, %v13346_v50  ;;  %v12002_v42 = vld [vmem:[%s16184_s10 + $0x58] sm:$0xff]  }
 0x439   : > { %v2953_v35 = vpop.f32.mrb[63].mxu1  ;;  %v2962_v62 = vadd.f32 %v10881_v13, %v13322_v23  ;;  %v13375_v13 = vadd.f32 %v3191_v48, %v12530_v5 }
 0x43b   : > { %16614 = vst [vmem:[#allocation16_spill] sm:$0xff] %v13375_v13 }
 0x43e   : > { %v13305_v28 = vpop.f32.mrb[64].mxu1 }
 0x43f   : > { %v13307_v9 = vpop.f32.mrb[65].mxu1 }
 0x440   : > { %v13309_v2 = vpop.f32.mrb[66].mxu1 }
 0x441   : > { %v2969_v55 = vpop.f32.mrb[67].mxu1 }
 0x446   : > { %v13311_v58 = vpop.f32.mrb[68].mxu1 }
 0x447   : > { %v13313_v53 = vpop.f32.mrb[69].mxu1 }
 0x448   : > { %v13315_v19 = vpop.f32.mrb[70].mxu1 }
 0x449   : > { %v13317_v63 = vpop.f32.mrb[71].mxu1 }
 0x44e   : > { %v10892_v27 = vpop.f32.mrb[72].mxu1 }
 0x44f   : > { %v2998_v39 = vpop.f32.mrb[73].mxu1  ;;  %v3007_v20 = vadd.f32 %v10892_v27, %v13322_v23  ;;  %v2954_v27 = vadd.f32 %v13322_v23, %v2953_v35 }
 0x450   : > { %v2999_v43 = vadd.f32 %v13322_v23, %v2998_v39  ;;  %v10893_v21 = vpop.f32.mrb[74].mxu1 }
 0x451   : > { %v3010_v32 = vadd.f32 %v10893_v21, %v13322_v23  ;;  %v3001_v3 = vpop.f32.mrb[75].mxu1  ;;  %v3207_v15 = vmax.f32 %v3007_v20, 0.0  ;;  %v3194_v29 = vmax.f32 %v2954_v27, 0.0  ;;  %v2970_v27 = vadd.f32 %v13322_v23, %v2969_v55 }
 0x452   : > { %v3205_v11 = vmax.f32 %v2999_v43, 0.0  ;;  %v3002_v6 = vadd.f32 %v13322_v23, %v3001_v3  ;;  %v3193_v3 = vmax.f32 %v2951_v57, 0.0  ;;  %v2967_v55 = vadd.f32 %v13322_v23, %v13307_v9 }
 0x453   : > { %v3208_v40 = vmax.f32 %v3010_v32, 0.0 }
 0x454   : > { %v3206_v7 = vmax.f32 %v3002_v6, 0.0  ;;  %v13337_v10 = vadd.f32 %v3205_v11, %v16577_v49  ;;  %v13349_v6 = vadd.f32 %v3192_v51, %v12518_v1  ;;  %v13353_v49 = vadd.f32 %v3207_v15, %v16575_v25 }
 0x455   : > { %v13340_v39 = vadd.f32 %v3208_v40, %v16576_v60  ;;  %v2959_v15 = vadd.f32 %v10880_v26, %v13322_v23  ;;  %v3196_v26 = vmax.f32 %v2962_v62, 0.0 }
 0x456   : > { %16608 = vst [vmem:[#allocation11_spill] sm:$0xff] %v13337_v10  ;;  %v13343_v43 = vadd.f32 %v3206_v7, %v16578_v52  ;;  %v10896_v54 = vpop.f32.mrb[76].mxu1  ;;  %16612 = vst [vmem:[#allocation15_spill] sm:$0xff] %v13349_v6  ;;  %v13380_v7 = vadd.f32 %v3194_v29, %v12535_v8  ;;  %v13397_v8 = vadd.f32 %v3193_v3, %v12551_v14  ;;  %v3198_v29 = vmax.f32 %v2970_v27, 0.0 }
 0x457   : > { %16609 = vst [vmem:[#allocation10_spill] sm:$0xff] %v13340_v39  ;;  %v3014_v35 = vpop.f32.mrb[77].mxu1  ;;  %16613 = vst [vmem:[#allocation14_spill] sm:$0xff] %v13353_v49  ;;  %v3023_v60 = vadd.f32 %v10896_v54, %v13322_v23  ;;  %v13372_v32 = vpack.c.bf16 %v13340_v39, %v13353_v49  ;;  %v13385_v54 = vpack.c.bf16 %v13349_v6, %v13375_v13  ;;  %v3195_v5 = vmax.f32 %v2959_v15, 0.0  ;;  %v16655_v49 = vld [vmem:[#allocation38_spill] sm:$0xff]  ;;  %v12003_v6 = vld [vmem:[%s16184_s10 + $0x60] sm:$0xff]  }
 0x458   : > { %16610 = vst [vmem:[#allocation12_spill] sm:$0xff] %v13343_v43  ;;  %v3015_v20 = vadd.f32 %v13322_v23, %v3014_v35  ;;  %v10897_v52 = vpop.f32.mrb[78].mxu1  ;;  %v13359_v21 = vpack.c.bf16 %v13343_v43, %v13337_v10  ;;  %16615 = vst [vmem:[#allocation29_spill] sm:$0xff] %v13380_v7  ;;  %v13414_v9 = vadd.f32 %v3196_v26, %v12562_v17 }
 0x459   : > { %v3026_v1 = vadd.f32 %v10897_v52, %v13322_v23  ;;  %v3017_v51 = vpop.f32.mrb[79].mxu1  ;;  %v3211_v56 = vmax.f32 %v3023_v60, 0.0  ;;  %16619 = vst [vmem:[#allocation57_spill] sm:$0xff] %v13397_v8  ;;  %v2975_v3 = vadd.f32 %v13305_v28, %v13322_v23  ;;  %v16628_v28 = vld [vmem:[#allocation20_spill] sm:$0xff] }
 0x45a   : > { %v3209_v25 = vmax.f32 %v3015_v20, 0.0  ;;  %v3018_v44 = vadd.f32 %v13322_v23, %v3017_v51  ;;  %10037 = vmatprep.subr.bf16.mxu0 %v13359_v21  ;;  %v2978_v20 = vadd.f32 %v13309_v2, %v13322_v23  ;;  %16622 = vst [vmem:[#allocation56_spill] sm:$0xff] %v13414_v9  ;;  %v16623_v51 = vld [vmem:[#allocation18_spill] sm:$0xff] }
 0x45b   : > { %v3212_v11 = vmax.f32 %v3026_v1, 0.0  ;;  %10038 = vmatpush3.bf16.msra.mxu0 %v13365_v33  ;;  %v13422_v15 = vadd.f32 %v3195_v5, %v16623_v51  ;;  %v16626_v5 = vld [vmem:[#allocation19_spill] sm:$0xff]  ;;  %v3199_v51 = vmax.f32 %v2975_v3, 0.0 }
 0x45c   : > { %v3210_v40 = vmax.f32 %v3018_v44, 0.0  ;;  %10039 = vmatprep.subr.bf16.mxu0 %v13372_v32  ;;  %v13388_v48 = vadd.f32 %v3209_v25, %v16581_v12  ;;  %v13405_v12 = vadd.f32 %v3211_v56, %v16579_v0  ;;  %v13419_v0 = vpack.c.bf16 %v13380_v7, %v13397_v8  ;;  %v12000_v7 = vld [vmem:[%s16184_s10 + $0x48] sm:$0xff]  }
 0x45d   : > { %v13391_v57 = vadd.f32 %v3212_v11, %v16580_v22  ;;  %16624 = vst [vmem:[#allocation59_spill] sm:$0xff] %v13422_v15  ;;  %v3197_v11 = vmax.f32 %v2967_v55, 0.0  ;;  %v3200_v56 = vmax.f32 %v2978_v20, 0.0  ;;  %v16630_v20 = vld [vmem:[#allocation21_spill] sm:$0xff] }
 0x45e   : > { %16616 = vst [vmem:[#allocation28_spill] sm:$0xff] %v13388_v48  ;;  %v13394_v35 = vadd.f32 %v3210_v40, %v16582_v45  ;;  %v10900_v60 = vpop.f32.mrb[80].mxu1  ;;  %16620 = vst [vmem:[#allocation55_spill] sm:$0xff] %v13405_v12 }
 0x45f   : > { %16617 = vst [vmem:[#allocation30_spill] sm:$0xff] %v13391_v57  ;;  %v3030_v52 = vpop.f32.mrb[81].mxu1  ;;  %10040 = vmatpush3.bf16.msra.mxu0 %v13385_v54  ;;  %v3039_v22 = vadd.f32 %v10900_v60, %v13322_v23  ;;  %v13428_v17 = vpack.c.bf16 %v13391_v57, %v13405_v12  ;;  %v13435_v60 = vadd.f32 %v3198_v29, %v16626_v5  ;;  %v16634_v29 = vld [vmem:[#allocation23_spill] sm:$0xff]  ;;  %v16636_v5 = vld [vmem:[#allocation25_spill] sm:$0xff] }
 0x460   : > { %16618 = vst [vmem:[#allocation53_spill] sm:$0xff] %v13394_v35  ;;  %v3031_v45 = vadd.f32 %v13322_v23, %v3030_v52  ;;  %v10901_v62 = vpop.f32.mrb[82].mxu1  ;;  %v13411_v14 = vpack.c.bf16 %v13394_v35, %v13388_v48  ;;  %v2986_v52 = vadd.f32 %v13322_v23, %v13317_v63  ;;  %v13456_v63 = vadd.f32 %v3200_v56, %v16636_v5  ;;  %v16640_v5 = vld [vmem:[#allocation26_spill] sm:$0xff]  ;;  %v16642_v12 = vld [vmem:[#allocation27_spill] sm:$0xff] }
 0x461   : > { %v3042_v2 = vadd.f32 %v10901_v62, %v13322_v23  ;;  %v3033_v1 = vpop.f32.mrb[83].mxu1  ;;  %16625 = vst [vmem:[#allocation18_spill] sm:$0xff] %v13428_v17  ;;  %v3215_v26 = vmax.f32 %v3039_v22, 0.0  ;;  %16627 = vst [vmem:[#allocation19_spill] sm:$0xff] %v13435_v60  ;;  %v16632_v22 = vld [vmem:[#allocation22_spill] sm:$0xff]  ;;  %v2983_v35 = vadd.f32 %v13322_v23, %v13313_v53  ;;  %v2994_v56 = vadd.f32 %v13315_v19, %v13322_v23 }
 0x462   : > { %16621 = vst [vmem:[#allocation54_spill] sm:$0xff] %v13411_v14  ;;  %v3213_v25 = vmax.f32 %v3031_v45, 0.0  ;;  %v3034_v44 = vadd.f32 %v13322_v23, %v3033_v1  ;;  %10041 = vmatprep.subr.bf16.mxu0 %v13411_v14  ;;  %v13441_v45 = vpack.c.bf16 %v13414_v9, %v13422_v15  ;;  %16637 = vst [vmem:[#allocation25_spill] sm:$0xff] %v13456_v63 }
 0x463   : > { %v3216_v40 = vmax.f32 %v3042_v2, 0.0  ;;  %10042 = vmatpush3.bf16.msra.mxu0 %v13419_v0  ;;  %v2991_v19 = vadd.f32 %v13311_v58, %v13322_v23 }
 0x464   : > { %v3214_v27 = vmax.f32 %v3034_v44, 0.0  ;;  %10043 = vmatprep.subr.bf16.mxu0 %v13428_v17  ;;  %v13444_v55 = vadd.f32 %v3213_v25, %v16628_v28  ;;  %v13453_v44 = vadd.f32 %v3197_v11, %v16634_v29  ;;  %v16638_v25 = vld [vmem:[#allocation24_spill] sm:$0xff] }
 0x465   : > { %v13447_v62 = vadd.f32 %v3216_v40, %v16630_v20  ;;  %v13462_v40 = vadd.f32 %v3215_v26, %v16638_v25  ;;  %v3202_v20 = vmax.f32 %v2986_v52, 0.0  ;;  %v13484_v25 = vadd.f32 %v3199_v51, %v16640_v5  ;;  %v16667_v17 = vld [vmem:[#allocation36_spill] sm:$0xff] }
 0x466   : > { %16629 = vst [vmem:[#allocation20_spill] sm:$0xff] %v13444_v55  ;;  %v13450_v2 = vadd.f32 %v3214_v27, %v16632_v22  ;;  %v10904_v1 = vpop.f32.mrb[84].mxu1  ;;  %16635 = vst [vmem:[#allocation23_spill] sm:$0xff] %v13453_v44  ;;  %v13475_v26 = vpack.c.bf16 %v13435_v60, %v13453_v44  ;;  %v3201_v52 = vmax.f32 %v2983_v35, 0.0 }
 0x467   : > { %16631 = vst [vmem:[#allocation21_spill] sm:$0xff] %v13447_v62  ;;  %v3046_v48 = vpop.f32.mrb[85].mxu1  ;;  %10044 = vmatpush3.bf16.msra.mxu0 %v13441_v45  ;;  %16639 = vst [vmem:[#allocation24_spill] sm:$0xff] %v13462_v40  ;;  %v3055_v27 = vadd.f32 %v10904_v1, %v13322_v23  ;;  %v13491_v43 = vadd.f32 %v3202_v20, %v16642_v12  ;;  %v13495_v10 = vpack.c.bf16 %v13456_v63, %v13484_v25  ;;  %v16649_v20 = vld [vmem:[#allocation32_spill] sm:$0xff] }
 0x468   : > { %16633 = vst [vmem:[#allocation22_spill] sm:$0xff] %v13450_v2  ;;  %v3047_v28 = vadd.f32 %v13322_v23, %v3046_v48  ;;  %v10905_v3 = vpop.f32.mrb[86].mxu1  ;;  %v13468_v11 = vpack.c.bf16 %v13450_v2, %v13444_v55  ;;  %v13481_v48 = vpack.c.bf16 %v13447_v62, %v13462_v40  ;;  %16641 = vst [vmem:[#allocation26_spill] sm:$0xff] %v13484_v25  ;;  %v12005_v55 = vld [vmem:[%s16184_s10 + $0x70] sm:$0xff]  }
 0x469   : > { %v3058_v53 = vadd.f32 %v10905_v3, %v13322_v23  ;;  %v3049_v22 = vpop.f32.mrb[87].mxu1  ;;  %v3219_v57 = vmax.f32 %v3055_v27, 0.0  ;;  %16643 = vst [vmem:[#allocation27_spill] sm:$0xff] %v13491_v43 }
 0x46a   : > { %v3217_v29 = vmax.f32 %v3047_v28, 0.0  ;;  %v3050_v1 = vadd.f32 %v13322_v23, %v3049_v22  ;;  %10045 = vmatprep.subr.bf16.mxu0 %v13468_v11  ;;  %v3204_v22 = vmax.f32 %v2994_v56, 0.0  ;;  %v16647_v56 = vld [vmem:[#allocation31_spill] sm:$0xff] }
 0x46b   : > { %v3220_v3 = vmax.f32 %v3058_v53, 0.0  ;;  %10046 = vmatpush3.bf16.msra.mxu0 %v13475_v26  ;;  %v3203_v53 = vmax.f32 %v2991_v19, 0.0  ;;  %v13513_v5 = vadd.f32 %v3219_v57, %v16649_v20  ;;  %v16653_v57 = vld [vmem:[#allocation34_spill] sm:$0xff] }
 0x46c   : > { %v3218_v28 = vmax.f32 %v3050_v1, 0.0  ;;  %10047 = vmatprep.subr.bf16.mxu0 %v13481_v48  ;;  %v13498_v51 = vadd.f32 %v3217_v29, %v16589_v18  ;;  %v13509_v1 = vadd.f32 %v3201_v52, %v16647_v56  ;;  %v16651_v29 = vld [vmem:[#allocation33_spill] sm:$0xff] }
 0x46d   : > { %v13501_v58 = vadd.f32 %v3220_v3, %v16588_v41  ;;  %16650 = vst [vmem:[#allocation32_spill] sm:$0xff] %v13513_v5 }
 0x46e   : > { %16644 = vst [vmem:[#allocation65_spill] sm:$0xff] %v13498_v51  ;;  %v13504_v35 = vadd.f32 %v3218_v28, %v16590_v4  ;;  %v13506_v27 = vpop.f32.mrb[88].mxu1  ;;  %16648 = vst [vmem:[#allocation31_spill] sm:$0xff] %v13509_v1  ;;  %v13520_v4 = vadd.f32 %v3204_v22, %v16651_v29  ;;  %v13524_v19 = vpack.c.bf16 %v13491_v43, %v13509_v1  ;;  %v11999_v29 = vld [vmem:[%s16184_s10 + $0x40] sm:$0xff]  }
 0x46f   : > { %16645 = vst [vmem:[#allocation66_spill] sm:$0xff] %v13501_v58  ;;  %v3062_v12 = vpop.f32.mrb[89].mxu1  ;;  %10048 = vmatpush3.bf16.msra.mxu0 %v13495_v10  ;;  %v13529_v52 = vpack.c.bf16 %v13501_v58, %v13513_v5  ;;  %v13532_v28 = vadd.f32 %v3203_v53, %v16653_v57  ;;  %v16333_v57 = vmov 0.0  }
 0x470   : > { %16646 = vst [vmem:[#allocation67_spill] sm:$0xff] %v13504_v35  ;;  %v10909_v18 = vpop.f32.mrb[90].mxu1  ;;  %v13517_v41 = vpack.c.bf16 %v13504_v35, %v13498_v51  ;;  %16652 = vst [vmem:[#allocation33_spill] sm:$0xff] %v13520_v4  ;;  %v12004_v35 = vld [vmem:[%s16184_s10 + $0x68] sm:$0xff]   ;;  %v3063_v58 = vadd.f32 %v13322_v23, %v3062_v12 }
 0x471   : > { %v3065_v3 = vpop.f32.mrb[91].mxu1  ;;  %16654 = vst [vmem:[#allocation34_spill] sm:$0xff] %v13532_v28  ;;  %v13538_v22 = vpack.c.bf16 %v13520_v4, %v13532_v28  ;;  %v3074_v5 = vadd.f32 %v10909_v18, %v13322_v23 }
 0x472   : > { %10049 = vmatprep.subr.bf16.mxu0 %v13517_v41  ;;  %v3066_v51 = vadd.f32 %v13322_v23, %v3065_v3  ;;  %v3221_v4 = vmax.f32 %v3063_v58, 0.0  ;;  %v16661_v58 = vld [vmem:[#allocation46_spill] sm:$0xff] }
 0x473   : > { %10050 = vmatpush3.bf16.msra.mxu0 %v13524_v19  ;;  %v3224_v28 = vmax.f32 %v3074_v5, 0.0 }
 0x474   : > { %10051 = vmatprep.subr.bf16.mxu0 %v13529_v52  ;;  %v3222_v43 = vmax.f32 %v3066_v51, 0.0  ;;  %v16656_v51 = vmov 0.0  }
 0x475   : > { %v13624_v14 = vadd.f32 %v3224_v28, %v16667_v17 }
 0x476   : > { %v13540_v56 = vpop.f32.mrb[92].mxu1 }
 0x477   : > { %v13542_v20 = vpop.f32.mrb[93].mxu1  ;;  %10052 = vmatpush3.bf16.msra.mxu0 %v13538_v22 }
 0x478   : > { %v13548_v53 = vpop.f32.mrb[94].mxu1  ;;  %10938 = vmatprep.subr.bf16.mxu0 %v16333_v57 }
 0x479   : > { %v3081_v39 = vpop.f32.mrb[95].mxu1  ;;  %v3090_v17 = vadd.f32 %v13548_v53, %v13322_v23  ;;  %v16670_v53 = vld [vmem:[#allocation40_spill] sm:$0xff] }
 0x47a   : > { %3510 = vmatmul.mubr.bf16.vlgmr.msra.gmra.mrb[144].mxu0 %v16655_v49  ;;  %v12001_v49 = vld [vmem:[%s16184_s10 + $0x50] sm:$0xff]  }
 0x47b   : > { %10939 = vmatpush3.bf16.msra.mxu0 %v11999_v29  ;;  %10954 = vmatprep.mubr.msk.bf16.mxu0 %vm12251_vm3, %v16333_v57 }
 0x47c   : > { %10940 = vmatprep.subr.bf16.mxu0 %v16333_v57 }
 0x47e   : > { %v13558_v8 = vpop.f32.mrb[96].mxu1 }
 0x47f   : > { %v13560_v9 = vpop.f32.mrb[97].mxu1  ;;  %10941 = vmatpush3.bf16.msra.mxu0 %v12000_v7 }
 0x480   : > { %v13565_v29 = vpop.f32.mrb[98].mxu1  ;;  %10942 = vmatprep.subr.bf16.mxu0 %v16333_v57 }
 0x481   : > { %v13568_v15 = vpop.f32.mrb[99].mxu1 }
 0x483   : > { %10943 = vmatpush3.bf16.msra.mxu0 %v12001_v49 }
 0x484   : > { %10944 = vmatprep.subr.bf16.mxu0 %v16333_v57 }
 0x486   : > { %v13574_v50 = vpop.f32.mrb[100].mxu1 }
 0x487   : > { %v13576_v7 = vpop.f32.mrb[101].mxu1  ;;  %10945 = vmatpush3.bf16.msra.mxu0 %v12002_v42 }
 0x488   : > { %v13581_v13 = vpop.f32.mrb[102].mxu1  ;;  %10946 = vmatprep.subr.bf16.mxu0 %v16333_v57 }
 0x489   : > { %v13584_v49 = vpop.f32.mrb[103].mxu1 }
 0x48b   : > { %10947 = vmatpush3.bf16.msra.mxu0 %v12003_v6 }
 0x48c   : > { %10948 = vmatprep.subr.bf16.mxu0 %v16333_v57 }
 0x48e   : > { %v10924_v42 = vpop.f32.mrb[104].mxu1 }
 0x48f   : > { %v3126_v2 = vpop.f32.mrb[105].mxu1  ;;  %10949 = vmatpush3.bf16.msra.mxu0 %v12004_v35  ;;  %v3135_v6 = vadd.f32 %v10924_v42, %v13322_v23  ;;  %v3071_v35 = vadd.f32 %v13506_v27, %v13322_v23 }
 0x490   : > { %v3127_v62 = vadd.f32 %v13322_v23, %v3126_v2  ;;  %v10925_v40 = vpop.f32.mrb[106].mxu1  ;;  %10950 = vmatprep.subr.bf16.mxu0 %v16333_v57  ;;  %v12006_v2 = vld [vmem:[%s16184_s10 + $0x78] sm:$0xff]  }
 0x491   : > { %v3138_v3 = vadd.f32 %v10925_v40, %v13322_v23  ;;  %v3129_v1 = vpop.f32.mrb[107].mxu1  ;;  %v3239_v42 = vmax.f32 %v3135_v6, 0.0  ;;  %v16657_v40 = vld [vmem:[#allocation37_spill] sm:$0xff]  ;;  %v3223_v25 = vmax.f32 %v3071_v35, 0.0  ;;  %v16665_v6 = vld [vmem:[#allocation35_spill] sm:$0xff] }
 0x492   : > { %v3237_v12 = vmax.f32 %v3127_v62, 0.0  ;;  %v3130_v18 = vadd.f32 %v13322_v23, %v3129_v1  ;;  %v13608_v44 = vadd.f32 %v3222_v43, %v16657_v40  ;;  %v3082_v62 = vadd.f32 %v13322_v23, %v3081_v39  ;;  %v16659_v1 = vld [vmem:[#allocation45_spill] sm:$0xff] }
 0x493   : > { %v3240_v60 = vmax.f32 %v3138_v3, 0.0  ;;  %10951 = vmatpush3.bf16.msra.mxu0 %v12005_v55  ;;  %v16663_v55 = vld [vmem:[#allocation47_spill] sm:$0xff]  ;;  %v3079_v39 = vadd.f32 %v13322_v23, %v13542_v20 }
 0x494   : > { %v3238_v57 = vmax.f32 %v3130_v18, 0.0  ;;  %10952 = vmatprep.subr.bf16.mxu0 %v16656_v51  ;;  %16658 = vst [vmem:[#allocation37_spill] sm:$0xff] %v13608_v44  ;;  %v13612_v63 = vadd.f32 %v3237_v12, %v16659_v1  ;;  %v13621_v18 = vadd.f32 %v3221_v4, %v16665_v6  ;;  %v16668_v12 = vld [vmem:[#allocation48_spill] sm:$0xff]  ;;  %v3226_v28 = vmax.f32 %v3082_v62, 0.0 }
 0x495   : > { %v13615_v27 = vadd.f32 %v3240_v60, %v16661_v58  ;;  %v13629_v40 = vadd.f32 %v3239_v42, %v16668_v12  ;;  %v3087_v42 = vadd.f32 %v13540_v56, %v13322_v23  ;;  %v13654_v62 = vadd.f32 %v3223_v25, %v16670_v53  ;;  %v16676_v53 = vld [vmem:[#allocation50_spill] sm:$0xff] }
 0x496   : > { %16660 = vst [vmem:[#allocation45_spill] sm:$0xff] %v13612_v63  ;;  %v13618_v5 = vadd.f32 %v3238_v57, %v16663_v55  ;;  %v10928_v3 = vpop.f32.mrb[108].mxu1  ;;  %16666 = vst [vmem:[#allocation35_spill] sm:$0xff] %v13621_v18  ;;  %v3225_v6 = vmax.f32 %v3079_v39, 0.0  ;;  %v3228_v56 = vmax.f32 %v3090_v17, 0.0  ;;  %v16674_v39 = vld [vmem:[#allocation49_spill] sm:$0xff] }
 0x497   : > { %16662 = vst [vmem:[#allocation46_spill] sm:$0xff] %v13615_v27  ;;  %v3142_v43 = vpop.f32.mrb[109].mxu1  ;;  %10953 = vmatpush3.bf16.msra.mxu0 %v12006_v2  ;;  %16669 = vst [vmem:[#allocation36_spill] sm:$0xff] %v13629_v40  ;;  %v3151_v60 = vadd.f32 %v10928_v3, %v13322_v23  ;;  %v13643_v2 = vpack.c.bf16 %v13608_v44, %v13621_v18  ;;  %v13651_v3 = vpack.c.bf16 %v13615_v27, %v13629_v40 }
 0x498   : > { %16664 = vst [vmem:[#allocation47_spill] sm:$0xff] %v13618_v5  ;;  %v3143_v57 = vadd.f32 %v13322_v23, %v3142_v43  ;;  %v10929_v1 = vpop.f32.mrb[110].mxu1  ;;  %10978 = vmatprep.subr.bf16.mxu0 %v13365_v33  ;;  %v13636_v4 = vpack.c.bf16 %v13618_v5, %v13612_v63  ;;  %16671 = vst [vmem:[#allocation48_spill] sm:$0xff] %v13654_v62  ;;  %v3098_v5 = vadd.f32 %v13322_v23, %v13568_v15 }
 0x499   : > { %v3154_v20 = vadd.f32 %v10929_v1, %v13322_v23  ;;  %v3145_v35 = vpop.f32.mrb[111].mxu1  ;;  %v3243_v12 = vmax.f32 %v3151_v60, 0.0  ;;  %v13665_v63 = vpack.c.bf16 %v13624_v14, %v13654_v62  ;;  %v3227_v25 = vmax.f32 %v3087_v42, 0.0 }
 0x49a   : > { %v3241_v58 = vmax.f32 %v3143_v57, 0.0  ;;  %v3146_v55 = vadd.f32 %v13322_v23, %v3145_v35  ;;  %10059 = vmatprep.subr.bf16.mxu1 %v13636_v4  ;;  %v16672_v57 = vld [vmem:[#allocation43_spill] sm:$0xff]  ;;  %v3095_v15 = vadd.f32 %v13322_v23, %v13560_v9  ;;  %v3106_v40 = vadd.f32 %v13565_v29, %v13322_v23 }
 0x49b   : > { %v3244_v43 = vmax.f32 %v3154_v20, 0.0  ;;  %10060 = vmatpush3.bf16.msra.mxu1 %v13643_v2  ;;  %v13659_v35 = vadd.f32 %v3226_v28, %v16672_v57  ;;  %v16680_v28 = vld [vmem:[#allocation41_spill] sm:$0xff] }
 0x49c   : > { %v3242_v1 = vmax.f32 %v3146_v55, 0.0  ;;  %10061 = vmatprep.subr.bf16.mxu1 %v13651_v3  ;;  %v13668_v20 = vadd.f32 %v3241_v58, %v16674_v39  ;;  %v16678_v55 = vld [vmem:[#allocation51_spill] sm:$0xff]  ;;  %v13677_v57 = vadd.f32 %v3225_v6, %v16680_v28  ;;  %v16682_v58 = vld [vmem:[#allocation52_spill] sm:$0xff]  ;;  %v3230_v28 = vmax.f32 %v3098_v5, 0.0 }
 0x49d   : > { %16673 = vst [vmem:[#allocation40_spill] sm:$0xff] %v13659_v35  ;;  %v13671_v60 = vadd.f32 %v3244_v43, %v16676_v53  ;;  %v13685_v39 = vadd.f32 %v3243_v12, %v16682_v58  ;;  %v16686_v58 = vld [vmem:[#allocation44_spill] sm:$0xff]  ;;  %v3103_v5 = vadd.f32 %v13558_v8, %v13322_v23 }
 0x49e   : > { %16675 = vst [vmem:[#allocation43_spill] sm:$0xff] %v13668_v20  ;;  %v13674_v27 = vadd.f32 %v3242_v1, %v16678_v55  ;;  %v10932_v17 = vpop.f32.mrb[112].mxu1  ;;  %16681 = vst [vmem:[#allocation51_spill] sm:$0xff] %v13677_v57  ;;  %v16684_v55 = vld [vmem:[#allocation42_spill] sm:$0xff]  ;;  %v13699_v12 = vpack.c.bf16 %v13659_v35, %v13677_v57 }
 0x49f   : > { %16677 = vst [vmem:[#allocation49_spill] sm:$0xff] %v13671_v60  ;;  %v3158_v42 = vpop.f32.mrb[113].mxu1  ;;  %10062 = vmatpush3.bf16.msra.mxu1 %v13665_v63  ;;  %16683 = vst [vmem:[#allocation41_spill] sm:$0xff] %v13685_v39  ;;  %v3167_v43 = vadd.f32 %v10932_v17, %v13322_v23  ;;  %v13694_v9 = vadd.f32 %v3228_v56, %v16684_v55  ;;  %v13702_v17 = vadd.f32 %v3227_v25, %v16686_v58 }
 0x4a0   : > { %16679 = vst [vmem:[#allocation50_spill] sm:$0xff] %v13674_v27  ;;  %v3159_v1 = vadd.f32 %v13322_v23, %v3158_v42  ;;  %v10933_v53 = vpop.f32.mrb[114].mxu1  ;;  %v13691_v6 = vpack.c.bf16 %v13674_v27, %v13668_v20  ;;  %v13708_v56 = vpack.c.bf16 %v13671_v60, %v13685_v39  ;;  %v3232_v55 = vmax.f32 %v3106_v40, 0.0 }
 0x4a1   : > { %16685 = vst [vmem:[#allocation52_spill] sm:$0xff] %v13694_v9  ;;  %v3170_v29 = vadd.f32 %v10933_v53, %v13322_v23  ;;  %v3161_v44 = vpop.f32.mrb[115].mxu1  ;;  %16687 = vst [vmem:[#allocation42_spill] sm:$0xff] %v13702_v17  ;;  %v3229_v53 = vmax.f32 %v3095_v15, 0.0  ;;  %v3247_v20 = vmax.f32 %v3167_v43, 0.0  ;;  %v13721_v58 = vpack.c.bf16 %v13694_v9, %v13702_v17 }
 0x4a2   : > { %v3245_v42 = vmax.f32 %v3159_v1, 0.0  ;;  %v3162_v18 = vadd.f32 %v13322_v23, %v3161_v44  ;;  %10063 = vmatprep.subr.bf16.mxu1 %v13691_v6  ;;  %v13715_v44 = vadd.f32 %v3230_v28, %v16592_v38  ;;  %v3114_v1 = vadd.f32 %v13322_v23, %v13584_v49 }
 0x4a3   : > { %v3248_v27 = vmax.f32 %v3170_v29, 0.0  ;;  %10064 = vmatpush3.bf16.msra.mxu1 %v13699_v12  ;;  %v3231_v43 = vmax.f32 %v3103_v5, 0.0  ;;  %v13733_v38 = vadd.f32 %v3229_v53, %v12791_v37  ;;  %v13736_v49 = vadd.f32 %v3232_v55, %v12804_v59 }
 0x4a4   : > { %v3246_v25 = vmax.f32 %v3162_v18, 0.0  ;;  %10065 = vmatprep.subr.bf16.mxu1 %v13708_v56  ;;  %16688 = vst [vmem:[#allocation44_spill] sm:$0xff] %v13715_v44  ;;  %v13724_v8 = vadd.f32 %v3245_v42, %v16598_v16  ;;  %v3111_v28 = vadd.f32 %v13322_v23, %v13576_v7  ;;  %v3122_v59 = vadd.f32 %v13581_v13, %v13322_v23 }
 0x4a5   : > { %v13727_v40 = vadd.f32 %v3248_v27, %v16597_v34  ;;  %16692 = vst [vmem:[#allocation71_spill] sm:$0xff] %v13733_v38  ;;  %16693 = vst [vmem:[#allocation72_spill] sm:$0xff] %v13736_v49  ;;  %v13742_v34 = vadd.f32 %v3247_v20, %v16595_v47  ;;  %v3234_v42 = vmax.f32 %v3114_v1, 0.0  ;;  %v13755_v47 = vpack.c.bf16 %v13715_v44, %v13733_v38 }
 0x4a6   : > { %16689 = vst [vmem:[#allocation68_spill] sm:$0xff] %v13724_v8  ;;  %v13730_v18 = vadd.f32 %v3246_v25, %v16599_v36  ;;  %v10936_v15 = vpop.f32.mrb[116].mxu1  ;;  %v16695_v25 = vld [vmem:[#allocation58_spill] sm:$0xff]  ;;  %v3119_v13 = vadd.f32 %v13574_v50, %v13322_v23  ;;  %v3233_v1 = vmax.f32 %v3111_v28, 0.0 }
 0x4a7   : > { %16690 = vst [vmem:[#allocation69_spill] sm:$0xff] %v13727_v40  ;;  %v3174_v29 = vpop.f32.mrb[117].mxu1  ;;  %10066 = vmatpush3.bf16.msra.mxu1 %v13721_v58  ;;  %16694 = vst [vmem:[#allocation73_spill] sm:$0xff] %v13742_v34  ;;  %v3183_v16 = vadd.f32 %v10936_v15, %v13322_v23  ;;  %v13761_v55 = vpack.c.bf16 %v13727_v40, %v13742_v34  ;;  %v13764_v15 = vadd.f32 %v3231_v43, %v16695_v25  ;;  %v12007_v25 = vld [vmem:[%s16184_s10] sm:$0xff]  }
 0x4a8   : > { %16691 = vst [vmem:[#allocation70_spill] sm:$0xff] %v13730_v18  ;;  %v3175_v36 = vadd.f32 %v13322_v23, %v3174_v29  ;;  %v10937_v27 = vpop.f32.mrb[118].mxu1  ;;  %v13748_v37 = vpack.c.bf16 %v13730_v18, %v13724_v8  ;;  %v13771_v60 = vadd.f32 %v3234_v42, %v12825_v30  ;;  %v3235_v28 = vmax.f32 %v3119_v13, 0.0  ;;  %v16702_v30 = vld [vmem:[#allocation60_spill] sm:$0xff]  ;;  %v16708_v13 = vld [vmem:[#allocation63_spill] sm:$0xff] }
 0x4a9   : > { %v3186_v7 = vadd.f32 %v10937_v27, %v13322_v23  ;;  %v3177_v5 = vpop.f32.mrb[119].mxu1  ;;  %16696 = vst [vmem:[#allocation58_spill] sm:$0xff] %v13764_v15  ;;  %v3251_v27 = vmax.f32 %v3183_v16, 0.0  ;;  %v13775_v39 = vpack.c.bf16 %v13736_v49, %v13764_v15  ;;  %v13787_v16 = vadd.f32 %v3233_v1, %v12843_v31  ;;  %v12008_v1 = vld [vmem:[%s16184_s10 + $0x8] sm:$0xff]  }
 0x4aa   : > { %v3249_v20 = vmax.f32 %v3175_v36, 0.0  ;;  %v3178_v53 = vadd.f32 %v13322_v23, %v3177_v5  ;;  %10067 = vmatprep.subr.bf16.mxu1 %v13748_v37  ;;  %v3236_v5 = vmax.f32 %v3122_v59, 0.0  ;;  %16697 = vst [vmem:[#allocation74_spill] sm:$0xff] %v13771_v60 }
 0x4ab   : > { %v3252_v29 = vmax.f32 %v3186_v7, 0.0  ;;  %10068 = vmatpush3.bf16.msra.mxu1 %v13755_v47  ;;  %16701 = vst [vmem:[#allocation78_spill] sm:$0xff] %v13787_v16  ;;  %v13791_v59 = vadd.f32 %v3251_v27, %v16702_v30  ;;  %v12010_v27 = vld [vmem:[%s16184_s10 + $0x18] sm:$0xff]  }
 0x4ac   : > { %v3250_v36 = vmax.f32 %v3178_v53, 0.0  ;;  %10069 = vmatprep.subr.bf16.mxu1 %v13761_v55  ;;  %v13778_v43 = vadd.f32 %v3249_v20, %v12832_v46  ;;  %v16704_v46 = vld [vmem:[#allocation61_spill] sm:$0xff]  ;;  %v12014_v30 = vld [vmem:[%s16184_s10 + $0x38] sm:$0xff]  }
 0x4ad   : > { %v13781_v23 = vadd.f32 %v3252_v29, %v12835_v24  ;;  %16703 = vst [vmem:[#allocation60_spill] sm:$0xff] %v13791_v59  ;;  %v13798_v7 = vadd.f32 %v3236_v5, %v16704_v46  ;;  %v13802_v24 = vpack.c.bf16 %v13771_v60, %v13787_v16  ;;  %v12009_v29 = vld [vmem:[%s16184_s10 + $0x10] sm:$0xff]   ;;  %v12012_v5 = vld [vmem:[%s16184_s10 + $0x28] sm:$0xff]  }
 0x4ae   : > { %16698 = vst [vmem:[#allocation75_spill] sm:$0xff] %v13778_v43  ;;  %v13784_v50 = vadd.f32 %v3250_v36, %v16600_v61  ;;  %v16706_v61 = vld [vmem:[#allocation62_spill] sm:$0xff]  ;;  %v12011_v36 = vld [vmem:[%s16184_s10 + $0x20] sm:$0xff]   ;;  %v16709_v46 = vld [vmem:[#allocation64_spill] sm:$0xff] }
 0x4af   : > { %16699 = vst [vmem:[#allocation76_spill] sm:$0xff] %v13781_v23  ;;  %10070 = vmatpush3.bf16.msra.mxu1 %v13775_v39  ;;  %16705 = vst [vmem:[#allocation61_spill] sm:$0xff] %v13798_v7  ;;  %v13807_v31 = vpack.c.bf16 %v13781_v23, %v13791_v59  ;;  %v13810_v20 = vadd.f32 %v3235_v28, %v16706_v61  ;;  %v12013_v28 = vld [vmem:[%s16184_s10 + $0x30] sm:$0xff]   ;;  %v1352_v61 = vpack.c.bf16 %v16709_v46, %v16709_v46 }
 0x4b0   : > { %16700 = vst [vmem:[#allocation77_spill] sm:$0xff] %v13784_v50  ;;  %v13795_v42 = vpack.c.bf16 %v13784_v50, %v13778_v43 }
 0x4b1   : > { %16707 = vst [vmem:[#allocation62_spill] sm:$0xff] %v13810_v20  ;;  %v13816_v53 = vpack.c.bf16 %v13798_v7, %v13810_v20 }
 0x4b2   : > { %10071 = vmatprep.subr.bf16.mxu1 %v13795_v42 }
 0x4b3   : > { %10072 = vmatpush3.bf16.msra.mxu1 %v13802_v24 }
 0x4b4   : > { %10073 = vmatprep.subr.bf16.mxu1 %v13807_v31 }
 0x4b7   : > { %10074 = vmatpush3.bf16.msra.mxu1 %v13816_v53 }
 0x4b8   : > { %10958 = vmatprep.subr.bf16.mxu1 %v16656_v51 }
 0x4ba   : > { %3550 = vmatmul.mubr.bf16.vlgmr.msra.gmra.mrb[120].mxu1 %v16708_v13 }
 0x4bb   : > { %10959 = vmatpush3.bf16.msra.mxu1 %v12007_v25  ;;  %10974 = vmatprep.mubr.msk.bf16.mxu1 %vm12251_vm3, %v16656_v51  ;;  %v12071_v25 = vld [vmem:[%s12461_s29 + $0x20] sm:$0xff]  }
 0x4bc   : > { %10960 = vmatprep.subr.bf16.mxu1 %v16656_v51 }
 0x4bf   : > { %10961 = vmatpush3.bf16.msra.mxu1 %v12008_v1  ;;  %v12073_v1 = vld [vmem:[%s12461_s29 + $0x30] sm:$0xff]  }
 0x4c0   : > { %10962 = vmatprep.subr.bf16.mxu1 %v16656_v51 }
 0x4c3   : > { %10963 = vmatpush3.bf16.msra.mxu1 %v12009_v29 }
 0x4c4   : > { %10964 = vmatprep.subr.bf16.mxu1 %v16656_v51 }
 0x4c7   : > { %10965 = vmatpush3.bf16.msra.mxu1 %v12010_v27 }
 0x4c8   : > { %10966 = vmatprep.subr.bf16.mxu1 %v16656_v51 }
 0x4cb   : > { %10967 = vmatpush3.bf16.msra.mxu1 %v12011_v36 }
 0x4cc   : > { %10968 = vmatprep.subr.bf16.mxu1 %v16656_v51 }
 0x4cf   : > { %10969 = vmatpush3.bf16.msra.mxu1 %v12012_v5 }
 0x4d0   : > { %10970 = vmatprep.subr.bf16.mxu1 %v16656_v51 }
 0x4d3   : > { %10971 = vmatpush3.bf16.msra.mxu1 %v12013_v28 }
 0x4d4   : > { %10972 = vmatprep.subr.bf16.mxu1 %v16656_v51 }
 0x4d7   : > { %10973 = vmatpush3.bf16.msra.mxu1 %v12014_v30 }
 0x4d8   : > { %10994 = vmatprep.subr.bf16.mxu1 %v13475_v26 }
 0x4da   : > { %10975 = vmatmul.mubr.bf16.vlgmr.msra.gmra.mrb[124].mxu1 %v1352_v61 }
 0x4db   : > { %10995 = vmatpush3.bf16.msra.mxu1 %v13475_v26  ;;  %11002 = vmatprep.mubr.msk.bf16.mxu1 %vm1453_vm2, %v12071_v25  ;;  %v12072_v26 = vld [vmem:[%s12461_s29 + $0x28] sm:$0xff]  }
 0x4dc   : > { %10996 = vmatprep.subr.bf16.mxu1 %v13495_v10 }
 0x4df   : > { %10997 = vmatpush3.bf16.msra.mxu1 %v13495_v10  ;;  %v12074_v10 = vld [vmem:[%s12461_s29 + $0x38] sm:$0xff]  }
 0x4e0   : > { %10998 = vmatprep.subr.bf16.mxu1 %v13524_v19 }
 0x4e3   : > { %10999 = vmatpush3.bf16.msra.mxu1 %v13524_v19  ;;  %v12075_v19 = vld [vmem:[%s12461_s29 + $0x60] sm:$0xff]  }
 0x4e4   : > { %11000 = vmatprep.subr.bf16.mxu1 %v13538_v22 }
 0x4e7   : > { %11001 = vmatpush3.bf16.msra.mxu1 %v13538_v22  ;;  %v12080_v22 = vld [vmem:[%s12461_s29 + $0xa8] sm:$0xff]  }
 0x4e8   : > { %11026 = vmatprep.subr.bf16.mxu1 %v13468_v11 }
 0x4ea   : > { %11003 = vmatmul.mubr.msk.bf16.vlgmr.msra.gmra.mrb[128].mxu1 %vm1453_vm2, %v12072_v26 }
 0x4eb   : > { %11027 = vmatpush3.bf16.msra.mxu1 %v13468_v11  ;;  %11006 = vmatprep.mubr.msk.bf16.mxu1 %vm1453_vm2, %v12073_v1  ;;  %v12076_v11 = vld [vmem:[%s12461_s29 + $0x68] sm:$0xff]   ;;  %v12087_v1 = vld [vmem:[%s12461_s29] sm:$0xff]  }
 0x4ec   : > { %11028 = vmatprep.subr.bf16.mxu1 %v13481_v48 }
 0x4ef   : > { %11029 = vmatpush3.bf16.msra.mxu1 %v13481_v48  ;;  %v12077_v48 = vld [vmem:[%s12461_s29 + $0x70] sm:$0xff]  }
 0x4f0   : > { %11030 = vmatprep.subr.bf16.mxu1 %v13517_v41 }
 0x4f2   : > { %11007 = vmatmul.mubr.msk.bf16.gmra.mrb[132].mxu1 %vm1453_vm2, %v12074_v10  ;;  %v12089_v10 = vld [vmem:[%s12461_s29 + $0x10] sm:$0xff]  }
 0x4f3   : > { %11031 = vmatpush3.bf16.msra.mxu1 %v13517_v41  ;;  %11034 = vmatprep.mubr.msk.bf16.mxu1 %vm1453_vm2, %v12075_v19  ;;  %v12078_v41 = vld [vmem:[%s12461_s29 + $0x78] sm:$0xff]  }
 0x4f4   : > { %11032 = vmatprep.subr.bf16.mxu1 %v13529_v52 }
 0x4f7   : > { %11033 = vmatpush3.bf16.msra.mxu1 %v13529_v52  ;;  %v12079_v52 = vld [vmem:[%s12461_s29 + $0xa0] sm:$0xff]  }
 0x4f8   : > { %11058 = vmatprep.subr.bf16.mxu1 %v13755_v47 }
 0x4fa   : > { %11035 = vmatmul.mubr.msk.bf16.vlgmr.msra.gmra.mrb[136].mxu1 %vm1453_vm2, %v12076_v11  ;;  %v16711_v11 = vld [vmem:[#allocation18_spill] sm:$0xff] }
 0x4fb   : > { %11059 = vmatpush3.bf16.msra.mxu1 %v13755_v47  ;;  %11038 = vmatprep.mubr.msk.bf16.mxu1 %vm1453_vm2, %v12077_v48  ;;  %v12082_v47 = vld [vmem:[%s12461_s29 + $0xb8] sm:$0xff]  }
 0x4fc   : > { %11060 = vmatprep.subr.bf16.mxu1 %v13775_v39 }
 0x4ff   : > { %11061 = vmatpush3.bf16.msra.mxu1 %v13775_v39  ;;  %v12081_v39 = vld [vmem:[%s12461_s29 + $0xb0] sm:$0xff]  }
 0x500   : > { %11062 = vmatprep.subr.bf16.mxu1 %v13802_v24 }
 0x502   : > { %11039 = vmatmul.mubr.msk.bf16.gmra.mrb[140].mxu1 %vm1453_vm2, %v12078_v41 }
 0x503   : > { %11063 = vmatpush3.bf16.msra.mxu1 %v13802_v24  ;;  %11066 = vmatprep.mubr.msk.bf16.mxu1 %vm1453_vm2, %v12079_v52  ;;  %v12083_v24 = vld [vmem:[%s12461_s29 + $0xe0] sm:$0xff]   ;;  %v12093_v52 = vld [vmem:[%s12461_s29 + $0x50] sm:$0xff]  }
 0x504   : > { %11064 = vmatprep.subr.bf16.mxu1 %v13816_v53 }
 0x507   : > { %11065 = vmatpush3.bf16.msra.mxu1 %v13816_v53  ;;  %v12085_v53 = vld [vmem:[%s12461_s29 + $0xf0] sm:$0xff]  }
 0x508   : > { %11090 = vmatprep.subr.bf16.mxu1 %v13748_v37 }
 0x50a   : > { %11067 = vmatmul.mubr.msk.bf16.vlgmr.msra.gmra.mrb[144].mxu1 %vm1453_vm2, %v12080_v22  ;;  %v12094_v22 = vld [vmem:[%s12461_s29 + $0x58] sm:$0xff]  }
 0x50b   : > { %11091 = vmatpush3.bf16.msra.mxu1 %v13748_v37  ;;  %11070 = vmatprep.mubr.msk.bf16.mxu1 %vm1453_vm2, %v12081_v39  ;;  %v12084_v37 = vld [vmem:[%s12461_s29 + $0xe8] sm:$0xff]  }
 0x50c   : > { %11092 = vmatprep.subr.bf16.mxu1 %v13761_v55 }
 0x50f   : > { %11093 = vmatpush3.bf16.msra.mxu1 %v13761_v55  ;;  %v12086_v55 = vld [vmem:[%s12461_s29 + $0xf8] sm:$0xff]  }
 0x510   : > { %11094 = vmatprep.subr.bf16.mxu1 %v13795_v42 }
 0x512   : > { %11071 = vmatmul.mubr.msk.bf16.gmra.mrb[148].mxu1 %vm1453_vm2, %v12082_v47  ;;  %v13958_v47 = vstv %s4272_s20  ;;  %s6250_s20 = sadd.f32 1.0, %s9671_s19  ;;  %s15743_s19 = sld [smem:[#allocation3 + $0x3]] }
 0x513   : > { %11095 = vmatpush3.bf16.msra.mxu1 %v13795_v42  ;;  %11098 = vmatprep.mubr.msk.bf16.mxu1 %vm1453_vm2, %v12083_v24  ;;  %v16712_v24 = vld [vmem:[#allocation26_spill] sm:$0xff] }
 0x514   : > { %11096 = vmatprep.subr.bf16.mxu1 %v13807_v31 }
 0x517   : > { %11097 = vmatpush3.bf16.msra.mxu1 %v13807_v31 }
 0x51a   : > { %11099 = vmatmul.mubr.msk.bf16.vlgmr.msra.gmra.mrb[152].mxu1 %vm1453_vm2, %v12084_v37  ;;  %v4284_v37 = vmul.f32 %v13958_v47, %v16712_v24 }
 0x51b   : > { %11102 = vmatprep.mubr.msk.bf16.mxu1 %vm1453_vm2, %v12085_v53  ;;  %v16713_v53 = vld [vmem:[#allocation25_spill] sm:$0xff] }
 0x522   : > { %11103 = vmatmul.mubr.msk.bf16.gmra.mrb[156].mxu1 %vm1453_vm2, %v12086_v55  ;;  %v4285_v55 = vmul.f32 %v13958_v47, %v16713_v53  ;;  %v12025_v53 = vld [vmem:[%s16181_s7 + $0x50] sm:$0xff]  }
 0x54d   : > { %v10053_v29 = vpop.f32.mrb[144].mxu0 }
 0x54e   : > { %v10054_v27 = vpop.f32.mrb[145].mxu0 }
 0x54f   : > { %v10055_v42 = vadd.f32 %v10054_v27, %v10053_v29  ;;  %v10056_v36 = vpop.f32.mrb[146].mxu0  ;;  %v12095_v29 = vld [vmem:[%s12461_s29 + $0x80] sm:$0xff]  }
 0x550   : > { %v10057_v5 = vpop.f32.mrb[147].mxu0  ;;  %v16715_v36 = vld [vmem:[#allocation19_spill] sm:$0xff] }
 0x551   : > { %v4283_v5 = vmul.f32 %v13958_v47, %v16715_v36 }
 0x58d   : > { %v10075_v28 = vpop.f32.mrb[120].mxu1 }
 0x58e   : > { %v10076_v30 = vpop.f32.mrb[121].mxu1 }
 0x58f   : > { %v10077_v46 = vadd.f32 %v10076_v30, %v10075_v28  ;;  %v10078_v31 = vpop.f32.mrb[122].mxu1 }
 0x590   : > { %v10079_v61 = vpop.f32.mrb[123].mxu1 }
 0x591   : > { %v3552_v25 = vadd.f32 %v10077_v46, %v10055_v42 }
 0x593   : > { %v3557_v26 = vpack.c.bf16 %v3552_v25, %v3552_v25  ;;  %v16727_v25 = vld [vmem:[#allocation67_spill] sm:$0xff] }
 0x595   : > { %10955 = vmatmul.mubr.bf16.vlgmr.msra.gmra.mrb[148].mxu0 %v3557_v26  ;;  %v12096_v26 = vld [vmem:[%s12461_s29 + $0x88] sm:$0xff]  }
 0x596   : > { %10979 = vmatpush3.bf16.msra.mxu0 %v13365_v33  ;;  %10986 = vmatprep.mubr.msk.bf16.mxu0 %vm1453_vm2, %v12087_v1  ;;  %v12088_v33 = vld [vmem:[%s12461_s29 + $0x8] sm:$0xff]  }
 0x597   : > { %10980 = vmatprep.subr.bf16.mxu0 %v13385_v54 }
 0x59a   : > { %10981 = vmatpush3.bf16.msra.mxu0 %v13385_v54  ;;  %v16710_v54 = vld [vmem:[#allocation54_spill] sm:$0xff] }
 0x59b   : > { %10982 = vmatprep.subr.bf16.mxu0 %v13419_v0 }
 0x59e   : > { %10983 = vmatpush3.bf16.msra.mxu0 %v13419_v0  ;;  %v12090_v0 = vld [vmem:[%s12461_s29 + $0x18] sm:$0xff]  }
 0x59f   : > { %10984 = vmatprep.subr.bf16.mxu0 %v13441_v45 }
 0x5a2   : > { %10985 = vmatpush3.bf16.msra.mxu0 %v13441_v45 }
 0x5a3   : > { %11010 = vmatprep.subr.bf16.mxu0 %v13359_v21 }
 0x5a5   : > { %10987 = vmatmul.mubr.msk.bf16.vlgmr.msra.gmra.mrb[152].mxu0 %vm1453_vm2, %v12088_v33  ;;  %v16716_v33 = vld [vmem:[#allocation34_spill] sm:$0xff] }
 0x5a6   : > { %11011 = vmatpush3.bf16.msra.mxu0 %v13359_v21  ;;  %10990 = vmatprep.mubr.msk.bf16.mxu0 %vm1453_vm2, %v12089_v10  ;;  %v12091_v21 = vld [vmem:[%s12461_s29 + $0x40] sm:$0xff]   ;;  %v4288_v10 = vmul.f32 %v13958_v47, %v16716_v33 }
 0x5a7   : > { %11012 = vmatprep.subr.bf16.mxu0 %v13372_v32 }
 0x5aa   : > { %11013 = vmatpush3.bf16.msra.mxu0 %v13372_v32  ;;  %v12092_v32 = vld [vmem:[%s12461_s29 + $0x48] sm:$0xff]  }
 0x5ab   : > { %11014 = vmatprep.subr.bf16.mxu0 %v16710_v54 }
 0x5ad   : > { %10991 = vmatmul.mubr.msk.bf16.gmra.mrb[156].mxu0 %vm1453_vm2, %v12090_v0  ;;  %v13940_v45 = vpop.f32.mrb[124].mxu1  ;;  %v16717_v0 = vld [vmem:[#allocation33_spill] sm:$0xff] }
 0x5ae   : > { %11015 = vmatpush3.bf16.msra.mxu0 %v16710_v54  ;;  %v10976_v19 = vpop.f32.mrb[125].mxu1  ;;  %11018 = vmatprep.mubr.msk.bf16.mxu0 %vm1453_vm2, %v12091_v21  ;;  %v16718_v21 = vld [vmem:[#allocation31_spill] sm:$0xff] }
 0x5af   : > { %11016 = vmatprep.subr.bf16.mxu0 %v16711_v11  ;;  %v3748_v48 = vpop.f32.mrb[126].mxu1  ;;  %v12097_v19 = vld [vmem:[%s12461_s29 + $0x90] sm:$0xff]  }
 0x5b0   : > { %v10977_v41 = vpop.f32.mrb[127].mxu1 }
 0x5b1   : > { %v16719_v41 = vld [vmem:[#allocation27_spill] sm:$0xff] }
 0x5b2   : > { %11017 = vmatpush3.bf16.msra.mxu0 %v16711_v11  ;;  %v4286_v11 = vmul.f32 %v13958_v47, %v16718_v21  ;;  %v12102_v21 = vld [vmem:[%s12461_s29 + $0xd8] sm:$0xff]  }
 0x5b3   : > { %11042 = vmatprep.subr.bf16.mxu0 %v13643_v2 }
 0x5b5   : > { %11019 = vmatmul.mubr.msk.bf16.vlgmr.msra.gmra.mrb[160].mxu0 %vm1453_vm2, %v12092_v32  ;;  %v4287_v32 = vmul.f32 %v13958_v47, %v16719_v41 }
 0x5b6   : > { %11043 = vmatpush3.bf16.msra.mxu0 %v13643_v2  ;;  %11022 = vmatprep.mubr.msk.bf16.mxu0 %vm1453_vm2, %v12093_v52 }
 0x5b7   : > { %11044 = vmatprep.subr.bf16.mxu0 %v13665_v63 }
 0x5ba   : > { %11045 = vmatpush3.bf16.msra.mxu0 %v13665_v63  ;;  %v16714_v63 = vld [vmem:[#allocation23_spill] sm:$0xff] }
 0x5bb   : > { %11046 = vmatprep.subr.bf16.mxu0 %v13699_v12  ;;  %v4282_v27 = vmul.f32 %v13958_v47, %v16714_v63 }
 0x5bd   : > { %11023 = vmatmul.mubr.msk.bf16.gmra.mrb[164].mxu0 %vm1453_vm2, %v12094_v22  ;;  %v11004_v39 = vpop.f32.mrb[128].mxu1 }
 0x5be   : > { %11047 = vmatpush3.bf16.msra.mxu0 %v13699_v12  ;;  %v3850_v2 = vpop.f32.mrb[129].mxu1  ;;  %11050 = vmatprep.mubr.msk.bf16.mxu0 %vm1453_vm2, %v12095_v29  ;;  %v13972_v28 = vadd.f32 %v11004_v39, %v4284_v37  ;;  %v12098_v29 = vld [vmem:[%s12461_s29 + $0x98] sm:$0xff]  }
 0x5bf   : > { %11048 = vmatprep.subr.bf16.mxu0 %v13721_v58  ;;  %v11005_v42 = vpop.f32.mrb[130].mxu1  ;;  %v13976_v46 = vadd.f32 %v4282_v27, %v3850_v2  ;;  %v16726_v2 = vld [vmem:[#allocation65_spill] sm:$0xff] }
 0x5c0   : > { %v13974_v12 = vadd.f32 %v11005_v42, %v4285_v55  ;;  %v3853_v30 = vpop.f32.mrb[131].mxu1  ;;  %v16720_v42 = vld [vmem:[#allocation24_spill] sm:$0xff]  ;;  %v4302_v61 = vmul.f32 %v13958_v47, %v16726_v2 }
 0x5c1   : > { %v13978_v31 = vadd.f32 %v4283_v5, %v3853_v30  ;;  %v4300_v5 = vmul.f32 %v13958_v47, %v16720_v42  ;;  %v12016_v55 = vld [vmem:[%s16179_s5 + $0x48] sm:$0xff]  }
 0x5c2   : > { %11049 = vmatpush3.bf16.msra.mxu0 %v13721_v58  ;;  %v4289_v58 = vmul.f32 %v13958_v47, %v16717_v0 }
 0x5c3   : > { %11074 = vmatprep.subr.bf16.mxu0 %v13636_v4 }
 0x5c5   : > { %11051 = vmatmul.mubr.msk.bf16.vlgmr.msra.gmra.mrb[168].mxu0 %vm1453_vm2, %v12096_v26  ;;  %v11008_v1 = vpop.f32.mrb[132].mxu1  ;;  %v16721_v26 = vld [vmem:[#allocation21_spill] sm:$0xff] }
 0x5c6   : > { %11075 = vmatpush3.bf16.msra.mxu0 %v13636_v4  ;;  %v3866_v54 = vpop.f32.mrb[133].mxu1  ;;  %11054 = vmatprep.mubr.msk.bf16.mxu0 %vm1453_vm2, %v12097_v19  ;;  %v14000_v52 = vadd.f32 %v11008_v1, %v4288_v10  ;;  %v12099_v1 = vld [vmem:[%s12461_s29 + $0xc0] sm:$0xff]   ;;  %v16722_v10 = vld [vmem:[#allocation20_spill] sm:$0xff]  ;;  %v16723_v19 = vld [vmem:[#allocation22_spill] sm:$0xff] }
 0x5c7   : > { %11076 = vmatprep.subr.bf16.mxu0 %v13651_v3  ;;  %v11009_v48 = vpop.f32.mrb[134].mxu1  ;;  %v14004_v39 = vadd.f32 %v4286_v11, %v3866_v54  ;;  %v4298_v54 = vmul.f32 %v13958_v47, %v16722_v10  ;;  %v4299_v11 = vmul.f32 %v13958_v47, %v16723_v19 }
 0x5c8   : > { %v14002_v4 = vadd.f32 %v11009_v48, %v4289_v58  ;;  %v3869_v22 = vpop.f32.mrb[135].mxu1 }
 0x5c9   : > { %v14006_v37 = vadd.f32 %v4287_v32, %v3869_v22 }
 0x5ca   : > { %11077 = vmatpush3.bf16.msra.mxu0 %v13651_v3  ;;  %v4301_v3 = vmul.f32 %v13958_v47, %v16721_v26  ;;  %v16733_v26 = vld [vmem:[#allocation59_spill] sm:$0xff] }
 0x5cb   : > { %11078 = vmatprep.subr.bf16.mxu0 %v13691_v6  ;;  %v4280_v10 = vmul.f32 %v13958_v47, %v16733_v26 }
 0x5cd   : > { %11055 = vmatmul.mubr.msk.bf16.gmra.mrb[172].mxu0 %vm1453_vm2, %v12098_v29  ;;  %v11036_v27 = vpop.f32.mrb[136].mxu1 }
 0x5ce   : > { %11079 = vmatpush3.bf16.msra.mxu0 %v13691_v6  ;;  %v3980_v30 = vpop.f32.mrb[137].mxu1  ;;  %11082 = vmatprep.mubr.msk.bf16.mxu0 %vm1453_vm2, %v12099_v1  ;;  %v12015_v6 = vld [vmem:[%s16179_s5 + $0x40] sm:$0xff]   ;;  %v14031_v48 = vadd.f32 %v11036_v27, %v4300_v5  ;;  %v12100_v5 = vld [vmem:[%s12461_s29 + $0xc8] sm:$0xff]  }
 0x5cf   : > { %11080 = vmatprep.subr.bf16.mxu0 %v13708_v56  ;;  %v11037_v58 = vpop.f32.mrb[138].mxu1  ;;  %v14035_v29 = vadd.f32 %v4298_v54, %v3980_v30 }
 0x5d0   : > { %v14033_v32 = vadd.f32 %v11037_v58, %v4301_v3  ;;  %v3983_v22 = vpop.f32.mrb[139].mxu1  ;;  %v16724_v3 = vld [vmem:[#allocation32_spill] sm:$0xff] }
 0x5d1   : > { %v14037_v1 = vadd.f32 %v4299_v11, %v3983_v22  ;;  %v4304_v54 = vmul.f32 %v13958_v47, %v16724_v3  ;;  %v12101_v22 = vld [vmem:[%s12461_s29 + $0xd0] sm:$0xff]  }
 0x5d2   : > { %11081 = vmatpush3.bf16.msra.mxu0 %v13708_v56  ;;  %v16725_v56 = vld [vmem:[#allocation66_spill] sm:$0xff] }
 0x5d3   : > { %11106 = vmatprep.subr.bf16.mxu0 %v12015_v6  ;;  %v4305_v11 = vmul.f32 %v13958_v47, %v16725_v56 }
 0x5d5   : > { %11083 = vmatmul.mubr.msk.bf16.vlgmr.msra.gmra.mrb[176].mxu0 %vm1453_vm2, %v12100_v5  ;;  %v11040_v30 = vpop.f32.mrb[140].mxu1  ;;  %v4303_v5 = vmul.f32 %v13958_v47, %v16727_v25 }
 0x5d6   : > { %v3996_v58 = vpop.f32.mrb[141].mxu1  ;;  %11086 = vmatprep.mubr.msk.bf16.mxu0 %vm1453_vm2, %v12101_v22  ;;  %11107 = vmatpush3.bf16.msra.mxu0 %v12015_v6  ;;  %v14059_v13 = vadd.f32 %v11040_v30, %v4304_v54  ;;  %v4315_v54 = vmul.f32 %v13958_v47, %v13715_v44 }
 0x5d7   : > { %v11041_v27 = vpop.f32.mrb[142].mxu1  ;;  %11108 = vmatprep.subr.bf16.mxu0 %v12016_v55  ;;  %v14063_v0 = vadd.f32 %v4302_v61, %v3996_v58  ;;  %v4317_v61 = vmul.f32 %v13958_v47, %v13736_v49 }
 0x5d8   : > { %v14061_v51 = vadd.f32 %v11041_v27, %v4305_v11  ;;  %v3999_v33 = vpop.f32.mrb[143].mxu1  ;;  %v4316_v27 = vmul.f32 %v13958_v47, %v13764_v15 }
 0x5d9   : > { %v14065_v3 = vadd.f32 %v4303_v5, %v3999_v33  ;;  %v4314_v33 = vmul.f32 %v13958_v47, %v13733_v38  ;;  %v4320_v38 = vmul.f32 %v13958_v47, %v13810_v20  ;;  %v12020_v20 = vld [vmem:[%s16179_s5 + $0x68] sm:$0xff]  }
 0x5da   : > { %11109 = vmatpush3.bf16.msra.mxu0 %v12016_v55 }
 0x5dd   : > { %11087 = vmatmul.mubr.msk.bf16.gmra.mrb[180].mxu0 %vm1453_vm2, %v12102_v21  ;;  %v11068_v25 = vpop.f32.mrb[144].mxu1 }
 0x5de   : > { %v4110_v30 = vpop.f32.mrb[145].mxu1  ;;  %v14081_v58 = vadd.f32 %v11068_v25, %v4316_v27  ;;  %v4321_v25 = vmul.f32 %v13958_v47, %v13798_v7  ;;  %v4318_v27 = vmul.f32 %v13958_v47, %v13787_v16  ;;  %v12018_v7 = vld [vmem:[%s16179_s5 + $0x58] sm:$0xff]  }
 0x5df   : > { %v11069_v55 = vpop.f32.mrb[146].mxu1  ;;  %v14085_v5 = vadd.f32 %v4314_v33, %v4110_v30  ;;  %v12017_v33 = vld [vmem:[%s16179_s5 + $0x50] sm:$0xff]  }
 0x5e0   : > { %v14083_v11 = vadd.f32 %v11069_v55, %v4317_v61  ;;  %v4113_v21 = vpop.f32.mrb[147].mxu1  ;;  %v4319_v61 = vmul.f32 %v13958_v47, %v13771_v60  ;;  %11110 = vmatprep.subr.bf16.mxu0 %v12017_v33 }
 0x5e1   : > { %v14087_v6 = vadd.f32 %v4315_v54, %v4113_v21  ;;  %11111 = vmatpush3.bf16.msra.mxu0 %v12017_v33 }
 0x5e2   : > { %11112 = vmatprep.subr.bf16.mxu0 %v12018_v7 }
 0x5e5   : > { %v11072_v49 = vpop.f32.mrb[148].mxu1  ;;  %11113 = vmatpush3.bf16.msra.mxu0 %v12018_v7 }
 0x5e6   : > { %v4126_v44 = vpop.f32.mrb[149].mxu1  ;;  %v14104_v55 = vadd.f32 %v11072_v49, %v4320_v38  ;;  %v12019_v38 = vld [vmem:[%s16179_s5 + $0x60] sm:$0xff]  }
 0x5e7   : > { %v11073_v30 = vpop.f32.mrb[150].mxu1  ;;  %v14108_v22 = vadd.f32 %v4318_v27, %v4126_v44  ;;  %11114 = vmatprep.subr.bf16.mxu0 %v12019_v38 }
 0x5e8   : > { %v14106_v54 = vadd.f32 %v11073_v30, %v4321_v25  ;;  %v4129_v21 = vpop.f32.mrb[151].mxu1  ;;  %v4332_v25 = vmul.f32 %v13958_v47, %v13742_v34  ;;  %v4333_v30 = vmul.f32 %v13958_v47, %v13727_v40 }
 0x5e9   : > { %v14110_v15 = vadd.f32 %v4319_v61, %v4129_v21  ;;  %v4330_v61 = vmul.f32 %v13958_v47, %v13724_v8  ;;  %v4331_v21 = vmul.f32 %v13958_v47, %v13730_v18  ;;  %11115 = vmatpush3.bf16.msra.mxu0 %v12019_v38 }
 0x5ea   : > { %11116 = vmatprep.subr.bf16.mxu0 %v12020_v20 }
 0x5ed   : > { %v11100_v44 = vpop.f32.mrb[152].mxu1  ;;  %11117 = vmatpush3.bf16.msra.mxu0 %v12020_v20 }
 0x5ee   : > { %v4240_v27 = vpop.f32.mrb[153].mxu1  ;;  %v14133_v49 = vadd.f32 %v11100_v44, %v4332_v25  ;;  %v4336_v44 = vmul.f32 %v13958_v47, %v13791_v59 }
 0x5ef   : > { %v11101_v33 = vpop.f32.mrb[154].mxu1  ;;  %v14137_v34 = vadd.f32 %v4330_v61, %v4240_v27  ;;  %v4335_v27 = vmul.f32 %v13958_v47, %v13784_v50  ;;  %v12021_v61 = vld [vmem:[%s16179_s5 + $0x70] sm:$0xff]   ;;  %v12022_v50 = vld [vmem:[%s16179_s5 + $0x78] sm:$0xff]  }
 0x5f0   : > { %v14135_v16 = vadd.f32 %v11101_v33, %v4333_v30  ;;  %v4243_v60 = vpop.f32.mrb[155].mxu1  ;;  %v4337_v30 = vmul.f32 %v13958_v47, %v13781_v23  ;;  %11118 = vmatprep.subr.bf16.mxu0 %v12021_v61  ;;  %v16730_v23 = vld [vmem:[#allocation15_spill] sm:$0xff] }
 0x5f1   : > { %v14139_v7 = vadd.f32 %v4331_v21, %v4243_v60  ;;  %v4334_v60 = vmul.f32 %v13958_v47, %v13778_v43  ;;  %11119 = vmatpush3.bf16.msra.mxu0 %v12021_v61  ;;  %v4277_v43 = vmul.f32 %v13958_v47, %v16730_v23 }
 0x5f2   : > { %11120 = vmatprep.subr.bf16.mxu0 %v12022_v50 }
 0x5f5   : > { %v11104_v8 = vpop.f32.mrb[156].mxu1  ;;  %11121 = vmatpush3.bf16.msra.mxu0 %v12022_v50  ;;  %v12024_v50 = vld [vmem:[%s16181_s7 + $0x48] sm:$0xff]  }
 0x5f6   : > { %v4256_v25 = vpop.f32.mrb[157].mxu1  ;;  %v14156_v33 = vadd.f32 %v11104_v8, %v4336_v44  ;;  %v12023_v8 = vld [vmem:[%s16181_s7 + $0x40] sm:$0xff]  }
 0x5f7   : > { %v11105_v38 = vpop.f32.mrb[158].mxu1  ;;  %v14160_v18 = vadd.f32 %v4334_v60, %v4256_v25  ;;  %11186 = vmatprep.subr.bf16.mxu1 %v12023_v8 }
 0x5f8   : > { %v14158_v21 = vadd.f32 %v11105_v38, %v4337_v30  ;;  %v4259_v40 = vpop.f32.mrb[159].mxu1  ;;  %11187 = vmatpush3.bf16.msra.mxu1 %v12023_v8 }
 0x5f9   : > { %v14162_v59 = vadd.f32 %v4335_v27, %v4259_v40  ;;  %v16729_v27 = vld [vmem:[#allocation16_spill] sm:$0xff]  ;;  %11188 = vmatprep.subr.bf16.mxu1 %v12024_v50 }
 0x5fa   : > { %v4276_v61 = vmul.f32 %v13958_v47, %v16729_v27 }
 0x5fc   : > { %11189 = vmatpush3.bf16.msra.mxu1 %v12024_v50 }
 0x5fd   : > { %11190 = vmatprep.subr.bf16.mxu1 %v12025_v53 }
 0x600   : > { %11191 = vmatpush3.bf16.msra.mxu1 %v12025_v53  ;;  %v12028_v53 = vld [vmem:[%s16181_s7 + $0x68] sm:$0xff]  }
 0x668   : > { %v3657_v44 = vpop.f32.mrb[148].mxu0 }
 0x669   : > { %v10956_v30 = vpop.f32.mrb[149].mxu0  ;;  %v14172_v25 = vadd.f32 %v13940_v45, %v3657_v44  ;;  %v16731_v45 = vld [vmem:[#allocation17_spill] sm:$0xff] }
 0x66a   : > { %v3660_v40 = vpop.f32.mrb[150].mxu0  ;;  %v4274_v44 = vmul.f32 %v13958_v47, %v16731_v45 }
 0x66b   : > { %16728 = vst [vmem:[#allocation64_spill] sm:$0xff] %v14172_v25  ;;  %v10957_v60 = vpop.f32.mrb[151].mxu0  ;;  %v16732_v40 = vld [vmem:[#allocation13_spill] sm:$0xff] }
 0x66c   : > { %v4275_v60 = vmul.f32 %v13958_v47, %v16732_v40 }
 0x678   : > { %v10988_v38 = vpop.f32.mrb[152].mxu0 }
 0x679   : > { %v3785_v20 = vpop.f32.mrb[153].mxu0  ;;  %v4340_v25 = vadd.f32 %v10988_v38, %v4276_v61 }
 0x67a   : > { %v10989_v30 = vpop.f32.mrb[154].mxu0  ;;  %v4338_v41 = vadd.f32 %v4274_v44, %v3785_v20 }
 0x67b   : > { %v4341_v56 = vadd.f32 %v10989_v30, %v4277_v43  ;;  %v3788_v2 = vpop.f32.mrb[155].mxu0  ;;  %v16734_v43 = vld [vmem:[#allocation56_spill] sm:$0xff] }
 0x67c   : > { %v4339_v24 = vadd.f32 %v4275_v60, %v3788_v2  ;;  %v4281_v20 = vmul.f32 %v13958_v47, %v16734_v43  ;;  %v12026_v2 = vld [vmem:[%s16181_s7 + $0x58] sm:$0xff]   ;;  %v12027_v60 = vld [vmem:[%s16181_s7 + $0x60] sm:$0xff]  }
 0x67d   : > { %v4403_v42 = vpack.c.bf16 %v4341_v56, %v4340_v25  ;;  %v16735_v56 = vld [vmem:[#allocation57_spill] sm:$0xff]  ;;  %11192 = vmatprep.subr.bf16.mxu1 %v12026_v2  ;;  %v16737_v43 = vld [vmem:[#allocation14_spill] sm:$0xff] }
 0x67e   : > { %v4402_v63 = vpack.c.bf16 %v4339_v24, %v4338_v41  ;;  %v4278_v8 = vmul.f32 %v13958_v47, %v16735_v56  ;;  %v16736_v41 = vld [vmem:[#allocation29_spill] sm:$0xff]  ;;  %11193 = vmatpush3.bf16.msra.mxu1 %v12026_v2  ;;  %v4292_v56 = vmul.f32 %v13958_v47, %v16737_v43  ;;  %v16741_v2 = vld [vmem:[#allocation12_spill] sm:$0xff]  ;;  %v16742_v43 = vld [vmem:[#allocation55_spill] sm:$0xff] }
 0x67f   : > { %11194 = vmatprep.subr.bf16.mxu1 %v12027_v60  ;;  %v4296_v23 = vmul.f32 %v13958_v47, %v16742_v43 }
 0x680   : > { %v10992_v19 = vpop.f32.mrb[156].mxu0  ;;  %11122 = vmatprep.mubr.bf16.mxu0 %v4402_v63  ;;  %v4279_v63 = vmul.f32 %v13958_v47, %v16736_v41 }
 0x681   : > { %v3801_v38 = vpop.f32.mrb[157].mxu0  ;;  %11123 = vmatmul.mubr.bf16.vlgmr.msra.gmra.mrb[184].mxu0 %v4403_v42  ;;  %v4344_v25 = vadd.f32 %v10992_v19, %v4280_v10  ;;  %v16738_v10 = vld [vmem:[#allocation10_spill] sm:$0xff] }
 0x682   : > { %v10993_v24 = vpop.f32.mrb[158].mxu0  ;;  %v4342_v44 = vadd.f32 %v4278_v8, %v3801_v38  ;;  %v4293_v19 = vmul.f32 %v13958_v47, %v16738_v10  ;;  %v16739_v38 = vld [vmem:[#allocation11_spill] sm:$0xff]  ;;  %11195 = vmatpush3.bf16.msra.mxu1 %v12027_v60 }
 0x683   : > { %v4345_v61 = vadd.f32 %v10993_v24, %v4281_v20  ;;  %v3804_v50 = vpop.f32.mrb[159].mxu0  ;;  %v4290_v20 = vmul.f32 %v13958_v47, %v16739_v38  ;;  %v4291_v24 = vmul.f32 %v13958_v47, %v16741_v2  ;;  %11196 = vmatprep.subr.bf16.mxu1 %v12028_v53 }
 0x684   : > { %v4343_v42 = vadd.f32 %v4279_v63, %v3804_v50 }
 0x685   : > { %v4405_v30 = vpack.c.bf16 %v4345_v61, %v4344_v25 }
 0x686   : > { %v4404_v36 = vpack.c.bf16 %v4343_v42, %v4342_v44  ;;  %11197 = vmatpush3.bf16.msra.mxu1 %v12028_v53  ;;  %v16747_v53 = vld [vmem:[#allocation53_spill] sm:$0xff] }
 0x688   : > { %v11020_v26 = vpop.f32.mrb[160].mxu0  ;;  %11126 = vmatprep.mubr.bf16.mxu0 %v4404_v36  ;;  %v16740_v36 = vpack.c.bf16 %v13978_v31, %v13976_v46  ;;  %v16743_v46 = vpack.c.bf16 %v13974_v12, %v13972_v28  ;;  %v16744_v31 = vld [vmem:[#allocation30_spill] sm:$0xff] }
 0x689   : > { %v3915_v41 = vpop.f32.mrb[161].mxu0  ;;  %11127 = vmatmul.mubr.bf16.gmra.mrb[188].mxu0 %v4405_v30  ;;  %v4356_v63 = vadd.f32 %v11020_v26, %v4292_v56  ;;  %v4297_v26 = vmul.f32 %v13958_v47, %v16744_v31  ;;  %v16745_v56 = vld [vmem:[#allocation28_spill] sm:$0xff] }
 0x68a   : > { %v11021_v8 = vpop.f32.mrb[162].mxu0  ;;  %11130 = vmatprep.mubr.bf16.mxu0 %v16740_v36  ;;  %v4354_v50 = vadd.f32 %v4290_v20, %v3915_v41  ;;  %v4294_v41 = vmul.f32 %v13958_v47, %v16745_v56  ;;  %v4295_v20 = vmul.f32 %v13958_v47, %v16747_v53 }
 0x68b   : > { %v4357_v25 = vadd.f32 %v11021_v8, %v4293_v19  ;;  %v3918_v61 = vpop.f32.mrb[163].mxu0  ;;  %v16746_v19 = vpack.c.bf16 %v14006_v37, %v14004_v39  ;;  %v4309_v39 = vmul.f32 %v13958_v47, %v13624_v14  ;;  %v16749_v37 = vld [vmem:[#allocation35_spill] sm:$0xff] }
 0x68c   : > { %v4355_v44 = vadd.f32 %v4291_v24, %v3918_v61 }
 0x68d   : > { %v4411_v42 = vpack.c.bf16 %v4357_v25, %v4356_v63 }
 0x68e   : > { %v4410_v30 = vpack.c.bf16 %v4355_v44, %v4354_v50  ;;  %v4308_v50 = vmul.f32 %v13958_v47, %v13654_v62  ;;  %v16757_v62 = vpack.c.bf16 %v14033_v32, %v14031_v48 }
 0x690   : > { %v11024_v27 = vpop.f32.mrb[164].mxu0 }
 0x691   : > { %v3931_v45 = vpop.f32.mrb[165].mxu0  ;;  %11131 = vmatmul.mubr.bf16.gmra.mrb[192].mxu0 %v16743_v46  ;;  %v4360_v8 = vadd.f32 %v11024_v27, %v4296_v23  ;;  %v16748_v46 = vpack.c.bf16 %v14002_v4, %v14000_v52  ;;  %v4306_v23 = vmul.f32 %v13958_v47, %v16749_v37  ;;  %v4312_v4 = vmul.f32 %v13958_v47, %v13702_v17 }
 0x692   : > { %v11025_v60 = vpop.f32.mrb[166].mxu0  ;;  %11134 = vmatprep.mubr.bf16.mxu0 %v16746_v19  ;;  %v4358_v63 = vadd.f32 %v4294_v41, %v3931_v45  ;;  %v16750_v45 = vld [vmem:[#allocation37_spill] sm:$0xff] }
 0x693   : > { %v4361_v36 = vadd.f32 %v11025_v60, %v4297_v26  ;;  %v3934_v24 = vpop.f32.mrb[167].mxu0  ;;  %v4307_v26 = vmul.f32 %v13958_v47, %v16750_v45 }
 0x694   : > { %v4359_v28 = vadd.f32 %v4295_v20, %v3934_v24 }
 0x695   : > { %v4413_v12 = vpack.c.bf16 %v4361_v36, %v4360_v8 }
 0x696   : > { %v4412_v25 = vpack.c.bf16 %v4359_v28, %v4358_v63  ;;  %v4313_v28 = vmul.f32 %v13958_v47, %v13694_v9 }
 0x698   : > { %v11052_v61 = vpop.f32.mrb[168].mxu0 }
 0x699   : > { %v4045_v44 = vpop.f32.mrb[169].mxu0  ;;  %11135 = vmatmul.mubr.bf16.gmra.mrb[196].mxu0 %v16748_v46  ;;  %v4372_v41 = vadd.f32 %v11052_v61, %v4308_v50  ;;  %v4311_v61 = vmul.f32 %v13958_v47, %v13659_v35 }
 0x69a   : > { %v11053_v27 = vpop.f32.mrb[170].mxu0  ;;  %11138 = vmatprep.mubr.bf16.mxu0 %v4410_v30  ;;  %v4370_v20 = vadd.f32 %v4306_v23, %v4045_v44  ;;  %v4310_v30 = vmul.f32 %v13958_v47, %v13677_v57 }
 0x69b   : > { %v4373_v60 = vadd.f32 %v11053_v27, %v4309_v39  ;;  %v4048_v19 = vpop.f32.mrb[171].mxu0 }
 0x69c   : > { %v4371_v8 = vadd.f32 %v4307_v26, %v4048_v19 }
 0x69d   : > { %v4419_v36 = vpack.c.bf16 %v4373_v60, %v4372_v41 }
 0x69e   : > { %v4418_v24 = vpack.c.bf16 %v4371_v8, %v4370_v20  ;;  %v16752_v8 = vld [vmem:[#allocation46_spill] sm:$0xff] }
 0x69f   : > { %v4325_v17 = vmul.f32 %v13958_v47, %v16752_v8 }
 0x6a0   : > { %v11056_v52 = vpop.f32.mrb[172].mxu0 }
 0x6a1   : > { %v4061_v63 = vpop.f32.mrb[173].mxu0  ;;  %11139 = vmatmul.mubr.bf16.gmra.mrb[200].mxu0 %v4411_v42  ;;  %v4376_v50 = vadd.f32 %v11056_v52, %v4312_v4  ;;  %v16751_v42 = vld [vmem:[#allocation36_spill] sm:$0xff]  ;;  %v16754_v52 = vpack.c.bf16 %v14037_v1, %v14035_v29  ;;  %v16755_v4 = vld [vmem:[#allocation47_spill] sm:$0xff]  ;;  %v16758_v29 = vld [vmem:[#allocation49_spill] sm:$0xff] }
 0x6a2   : > { %v11057_v46 = vpop.f32.mrb[174].mxu0  ;;  %11142 = vmatprep.mubr.bf16.mxu0 %v4412_v25  ;;  %v4374_v23 = vadd.f32 %v4310_v30, %v4061_v63  ;;  %v4324_v19 = vmul.f32 %v13958_v47, %v16751_v42  ;;  %v16753_v25 = vld [vmem:[#allocation45_spill] sm:$0xff]  ;;  %v4323_v63 = vmul.f32 %v13958_v47, %v16755_v4  ;;  %v4329_v1 = vmul.f32 %v13958_v47, %v16758_v29 }
 0x6a3   : > { %v4377_v44 = vadd.f32 %v11057_v46, %v4313_v28  ;;  %v4064_v39 = vpop.f32.mrb[175].mxu0  ;;  %v4322_v9 = vmul.f32 %v13958_v47, %v16753_v25 }
 0x6a4   : > { %v4375_v27 = vadd.f32 %v4311_v61, %v4064_v39 }
 0x6a5   : > { %v4421_v26 = vpack.c.bf16 %v4377_v44, %v4376_v50 }
 0x6a6   : > { %v4420_v41 = vpack.c.bf16 %v4375_v27, %v4374_v23  ;;  %v16756_v23 = vld [vmem:[#allocation41_spill] sm:$0xff] }
 0x6a7   : > { %v4328_v27 = vmul.f32 %v13958_v47, %v16756_v23 }
 0x6a8   : > { %v11084_v60 = vpop.f32.mrb[176].mxu0 }
 0x6a9   : > { %v4175_v20 = vpop.f32.mrb[177].mxu0  ;;  %11143 = vmatmul.mubr.bf16.gmra.mrb[204].mxu0 %v4413_v12  ;;  %v4388_v28 = vadd.f32 %v11084_v60, %v4324_v19  ;;  %v16761_v60 = vld [vmem:[#allocation50_spill] sm:$0xff] }
 0x6aa   : > { %v11085_v57 = vpop.f32.mrb[178].mxu0  ;;  %11146 = vmatprep.mubr.bf16.mxu0 %v16754_v52  ;;  %v4386_v61 = vadd.f32 %v4322_v9, %v4175_v20  ;;  %v16759_v52 = vld [vmem:[#allocation43_spill] sm:$0xff]  ;;  %v16760_v9 = vpack.c.bf16 %v14065_v3, %v14063_v0  ;;  %v4327_v19 = vmul.f32 %v13958_v47, %v16761_v60  ;;  %v16763_v0 = vpack.c.bf16 %v14087_v6, %v14085_v5  ;;  %v12030_v3 = vld [vmem:[%s16181_s7 + $0x78] sm:$0xff]  }
 0x6ab   : > { %v4389_v30 = vadd.f32 %v11085_v57, %v4325_v17  ;;  %v4178_v46 = vpop.f32.mrb[179].mxu0  ;;  %v4326_v57 = vmul.f32 %v13958_v47, %v16759_v52  ;;  %v16764_v47 = vpack.c.bf16 %v14083_v11, %v14081_v58  ;;  %v16768_v6 = vpack.c.bf16 %v14135_v16, %v14133_v49  ;;  %v16771_v11 = vld [vmem:[#allocation9_spill] sm:$0xff]  ;;  %v14314_v5 = vld [vmem:[%s16180_s6 + $0x1] ss:$0 sm:$0xff] }
 0x6ac   : > { %v4387_v50 = vadd.f32 %v4323_v63, %v4178_v46  ;;  %v16762_v46 = vpack.c.bf16 %v14061_v51, %v14059_v13  ;;  %v12029_v51 = vld [vmem:[%s16181_s7 + $0x70] sm:$0xff]   ;;  %v16766_v13 = vpack.c.bf16 %v14106_v54, %v14104_v55  ;;  %v16770_v58 = vpack.c.bf16 %v14158_v21, %v14156_v33 }
 0x6ad   : > { %v4427_v12 = vpack.c.bf16 %v4389_v30, %v4388_v28  ;;  %11198 = vmatprep.subr.bf16.mxu1 %v12029_v51 }
 0x6ae   : > { %v4426_v44 = vpack.c.bf16 %v4387_v50, %v4386_v61  ;;  %11199 = vmatpush3.bf16.msra.mxu1 %v12029_v51 }
 0x6af   : > { %11200 = vmatprep.subr.bf16.mxu1 %v12030_v3 }
 0x6b0   : > { %v11088_v39 = vpop.f32.mrb[180].mxu0 }
 0x6b1   : > { %v4191_v35 = vpop.f32.mrb[181].mxu0  ;;  %11147 = vmatmul.mubr.bf16.gmra.mrb[208].mxu0 %v16757_v62  ;;  %v4392_v20 = vadd.f32 %v11088_v39, %v4328_v27 }
 0x6b2   : > { %v11089_v17 = vpop.f32.mrb[182].mxu0  ;;  %11150 = vmatprep.mubr.bf16.mxu0 %v16760_v9  ;;  %v4390_v30 = vadd.f32 %v4326_v57, %v4191_v35  ;;  %v16765_v35 = vpack.c.bf16 %v14110_v15, %v14108_v22  ;;  %11201 = vmatpush3.bf16.msra.mxu1 %v12030_v3  ;;  %v16767_v15 = vpack.c.bf16 %v14139_v7, %v14137_v34 }
 0x6b3   : > { %v4393_v63 = vadd.f32 %v11089_v17, %v4329_v1  ;;  %v4194_v28 = vpop.f32.mrb[183].mxu0  ;;  %v16769_v22 = vpack.c.bf16 %v14162_v59, %v14160_v18 }
 0x6b4   : > { %v4391_v48 = vadd.f32 %v4327_v19, %v4194_v28 }
 0x6b5   : > { %v4429_v62 = vpack.c.bf16 %v4393_v63, %v4392_v20 }
 0x6b6   : > { %v4428_v32 = vpack.c.bf16 %v4391_v48, %v4390_v30 }
 0x6b9   : > { %11151 = vmatmul.mubr.bf16.gmra.mrb[212].mxu0 %v16762_v46 }
 0x6ba   : > { %11154 = vmatprep.mubr.bf16.mxu0 %v4418_v24 }
 0x6c1   : > { %11155 = vmatmul.mubr.bf16.gmra.mrb[216].mxu0 %v4419_v36 }
 0x6c2   : > { %11158 = vmatprep.mubr.bf16.mxu0 %v4420_v41 }
 0x6c9   : > { %11159 = vmatmul.mubr.bf16.gmra.mrb[220].mxu0 %v4421_v26 }
 0x6ca   : > { %11162 = vmatprep.mubr.bf16.mxu0 %v16763_v0 }
 0x6d1   : > { %11163 = vmatmul.mubr.bf16.gmra.mrb[224].mxu0 %v16764_v47 }
 0x6d2   : > { %11166 = vmatprep.mubr.bf16.mxu0 %v16765_v35 }
 0x6d9   : > { %11167 = vmatmul.mubr.bf16.gmra.mrb[228].mxu0 %v16766_v13 }
 0x6da   : > { %11170 = vmatprep.mubr.bf16.mxu0 %v4426_v44 }
 0x6e1   : > { %11171 = vmatmul.mubr.bf16.gmra.mrb[232].mxu0 %v4427_v12 }
 0x6e2   : > { %11174 = vmatprep.mubr.bf16.mxu0 %v4428_v32 }
 0x6e9   : > { %11175 = vmatmul.mubr.bf16.gmra.mrb[236].mxu0 %v4429_v62 }
 0x6ea   : > { %11178 = vmatprep.mubr.bf16.mxu0 %v16767_v15 }
 0x6f1   : > { %11179 = vmatmul.mubr.bf16.gmra.mrb[240].mxu0 %v16768_v6 }
 0x6f2   : > { %11182 = vmatprep.mubr.bf16.mxu0 %v16769_v22 }
 0x6f9   : > { %11183 = vmatmul.mubr.bf16.gmra.mrb[244].mxu0 %v16770_v58 }
 0x6fa   : > { %5574 = vmatprep.mubr.bf16.mxu0 %v16771_v11 }
 0x754   : > { %v11124_v34 = vpop.f32.mrb[184].mxu0 }
 0x755   : > { %v4550_v55 = vadd.f32 %v11124_v34, %v14314_v5  ;;  %v4541_v16 = vpop.f32.mrb[185].mxu0 }
 0x756   : > { %v4542_v54 = vadd.f32 %v14314_v5, %v4541_v16  ;;  %v11125_v49 = vpop.f32.mrb[186].mxu0 }
 0x757   : > { %v4553_v18 = vadd.f32 %v11125_v49, %v14314_v5  ;;  %v4544_v59 = vpop.f32.mrb[187].mxu0  ;;  %v4798_v33 = vmax.f32 %v4550_v55, 0.0 }
 0x758   : > { %v4545_v7 = vadd.f32 %v14314_v5, %v4544_v59  ;;  %v4796_v36 = vmax.f32 %v4542_v54, 0.0 }
 0x759   : > { %v4799_v21 = vmax.f32 %v4553_v18, 0.0 }
 0x75a   : > { %v4797_v24 = vmax.f32 %v4545_v7, 0.0 }
 0x75b   : > { %v4861_v26 = vpack.c.bf16 %v4799_v21, %v4798_v33 }
 0x75c   : > { %v4860_v41 = vpack.c.bf16 %v4797_v24, %v4796_v36  ;;  %v11128_v61 = vpop.f32.mrb[188].mxu0 }
 0x75d   : > { %v4566_v50 = vadd.f32 %v11128_v61, %v14314_v5  ;;  %v4557_v12 = vpop.f32.mrb[189].mxu0 }
 0x75e   : > { %v4558_v44 = vadd.f32 %v14314_v5, %v4557_v12  ;;  %v11129_v39 = vpop.f32.mrb[190].mxu0  ;;  %11202 = vmatprep.mubr.bf16.mxu1 %v4860_v41 }
 0x75f   : > { %v4569_v27 = vadd.f32 %v11129_v39, %v14314_v5  ;;  %v4560_v1 = vpop.f32.mrb[191].mxu0  ;;  %11203 = vmatmul.mubr.bf16.vlgmr.msra.gmra.mrb[160].mxu1 %v4861_v26  ;;  %v4802_v17 = vmax.f32 %v4566_v50, 0.0 }
 0x760   : > { %v4561_v57 = vadd.f32 %v14314_v5, %v4560_v1  ;;  %v4800_v19 = vmax.f32 %v4558_v44, 0.0 }
 0x761   : > { %v4803_v9 = vmax.f32 %v4569_v27, 0.0 }
 0x762   : > { %v4801_v20 = vmax.f32 %v4561_v57, 0.0 }
 0x763   : > { %v4863_v63 = vpack.c.bf16 %v4803_v9, %v4802_v17 }
 0x764   : > { %v4862_v28 = vpack.c.bf16 %v4801_v20, %v4800_v19  ;;  %v11132_v30 = vpop.f32.mrb[192].mxu0 }
 0x765   : > { %v4582_v48 = vadd.f32 %v11132_v30, %v14314_v5  ;;  %v4573_v62 = vpop.f32.mrb[193].mxu0 }
 0x766   : > { %v4574_v32 = vadd.f32 %v14314_v5, %v4573_v62  ;;  %v11133_v46 = vpop.f32.mrb[194].mxu0  ;;  %11206 = vmatprep.mubr.bf16.mxu1 %v4862_v28 }
 0x767   : > { %v4585_v0 = vadd.f32 %v11133_v46, %v14314_v5  ;;  %v4576_v47 = vpop.f32.mrb[195].mxu0  ;;  %11207 = vmatmul.mubr.bf16.gmra.mrb[164].mxu1 %v4863_v63  ;;  %v4806_v51 = vmax.f32 %v4582_v48, 0.0 }
 0x768   : > { %v4577_v35 = vadd.f32 %v14314_v5, %v4576_v47  ;;  %v4804_v3 = vmax.f32 %v4574_v32, 0.0 }
 0x769   : > { %v4807_v13 = vmax.f32 %v4585_v0, 0.0 }
 0x76a   : > { %v4805_v15 = vmax.f32 %v4577_v35, 0.0 }
 0x76b   : > { %v4865_v6 = vpack.c.bf16 %v4807_v13, %v4806_v51 }
 0x76c   : > { %v4864_v22 = vpack.c.bf16 %v4805_v15, %v4804_v3  ;;  %v11136_v58 = vpop.f32.mrb[196].mxu0 }
 0x76d   : > { %v4598_v11 = vadd.f32 %v11136_v58, %v14314_v5  ;;  %v4589_v34 = vpop.f32.mrb[197].mxu0 }
 0x76e   : > { %v4590_v55 = vadd.f32 %v14314_v5, %v4589_v34  ;;  %v11137_v16 = vpop.f32.mrb[198].mxu0  ;;  %11210 = vmatprep.mubr.bf16.mxu1 %v4864_v22 }
 0x76f   : > { %v4601_v54 = vadd.f32 %v11137_v16, %v14314_v5  ;;  %v4592_v49 = vpop.f32.mrb[199].mxu0  ;;  %11211 = vmatmul.mubr.bf16.gmra.mrb[168].mxu1 %v4865_v6  ;;  %v4810_v59 = vmax.f32 %v4598_v11, 0.0 }
 0x770   : > { %v4593_v18 = vadd.f32 %v14314_v5, %v4592_v49  ;;  %v4808_v33 = vmax.f32 %v4590_v55, 0.0 }
 0x771   : > { %v4811_v7 = vmax.f32 %v4601_v54, 0.0 }
 0x772   : > { %v4809_v21 = vmax.f32 %v4593_v18, 0.0 }
 0x773   : > { %v4867_v36 = vpack.c.bf16 %v4811_v7, %v4810_v59 }
 0x774   : > { %v4866_v24 = vpack.c.bf16 %v4809_v21, %v4808_v33  ;;  %v11140_v26 = vpop.f32.mrb[200].mxu0 }
 0x775   : > { %v4614_v41 = vadd.f32 %v11140_v26, %v14314_v5  ;;  %v4605_v61 = vpop.f32.mrb[201].mxu0 }
 0x776   : > { %v4606_v50 = vadd.f32 %v14314_v5, %v4605_v61  ;;  %v11141_v12 = vpop.f32.mrb[202].mxu0  ;;  %11214 = vmatprep.mubr.bf16.mxu1 %v4866_v24 }
 0x777   : > { %v4617_v44 = vadd.f32 %v11141_v12, %v14314_v5  ;;  %v4608_v39 = vpop.f32.mrb[203].mxu0  ;;  %11215 = vmatmul.mubr.bf16.gmra.mrb[172].mxu1 %v4867_v36  ;;  %v4814_v1 = vmax.f32 %v4614_v41, 0.0 }
 0x778   : > { %v4609_v27 = vadd.f32 %v14314_v5, %v4608_v39  ;;  %v4812_v17 = vmax.f32 %v4606_v50, 0.0 }
 0x779   : > { %v4815_v57 = vmax.f32 %v4617_v44, 0.0 }
 0x77a   : > { %v4813_v9 = vmax.f32 %v4609_v27, 0.0 }
 0x77b   : > { %v4869_v19 = vpack.c.bf16 %v4815_v57, %v4814_v1 }
 0x77c   : > { %v4868_v20 = vpack.c.bf16 %v4813_v9, %v4812_v17  ;;  %v11144_v63 = vpop.f32.mrb[204].mxu0 }
 0x77d   : > { %v4630_v28 = vadd.f32 %v11144_v63, %v14314_v5  ;;  %v4621_v30 = vpop.f32.mrb[205].mxu0 }
 0x77e   : > { %v4622_v48 = vadd.f32 %v14314_v5, %v4621_v30  ;;  %v11145_v62 = vpop.f32.mrb[206].mxu0  ;;  %11218 = vmatprep.mubr.bf16.mxu1 %v4868_v20 }
 0x77f   : > { %v4633_v32 = vadd.f32 %v11145_v62, %v14314_v5  ;;  %v4624_v46 = vpop.f32.mrb[207].mxu0  ;;  %11219 = vmatmul.mubr.bf16.gmra.mrb[176].mxu1 %v4869_v19  ;;  %v4818_v47 = vmax.f32 %v4630_v28, 0.0 }
 0x780   : > { %v4625_v0 = vadd.f32 %v14314_v5, %v4624_v46  ;;  %v4816_v51 = vmax.f32 %v4622_v48, 0.0 }
 0x781   : > { %v4819_v35 = vmax.f32 %v4633_v32, 0.0 }
 0x782   : > { %v4817_v13 = vmax.f32 %v4625_v0, 0.0 }
 0x783   : > { %v4871_v3 = vpack.c.bf16 %v4819_v35, %v4818_v47 }
 0x784   : > { %v4870_v15 = vpack.c.bf16 %v4817_v13, %v4816_v51  ;;  %v11148_v6 = vpop.f32.mrb[208].mxu0 }
 0x785   : > { %v4646_v22 = vadd.f32 %v11148_v6, %v14314_v5  ;;  %v4637_v58 = vpop.f32.mrb[209].mxu0 }
 0x786   : > { %v4638_v11 = vadd.f32 %v14314_v5, %v4637_v58  ;;  %v11149_v34 = vpop.f32.mrb[210].mxu0  ;;  %11222 = vmatprep.mubr.bf16.mxu1 %v4870_v15 }
 0x787   : > { %v4649_v55 = vadd.f32 %v11149_v34, %v14314_v5  ;;  %v4640_v16 = vpop.f32.mrb[211].mxu0  ;;  %11223 = vmatmul.mubr.bf16.gmra.mrb[180].mxu1 %v4871_v3  ;;  %v4822_v49 = vmax.f32 %v4646_v22, 0.0 }
 0x788   : > { %v4641_v54 = vadd.f32 %v14314_v5, %v4640_v16  ;;  %v4820_v59 = vmax.f32 %v4638_v11, 0.0 }
 0x789   : > { %v4823_v18 = vmax.f32 %v4649_v55, 0.0 }
 0x78a   : > { %v4821_v7 = vmax.f32 %v4641_v54, 0.0 }
 0x78b   : > { %v4873_v33 = vpack.c.bf16 %v4823_v18, %v4822_v49 }
 0x78c   : > { %v4872_v21 = vpack.c.bf16 %v4821_v7, %v4820_v59  ;;  %v11152_v36 = vpop.f32.mrb[212].mxu0 }
 0x78d   : > { %v4662_v24 = vadd.f32 %v11152_v36, %v14314_v5  ;;  %v4653_v26 = vpop.f32.mrb[213].mxu0 }
 0x78e   : > { %v4654_v41 = vadd.f32 %v14314_v5, %v4653_v26  ;;  %v11153_v61 = vpop.f32.mrb[214].mxu0  ;;  %11226 = vmatprep.mubr.bf16.mxu1 %v4872_v21 }
 0x78f   : > { %v4665_v50 = vadd.f32 %v11153_v61, %v14314_v5  ;;  %v4656_v12 = vpop.f32.mrb[215].mxu0  ;;  %11227 = vmatmul.mubr.bf16.gmra.mrb[184].mxu1 %v4873_v33  ;;  %v4826_v39 = vmax.f32 %v4662_v24, 0.0 }
 0x790   : > { %v4657_v44 = vadd.f32 %v14314_v5, %v4656_v12  ;;  %v4824_v1 = vmax.f32 %v4654_v41, 0.0 }
 0x791   : > { %v4827_v27 = vmax.f32 %v4665_v50, 0.0 }
 0x792   : > { %v4825_v57 = vmax.f32 %v4657_v44, 0.0 }
 0x793   : > { %v4875_v17 = vpack.c.bf16 %v4827_v27, %v4826_v39 }
 0x794   : > { %v4874_v9 = vpack.c.bf16 %v4825_v57, %v4824_v1  ;;  %v11156_v19 = vpop.f32.mrb[216].mxu0 }
 0x795   : > { %v4678_v20 = vadd.f32 %v11156_v19, %v14314_v5  ;;  %v4669_v63 = vpop.f32.mrb[217].mxu0 }
 0x796   : > { %v4670_v28 = vadd.f32 %v14314_v5, %v4669_v63  ;;  %v11157_v30 = vpop.f32.mrb[218].mxu0  ;;  %11230 = vmatprep.mubr.bf16.mxu1 %v4874_v9 }
 0x797   : > { %v4681_v48 = vadd.f32 %v11157_v30, %v14314_v5  ;;  %v4672_v62 = vpop.f32.mrb[219].mxu0  ;;  %11231 = vmatmul.mubr.bf16.gmra.mrb[188].mxu1 %v4875_v17  ;;  %v4830_v46 = vmax.f32 %v4678_v20, 0.0 }
 0x798   : > { %v4673_v32 = vadd.f32 %v14314_v5, %v4672_v62  ;;  %v4828_v47 = vmax.f32 %v4670_v28, 0.0 }
 0x799   : > { %v4831_v0 = vmax.f32 %v4681_v48, 0.0 }
 0x79a   : > { %v4829_v35 = vmax.f32 %v4673_v32, 0.0 }
 0x79b   : > { %v4877_v51 = vpack.c.bf16 %v4831_v0, %v4830_v46 }
 0x79c   : > { %v4876_v13 = vpack.c.bf16 %v4829_v35, %v4828_v47  ;;  %v11160_v3 = vpop.f32.mrb[220].mxu0 }
 0x79d   : > { %v4694_v15 = vadd.f32 %v11160_v3, %v14314_v5  ;;  %v4685_v6 = vpop.f32.mrb[221].mxu0 }
 0x79e   : > { %v4686_v22 = vadd.f32 %v14314_v5, %v4685_v6  ;;  %v11161_v58 = vpop.f32.mrb[222].mxu0  ;;  %11234 = vmatprep.mubr.bf16.mxu1 %v4876_v13 }
 0x79f   : > { %v4697_v11 = vadd.f32 %v11161_v58, %v14314_v5  ;;  %v4688_v34 = vpop.f32.mrb[223].mxu0  ;;  %11235 = vmatmul.mubr.bf16.gmra.mrb[192].mxu1 %v4877_v51  ;;  %v4834_v16 = vmax.f32 %v4694_v15, 0.0 }
 0x7a0   : > { %v4689_v55 = vadd.f32 %v14314_v5, %v4688_v34  ;;  %v4832_v49 = vmax.f32 %v4686_v22, 0.0 }
 0x7a1   : > { %v4835_v54 = vmax.f32 %v4697_v11, 0.0 }
 0x7a2   : > { %v4833_v18 = vmax.f32 %v4689_v55, 0.0 }
 0x7a3   : > { %v4879_v59 = vpack.c.bf16 %v4835_v54, %v4834_v16 }
 0x7a4   : > { %v4878_v7 = vpack.c.bf16 %v4833_v18, %v4832_v49  ;;  %v11164_v33 = vpop.f32.mrb[224].mxu0 }
 0x7a5   : > { %v4710_v21 = vadd.f32 %v11164_v33, %v14314_v5  ;;  %v4701_v36 = vpop.f32.mrb[225].mxu0 }
 0x7a6   : > { %v4702_v24 = vadd.f32 %v14314_v5, %v4701_v36  ;;  %v11165_v26 = vpop.f32.mrb[226].mxu0  ;;  %11238 = vmatprep.mubr.bf16.mxu1 %v4878_v7 }
 0x7a7   : > { %v4713_v41 = vadd.f32 %v11165_v26, %v14314_v5  ;;  %v4704_v61 = vpop.f32.mrb[227].mxu0  ;;  %11239 = vmatmul.mubr.bf16.gmra.mrb[196].mxu1 %v4879_v59  ;;  %v4838_v12 = vmax.f32 %v4710_v21, 0.0 }
 0x7a8   : > { %v4705_v50 = vadd.f32 %v14314_v5, %v4704_v61  ;;  %v4836_v39 = vmax.f32 %v4702_v24, 0.0 }
 0x7a9   : > { %v4839_v44 = vmax.f32 %v4713_v41, 0.0 }
 0x7aa   : > { %v4837_v27 = vmax.f32 %v4705_v50, 0.0 }
 0x7ab   : > { %v4881_v1 = vpack.c.bf16 %v4839_v44, %v4838_v12 }
 0x7ac   : > { %v4880_v57 = vpack.c.bf16 %v4837_v27, %v4836_v39  ;;  %v11168_v17 = vpop.f32.mrb[228].mxu0 }
 0x7ad   : > { %v4726_v9 = vadd.f32 %v11168_v17, %v14314_v5  ;;  %v4717_v19 = vpop.f32.mrb[229].mxu0 }
 0x7ae   : > { %v4718_v20 = vadd.f32 %v14314_v5, %v4717_v19  ;;  %v11169_v63 = vpop.f32.mrb[230].mxu0  ;;  %11242 = vmatprep.mubr.bf16.mxu1 %v4880_v57 }
 0x7af   : > { %v4729_v28 = vadd.f32 %v11169_v63, %v14314_v5  ;;  %v4720_v30 = vpop.f32.mrb[231].mxu0  ;;  %11243 = vmatmul.mubr.bf16.gmra.mrb[200].mxu1 %v4881_v1  ;;  %v4842_v62 = vmax.f32 %v4726_v9, 0.0 }
 0x7b0   : > { %v4721_v48 = vadd.f32 %v14314_v5, %v4720_v30  ;;  %v4840_v46 = vmax.f32 %v4718_v20, 0.0 }
 0x7b1   : > { %v4843_v32 = vmax.f32 %v4729_v28, 0.0 }
 0x7b2   : > { %v4841_v0 = vmax.f32 %v4721_v48, 0.0 }
 0x7b3   : > { %v4883_v47 = vpack.c.bf16 %v4843_v32, %v4842_v62 }
 0x7b4   : > { %v4882_v35 = vpack.c.bf16 %v4841_v0, %v4840_v46  ;;  %v11172_v51 = vpop.f32.mrb[232].mxu0 }
 0x7b5   : > { %v4742_v13 = vadd.f32 %v11172_v51, %v14314_v5  ;;  %v4733_v3 = vpop.f32.mrb[233].mxu0 }
 0x7b6   : > { %v4734_v15 = vadd.f32 %v14314_v5, %v4733_v3  ;;  %v11173_v6 = vpop.f32.mrb[234].mxu0  ;;  %11246 = vmatprep.mubr.bf16.mxu1 %v4882_v35 }
 0x7b7   : > { %v4745_v22 = vadd.f32 %v11173_v6, %v14314_v5  ;;  %v4736_v58 = vpop.f32.mrb[235].mxu0  ;;  %11247 = vmatmul.mubr.bf16.gmra.mrb[204].mxu1 %v4883_v47  ;;  %v4846_v34 = vmax.f32 %v4742_v13, 0.0 }
 0x7b8   : > { %v4737_v11 = vadd.f32 %v14314_v5, %v4736_v58  ;;  %v4844_v16 = vmax.f32 %v4734_v15, 0.0 }
 0x7b9   : > { %v4847_v55 = vmax.f32 %v4745_v22, 0.0 }
 0x7ba   : > { %v4845_v54 = vmax.f32 %v4737_v11, 0.0 }
 0x7bb   : > { %v4885_v49 = vpack.c.bf16 %v4847_v55, %v4846_v34 }
 0x7bc   : > { %v4884_v18 = vpack.c.bf16 %v4845_v54, %v4844_v16  ;;  %v11176_v59 = vpop.f32.mrb[236].mxu0 }
 0x7bd   : > { %v4758_v7 = vadd.f32 %v11176_v59, %v14314_v5  ;;  %v4749_v33 = vpop.f32.mrb[237].mxu0 }
 0x7be   : > { %v4750_v21 = vadd.f32 %v14314_v5, %v4749_v33  ;;  %v11177_v36 = vpop.f32.mrb[238].mxu0  ;;  %11250 = vmatprep.mubr.bf16.mxu1 %v4884_v18 }
 0x7bf   : > { %v4761_v24 = vadd.f32 %v11177_v36, %v14314_v5  ;;  %v4752_v26 = vpop.f32.mrb[239].mxu0  ;;  %11251 = vmatmul.mubr.bf16.gmra.mrb[208].mxu1 %v4885_v49  ;;  %v4850_v61 = vmax.f32 %v4758_v7, 0.0  ;;  %v16772_v49 = vld [vmem:[#allocation39_spill] sm:$0xff] }
 0x7c0   : > { %v4753_v41 = vadd.f32 %v14314_v5, %v4752_v26  ;;  %v4848_v12 = vmax.f32 %v4750_v21, 0.0 }
 0x7c1   : > { %v4851_v50 = vmax.f32 %v4761_v24, 0.0 }
 0x7c2   : > { %v4849_v44 = vmax.f32 %v4753_v41, 0.0 }
 0x7c3   : > { %v4887_v39 = vpack.c.bf16 %v4851_v50, %v4850_v61 }
 0x7c4   : > { %v4886_v27 = vpack.c.bf16 %v4849_v44, %v4848_v12  ;;  %v11180_v1 = vpop.f32.mrb[240].mxu0 }
 0x7c5   : > { %v4774_v57 = vadd.f32 %v11180_v1, %v14314_v5  ;;  %v4765_v17 = vpop.f32.mrb[241].mxu0  ;;  %v14398_v1 = vld [vmem:[%s16182_s8 + $0x1] ss:$0 sm:$0xff] }
 0x7c6   : > { %v4766_v9 = vadd.f32 %v14314_v5, %v4765_v17  ;;  %v11181_v19 = vpop.f32.mrb[242].mxu0  ;;  %11254 = vmatprep.mubr.bf16.mxu1 %v4886_v27 }
 0x7c7   : > { %v4777_v20 = vadd.f32 %v11181_v19, %v14314_v5  ;;  %v4768_v63 = vpop.f32.mrb[243].mxu0  ;;  %11255 = vmatmul.mubr.bf16.gmra.mrb[212].mxu1 %v4887_v39  ;;  %v4854_v30 = vmax.f32 %v4774_v57, 0.0 }
 0x7c8   : > { %v4769_v28 = vadd.f32 %v14314_v5, %v4768_v63  ;;  %v4852_v62 = vmax.f32 %v4766_v9, 0.0 }
 0x7c9   : > { %v4855_v48 = vmax.f32 %v4777_v20, 0.0 }
 0x7ca   : > { %v4853_v32 = vmax.f32 %v4769_v28, 0.0 }
 0x7cb   : > { %v4889_v46 = vpack.c.bf16 %v4855_v48, %v4854_v30 }
 0x7cc   : > { %v4888_v0 = vpack.c.bf16 %v4853_v32, %v4852_v62  ;;  %v11184_v47 = vpop.f32.mrb[244].mxu0 }
 0x7cd   : > { %v4790_v35 = vadd.f32 %v11184_v47, %v14314_v5  ;;  %v4781_v51 = vpop.f32.mrb[245].mxu0 }
 0x7ce   : > { %v4782_v13 = vadd.f32 %v14314_v5, %v4781_v51  ;;  %v11185_v3 = vpop.f32.mrb[246].mxu0  ;;  %11258 = vmatprep.mubr.bf16.mxu1 %v4888_v0 }
 0x7cf   : > { %v4793_v15 = vadd.f32 %v11185_v3, %v14314_v5  ;;  %v4784_v6 = vpop.f32.mrb[247].mxu0  ;;  %11259 = vmatmul.mubr.bf16.gmra.mrb[216].mxu1 %v4889_v46  ;;  %v4858_v58 = vmax.f32 %v4790_v35, 0.0 }
 0x7d0   : > { %v4785_v22 = vadd.f32 %v14314_v5, %v4784_v6  ;;  %v4856_v34 = vmax.f32 %v4782_v13, 0.0 }
 0x7d1   : > { %v4859_v11 = vmax.f32 %v4793_v15, 0.0 }
 0x7d2   : > { %v4857_v55 = vmax.f32 %v4785_v22, 0.0 }
 0x7d3   : > { %v4891_v16 = vpack.c.bf16 %v4859_v11, %v4858_v58 }
 0x7d4   : > { %v4890_v54 = vpack.c.bf16 %v4857_v55, %v4856_v34 }
 0x7d6   : > { %11262 = vmatprep.mubr.bf16.mxu1 %v4890_v54  ;;  %v16777_v54 = vld [vmem:[#allocation17_spill] sm:$0xff] }
 0x7d7   : > { %11263 = vmatmul.mubr.bf16.gmra.mrb[220].mxu1 %v4891_v16 }
 0x7d8   : > { %5614 = vmatprep.mubr.bf16.mxu1 %v16772_v49 }
 0x832   : > { %v11204_v18 = vpop.f32.mrb[160].mxu1 }
 0x833   : > { %v4999_v59 = vpop.f32.mrb[161].mxu1  ;;  %v5008_v47 = vadd.f32 %v11204_v18, %v14398_v1  ;;  %v16778_v18 = vld [vmem:[#allocation15_spill] sm:$0xff] }
 0x834   : > { %v11205_v7 = vpop.f32.mrb[162].mxu1  ;;  %v5000_v9 = vadd.f32 %v14398_v1, %v4999_v59 }
 0x835   : > { %v5002_v33 = vpop.f32.mrb[163].mxu1  ;;  %v5011_v19 = vadd.f32 %v11205_v7, %v14398_v1  ;;  %v5256_v16 = vmax.f32 %v5008_v47, 0.0 }
 0x836   : > { %v5003_v57 = vadd.f32 %v14398_v1, %v5002_v33  ;;  %v5254_v35 = vmax.f32 %v5000_v9, 0.0  ;;  %v16779_v33 = vld [vmem:[#allocation14_spill] sm:$0xff] }
 0x837   : > { %v5257_v51 = vmax.f32 %v5011_v19, 0.0 }
 0x838   : > { %v5255_v48 = vmax.f32 %v5003_v57, 0.0  ;;  %v14422_v49 = vadd.f32 %v5254_v35, %v16777_v54  ;;  %v16782_v35 = vld [vmem:[#allocation29_spill] sm:$0xff] }
 0x839   : > { %v14425_v59 = vadd.f32 %v5257_v51, %v16778_v18  ;;  %v16787_v18 = vld [vmem:[#allocation57_spill] sm:$0xff] }
 0x83a   : > { %v11208_v21 = vpop.f32.mrb[164].mxu1  ;;  %v14409_v6 = vadd.f32 %v5255_v48, %v16732_v40 }
 0x83b   : > { %v5015_v36 = vpop.f32.mrb[165].mxu1 }
 0x83c   : > { %v11209_v24 = vpop.f32.mrb[166].mxu1  ;;  %16773 = vst [vmem:[#allocation54_spill] sm:$0xff] %v14409_v6  ;;  %v5016_v40 = vadd.f32 %v14398_v1, %v5015_v36  ;;  %v14441_v36 = vpack.c.bf16 %v14409_v6, %v14422_v49 }
 0x83d   : > { %v5018_v26 = vpop.f32.mrb[167].mxu1 }
 0x83e   : > { %v5019_v22 = vadd.f32 %v14398_v1, %v5018_v26 }
 0x840   : > { %v5259_v9 = vmax.f32 %v5019_v22, 0.0 }
 0x842   : > { %v14381_v41 = vpop.f32.mrb[168].mxu1  ;;  %v14456_v51 = vadd.f32 %v5259_v9, %v16782_v35  ;;  %v16794_v35 = vld [vmem:[#allocation19_spill] sm:$0xff] }
 0x843   : > { %v14383_v5 = vpop.f32.mrb[169].mxu1 }
 0x844   : > { %v14385_v61 = vpop.f32.mrb[170].mxu1  ;;  %16783 = vst [vmem:[#allocation12_spill] sm:$0xff] %v14456_v51 }
 0x845   : > { %v5034_v50 = vpop.f32.mrb[171].mxu1 }
 0x84a   : > { %v14387_v12 = vpop.f32.mrb[172].mxu1 }
 0x84b   : > { %v14389_v44 = vpop.f32.mrb[173].mxu1 }
 0x84c   : > { %v14391_v39 = vpop.f32.mrb[174].mxu1 }
 0x84d   : > { %v14393_v27 = vpop.f32.mrb[175].mxu1 }
 0x852   : > { %v11220_v17 = vpop.f32.mrb[176].mxu1 }
 0x853   : > { %v5063_v20 = vpop.f32.mrb[177].mxu1  ;;  %v5072_v63 = vadd.f32 %v11220_v17, %v14398_v1  ;;  %v5027_v17 = vadd.f32 %v11209_v24, %v14398_v1  ;;  %v16781_v24 = vld [vmem:[#allocation16_spill] sm:$0xff] }
 0x854   : > { %v5064_v28 = vadd.f32 %v14398_v1, %v5063_v20  ;;  %v11221_v30 = vpop.f32.mrb[178].mxu1 }
 0x855   : > { %v5075_v62 = vadd.f32 %v11221_v30, %v14398_v1  ;;  %v5066_v32 = vpop.f32.mrb[179].mxu1  ;;  %v5272_v3 = vmax.f32 %v5072_v63, 0.0  ;;  %v5024_v63 = vadd.f32 %v11208_v21, %v14398_v1  ;;  %v5261_v21 = vmax.f32 %v5027_v17, 0.0 }
 0x856   : > { %v5270_v46 = vmax.f32 %v5064_v28, 0.0  ;;  %v5067_v0 = vadd.f32 %v14398_v1, %v5066_v32  ;;  %v5258_v32 = vmax.f32 %v5016_v40, 0.0 }
 0x857   : > { %v5273_v13 = vmax.f32 %v5075_v62, 0.0  ;;  %v14451_v62 = vadd.f32 %v5256_v16, %v16781_v24  ;;  %v5040_v24 = vadd.f32 %v14381_v41, %v14398_v1  ;;  %v16796_v41 = vld [vmem:[#allocation20_spill] sm:$0xff] }
 0x858   : > { %v5271_v15 = vmax.f32 %v5067_v0, 0.0  ;;  %v14413_v58 = vadd.f32 %v5270_v46, %v16739_v38  ;;  %v14429_v38 = vadd.f32 %v5272_v3, %v16779_v33  ;;  %v14473_v40 = vadd.f32 %v5258_v32, %v16787_v18 }
 0x859   : > { %v14416_v11 = vadd.f32 %v5273_v13, %v16738_v10  ;;  %v5035_v13 = vadd.f32 %v14398_v1, %v5034_v50  ;;  %v14461_v3 = vpack.c.bf16 %v14425_v59, %v14451_v62  ;;  %v5032_v50 = vadd.f32 %v14398_v1, %v14383_v5 }
 0x85a   : > { %16774 = vst [vmem:[#allocation18_spill] sm:$0xff] %v14413_v58  ;;  %v14419_v34 = vadd.f32 %v5271_v15, %v16741_v2  ;;  %v11224_v55 = vpop.f32.mrb[180].mxu1  ;;  %16780 = vst [vmem:[#allocation11_spill] sm:$0xff] %v14429_v38  ;;  %v5260_v15 = vmax.f32 %v5024_v63, 0.0 }
 0x85b   : > { %16775 = vst [vmem:[#allocation13_spill] sm:$0xff] %v14416_v11  ;;  %v5079_v7 = vpop.f32.mrb[181].mxu1  ;;  %v5088_v10 = vadd.f32 %v11224_v55, %v14398_v1  ;;  %v14448_v48 = vpack.c.bf16 %v14416_v11, %v14429_v38  ;;  %16788 = vst [vmem:[#allocation53_spill] sm:$0xff] %v14473_v40  ;;  %v5263_v17 = vmax.f32 %v5035_v13, 0.0  ;;  %v5262_v32 = vmax.f32 %v5032_v50, 0.0  ;;  %v16798_v50 = vld [vmem:[#allocation21_spill] sm:$0xff] }
 0x85c   : > { %16776 = vst [vmem:[#allocation10_spill] sm:$0xff] %v14419_v34  ;;  %v5080_v26 = vadd.f32 %v14398_v1, %v5079_v7  ;;  %v11225_v2 = vpop.f32.mrb[182].mxu1  ;;  %v14435_v57 = vpack.c.bf16 %v14419_v34, %v14413_v58  ;;  %v5043_v7 = vadd.f32 %v14385_v61, %v14398_v1  ;;  %v16827_v11 = vld [vmem:[#allocation38_spill] sm:$0xff]  ;;  %v12032_v38 = vld [vmem:[%s16184_s10 + $0x88] sm:$0xff]  }
 0x85d   : > { %v5091_v19 = vadd.f32 %v11225_v2, %v14398_v1  ;;  %v5082_v20 = vpop.f32.mrb[183].mxu1  ;;  %v5276_v0 = vmax.f32 %v5088_v10, 0.0  ;;  %v16790_v2 = vld [vmem:[#allocation56_spill] sm:$0xff]  ;;  %v14511_v13 = vadd.f32 %v5263_v17, %v16794_v35 }
 0x85e   : > { %v5274_v28 = vmax.f32 %v5080_v26, 0.0  ;;  %v5083_v30 = vadd.f32 %v14398_v1, %v5082_v20  ;;  %10243 = vmatprep.subr.bf16.mxu0 %v14435_v57  ;;  %v14490_v5 = vadd.f32 %v5261_v21, %v16790_v2  ;;  %v16802_v2 = vld [vmem:[#allocation23_spill] sm:$0xff] }
 0x85f   : > { %v5277_v46 = vmax.f32 %v5091_v19, 0.0  ;;  %10244 = vmatpush3.bf16.msra.mxu0 %v14441_v36  ;;  %v16792_v19 = vld [vmem:[#allocation59_spill] sm:$0xff]  ;;  %16795 = vst [vmem:[#allocation46_spill] sm:$0xff] %v14511_v13  ;;  %v14529_v17 = vadd.f32 %v5262_v32, %v16802_v2  ;;  %v16808_v2 = vld [vmem:[#allocation26_spill] sm:$0xff] }
 0x860   : > { %v5275_v47 = vmax.f32 %v5083_v30, 0.0  ;;  %10245 = vmatprep.subr.bf16.mxu0 %v14448_v48  ;;  %v14464_v22 = vadd.f32 %v5274_v28, %v16745_v56  ;;  %v14481_v56 = vadd.f32 %v5276_v0, %v16742_v43  ;;  %16791 = vst [vmem:[#allocation37_spill] sm:$0xff] %v14490_v5  ;;  %v14495_v43 = vpack.c.bf16 %v14456_v51, %v14473_v40 }
 0x861   : > { %v14467_v55 = vadd.f32 %v5277_v46, %v16744_v31  ;;  %v14498_v20 = vadd.f32 %v5260_v15, %v16792_v19  ;;  %v5265_v46 = vmax.f32 %v5043_v7, 0.0  ;;  %v5051_v15 = vadd.f32 %v14398_v1, %v14393_v27  ;;  %16803 = vst [vmem:[#allocation49_spill] sm:$0xff] %v14529_v17 }
 0x862   : > { %16784 = vst [vmem:[#allocation55_spill] sm:$0xff] %v14464_v22  ;;  %v14470_v16 = vadd.f32 %v5275_v47, %v16747_v53  ;;  %v11228_v54 = vpop.f32.mrb[184].mxu1  ;;  %16789 = vst [vmem:[#allocation35_spill] sm:$0xff] %v14481_v56 }
 0x863   : > { %16785 = vst [vmem:[#allocation30_spill] sm:$0xff] %v14467_v55  ;;  %v5095_v33 = vpop.f32.mrb[185].mxu1  ;;  %10246 = vmatpush3.bf16.msra.mxu0 %v14461_v3  ;;  %v5104_v31 = vadd.f32 %v11228_v54, %v14398_v1  ;;  %16793 = vst [vmem:[#allocation36_spill] sm:$0xff] %v14498_v20  ;;  %v14504_v30 = vpack.c.bf16 %v14467_v55, %v14481_v56  ;;  %v14517_v54 = vpack.c.bf16 %v14490_v5, %v14498_v20 }
 0x864   : > { %16786 = vst [vmem:[#allocation28_spill] sm:$0xff] %v14470_v16  ;;  %v5096_v53 = vadd.f32 %v14398_v1, %v5095_v33  ;;  %v11229_v10 = vpop.f32.mrb[186].mxu1  ;;  %v14487_v26 = vpack.c.bf16 %v14470_v16, %v14464_v22  ;;  %v16800_v33 = vld [vmem:[#allocation22_spill] sm:$0xff]  ;;  %v5267_v35 = vmax.f32 %v5051_v15, 0.0 }
 0x865   : > { %v5107_v61 = vadd.f32 %v11229_v10, %v14398_v1  ;;  %v5098_v9 = vpop.f32.mrb[187].mxu1  ;;  %v5280_v47 = vmax.f32 %v5104_v31, 0.0  ;;  %v5264_v10 = vmax.f32 %v5040_v24, 0.0 }
 0x866   : > { %v5278_v63 = vmax.f32 %v5096_v53, 0.0  ;;  %v5099_v28 = vadd.f32 %v14398_v1, %v5098_v9  ;;  %10247 = vmatprep.subr.bf16.mxu0 %v14487_v26  ;;  %v5048_v9 = vadd.f32 %v14398_v1, %v14389_v44 }
 0x867   : > { %v5281_v0 = vmax.f32 %v5107_v61, 0.0  ;;  %10248 = vmatpush3.bf16.msra.mxu0 %v14495_v43  ;;  %v16804_v61 = vld [vmem:[#allocation25_spill] sm:$0xff] }
 0x868   : > { %v5279_v21 = vmax.f32 %v5099_v28, 0.0  ;;  %10249 = vmatprep.subr.bf16.mxu0 %v14504_v30  ;;  %v14520_v18 = vadd.f32 %v5278_v63, %v16796_v41  ;;  %v14532_v27 = vadd.f32 %v5265_v46, %v16804_v61  ;;  %v16806_v63 = vld [vmem:[#allocation24_spill] sm:$0xff]  ;;  %v5059_v46 = vadd.f32 %v14391_v39, %v14398_v1 }
 0x869   : > { %v14523_v7 = vadd.f32 %v5281_v0, %v16798_v50  ;;  %v14538_v28 = vadd.f32 %v5280_v47, %v16806_v63  ;;  %v14551_v47 = vpack.c.bf16 %v14511_v13, %v14529_v17  ;;  %v14560_v61 = vadd.f32 %v5264_v10, %v16808_v2  ;;  %v16812_v10 = vld [vmem:[#allocation65_spill] sm:$0xff] }
 0x86a   : > { %16797 = vst [vmem:[#allocation45_spill] sm:$0xff] %v14520_v18  ;;  %v14526_v31 = vadd.f32 %v5279_v21, %v16800_v33  ;;  %v11232_v53 = vpop.f32.mrb[188].mxu1  ;;  %16805 = vst [vmem:[#allocation43_spill] sm:$0xff] %v14532_v27  ;;  %v5056_v39 = vadd.f32 %v14387_v12, %v14398_v1  ;;  %v5266_v15 = vmax.f32 %v5048_v9, 0.0  ;;  %v16814_v12 = vld [vmem:[#allocation66_spill] sm:$0xff]  ;;  %v12037_v13 = vld [vmem:[%s16184_s10 + $0xb0] sm:$0xff]  }
 0x86b   : > { %16799 = vst [vmem:[#allocation47_spill] sm:$0xff] %v14523_v7  ;;  %v5111_v19 = vpop.f32.mrb[189].mxu1  ;;  %10250 = vmatpush3.bf16.msra.mxu0 %v14517_v54  ;;  %16807 = vst [vmem:[#allocation50_spill] sm:$0xff] %v14538_v28  ;;  %v5120_v0 = vadd.f32 %v11232_v53, %v14398_v1  ;;  %v14557_v53 = vpack.c.bf16 %v14523_v7, %v14538_v28  ;;  %v14571_v22 = vpack.c.bf16 %v14532_v27, %v14560_v61  ;;  %v12036_v28 = vld [vmem:[%s16184_s10 + $0xa8] sm:$0xff]  }
 0x86c   : > { %16801 = vst [vmem:[#allocation41_spill] sm:$0xff] %v14526_v31  ;;  %v5112_v21 = vadd.f32 %v14398_v1, %v5111_v19  ;;  %v11233_v24 = vpop.f32.mrb[190].mxu1  ;;  %v14544_v32 = vpack.c.bf16 %v14526_v31, %v14520_v18  ;;  %16809 = vst [vmem:[#allocation9_spill] sm:$0xff] %v14560_v61  ;;  %v12035_v18 = vld [vmem:[%s16184_s10 + $0xa0] sm:$0xff]  }
 0x86d   : > { %v5123_v44 = vadd.f32 %v11233_v24, %v14398_v1  ;;  %v5114_v41 = vpop.f32.mrb[191].mxu1  ;;  %v5284_v63 = vmax.f32 %v5120_v0, 0.0  ;;  %v5269_v24 = vmax.f32 %v5059_v46, 0.0  ;;  %v16818_v46 = vld [vmem:[#allocation31_spill] sm:$0xff] }
 0x86e   : > { %v5282_v50 = vmax.f32 %v5112_v21, 0.0  ;;  %v5115_v33 = vadd.f32 %v14398_v1, %v5114_v41  ;;  %10251 = vmatprep.subr.bf16.mxu0 %v14544_v32  ;;  %v16810_v41 = vld [vmem:[#allocation27_spill] sm:$0xff]  ;;  %v14585_v56 = vadd.f32 %v5266_v15, %v16818_v46 }
 0x86f   : > { %v5285_v19 = vmax.f32 %v5123_v44, 0.0  ;;  %10252 = vmatpush3.bf16.msra.mxu0 %v14551_v47  ;;  %v14567_v16 = vadd.f32 %v5267_v35, %v16810_v41  ;;  %v16816_v44 = vld [vmem:[#allocation67_spill] sm:$0xff]  ;;  %v16820_v41 = vld [vmem:[#allocation32_spill] sm:$0xff] }
 0x870   : > { %v5283_v21 = vmax.f32 %v5115_v33, 0.0  ;;  %10253 = vmatprep.subr.bf16.mxu0 %v14557_v53  ;;  %v14574_v2 = vadd.f32 %v5282_v50, %v16812_v10  ;;  %v5268_v33 = vmax.f32 %v5056_v39, 0.0  ;;  %16819 = vst [vmem:[#allocation16_spill] sm:$0xff] %v14585_v56  ;;  %v14589_v34 = vadd.f32 %v5284_v63, %v16820_v41  ;;  %v16822_v10 = vld [vmem:[#allocation33_spill] sm:$0xff]  ;;  %v16824_v63 = vld [vmem:[#allocation34_spill] sm:$0xff] }
 0x871   : > { %16811 = vst [vmem:[#allocation39_spill] sm:$0xff] %v14567_v16  ;;  %v14577_v9 = vadd.f32 %v5285_v19, %v16814_v12  ;;  %v14600_v39 = vpack.c.bf16 %v14567_v16, %v14585_v56 }
 0x872   : > { %16813 = vst [vmem:[#allocation17_spill] sm:$0xff] %v14574_v2  ;;  %v14580_v55 = vadd.f32 %v5283_v21, %v16816_v44  ;;  %v14582_v0 = vpop.f32.mrb[192].mxu1  ;;  %16821 = vst [vmem:[#allocation29_spill] sm:$0xff] %v14589_v34  ;;  %v14596_v21 = vadd.f32 %v5269_v24, %v16822_v10  ;;  %v14608_v44 = vadd.f32 %v5268_v33, %v16824_v63  ;;  %v12031_v10 = vld [vmem:[%s16184_s10 + $0x80] sm:$0xff]   ;;  %v16826_v63 = vmov 0.0  }
 0x873   : > { %16815 = vst [vmem:[#allocation15_spill] sm:$0xff] %v14577_v9  ;;  %v5127_v35 = vpop.f32.mrb[193].mxu1  ;;  %10254 = vmatpush3.bf16.msra.mxu0 %v14571_v22  ;;  %v14605_v15 = vpack.c.bf16 %v14577_v9, %v14589_v34  ;;  %v12033_v9 = vld [vmem:[%s16184_s10 + $0x90] sm:$0xff]   ;;  %v12034_v34 = vld [vmem:[%s16184_s10 + $0x98] sm:$0xff]  }
 0x874   : > { %16817 = vst [vmem:[#allocation14_spill] sm:$0xff] %v14580_v55  ;;  %v11237_v50 = vpop.f32.mrb[194].mxu1  ;;  %v14593_v19 = vpack.c.bf16 %v14580_v55, %v14574_v2  ;;  %16823 = vst [vmem:[#allocation57_spill] sm:$0xff] %v14596_v21  ;;  %v14614_v24 = vpack.c.bf16 %v14596_v21, %v14608_v44  ;;  %v5128_v56 = vadd.f32 %v14398_v1, %v5127_v35 }
 0x875   : > { %v5130_v12 = vpop.f32.mrb[195].mxu1  ;;  %16825 = vst [vmem:[#allocation56_spill] sm:$0xff] %v14608_v44  ;;  %v5139_v21 = vadd.f32 %v11237_v50, %v14398_v1 }
 0x876   : > { %10255 = vmatprep.subr.bf16.mxu0 %v14593_v19  ;;  %v5131_v16 = vadd.f32 %v14398_v1, %v5130_v12  ;;  %v5286_v40 = vmax.f32 %v5128_v56, 0.0 }
 0x877   : > { %10256 = vmatpush3.bf16.msra.mxu0 %v14600_v39  ;;  %v5289_v5 = vmax.f32 %v5139_v21, 0.0 }
 0x878   : > { %10257 = vmatprep.subr.bf16.mxu0 %v14605_v15  ;;  %v5287_v61 = vmax.f32 %v5131_v16, 0.0  ;;  %v14697_v21 = vadd.f32 %v5286_v40, %v16749_v37 }
 0x87a   : > { %v14616_v46 = vpop.f32.mrb[196].mxu1  ;;  %v14684_v16 = vadd.f32 %v5287_v61, %v16750_v45 }
 0x87b   : > { %v14618_v41 = vpop.f32.mrb[197].mxu1  ;;  %10258 = vmatpush3.bf16.msra.mxu0 %v14614_v24  ;;  %v5152_v61 = vadd.f32 %v14616_v46, %v14398_v1 }
 0x87c   : > { %v14624_v33 = vpop.f32.mrb[198].mxu1  ;;  %11266 = vmatprep.subr.bf16.mxu0 %v16826_v63  ;;  %v5144_v45 = vadd.f32 %v14398_v1, %v14618_v41 }
 0x87d   : > { %v5146_v58 = vpop.f32.mrb[199].mxu1 }
 0x87e   : > { %5575 = vmatmul.mubr.bf16.vlgmr.msra.gmra.mrb[248].mxu0 %v16827_v11 }
 0x87f   : > { %11267 = vmatpush3.bf16.msra.mxu0 %v12031_v10  ;;  %11282 = vmatprep.mubr.msk.bf16.mxu0 %vm12251_vm3, %v16826_v63 }
 0x880   : > { %11268 = vmatprep.subr.bf16.mxu0 %v16826_v63 }
 0x882   : > { %v14634_v55 = vpop.f32.mrb[200].mxu1 }
 0x883   : > { %v14636_v2 = vpop.f32.mrb[201].mxu1  ;;  %11269 = vmatpush3.bf16.msra.mxu0 %v12032_v38 }
 0x884   : > { %v14641_v11 = vpop.f32.mrb[202].mxu1  ;;  %11270 = vmatprep.subr.bf16.mxu0 %v16826_v63 }
 0x885   : > { %v14644_v10 = vpop.f32.mrb[203].mxu1 }
 0x887   : > { %11271 = vmatpush3.bf16.msra.mxu0 %v12033_v9 }
 0x888   : > { %11272 = vmatprep.subr.bf16.mxu0 %v16826_v63 }
 0x88a   : > { %v14650_v31 = vpop.f32.mrb[204].mxu1 }
 0x88b   : > { %v14652_v38 = vpop.f32.mrb[205].mxu1  ;;  %11273 = vmatpush3.bf16.msra.mxu0 %v12034_v34 }
 0x88c   : > { %v14657_v7 = vpop.f32.mrb[206].mxu1  ;;  %11274 = vmatprep.subr.bf16.mxu0 %v16826_v63 }
 0x88d   : > { %v14660_v9 = vpop.f32.mrb[207].mxu1 }
 0x88f   : > { %11275 = vmatpush3.bf16.msra.mxu0 %v12035_v18 }
 0x890   : > { %11276 = vmatprep.subr.bf16.mxu0 %v16826_v63 }
 0x892   : > { %v11252_v34 = vpop.f32.mrb[208].mxu1 }
 0x893   : > { %v5191_v44 = vpop.f32.mrb[209].mxu1  ;;  %11277 = vmatpush3.bf16.msra.mxu0 %v12036_v28  ;;  %v5200_v18 = vadd.f32 %v11252_v34, %v14398_v1  ;;  %v5136_v28 = vadd.f32 %v14582_v0, %v14398_v1 }
 0x894   : > { %v5192_v17 = vadd.f32 %v14398_v1, %v5191_v44  ;;  %v11253_v27 = vpop.f32.mrb[210].mxu1  ;;  %11278 = vmatprep.subr.bf16.mxu0 %v16826_v63  ;;  %v12038_v44 = vld [vmem:[%s16184_s10 + $0xb8] sm:$0xff]  }
 0x895   : > { %v5203_v12 = vadd.f32 %v11253_v27, %v14398_v1  ;;  %v5194_v51 = vpop.f32.mrb[211].mxu1  ;;  %v5304_v34 = vmax.f32 %v5200_v18, 0.0  ;;  %v5288_v0 = vmax.f32 %v5136_v28, 0.0 }
 0x896   : > { %v5302_v35 = vmax.f32 %v5192_v17, 0.0  ;;  %v5195_v50 = vadd.f32 %v14398_v1, %v5194_v51  ;;  %v5147_v51 = vadd.f32 %v14398_v1, %v5146_v58 }
 0x897   : > { %v5305_v20 = vmax.f32 %v5203_v12, 0.0  ;;  %11279 = vmatpush3.bf16.msra.mxu0 %v12037_v13 }
 0x898   : > { %v5303_v6 = vmax.f32 %v5195_v50, 0.0  ;;  %11280 = vmatprep.subr.bf16.mxu0 %v16826_v63  ;;  %v14688_v17 = vadd.f32 %v5302_v35, %v16753_v25  ;;  %v14700_v63 = vadd.f32 %v5289_v5, %v13624_v14  ;;  %v14705_v25 = vadd.f32 %v5304_v34, %v16751_v42 }
 0x899   : > { %v14691_v56 = vadd.f32 %v5305_v20, %v16752_v8  ;;  %v5155_v14 = vadd.f32 %v14624_v33, %v14398_v1  ;;  %v5291_v40 = vmax.f32 %v5147_v51, 0.0  ;;  %v14719_v42 = vpack.c.bf16 %v14684_v16, %v14697_v21  ;;  %v16832_v33 = vld [vmem:[#allocation48_spill] sm:$0xff] }
 0x89a   : > { %16828 = vst [vmem:[#allocation59_spill] sm:$0xff] %v14688_v17  ;;  %v14694_v13 = vadd.f32 %v5303_v6, %v16755_v4  ;;  %v11256_v27 = vpop.f32.mrb[212].mxu1  ;;  %16831 = vst [vmem:[#allocation21_spill] sm:$0xff] %v14705_v25  ;;  %v14730_v35 = vadd.f32 %v5288_v0, %v16832_v33  ;;  %v5290_v50 = vmax.f32 %v5144_v45, 0.0  ;;  %v16833_v51 = vld [vmem:[#allocation40_spill] sm:$0xff]  ;;  %v5292_v0 = vmax.f32 %v5152_v61, 0.0 }
 0x89b   : > { %16829 = vst [vmem:[#allocation19_spill] sm:$0xff] %v14691_v56  ;;  %v5207_v58 = vpop.f32.mrb[213].mxu1  ;;  %11281 = vmatpush3.bf16.msra.mxu0 %v12038_v44  ;;  %v5216_v8 = vadd.f32 %v11256_v27, %v14398_v1  ;;  %v14727_v12 = vpack.c.bf16 %v14691_v56, %v14705_v25  ;;  %v5293_v46 = vmax.f32 %v5155_v14, 0.0  ;;  %v14735_v27 = vadd.f32 %v5291_v40, %v16833_v51  ;;  %v16838_v40 = vld [vmem:[#allocation51_spill] sm:$0xff]  ;;  %v16841_v33 = vld [vmem:[#allocation52_spill] sm:$0xff]  ;;  %v16860_v25 = vld [vmem:[#allocation74_spill] sm:$0xff] }
 0x89c   : > { %16830 = vst [vmem:[#allocation20_spill] sm:$0xff] %v14694_v13  ;;  %v5208_v4 = vadd.f32 %v14398_v1, %v5207_v58  ;;  %v11257_v6 = vpop.f32.mrb[214].mxu1  ;;  %11318 = vmatprep.subr.bf16.mxu0 %v14435_v57  ;;  %v14712_v37 = vpack.c.bf16 %v14694_v13, %v14688_v17  ;;  %v5163_v58 = vadd.f32 %v14398_v1, %v14644_v10 }
 0x89d   : > { %v5219_v5 = vadd.f32 %v11257_v6, %v14398_v1  ;;  %v5210_v20 = vpop.f32.mrb[215].mxu1  ;;  %v5308_v44 = vmax.f32 %v5216_v8, 0.0  ;;  %16834 = vst [vmem:[#allocation22_spill] sm:$0xff] %v14735_v27  ;;  %v5160_v10 = vadd.f32 %v14398_v1, %v14636_v2  ;;  %v14770_v2 = vadd.f32 %v5293_v46, %v16841_v33 }
 0x89e   : > { %v5306_v41 = vmax.f32 %v5208_v4, 0.0  ;;  %v5211_v18 = vadd.f32 %v14398_v1, %v5210_v20  ;;  %10265 = vmatprep.subr.bf16.mxu1 %v14712_v37  ;;  %v14741_v4 = vpack.c.bf16 %v14700_v63, %v14730_v35  ;;  %v5171_v20 = vadd.f32 %v14641_v11, %v14398_v1 }
 0x89f   : > { %v5309_v28 = vmax.f32 %v5219_v5, 0.0  ;;  %10266 = vmatpush3.bf16.msra.mxu1 %v14719_v42  ;;  %v14753_v5 = vadd.f32 %v5290_v50, %v16838_v40  ;;  %16842 = vst [vmem:[#allocation65_spill] sm:$0xff] %v14770_v2  ;;  %v5295_v50 = vmax.f32 %v5163_v58, 0.0  ;;  %v5168_v58 = vadd.f32 %v14634_v55, %v14398_v1  ;;  %v16846_v55 = vld [vmem:[#allocation68_spill] sm:$0xff] }
 0x8a0   : > { %v5307_v34 = vmax.f32 %v5211_v18, 0.0  ;;  %10267 = vmatprep.subr.bf16.mxu1 %v14727_v12  ;;  %v14744_v45 = vadd.f32 %v5306_v41, %v16759_v52  ;;  %v14761_v52 = vadd.f32 %v5308_v44, %v16756_v23  ;;  %v16843_v44 = vld [vmem:[#allocation42_spill] sm:$0xff]  ;;  %v5294_v40 = vmax.f32 %v5160_v10, 0.0 }
 0x8a1   : > { %v14747_v8 = vadd.f32 %v5309_v28, %v16758_v29  ;;  %16839 = vst [vmem:[#allocation26_spill] sm:$0xff] %v14753_v5  ;;  %v14775_v23 = vpack.c.bf16 %v14735_v27, %v14753_v5  ;;  %v5176_v13 = vadd.f32 %v14398_v1, %v14652_v38 }
 0x8a2   : > { %16835 = vst [vmem:[#allocation23_spill] sm:$0xff] %v14744_v45  ;;  %v14750_v6 = vadd.f32 %v5307_v34, %v16761_v60  ;;  %v11260_v14 = vpop.f32.mrb[216].mxu1  ;;  %16840 = vst [vmem:[#allocation27_spill] sm:$0xff] %v14761_v52  ;;  %v14778_v34 = vadd.f32 %v5292_v0, %v16843_v44  ;;  %v5179_v44 = vadd.f32 %v14398_v1, %v14660_v9 }
 0x8a3   : > { %16836 = vst [vmem:[#allocation25_spill] sm:$0xff] %v14747_v8  ;;  %v5223_v61 = vpop.f32.mrb[217].mxu1  ;;  %10268 = vmatpush3.bf16.msra.mxu1 %v14741_v4  ;;  %v5232_v29 = vadd.f32 %v11260_v14, %v14398_v1  ;;  %v14784_v46 = vpack.c.bf16 %v14747_v8, %v14761_v52  ;;  %v5296_v8 = vmax.f32 %v5168_v58, 0.0  ;;  %v16854_v52 = vld [vmem:[#allocation72_spill] sm:$0xff] }
 0x8a4   : > { %16837 = vst [vmem:[#allocation24_spill] sm:$0xff] %v14750_v6  ;;  %v5224_v60 = vadd.f32 %v14398_v1, %v5223_v61  ;;  %v11261_v41 = vpop.f32.mrb[218].mxu1  ;;  %v14767_v18 = vpack.c.bf16 %v14750_v6, %v14744_v45  ;;  %v5297_v61 = vmax.f32 %v5171_v20, 0.0  ;;  %v14797_v6 = vpack.c.bf16 %v14770_v2, %v14778_v34  ;;  %v16848_v20 = vld [vmem:[#allocation69_spill] sm:$0xff] }
 0x8a5   : > { %v5235_v11 = vadd.f32 %v11261_v41, %v14398_v1  ;;  %v5226_v28 = vpop.f32.mrb[219].mxu1  ;;  %v5312_v33 = vmax.f32 %v5232_v29, 0.0  ;;  %v16850_v29 = vld [vmem:[#allocation70_spill] sm:$0xff] }
 0x8a6   : > { %v5310_v51 = vmax.f32 %v5224_v60, 0.0  ;;  %v5227_v14 = vadd.f32 %v14398_v1, %v5226_v28  ;;  %10269 = vmatprep.subr.bf16.mxu1 %v14767_v18  ;;  %v16844_v60 = vld [vmem:[#allocation44_spill] sm:$0xff]  ;;  %v14812_v9 = vadd.f32 %v5297_v61, %v16854_v52  ;;  %v5187_v52 = vadd.f32 %v14657_v7, %v14398_v1 }
 0x8a7   : > { %v5313_v41 = vmax.f32 %v5235_v11, 0.0  ;;  %10270 = vmatpush3.bf16.msra.mxu1 %v14775_v23  ;;  %v14791_v28 = vadd.f32 %v5295_v50, %v16844_v60  ;;  %v16852_v50 = vld [vmem:[#allocation71_spill] sm:$0xff]  ;;  %v5299_v61 = vmax.f32 %v5179_v44, 0.0  ;;  %v5184_v7 = vadd.f32 %v14650_v31, %v14398_v1 }
 0x8a8   : > { %v5311_v0 = vmax.f32 %v5227_v14, 0.0  ;;  %10271 = vmatprep.subr.bf16.mxu1 %v14784_v46  ;;  %v14800_v10 = vadd.f32 %v5310_v51, %v16846_v55  ;;  %v14809_v60 = vadd.f32 %v5294_v40, %v16852_v50  ;;  %16855 = vst [vmem:[#allocation34_spill] sm:$0xff] %v14812_v9  ;;  %v16856_v51 = vld [vmem:[#allocation73_spill] sm:$0xff]  ;;  %v16858_v50 = vld [vmem:[#allocation58_spill] sm:$0xff]  ;;  %v5298_v44 = vmax.f32 %v5176_v13, 0.0 }
 0x8a9   : > { %16845 = vst [vmem:[#allocation66_spill] sm:$0xff] %v14791_v28  ;;  %v14803_v11 = vadd.f32 %v5313_v41, %v16848_v20  ;;  %v14818_v41 = vadd.f32 %v5312_v33, %v16856_v51  ;;  %v14840_v51 = vadd.f32 %v5296_v8, %v16858_v50  ;;  %v14847_v27 = vadd.f32 %v5299_v61, %v16860_v25  ;;  %v16862_v8 = vld [vmem:[#allocation75_spill] sm:$0xff]  ;;  %v16866_v13 = vld [vmem:[#allocation77_spill] sm:$0xff]  ;;  %v16870_v25 = vld [vmem:[#allocation60_spill] sm:$0xff] }
 0x8aa   : > { %16847 = vst [vmem:[#allocation67_spill] sm:$0xff] %v14800_v10  ;;  %v14806_v14 = vadd.f32 %v5311_v0, %v16850_v29  ;;  %v11264_v45 = vpop.f32.mrb[220].mxu1  ;;  %16853 = vst [vmem:[#allocation33_spill] sm:$0xff] %v14809_v60  ;;  %v14831_v33 = vpack.c.bf16 %v14791_v28, %v14809_v60 }
 0x8ab   : > { %16849 = vst [vmem:[#allocation31_spill] sm:$0xff] %v14803_v11  ;;  %v5239_v17 = vpop.f32.mrb[221].mxu1  ;;  %10272 = vmatpush3.bf16.msra.mxu1 %v14797_v6  ;;  %16857 = vst [vmem:[#allocation38_spill] sm:$0xff] %v14818_v41  ;;  %v5248_v0 = vadd.f32 %v11264_v45, %v14398_v1  ;;  %v14851_v5 = vpack.c.bf16 %v14812_v9, %v14840_v51 }
 0x8ac   : > { %16851 = vst [vmem:[#allocation32_spill] sm:$0xff] %v14806_v14  ;;  %v5240_v55 = vadd.f32 %v14398_v1, %v5239_v17  ;;  %v11265_v58 = vpop.f32.mrb[222].mxu1  ;;  %v14824_v40 = vpack.c.bf16 %v14806_v14, %v14800_v10  ;;  %v14837_v17 = vpack.c.bf16 %v14803_v11, %v14818_v41  ;;  %16859 = vst [vmem:[#allocation48_spill] sm:$0xff] %v14840_v51 }
 0x8ad   : > { %v5251_v38 = vadd.f32 %v11265_v58, %v14398_v1  ;;  %v5242_v20 = vpop.f32.mrb[223].mxu1  ;;  %v5316_v56 = vmax.f32 %v5248_v0, 0.0  ;;  %16861 = vst [vmem:[#allocation40_spill] sm:$0xff] %v14847_v27  ;;  %v5300_v0 = vmax.f32 %v5184_v7, 0.0 }
 0x8ae   : > { %v5314_v29 = vmax.f32 %v5240_v55, 0.0  ;;  %v5243_v45 = vadd.f32 %v14398_v1, %v5242_v20  ;;  %10273 = vmatprep.subr.bf16.mxu1 %v14824_v40  ;;  %v5301_v20 = vmax.f32 %v5187_v52, 0.0  ;;  %v16864_v1 = vld [vmem:[#allocation76_spill] sm:$0xff] }
 0x8af   : > { %v5317_v58 = vmax.f32 %v5251_v38, 0.0  ;;  %10274 = vmatpush3.bf16.msra.mxu1 %v14831_v33  ;;  %v14867_v52 = vadd.f32 %v5316_v56, %v16870_v25 }
 0x8b0   : > { %v5315_v55 = vmax.f32 %v5243_v45, 0.0  ;;  %10275 = vmatprep.subr.bf16.mxu1 %v14837_v17  ;;  %v14854_v50 = vadd.f32 %v5314_v29, %v16862_v8  ;;  %v16868_v45 = vld [vmem:[#allocation78_spill] sm:$0xff]  ;;  %v16872_v29 = vld [vmem:[#allocation61_spill] sm:$0xff] }
 0x8b1   : > { %v14857_v31 = vadd.f32 %v5317_v58, %v16864_v1  ;;  %v14863_v2 = vadd.f32 %v5298_v44, %v16868_v45  ;;  %16871 = vst [vmem:[#allocation68_spill] sm:$0xff] %v14867_v52  ;;  %v14874_v58 = vadd.f32 %v5301_v20, %v16872_v29  ;;  %v16874_v44 = vld [vmem:[#allocation62_spill] sm:$0xff]  ;;  %v16876_v20 = vld [vmem:[#allocation63_spill] sm:$0xff]  ;;  %v12121_v45 = vld [vmem:[%s12461_s29 + $0xf0] sm:$0xff]  }
 0x8b2   : > { %16863 = vst [vmem:[#allocation51_spill] sm:$0xff] %v14854_v50  ;;  %v14860_v38 = vadd.f32 %v5315_v55, %v16866_v13  ;;  %v14884_v8 = vadd.f32 %v5300_v0, %v16874_v44  ;;  %v14893_v1 = vld [vmem:[%s12461_s29] sm:$0xff]   ;;  %v12105_v13 = vld [vmem:[%s12461_s29 + $0x10] sm:$0xff]  }
 0x8b3   : > { %16865 = vst [vmem:[#allocation52_spill] sm:$0xff] %v14857_v31  ;;  %16869 = vst [vmem:[#allocation44_spill] sm:$0xff] %v14863_v2  ;;  %10276 = vmatpush3.bf16.msra.mxu1 %v14851_v5  ;;  %v5532_v55 = vpack.c.bf16 %v14847_v27, %v14863_v2  ;;  %v14881_v7 = vpack.c.bf16 %v14857_v31, %v14867_v52  ;;  %v12119_v0 = vld [vmem:[%s12461_s29 + $0xe0] sm:$0xff]  }
 0x8b4   : > { %16867 = vst [vmem:[#allocation42_spill] sm:$0xff] %v14860_v38  ;;  %v14871_v61 = vpack.c.bf16 %v14860_v38, %v14854_v50  ;;  %16873 = vst [vmem:[#allocation69_spill] sm:$0xff] %v14874_v58  ;;  %v5533_v56 = vpack.c.bf16 %v14874_v58, %v14884_v8 }
 0x8b5   : > { %16875 = vst [vmem:[#allocation70_spill] sm:$0xff] %v14884_v8 }
 0x8b6   : > { %10277 = vmatprep.subr.bf16.mxu1 %v14871_v61 }
 0x8b7   : > { %10278 = vmatpush3.bf16.msra.mxu1 %v5532_v55 }
 0x8b8   : > { %10279 = vmatprep.subr.bf16.mxu1 %v14881_v7 }
 0x8bb   : > { %10280 = vmatpush3.bf16.msra.mxu1 %v5533_v56 }
 0x8bc   : > { %11286 = vmatprep.subr.bf16.mxu1 %v14441_v36 }
 0x8be   : > { %5615 = vmatmul.mubr.bf16.vlgmr.msra.gmra.mrb[224].mxu1 %v16876_v20 }
 0x8bf   : > { %11287 = vmatpush3.bf16.msra.mxu1 %v14441_v36  ;;  %11294 = vmatprep.mubr.msk.bf16.mxu1 %vm1453_vm2, %v14893_v1  ;;  %v12104_v36 = vld [vmem:[%s12461_s29 + $0x8] sm:$0xff]  }
 0x8c0   : > { %11288 = vmatprep.subr.bf16.mxu1 %v14461_v3 }
 0x8c3   : > { %11289 = vmatpush3.bf16.msra.mxu1 %v14461_v3  ;;  %v12106_v3 = vld [vmem:[%s12461_s29 + $0x18] sm:$0xff]  }
 0x8c4   : > { %11290 = vmatprep.subr.bf16.mxu1 %v14495_v43 }
 0x8c7   : > { %11291 = vmatpush3.bf16.msra.mxu1 %v14495_v43  ;;  %v12107_v43 = vld [vmem:[%s12461_s29 + $0x20] sm:$0xff]  }
 0x8c8   : > { %11292 = vmatprep.subr.bf16.mxu1 %v14517_v54 }
 0x8cb   : > { %11293 = vmatpush3.bf16.msra.mxu1 %v14517_v54  ;;  %v12108_v54 = vld [vmem:[%s12461_s29 + $0x28] sm:$0xff]  }
 0x8cc   : > { %11302 = vmatprep.subr.bf16.mxu1 %v14551_v47 }
 0x8ce   : > { %11295 = vmatmul.mubr.msk.bf16.vlgmr.msra.gmra.mrb[228].mxu1 %vm1453_vm2, %v12104_v36 }
 0x8cf   : > { %11303 = vmatpush3.bf16.msra.mxu1 %v14551_v47  ;;  %11298 = vmatprep.mubr.msk.bf16.mxu1 %vm1453_vm2, %v12105_v13  ;;  %v12110_v47 = vld [vmem:[%s12461_s29 + $0x38] sm:$0xff]  }
 0x8d0   : > { %11304 = vmatprep.subr.bf16.mxu1 %v14571_v22 }
 0x8d3   : > { %11305 = vmatpush3.bf16.msra.mxu1 %v14571_v22  ;;  %v12109_v22 = vld [vmem:[%s12461_s29 + $0x30] sm:$0xff]  }
 0x8d4   : > { %11306 = vmatprep.subr.bf16.mxu1 %v14600_v39 }
 0x8d6   : > { %11299 = vmatmul.mubr.msk.bf16.gmra.mrb[232].mxu1 %vm1453_vm2, %v12106_v3 }
 0x8d7   : > { %11307 = vmatpush3.bf16.msra.mxu1 %v14600_v39  ;;  %11310 = vmatprep.mubr.msk.bf16.mxu1 %vm1453_vm2, %v12107_v43  ;;  %v12111_v39 = vld [vmem:[%s12461_s29 + $0x60] sm:$0xff]  }
 0x8d8   : > { %11308 = vmatprep.subr.bf16.mxu1 %v14614_v24 }
 0x8db   : > { %11309 = vmatpush3.bf16.msra.mxu1 %v14614_v24  ;;  %v12116_v24 = vld [vmem:[%s12461_s29 + $0xa8] sm:$0xff]  }
 0x8dc   : > { %11334 = vmatprep.subr.bf16.mxu1 %v14544_v32 }
 0x8de   : > { %11311 = vmatmul.mubr.msk.bf16.vlgmr.msra.gmra.mrb[236].mxu1 %vm1453_vm2, %v12108_v54  ;;  %v12123_v54 = vld [vmem:[%s12461_s29 + $0x40] sm:$0xff]  }
 0x8df   : > { %11335 = vmatpush3.bf16.msra.mxu1 %v14544_v32  ;;  %11314 = vmatprep.mubr.msk.bf16.mxu1 %vm1453_vm2, %v12109_v22  ;;  %v12112_v32 = vld [vmem:[%s12461_s29 + $0x68] sm:$0xff]   ;;  %v14975_v22 = vstv %s6250_s20  ;;  %s8041_s20 = sadd.f32 1.0, %s15743_s19  ;;  %s12181_s19 = scalar_lea.vmem %s9239_s17, 128 }
 0x8e0   : > { %11336 = vmatprep.subr.bf16.mxu1 %v14557_v53  ;;  %p12182_p12 = scmp.ne.s32.totalorder %s9239_s17, %s12181_s19  ;;  %p12189_p2 = scmp.lt.s32.totalorder %s12187_s3, %s12181_s19 }
 0x8e2   : > { %p12183_p13 = pnand %p12182_p12, %p12356_p5  ;;  %p12190_p3 = por %p12189_p2, %p12188_p1 }
 0x8e3   : > { %11337 = vmatpush3.bf16.msra.mxu1 %v14557_v53  ;;  %v12113_v53 = vld [vmem:[%s12461_s29 + $0x70] sm:$0xff]  }
 0x8e4   : > { %11338 = vmatprep.subr.bf16.mxu1 %v14593_v19  ;;  %p12184_p0 = pneg %p12183_p13 }
 0x8e6   : > { %11315 = vmatmul.mubr.msk.bf16.gmra.mrb[240].mxu1 %vm1453_vm2, %v12110_v47  ;;  %p12191_p4 = pnand %p12190_p3, %p12184_p0 }
 0x8e7   : > { %11339 = vmatpush3.bf16.msra.mxu1 %v14593_v19  ;;  %11342 = vmatprep.mubr.msk.bf16.mxu1 %vm1453_vm2, %v12111_v39  ;;  %v12114_v19 = vld [vmem:[%s12461_s29 + $0x78] sm:$0xff]   ;;  %v6254_v39 = vmul.f32 %v14975_v22, %v14451_v62 }
 0x8e8   : > { %11340 = vmatprep.subr.bf16.mxu1 %v14605_v15 }
 0x8eb   : > { %11341 = vmatpush3.bf16.msra.mxu1 %v14605_v15  ;;  %v12115_v15 = vld [vmem:[%s12461_s29 + $0xa0] sm:$0xff]  }
 0x8ec   : > { %11366 = vmatprep.subr.bf16.mxu1 %v14831_v33 }
 0x8ee   : > { %11343 = vmatmul.mubr.msk.bf16.vlgmr.msra.gmra.mrb[244].mxu1 %vm1453_vm2, %v12112_v32  ;;  %v6255_v32 = vmul.f32 %v14975_v22, %v14425_v59 }
 0x8ef   : > { %11367 = vmatpush3.bf16.msra.mxu1 %v14831_v33  ;;  %11346 = vmatprep.mubr.msk.bf16.mxu1 %vm1453_vm2, %v12113_v53  ;;  %v12118_v33 = vld [vmem:[%s12461_s29 + $0xb8] sm:$0xff]   ;;  %v6252_v53 = vmul.f32 %v14975_v22, %v14422_v49 }
 0x8f0   : > { %11368 = vmatprep.subr.bf16.mxu1 %v14851_v5 }
 0x8f3   : > { %11369 = vmatpush3.bf16.msra.mxu1 %v14851_v5  ;;  %v12117_v5 = vld [vmem:[%s12461_s29 + $0xb0] sm:$0xff]  }
 0x8f4   : > { %11370 = vmatprep.subr.bf16.mxu1 %v5532_v55 }
 0x8f6   : > { %11347 = vmatmul.mubr.msk.bf16.gmra.mrb[248].mxu1 %vm1453_vm2, %v12114_v19  ;;  %v16877_v19 = vld [vmem:[#allocation54_spill] sm:$0xff] }
 0x8f7   : > { %11371 = vmatpush3.bf16.msra.mxu1 %v5532_v55  ;;  %11374 = vmatprep.mubr.msk.bf16.mxu1 %vm1453_vm2, %v12115_v15  ;;  %v6253_v15 = vmul.f32 %v14975_v22, %v16877_v19 }
 0x8f8   : > { %11372 = vmatprep.subr.bf16.mxu1 %v5533_v56 }
 0x8fb   : > { %11373 = vmatpush3.bf16.msra.mxu1 %v5533_v56 }
 0x8fc   : > { %11398 = vmatprep.subr.bf16.mxu1 %v14824_v40 }
 0x8fe   : > { %11375 = vmatmul.mubr.msk.bf16.vlgmr.msra.gmra.mrb[252].mxu1 %vm1453_vm2, %v12116_v24 }
 0x8ff   : > { %11399 = vmatpush3.bf16.msra.mxu1 %v14824_v40  ;;  %11378 = vmatprep.mubr.msk.bf16.mxu1 %vm1453_vm2, %v12117_v5  ;;  %v12120_v40 = vld [vmem:[%s12461_s29 + $0xe8] sm:$0xff]  }
 0x900   : > { %11400 = vmatprep.subr.bf16.mxu1 %v14837_v17 }
 0x903   : > { %11401 = vmatpush3.bf16.msra.mxu1 %v14837_v17  ;;  %v12122_v17 = vld [vmem:[%s12461_s29 + $0xf8] sm:$0xff]  }
 0x904   : > { %11402 = vmatprep.subr.bf16.mxu1 %v14871_v61 }
 0x906   : > { %11379 = vmatmul.mubr.msk.bf16.gmra.mrb[0].mxu1 %vm1453_vm2, %v12118_v33 }
 0x907   : > { %11403 = vmatpush3.bf16.msra.mxu1 %v14871_v61  ;;  %11406 = vmatprep.mubr.msk.bf16.mxu1 %vm1453_vm2, %v12119_v0 }
 0x908   : > { %11404 = vmatprep.subr.bf16.mxu1 %v14881_v7 }
 0x90b   : > { %11405 = vmatpush3.bf16.msra.mxu1 %v14881_v7 }
 0x90e   : > { %11407 = vmatmul.mubr.msk.bf16.vlgmr.msra.gmra.mrb[4].mxu1 %vm1453_vm2, %v12120_v40 }
 0x90f   : > { %11410 = vmatprep.mubr.msk.bf16.mxu1 %vm1453_vm2, %v12121_v45 }
 0x916   : > { %11411 = vmatmul.mubr.msk.bf16.gmra.mrb[8].mxu1 %vm1453_vm2, %v12122_v17  ;;  %v12124_v17 = vld [vmem:[%s12461_s29 + $0x48] sm:$0xff]  }
 0x951   : > { %v10259_v25 = vpop.f32.mrb[248].mxu0 }
 0x952   : > { %v10260_v29 = vpop.f32.mrb[249].mxu0 }
 0x953   : > { %v10261_v61 = vadd.f32 %v10260_v29, %v10259_v25  ;;  %v10262_v55 = vpop.f32.mrb[250].mxu0  ;;  %v16878_v29 = vld [vmem:[#allocation36_spill] sm:$0xff] }
 0x954   : > { %v10263_v44 = vpop.f32.mrb[251].mxu0 }
 0x955   : > { %v16879_v44 = vld [vmem:[#allocation37_spill] sm:$0xff] }
 0x991   : > { %v10281_v56 = vpop.f32.mrb[224].mxu1 }
 0x992   : > { %v10282_v20 = vpop.f32.mrb[225].mxu1 }
 0x993   : > { %v10283_v36 = vadd.f32 %v10282_v20, %v10281_v56  ;;  %v10284_v13 = vpop.f32.mrb[226].mxu1  ;;  %v6259_v56 = vmul.f32 %v14975_v22, %v16879_v44  ;;  %v16880_v20 = vld [vmem:[#allocation53_spill] sm:$0xff] }
 0x994   : > { %v10285_v7 = vpop.f32.mrb[227].mxu1 }
 0x995   : > { %v5617_v3 = vadd.f32 %v10283_v36, %v10261_v61  ;;  %v6258_v61 = vmul.f32 %v14975_v22, %v16878_v29  ;;  %v6256_v36 = vmul.f32 %v14975_v22, %v16880_v20  ;;  %v16881_v7 = vld [vmem:[#allocation12_spill] sm:$0xff] }
 0x997   : > { %v5622_v43 = vpack.c.bf16 %v5617_v3, %v5617_v3  ;;  %v6257_v3 = vmul.f32 %v14975_v22, %v16881_v7  ;;  %v16897_v7 = vld [vmem:[#allocation14_spill] sm:$0xff] }
 0x999   : > { %11283 = vmatmul.mubr.bf16.vlgmr.msra.gmra.mrb[252].mxu0 %v5622_v43 }
 0x99a   : > { %11319 = vmatpush3.bf16.msra.mxu0 %v14435_v57  ;;  %11326 = vmatprep.mubr.msk.bf16.mxu0 %vm1453_vm2, %v12123_v54 }
 0x99b   : > { %11320 = vmatprep.subr.bf16.mxu0 %v14448_v48 }
 0x99e   : > { %11321 = vmatpush3.bf16.msra.mxu0 %v14448_v48 }
 0x99f   : > { %11322 = vmatprep.subr.bf16.mxu0 %v14487_v26 }
 0x9a1   : > { %v11296_v47 = vpop.f32.mrb[228].mxu1 }
 0x9a2   : > { %11323 = vmatpush3.bf16.msra.mxu0 %v14487_v26  ;;  %v5763_v57 = vpop.f32.mrb[229].mxu1  ;;  %v14987_v24 = vadd.f32 %v11296_v47, %v6254_v39 }
 0x9a3   : > { %11324 = vmatprep.subr.bf16.mxu0 %v14504_v30  ;;  %v11297_v48 = vpop.f32.mrb[230].mxu1  ;;  %v14991_v33 = vadd.f32 %v6252_v53, %v5763_v57  ;;  %v12126_v53 = vld [vmem:[%s12461_s29 + $0x58] sm:$0xff]  }
 0x9a4   : > { %v14989_v5 = vadd.f32 %v11297_v48, %v6255_v32  ;;  %v5766_v26 = vpop.f32.mrb[231].mxu1  ;;  %v16889_v32 = vld [vmem:[#allocation39_spill] sm:$0xff] }
 0x9a5   : > { %v14993_v0 = vadd.f32 %v6253_v15, %v5766_v26  ;;  %v16882_v15 = vld [vmem:[#allocation9_spill] sm:$0xff]  ;;  %v6265_v40 = vmul.f32 %v14975_v22, %v16889_v32 }
 0x9a6   : > { %11325 = vmatpush3.bf16.msra.mxu0 %v14504_v30  ;;  %v12125_v30 = vld [vmem:[%s12461_s29 + $0x50] sm:$0xff]   ;;  %v6262_v26 = vmul.f32 %v14975_v22, %v16882_v15 }
 0x9a7   : > { %11350 = vmatprep.subr.bf16.mxu0 %v14719_v42 }
 0x9a9   : > { %11327 = vmatmul.mubr.msk.bf16.vlgmr.msra.gmra.mrb[0].mxu0 %vm1453_vm2, %v12124_v17  ;;  %v11300_v25 = vpop.f32.mrb[232].mxu1 }
 0x9aa   : > { %11351 = vmatpush3.bf16.msra.mxu0 %v14719_v42  ;;  %v5779_v55 = vpop.f32.mrb[233].mxu1  ;;  %11330 = vmatprep.mubr.msk.bf16.mxu0 %vm1453_vm2, %v12125_v30  ;;  %v15015_v43 = vadd.f32 %v11300_v25, %v6258_v61  ;;  %v16883_v25 = vld [vmem:[#allocation43_spill] sm:$0xff] }
 0x9ab   : > { %11352 = vmatprep.subr.bf16.mxu0 %v14741_v4  ;;  %v11301_v13 = vpop.f32.mrb[234].mxu1  ;;  %v15019_v47 = vadd.f32 %v6256_v36, %v5779_v55  ;;  %v6263_v61 = vmul.f32 %v14975_v22, %v16883_v25  ;;  %v16884_v55 = vld [vmem:[#allocation49_spill] sm:$0xff]  ;;  %v16885_v36 = vld [vmem:[#allocation46_spill] sm:$0xff] }
 0x9ac   : > { %v15017_v42 = vadd.f32 %v11301_v13, %v6259_v56  ;;  %v5782_v54 = vpop.f32.mrb[235].mxu1  ;;  %v6260_v56 = vmul.f32 %v14975_v22, %v16884_v55  ;;  %v6261_v13 = vmul.f32 %v14975_v22, %v16885_v36 }
 0x9ad   : > { %v15021_v39 = vadd.f32 %v6257_v3, %v5782_v54 }
 0x9ae   : > { %11353 = vmatpush3.bf16.msra.mxu0 %v14741_v4  ;;  %v12127_v4 = vld [vmem:[%s12461_s29 + $0x80] sm:$0xff]  }
 0x9af   : > { %11354 = vmatprep.subr.bf16.mxu0 %v14775_v23 }
 0x9b1   : > { %11331 = vmatmul.mubr.msk.bf16.gmra.mrb[4].mxu0 %vm1453_vm2, %v12126_v53  ;;  %v11312_v48 = vpop.f32.mrb[236].mxu1 }
 0x9b2   : > { %11355 = vmatpush3.bf16.msra.mxu0 %v14775_v23  ;;  %v5828_v17 = vpop.f32.mrb[237].mxu1  ;;  %11358 = vmatprep.mubr.msk.bf16.mxu0 %vm1453_vm2, %v12127_v4  ;;  %v15043_v3 = vadd.f32 %v11312_v48, %v6262_v26  ;;  %v12128_v48 = vld [vmem:[%s12461_s29 + $0x88] sm:$0xff]  }
 0x9b3   : > { %11356 = vmatprep.subr.bf16.mxu0 %v14797_v6  ;;  %v11313_v30 = vpop.f32.mrb[238].mxu1  ;;  %v15047_v53 = vadd.f32 %v6260_v56, %v5828_v17 }
 0x9b4   : > { %v15045_v23 = vadd.f32 %v11313_v30, %v6263_v61  ;;  %v5831_v54 = vpop.f32.mrb[239].mxu1  ;;  %v16886_v61 = vld [vmem:[#allocation56_spill] sm:$0xff]  ;;  %v16887_v30 = vld [vmem:[#allocation57_spill] sm:$0xff] }
 0x9b5   : > { %v15049_v57 = vadd.f32 %v6261_v13, %v5831_v54  ;;  %v6266_v17 = vmul.f32 %v14975_v22, %v16886_v61  ;;  %v6267_v13 = vmul.f32 %v14975_v22, %v16887_v30  ;;  %v16888_v54 = vld [vmem:[#allocation16_spill] sm:$0xff] }
 0x9b6   : > { %11357 = vmatpush3.bf16.msra.mxu0 %v14797_v6  ;;  %v12129_v6 = vld [vmem:[%s12461_s29 + $0x90] sm:$0xff]   ;;  %v6264_v4 = vmul.f32 %v14975_v22, %v16888_v54 }
 0x9b7   : > { %11382 = vmatprep.subr.bf16.mxu0 %v14712_v37  ;;  %v16893_v54 = vld [vmem:[#allocation41_spill] sm:$0xff] }
 0x9b8   : > { %v6277_v32 = vmul.f32 %v14975_v22, %v16893_v54 }
 0x9b9   : > { %11359 = vmatmul.mubr.msk.bf16.vlgmr.msra.gmra.mrb[8].mxu0 %vm1453_vm2, %v12128_v48  ;;  %v11316_v26 = vpop.f32.mrb[240].mxu1 }
 0x9ba   : > { %11383 = vmatpush3.bf16.msra.mxu0 %v14712_v37  ;;  %v5844_v56 = vpop.f32.mrb[241].mxu1  ;;  %11362 = vmatprep.mubr.msk.bf16.mxu0 %vm1453_vm2, %v12129_v6  ;;  %v15071_v45 = vadd.f32 %v11316_v26, %v6266_v17  ;;  %v12130_v26 = vld [vmem:[%s12461_s29 + $0x98] sm:$0xff]  }
 0x9bb   : > { %11384 = vmatprep.subr.bf16.mxu0 %v14727_v12  ;;  %v11317_v48 = vpop.f32.mrb[242].mxu1  ;;  %v15075_v30 = vadd.f32 %v6264_v4, %v5844_v56 }
 0x9bc   : > { %v15073_v37 = vadd.f32 %v11317_v48, %v6267_v13  ;;  %v5847_v61 = vpop.f32.mrb[243].mxu1  ;;  %v16890_v13 = vld [vmem:[#allocation50_spill] sm:$0xff]  ;;  %v12131_v48 = vld [vmem:[%s12461_s29 + $0xc0] sm:$0xff]  }
 0x9bd   : > { %v15077_v36 = vadd.f32 %v6265_v40, %v5847_v61  ;;  %v6278_v4 = vmul.f32 %v14975_v22, %v16890_v13  ;;  %v16891_v61 = vld [vmem:[#allocation47_spill] sm:$0xff] }
 0x9be   : > { %11385 = vmatpush3.bf16.msra.mxu0 %v14727_v12  ;;  %v6279_v56 = vmul.f32 %v14975_v22, %v16891_v61  ;;  %v16892_v12 = vld [vmem:[#allocation45_spill] sm:$0xff] }
 0x9bf   : > { %11386 = vmatprep.subr.bf16.mxu0 %v14767_v18  ;;  %v6276_v6 = vmul.f32 %v14975_v22, %v16892_v12  ;;  %v16896_v12 = vld [vmem:[#allocation17_spill] sm:$0xff] }
 0x9c0   : > { %v6280_v54 = vmul.f32 %v14975_v22, %v16896_v12 }
 0x9c1   : > { %11363 = vmatmul.mubr.msk.bf16.gmra.mrb[12].mxu0 %vm1453_vm2, %v12130_v26  ;;  %v11344_v17 = vpop.f32.mrb[244].mxu1 }
 0x9c2   : > { %11387 = vmatpush3.bf16.msra.mxu0 %v14767_v18  ;;  %v5958_v40 = vpop.f32.mrb[245].mxu1  ;;  %11390 = vmatprep.mubr.msk.bf16.mxu0 %vm1453_vm2, %v12131_v48  ;;  %v12039_v18 = vld [vmem:[%s16179_s5 + $0x80] sm:$0xff]   ;;  %v15102_v13 = vadd.f32 %v11344_v17, %v6278_v4  ;;  %v12040_v17 = vld [vmem:[%s16179_s5 + $0x88] sm:$0xff]  }
 0x9c3   : > { %11388 = vmatprep.subr.bf16.mxu0 %v14784_v46  ;;  %v11345_v26 = vpop.f32.mrb[246].mxu1  ;;  %v15106_v55 = vadd.f32 %v6276_v6, %v5958_v40  ;;  %v12132_v4 = vld [vmem:[%s12461_s29 + $0xc8] sm:$0xff]   ;;  %v16894_v40 = vld [vmem:[#allocation29_spill] sm:$0xff] }
 0x9c4   : > { %v15104_v61 = vadd.f32 %v11345_v26, %v6279_v56  ;;  %v5961_v48 = vpop.f32.mrb[247].mxu1  ;;  %v16895_v26 = vld [vmem:[#allocation15_spill] sm:$0xff] }
 0x9c5   : > { %v15108_v25 = vadd.f32 %v6277_v32, %v5961_v48  ;;  %v6282_v32 = vmul.f32 %v14975_v22, %v16894_v40  ;;  %v12133_v48 = vld [vmem:[%s12461_s29 + $0xd0] sm:$0xff]  }
 0x9c6   : > { %11389 = vmatpush3.bf16.msra.mxu0 %v14784_v46  ;;  %v6283_v46 = vmul.f32 %v14975_v22, %v16895_v26 }
 0x9c7   : > { %11414 = vmatprep.subr.bf16.mxu0 %v12039_v18 }
 0x9c9   : > { %11391 = vmatmul.mubr.msk.bf16.vlgmr.msra.gmra.mrb[16].mxu0 %vm1453_vm2, %v12132_v4  ;;  %v11348_v6 = vpop.f32.mrb[248].mxu1  ;;  %v6281_v4 = vmul.f32 %v14975_v22, %v16897_v7 }
 0x9ca   : > { %11415 = vmatpush3.bf16.msra.mxu0 %v12039_v18  ;;  %v5974_v56 = vpop.f32.mrb[249].mxu1  ;;  %11394 = vmatprep.mubr.msk.bf16.mxu0 %vm1453_vm2, %v12133_v48  ;;  %v12041_v18 = vld [vmem:[%s16179_s5 + $0x90] sm:$0xff]   ;;  %v15133_v40 = vadd.f32 %v11348_v6, %v6282_v32  ;;  %v12042_v6 = vld [vmem:[%s16179_s5 + $0x98] sm:$0xff]  }
 0x9cb   : > { %v11349_v15 = vpop.f32.mrb[250].mxu1  ;;  %11416 = vmatprep.subr.bf16.mxu0 %v12040_v17  ;;  %v15137_v44 = vadd.f32 %v6280_v54, %v5974_v56  ;;  %v12134_v32 = vld [vmem:[%s12461_s29 + $0xd8] sm:$0xff]   ;;  %v6294_v54 = vmul.f32 %v14975_v22, %v14840_v51  ;;  %v16898_v56 = vpack.c.bf16 %v14993_v0, %v14991_v33 }
 0x9cc   : > { %v15135_v20 = vadd.f32 %v11349_v15, %v6283_v46  ;;  %v5977_v26 = vpop.f32.mrb[251].mxu1  ;;  %v6292_v46 = vmul.f32 %v14975_v22, %v14809_v60 }
 0x9cd   : > { %v15139_v48 = vadd.f32 %v6281_v4, %v5977_v26  ;;  %v6295_v26 = vmul.f32 %v14975_v22, %v14812_v9 }
 0x9ce   : > { %11417 = vmatpush3.bf16.msra.mxu0 %v12040_v17 }
 0x9cf   : > { %11418 = vmatprep.subr.bf16.mxu0 %v12041_v18 }
 0x9d1   : > { %11395 = vmatmul.mubr.msk.bf16.gmra.mrb[20].mxu0 %vm1453_vm2, %v12134_v32  ;;  %v11376_v15 = vpop.f32.mrb[252].mxu1  ;;  %v6293_v32 = vmul.f32 %v14975_v22, %v14791_v28 }
 0x9d2   : > { %11419 = vmatpush3.bf16.msra.mxu0 %v12041_v18  ;;  %11430 = vmatprep.mubr.bf16.mxu0 %v16898_v56  ;;  %v6088_v17 = vpop.f32.mrb[253].mxu1  ;;  %v12043_v18 = vld [vmem:[%s16179_s5 + $0xa0] sm:$0xff]   ;;  %v15164_v12 = vadd.f32 %v11376_v15, %v6294_v54  ;;  %v12044_v15 = vld [vmem:[%s16179_s5 + $0xa8] sm:$0xff]  }
 0x9d3   : > { %v11377_v4 = vpop.f32.mrb[254].mxu1  ;;  %11420 = vmatprep.subr.bf16.mxu0 %v12042_v6  ;;  %v15168_v56 = vadd.f32 %v6292_v46, %v6088_v17  ;;  %v6299_v46 = vmul.f32 %v14975_v22, %v14874_v58 }
 0x9d4   : > { %v15166_v33 = vadd.f32 %v11377_v4, %v6295_v26  ;;  %v6091_v0 = vpop.f32.mrb[255].mxu1  ;;  %v6298_v26 = vmul.f32 %v14975_v22, %v14884_v8 }
 0x9d5   : > { %v15170_v7 = vadd.f32 %v6293_v32, %v6091_v0  ;;  %v6297_v32 = vmul.f32 %v14975_v22, %v14847_v27  ;;  %v12045_v0 = vld [vmem:[%s16179_s5 + $0xb0] sm:$0xff]  }
 0x9d6   : > { %11421 = vmatpush3.bf16.msra.mxu0 %v12042_v6  ;;  %v6296_v6 = vmul.f32 %v14975_v22, %v14863_v2 }
 0x9d7   : > { %11422 = vmatprep.subr.bf16.mxu0 %v12043_v18 }
 0x9d9   : > { %v11380_v54 = vpop.f32.mrb[0].mxu1 }
 0x9da   : > { %11423 = vmatpush3.bf16.msra.mxu0 %v12043_v18  ;;  %v6104_v17 = vpop.f32.mrb[1].mxu1  ;;  %v15190_v60 = vadd.f32 %v11380_v54, %v6298_v26  ;;  %v12046_v54 = vld [vmem:[%s16179_s5 + $0xb8] sm:$0xff]  }
 0x9db   : > { %v11381_v4 = vpop.f32.mrb[2].mxu1  ;;  %11424 = vmatprep.subr.bf16.mxu0 %v12044_v15  ;;  %v15194_v8 = vadd.f32 %v6296_v6, %v6104_v17  ;;  %v6311_v6 = vmul.f32 %v14975_v22, %v14803_v11  ;;  %v16901_v11 = vpack.c.bf16 %v15017_v42, %v15015_v43  ;;  %v12048_v43 = vld [vmem:[%s16181_s7 + $0x88] sm:$0xff]   ;;  %v12049_v42 = vld [vmem:[%s16181_s7 + $0x90] sm:$0xff]  }
 0x9dc   : > { %v15192_v28 = vadd.f32 %v11381_v4, %v6299_v46  ;;  %v6107_v18 = vpop.f32.mrb[3].mxu1  ;;  %v6310_v46 = vmul.f32 %v14975_v22, %v14818_v41  ;;  %v6284_v41 = vmul.f32 %v14975_v22, %v14697_v21 }
 0x9dd   : > { %v15196_v58 = vadd.f32 %v6297_v32, %v6107_v18  ;;  %v6309_v32 = vmul.f32 %v14975_v22, %v14806_v14  ;;  %v16899_v14 = vpack.c.bf16 %v14989_v5, %v14987_v24  ;;  %v6313_v24 = vmul.f32 %v14975_v22, %v14860_v38  ;;  %v16912_v38 = vld [vmem:[#allocation30_spill] sm:$0xff] }
 0x9de   : > { %11425 = vmatpush3.bf16.msra.mxu0 %v12044_v15  ;;  %v6308_v15 = vmul.f32 %v14975_v22, %v14800_v10 }
 0x9df   : > { %11426 = vmatprep.subr.bf16.mxu0 %v12045_v0 }
 0x9e1   : > { %v11408_v26 = vpop.f32.mrb[4].mxu1 }
 0x9e2   : > { %11427 = vmatpush3.bf16.msra.mxu0 %v12045_v0  ;;  %v6218_v17 = vpop.f32.mrb[5].mxu1  ;;  %v15213_v18 = vadd.f32 %v11408_v26, %v6310_v46  ;;  %v6314_v46 = vmul.f32 %v14975_v22, %v14867_v52 }
 0x9e3   : > { %v11409_v4 = vpop.f32.mrb[6].mxu1  ;;  %11428 = vmatprep.subr.bf16.mxu0 %v12046_v54  ;;  %v15217_v9 = vadd.f32 %v6308_v15, %v6218_v17  ;;  %v16900_v17 = vpack.c.bf16 %v15021_v39, %v15019_v47  ;;  %v16911_v39 = vld [vmem:[#allocation35_spill] sm:$0xff] }
 0x9e4   : > { %v15215_v2 = vadd.f32 %v11409_v4, %v6311_v6  ;;  %v6221_v27 = vpop.f32.mrb[7].mxu1  ;;  %v6315_v6 = vmul.f32 %v14975_v22, %v14857_v31  ;;  %v16913_v31 = vld [vmem:[#allocation55_spill] sm:$0xff] }
 0x9e5   : > { %v15219_v0 = vadd.f32 %v6309_v32, %v6221_v27  ;;  %v6272_v52 = vmul.f32 %v14975_v22, %v16913_v31 }
 0x9e6   : > { %11429 = vmatpush3.bf16.msra.mxu0 %v12046_v54  ;;  %v6312_v54 = vmul.f32 %v14975_v22, %v14854_v50  ;;  %v6275_v50 = vmul.f32 %v14975_v22, %v16912_v38 }
 0x9e9   : > { %11431 = vmatmul.mubr.bf16.vlgmr.msra.gmra.mrb[24].mxu0 %v16899_v14  ;;  %v11412_v26 = vpop.f32.mrb[8].mxu1 }
 0x9ea   : > { %11434 = vmatprep.mubr.bf16.mxu0 %v16900_v17  ;;  %v6234_v27 = vpop.f32.mrb[9].mxu1  ;;  %v15239_v14 = vadd.f32 %v11412_v26, %v6314_v46  ;;  %v16902_v26 = vpack.c.bf16 %v15049_v57, %v15047_v53  ;;  %v16903_v46 = vpack.c.bf16 %v15045_v23, %v15043_v3  ;;  %v12051_v57 = vld [vmem:[%s16181_s7 + $0xa0] sm:$0xff]   ;;  %v12053_v3 = vld [vmem:[%s16181_s7 + $0xb0] sm:$0xff]   ;;  %v12054_v23 = vld [vmem:[%s16181_s7 + $0xb8] sm:$0xff]   ;;  %v6274_v17 = vmul.f32 %v14975_v22, %v16911_v39 }
 0x9eb   : > { %v11413_v15 = vpop.f32.mrb[10].mxu1  ;;  %v15243_v32 = vadd.f32 %v6312_v54, %v6234_v27  ;;  %v16904_v27 = vpack.c.bf16 %v15077_v36, %v15075_v30  ;;  %v12052_v36 = vld [vmem:[%s16181_s7 + $0xa8] sm:$0xff]   ;;  %v9809_v30 = vld [vmem:[%s16185_s11] ss:$0 sm:$0xff] }
 0x9ec   : > { %v15241_v5 = vadd.f32 %v11413_v15, %v6315_v6  ;;  %v6237_v4 = vpop.f32.mrb[11].mxu1  ;;  %v16905_v6 = vpack.c.bf16 %v15073_v37, %v15071_v45  ;;  %v12050_v45 = vld [vmem:[%s16181_s7 + $0x98] sm:$0xff]   ;;  %v16906_v37 = vld [vmem:[#allocation64_spill] sm:$0xff] }
 0x9ed   : > { %v15245_v47 = vadd.f32 %v6313_v24, %v6237_v4 }
 0x9f1   : > { %11435 = vmatmul.mubr.bf16.gmra.mrb[28].mxu0 %v16901_v11  ;;  %v12047_v11 = vld [vmem:[%s16181_s7 + $0x80] sm:$0xff]  }
 0x9f2   : > { %11438 = vmatprep.mubr.bf16.mxu0 %v16902_v26  ;;  %11494 = vmatprep.subr.bf16.mxu1 %v12047_v11 }
 0x9f3   : > { %11495 = vmatpush3.bf16.msra.mxu1 %v12047_v11 }
 0x9f4   : > { %11496 = vmatprep.subr.bf16.mxu1 %v12048_v43 }
 0x9f7   : > { %11497 = vmatpush3.bf16.msra.mxu1 %v12048_v43  ;;  %v16908_v43 = vld [vmem:[#allocation13_spill] sm:$0xff] }
 0x9f8   : > { %11498 = vmatprep.subr.bf16.mxu1 %v12049_v42 }
 0x9f9   : > { %11439 = vmatmul.mubr.bf16.gmra.mrb[32].mxu0 %v16903_v46 }
 0x9fa   : > { %11442 = vmatprep.mubr.bf16.mxu0 %v16904_v27  ;;  %v16907_v27 = vld [vmem:[#allocation11_spill] sm:$0xff] }
 0x9fb   : > { %11499 = vmatpush3.bf16.msra.mxu1 %v12049_v42  ;;  %v6271_v42 = vmul.f32 %v14975_v22, %v16908_v43 }
 0x9fc   : > { %11500 = vmatprep.subr.bf16.mxu1 %v12050_v45 }
 0x9ff   : > { %11501 = vmatpush3.bf16.msra.mxu1 %v12050_v45  ;;  %v16909_v45 = vld [vmem:[#allocation18_spill] sm:$0xff] }
 0xa00   : > { %11502 = vmatprep.subr.bf16.mxu1 %v12051_v57 }
 0xa01   : > { %11443 = vmatmul.mubr.bf16.gmra.mrb[36].mxu0 %v16905_v6  ;;  %v6270_v6 = vmul.f32 %v14975_v22, %v16907_v27 }
 0xa03   : > { %11503 = vmatpush3.bf16.msra.mxu1 %v12051_v57  ;;  %v6268_v57 = vmul.f32 %v14975_v22, %v16909_v45 }
 0xa04   : > { %11504 = vmatprep.subr.bf16.mxu1 %v12052_v36 }
 0xa07   : > { %11505 = vmatpush3.bf16.msra.mxu1 %v12052_v36 }
 0xa08   : > { %11506 = vmatprep.subr.bf16.mxu1 %v12053_v3 }
 0xa0b   : > { %11507 = vmatpush3.bf16.msra.mxu1 %v12053_v3  ;;  %v16910_v3 = vld [vmem:[#allocation10_spill] sm:$0xff] }
 0xa0c   : > { %11508 = vmatprep.subr.bf16.mxu1 %v12054_v23 }
 0xa0f   : > { %11509 = vmatpush3.bf16.msra.mxu1 %v12054_v23  ;;  %v6269_v23 = vmul.f32 %v14975_v22, %v16910_v3 }
 0xa6c   : > { %v5722_v53 = vpop.f32.mrb[252].mxu0 }
 0xa6d   : > { %v5728_v54 = vadd.f32 %v5722_v53, %v16906_v37  ;;  %v11284_v15 = vpop.f32.mrb[253].mxu0 }
 0xa6e   : > { %v5725_v24 = vpop.f32.mrb[254].mxu0 }
 0xa6f   : > { %v9222_v4 = vadd.f32 %v9809_v30, %v5728_v54  ;;  %v11285_v26 = vpop.f32.mrb[255].mxu0 }
 0xa71   : > { %9223 = vst [vmem:[%s454_s0] sm:$0xff] %v9222_v4 }
 0xa7c   : > { %v11328_v46 = vpop.f32.mrb[0].mxu0 }
 0xa7d   : > { %v5893_v11 = vpop.f32.mrb[1].mxu0  ;;  %v6334_v53 = vadd.f32 %v11328_v46, %v6270_v6  ;;  %v16914_v6 = vld [vmem:[#allocation28_spill] sm:$0xff] }
 0xa7e   : > { %v11329_v36 = vpop.f32.mrb[2].mxu0  ;;  %v6332_v54 = vadd.f32 %v6268_v57, %v5893_v11  ;;  %v6273_v11 = vmul.f32 %v14975_v22, %v16914_v6 }
 0xa7f   : > { %v6335_v30 = vadd.f32 %v11329_v36, %v6271_v42  ;;  %v5896_v37 = vpop.f32.mrb[3].mxu0 }
 0xa80   : > { %v6333_v15 = vadd.f32 %v6269_v23, %v5896_v37 }
 0xa81   : > { %v6389_v24 = vpack.c.bf16 %v6335_v30, %v6334_v53 }
 0xa82   : > { %v6388_v4 = vpack.c.bf16 %v6333_v15, %v6332_v54  ;;  %v6286_v15 = vmul.f32 %v14975_v22, %v14730_v35 }
 0xa84   : > { %v11332_v26 = vpop.f32.mrb[4].mxu0  ;;  %11446 = vmatprep.mubr.bf16.mxu0 %v6388_v4  ;;  %v6287_v4 = vmul.f32 %v14975_v22, %v14700_v63 }
 0xa85   : > { %v5909_v10 = vpop.f32.mrb[5].mxu0  ;;  %11447 = vmatmul.mubr.bf16.gmra.mrb[40].mxu0 %v6389_v24  ;;  %v6338_v42 = vadd.f32 %v11332_v26, %v6274_v17 }
 0xa86   : > { %v11333_v46 = vpop.f32.mrb[6].mxu0  ;;  %v6336_v23 = vadd.f32 %v6272_v52, %v5909_v10  ;;  %v16915_v10 = vpack.c.bf16 %v15108_v25, %v15106_v55  ;;  %v16917_v25 = vld [vmem:[#allocation65_spill] sm:$0xff] }
 0xa87   : > { %v6339_v57 = vadd.f32 %v11333_v46, %v6275_v50  ;;  %v5912_v36 = vpop.f32.mrb[7].mxu0  ;;  %v6285_v50 = vmul.f32 %v14975_v22, %v14684_v16  ;;  %v6291_v55 = vmul.f32 %v14975_v22, %v16917_v25 }
 0xa88   : > { %v6337_v53 = vadd.f32 %v6273_v11, %v5912_v36 }
 0xa89   : > { %v6391_v30 = vpack.c.bf16 %v6339_v57, %v6338_v42 }
 0xa8a   : > { %v6390_v37 = vpack.c.bf16 %v6337_v53, %v6336_v23  ;;  %v6290_v53 = vmul.f32 %v14975_v22, %v14778_v34 }
 0xa8c   : > { %v11360_v54 = vpop.f32.mrb[8].mxu0  ;;  %11450 = vmatprep.mubr.bf16.mxu0 %v6390_v37  ;;  %v16916_v37 = vpack.c.bf16 %v15104_v61, %v15102_v13 }
 0xa8d   : > { %v6023_v24 = vpop.f32.mrb[9].mxu0  ;;  %11451 = vmatmul.mubr.bf16.gmra.mrb[44].mxu0 %v6391_v30  ;;  %v6350_v52 = vadd.f32 %v11360_v54, %v6286_v15 }
 0xa8e   : > { %v11361_v17 = vpop.f32.mrb[10].mxu0  ;;  %11454 = vmatprep.mubr.bf16.mxu0 %v16915_v10  ;;  %v6348_v11 = vadd.f32 %v6284_v41, %v6023_v24  ;;  %v16918_v10 = vld [vmem:[#allocation26_spill] sm:$0xff]  ;;  %v16919_v41 = vpack.c.bf16 %v15139_v48, %v15137_v44  ;;  %v16923_v44 = vld [vmem:[#allocation19_spill] sm:$0xff] }
 0xa8f   : > { %v6351_v26 = vadd.f32 %v11361_v17, %v6287_v4  ;;  %v6026_v46 = vpop.f32.mrb[11].mxu0  ;;  %v6288_v54 = vmul.f32 %v14975_v22, %v16918_v10  ;;  %v16920_v24 = vld [vmem:[#allocation22_spill] sm:$0xff]  ;;  %v16922_v10 = vpack.c.bf16 %v15135_v20, %v15133_v40  ;;  %v6303_v48 = vmul.f32 %v14975_v22, %v16923_v44  ;;  %v16926_v40 = vld [vmem:[#allocation27_spill] sm:$0xff]  ;;  %v16927_v44 = vld [vmem:[#allocation25_spill] sm:$0xff] }
 0xa90   : > { %v6349_v42 = vadd.f32 %v6285_v50, %v6026_v46  ;;  %v6289_v4 = vmul.f32 %v14975_v22, %v16920_v24 }
 0xa91   : > { %v6397_v57 = vpack.c.bf16 %v6351_v26, %v6350_v52 }
 0xa92   : > { %v6396_v36 = vpack.c.bf16 %v6349_v42, %v6348_v11  ;;  %v16921_v42 = vld [vmem:[#allocation21_spill] sm:$0xff] }
 0xa94   : > { %v11364_v23 = vpop.f32.mrb[12].mxu0 }
 0xa95   : > { %v6039_v30 = vpop.f32.mrb[13].mxu0  ;;  %11455 = vmatmul.mubr.bf16.gmra.mrb[48].mxu0 %v16916_v37  ;;  %v6354_v17 = vadd.f32 %v11364_v23, %v6290_v53  ;;  %v6302_v37 = vmul.f32 %v14975_v22, %v16921_v42 }
 0xa96   : > { %v11365_v15 = vpop.f32.mrb[14].mxu0  ;;  %11458 = vmatprep.mubr.bf16.mxu0 %v16919_v41  ;;  %v6352_v26 = vadd.f32 %v6288_v54, %v6039_v30  ;;  %v16924_v41 = vld [vmem:[#allocation59_spill] sm:$0xff]  ;;  %v16925_v30 = vld [vmem:[#allocation20_spill] sm:$0xff] }
 0xa97   : > { %v6355_v50 = vadd.f32 %v11365_v15, %v6291_v55  ;;  %v6042_v52 = vpop.f32.mrb[15].mxu0  ;;  %v6300_v23 = vmul.f32 %v14975_v22, %v16924_v41  ;;  %v6301_v55 = vmul.f32 %v14975_v22, %v16925_v30  ;;  %v6307_v41 = vmul.f32 %v14975_v22, %v16927_v44 }
 0xa98   : > { %v6353_v13 = vadd.f32 %v6289_v4, %v6042_v52 }
 0xa99   : > { %v6399_v61 = vpack.c.bf16 %v6355_v50, %v6354_v17 }
 0xa9a   : > { %v6398_v46 = vpack.c.bf16 %v6353_v13, %v6352_v26 }
 0xa9c   : > { %v11392_v11 = vpop.f32.mrb[16].mxu0 }
 0xa9d   : > { %v6153_v51 = vpop.f32.mrb[17].mxu0  ;;  %11459 = vmatmul.mubr.bf16.gmra.mrb[52].mxu0 %v16922_v10  ;;  %v6366_v54 = vadd.f32 %v11392_v11, %v6302_v37  ;;  %v6306_v10 = vmul.f32 %v14975_v22, %v16926_v40  ;;  %v16929_v11 = vld [vmem:[#allocation24_spill] sm:$0xff] }
 0xa9e   : > { %v11393_v53 = vpop.f32.mrb[18].mxu0  ;;  %11462 = vmatprep.mubr.bf16.mxu0 %v6396_v36  ;;  %v6364_v17 = vadd.f32 %v6300_v23, %v6153_v51  ;;  %v16928_v36 = vld [vmem:[#allocation23_spill] sm:$0xff]  ;;  %v6305_v51 = vmul.f32 %v14975_v22, %v16929_v11 }
 0xa9f   : > { %v6367_v15 = vadd.f32 %v11393_v53, %v6303_v48  ;;  %v6156_v4 = vpop.f32.mrb[19].mxu0  ;;  %v6304_v42 = vmul.f32 %v14975_v22, %v16928_v36  ;;  %v15374_v22 = vld [vmem:[%s16180_s6 + $0x2] ss:$0 sm:$0xff] }
 0xaa0   : > { %v6365_v50 = vadd.f32 %v6301_v55, %v6156_v4  ;;  %v16931_v4 = vpack.c.bf16 %v15166_v33, %v15164_v12 }
 0xaa1   : > { %v6405_v52 = vpack.c.bf16 %v6367_v15, %v6366_v54 }
 0xaa2   : > { %v6404_v26 = vpack.c.bf16 %v6365_v50, %v6364_v17 }
 0xaa4   : > { %v11396_v20 = vpop.f32.mrb[20].mxu0 }
 0xaa5   : > { %v6169_v13 = vpop.f32.mrb[21].mxu0  ;;  %11463 = vmatmul.mubr.bf16.gmra.mrb[56].mxu0 %v6397_v57  ;;  %v6370_v37 = vadd.f32 %v11396_v20, %v6306_v10  ;;  %v16930_v57 = vpack.c.bf16 %v15170_v7, %v15168_v56  ;;  %v16933_v7 = vpack.c.bf16 %v15192_v28, %v15190_v60 }
 0xaa6   : > { %v11397_v30 = vpop.f32.mrb[22].mxu0  ;;  %11466 = vmatprep.mubr.bf16.mxu0 %v6398_v46  ;;  %v6368_v53 = vadd.f32 %v6304_v42, %v6169_v13  ;;  %v16932_v46 = vpack.c.bf16 %v15196_v58, %v15194_v8 }
 0xaa7   : > { %v6371_v48 = vadd.f32 %v11397_v30, %v6307_v41  ;;  %v6172_v23 = vpop.f32.mrb[23].mxu0 }
 0xaa8   : > { %v6369_v55 = vadd.f32 %v6305_v51, %v6172_v23 }
 0xaa9   : > { %v6407_v54 = vpack.c.bf16 %v6371_v48, %v6370_v37 }
 0xaaa   : > { %v6406_v15 = vpack.c.bf16 %v6369_v55, %v6368_v53 }
 0xaad   : > { %11467 = vmatmul.mubr.bf16.gmra.mrb[60].mxu0 %v6399_v61 }
 0xaae   : > { %11470 = vmatprep.mubr.bf16.mxu0 %v16930_v57 }
 0xab5   : > { %11471 = vmatmul.mubr.bf16.gmra.mrb[64].mxu0 %v16931_v4 }
 0xab6   : > { %11474 = vmatprep.mubr.bf16.mxu0 %v16932_v46 }
 0xabc   : > { %v11432_v42 = vpop.f32.mrb[24].mxu0 }
 0xabd   : > { %v6528_v61 = vadd.f32 %v11432_v42, %v15374_v22  ;;  %v6519_v41 = vpop.f32.mrb[25].mxu0  ;;  %11475 = vmatmul.mubr.bf16.gmra.mrb[68].mxu0 %v16933_v7 }
 0xabe   : > { %v6520_v12 = vadd.f32 %v15374_v22, %v6519_v41  ;;  %v11433_v33 = vpop.f32.mrb[26].mxu0  ;;  %11478 = vmatprep.mubr.bf16.mxu0 %v6404_v26 }
 0xabf   : > { %v6531_v58 = vadd.f32 %v11433_v33, %v15374_v22  ;;  %v6522_v8 = vpop.f32.mrb[27].mxu0  ;;  %v6776_v30 = vmax.f32 %v6528_v61, 0.0  ;;  %v16934_v33 = vpack.c.bf16 %v15219_v0, %v15217_v9  ;;  %v16935_v9 = vpack.c.bf16 %v15215_v2, %v15213_v18 }
 0xac0   : > { %v6523_v56 = vadd.f32 %v15374_v22, %v6522_v8  ;;  %v6774_v50 = vmax.f32 %v6520_v12, 0.0 }
 0xac1   : > { %v6777_v17 = vmax.f32 %v6531_v58, 0.0 }
 0xac2   : > { %v6775_v20 = vmax.f32 %v6523_v56, 0.0 }
 0xac3   : > { %v6839_v10 = vpack.c.bf16 %v6777_v17, %v6776_v30 }
 0xac4   : > { %v6838_v13 = vpack.c.bf16 %v6775_v20, %v6774_v50  ;;  %v11436_v51 = vpop.f32.mrb[28].mxu0 }
 0xac5   : > { %v6544_v37 = vadd.f32 %v11436_v51, %v15374_v22  ;;  %v6535_v28 = vpop.f32.mrb[29].mxu0  ;;  %11479 = vmatmul.mubr.bf16.gmra.mrb[72].mxu0 %v6405_v52 }
 0xac6   : > { %v6536_v60 = vadd.f32 %v15374_v22, %v6535_v28  ;;  %v11437_v48 = vpop.f32.mrb[30].mxu0  ;;  %11482 = vmatprep.mubr.bf16.mxu0 %v6406_v15  ;;  %11510 = vmatprep.mubr.bf16.mxu1 %v6838_v13 }
 0xac7   : > { %v6547_v26 = vadd.f32 %v11437_v48, %v15374_v22  ;;  %v6538_v23 = vpop.f32.mrb[31].mxu0  ;;  %11511 = vmatmul.mubr.bf16.vlgmr.msra.gmra.mrb[12].mxu1 %v6839_v10  ;;  %v6780_v55 = vmax.f32 %v6544_v37, 0.0 }
 0xac8   : > { %v6539_v53 = vadd.f32 %v15374_v22, %v6538_v23  ;;  %v6778_v4 = vmax.f32 %v6536_v60, 0.0  ;;  %v16936_v60 = vpack.c.bf16 %v15245_v47, %v15243_v32 }
 0xac9   : > { %v6781_v57 = vmax.f32 %v6547_v26, 0.0 }
 0xaca   : > { %v6779_v46 = vmax.f32 %v6539_v53, 0.0 }
 0xacb   : > { %v6841_v42 = vpack.c.bf16 %v6781_v57, %v6780_v55 }
 0xacc   : > { %v6840_v61 = vpack.c.bf16 %v6779_v46, %v6778_v4  ;;  %v11440_v41 = vpop.f32.mrb[32].mxu0  ;;  %v16937_v46 = vpack.c.bf16 %v15241_v5, %v15239_v14 }
 0xacd   : > { %v6560_v52 = vadd.f32 %v11440_v41, %v15374_v22  ;;  %v6551_v7 = vpop.f32.mrb[33].mxu0  ;;  %11483 = vmatmul.mubr.bf16.gmra.mrb[76].mxu0 %v6407_v54 }
 0xace   : > { %v6552_v15 = vadd.f32 %v15374_v22, %v6551_v7  ;;  %v11441_v12 = vpop.f32.mrb[34].mxu0  ;;  %11486 = vmatprep.mubr.bf16.mxu0 %v16934_v33  ;;  %11514 = vmatprep.mubr.bf16.mxu1 %v6840_v61 }
 0xacf   : > { %v6563_v58 = vadd.f32 %v11441_v12, %v15374_v22  ;;  %v6554_v8 = vpop.f32.mrb[35].mxu0  ;;  %11515 = vmatmul.mubr.bf16.gmra.mrb[16].mxu1 %v6841_v42  ;;  %v6784_v30 = vmax.f32 %v6560_v52, 0.0 }
 0xad0   : > { %v6555_v56 = vadd.f32 %v15374_v22, %v6554_v8  ;;  %v6782_v50 = vmax.f32 %v6552_v15, 0.0 }
 0xad1   : > { %v6785_v17 = vmax.f32 %v6563_v58, 0.0 }
 0xad2   : > { %v6783_v20 = vmax.f32 %v6555_v56, 0.0 }
 0xad3   : > { %v6843_v10 = vpack.c.bf16 %v6785_v17, %v6784_v30 }
 0xad4   : > { %v6842_v54 = vpack.c.bf16 %v6783_v20, %v6782_v50  ;;  %v11444_v13 = vpop.f32.mrb[36].mxu0 }
 0xad5   : > { %v6576_v51 = vadd.f32 %v11444_v13, %v15374_v22  ;;  %v6567_v37 = vpop.f32.mrb[37].mxu0  ;;  %11487 = vmatmul.mubr.bf16.gmra.mrb[80].mxu0 %v16935_v9 }
 0xad6   : > { %v6568_v0 = vadd.f32 %v15374_v22, %v6567_v37  ;;  %v11445_v28 = vpop.f32.mrb[38].mxu0  ;;  %11490 = vmatprep.mubr.bf16.mxu0 %v16936_v60  ;;  %11518 = vmatprep.mubr.bf16.mxu1 %v6842_v54 }
 0xad7   : > { %v6579_v48 = vadd.f32 %v11445_v28, %v15374_v22  ;;  %v6570_v26 = vpop.f32.mrb[39].mxu0  ;;  %11519 = vmatmul.mubr.bf16.gmra.mrb[20].mxu1 %v6843_v10  ;;  %v6788_v53 = vmax.f32 %v6576_v51, 0.0 }
 0xad8   : > { %v6571_v23 = vadd.f32 %v15374_v22, %v6570_v26  ;;  %v6786_v57 = vmax.f32 %v6568_v0, 0.0 }
 0xad9   : > { %v6789_v55 = vmax.f32 %v6579_v48, 0.0 }
 0xada   : > { %v6787_v4 = vmax.f32 %v6571_v23, 0.0 }
 0xadb   : > { %v6845_v2 = vpack.c.bf16 %v6789_v55, %v6788_v53 }
 0xadc   : > { %v6844_v18 = vpack.c.bf16 %v6787_v4, %v6786_v57 }
 0xadd   : > { %11491 = vmatmul.mubr.bf16.gmra.mrb[84].mxu0 %v16937_v46 }
 0xade   : > { %11522 = vmatprep.mubr.bf16.mxu1 %v6844_v18  ;;  %11582 = vmatprep.mubr.msk.bf16.mxu0 %vm1453_vm2, %v14893_v1 }
 0xadf   : > { %11523 = vmatmul.mubr.bf16.gmra.mrb[24].mxu1 %v6845_v2 }
 0xb58   : > { %v11448_v32 = vpop.f32.mrb[40].mxu0 }
 0xb59   : > { %v6592_v47 = vadd.f32 %v11448_v32, %v15374_v22  ;;  %v6583_v42 = vpop.f32.mrb[41].mxu0 }
 0xb5a   : > { %v6584_v61 = vadd.f32 %v15374_v22, %v6583_v42  ;;  %v11449_v41 = vpop.f32.mrb[42].mxu0 }
 0xb5b   : > { %v6595_v52 = vadd.f32 %v11449_v41, %v15374_v22  ;;  %v6586_v7 = vpop.f32.mrb[43].mxu0  ;;  %v6792_v12 = vmax.f32 %v6592_v47, 0.0 }
 0xb5c   : > { %v6587_v15 = vadd.f32 %v15374_v22, %v6586_v7  ;;  %v6790_v5 = vmax.f32 %v6584_v61, 0.0 }
 0xb5d   : > { %v6793_v14 = vmax.f32 %v6595_v52, 0.0 }
 0xb5e   : > { %v6791_v33 = vmax.f32 %v6587_v15, 0.0 }
 0xb5f   : > { %v6847_v58 = vpack.c.bf16 %v6793_v14, %v6792_v12 }
 0xb60   : > { %v6846_v8 = vpack.c.bf16 %v6791_v33, %v6790_v5  ;;  %v11452_v1 = vpop.f32.mrb[44].mxu0 }
 0xb61   : > { %v6608_v56 = vadd.f32 %v11452_v1, %v15374_v22  ;;  %v6599_v30 = vpop.f32.mrb[45].mxu0 }
 0xb62   : > { %v6600_v17 = vadd.f32 %v15374_v22, %v6599_v30  ;;  %v11453_v50 = vpop.f32.mrb[46].mxu0  ;;  %11526 = vmatprep.mubr.bf16.mxu1 %v6846_v8 }
 0xb63   : > { %v6611_v20 = vadd.f32 %v11453_v50, %v15374_v22  ;;  %v6602_v10 = vpop.f32.mrb[47].mxu0  ;;  %11527 = vmatmul.mubr.bf16.gmra.mrb[28].mxu1 %v6847_v58  ;;  %v6796_v13 = vmax.f32 %v6608_v56, 0.0 }
 0xb64   : > { %v6603_v54 = vadd.f32 %v15374_v22, %v6602_v10  ;;  %v6794_v37 = vmax.f32 %v6600_v17, 0.0 }
 0xb65   : > { %v6797_v51 = vmax.f32 %v6611_v20, 0.0 }
 0xb66   : > { %v6795_v9 = vmax.f32 %v6603_v54, 0.0 }
 0xb67   : > { %v6849_v0 = vpack.c.bf16 %v6797_v51, %v6796_v13 }
 0xb68   : > { %v6848_v28 = vpack.c.bf16 %v6795_v9, %v6794_v37  ;;  %v11456_v60 = vpop.f32.mrb[48].mxu0 }
 0xb69   : > { %v6624_v48 = vadd.f32 %v11456_v60, %v15374_v22  ;;  %v6615_v26 = vpop.f32.mrb[49].mxu0 }
 0xb6a   : > { %v6616_v23 = vadd.f32 %v15374_v22, %v6615_v26  ;;  %v11457_v53 = vpop.f32.mrb[50].mxu0  ;;  %11530 = vmatprep.mubr.bf16.mxu1 %v6848_v28 }
 0xb6b   : > { %v6627_v55 = vadd.f32 %v11457_v53, %v15374_v22  ;;  %v6618_v57 = vpop.f32.mrb[51].mxu0  ;;  %11531 = vmatmul.mubr.bf16.gmra.mrb[32].mxu1 %v6849_v0  ;;  %v6800_v2 = vmax.f32 %v6624_v48, 0.0 }
 0xb6c   : > { %v6619_v4 = vadd.f32 %v15374_v22, %v6618_v57  ;;  %v6798_v46 = vmax.f32 %v6616_v23, 0.0 }
 0xb6d   : > { %v6801_v18 = vmax.f32 %v6627_v55, 0.0 }
 0xb6e   : > { %v6799_v32 = vmax.f32 %v6619_v4, 0.0 }
 0xb6f   : > { %v6851_v47 = vpack.c.bf16 %v6801_v18, %v6800_v2 }
 0xb70   : > { %v6850_v42 = vpack.c.bf16 %v6799_v32, %v6798_v46  ;;  %v11460_v61 = vpop.f32.mrb[52].mxu0 }
 0xb71   : > { %v6640_v41 = vadd.f32 %v11460_v61, %v15374_v22  ;;  %v6631_v52 = vpop.f32.mrb[53].mxu0 }
 0xb72   : > { %v6632_v7 = vadd.f32 %v15374_v22, %v6631_v52  ;;  %v11461_v15 = vpop.f32.mrb[54].mxu0  ;;  %11534 = vmatprep.mubr.bf16.mxu1 %v6850_v42 }
 0xb73   : > { %v6643_v12 = vadd.f32 %v11461_v15, %v15374_v22  ;;  %v6634_v14 = vpop.f32.mrb[55].mxu0  ;;  %11535 = vmatmul.mubr.bf16.gmra.mrb[36].mxu1 %v6851_v47  ;;  %v6804_v33 = vmax.f32 %v6640_v41, 0.0 }
 0xb74   : > { %v6635_v5 = vadd.f32 %v15374_v22, %v6634_v14  ;;  %v6802_v8 = vmax.f32 %v6632_v7, 0.0 }
 0xb75   : > { %v6805_v58 = vmax.f32 %v6643_v12, 0.0 }
 0xb76   : > { %v6803_v1 = vmax.f32 %v6635_v5, 0.0 }
 0xb77   : > { %v6853_v56 = vpack.c.bf16 %v6805_v58, %v6804_v33 }
 0xb78   : > { %v6852_v30 = vpack.c.bf16 %v6803_v1, %v6802_v8  ;;  %v11464_v17 = vpop.f32.mrb[56].mxu0 }
 0xb79   : > { %v6656_v50 = vadd.f32 %v11464_v17, %v15374_v22  ;;  %v6647_v20 = vpop.f32.mrb[57].mxu0 }
 0xb7a   : > { %v6648_v10 = vadd.f32 %v15374_v22, %v6647_v20  ;;  %v11465_v54 = vpop.f32.mrb[58].mxu0  ;;  %11538 = vmatprep.mubr.bf16.mxu1 %v6852_v30 }
 0xb7b   : > { %v6659_v13 = vadd.f32 %v11465_v54, %v15374_v22  ;;  %v6650_v51 = vpop.f32.mrb[59].mxu0  ;;  %11539 = vmatmul.mubr.bf16.gmra.mrb[40].mxu1 %v6853_v56  ;;  %v6808_v9 = vmax.f32 %v6656_v50, 0.0 }
 0xb7c   : > { %v6651_v37 = vadd.f32 %v15374_v22, %v6650_v51  ;;  %v6806_v28 = vmax.f32 %v6648_v10, 0.0 }
 0xb7d   : > { %v6809_v0 = vmax.f32 %v6659_v13, 0.0 }
 0xb7e   : > { %v6807_v60 = vmax.f32 %v6651_v37, 0.0 }
 0xb7f   : > { %v6855_v48 = vpack.c.bf16 %v6809_v0, %v6808_v9 }
 0xb80   : > { %v6854_v26 = vpack.c.bf16 %v6807_v60, %v6806_v28  ;;  %v11468_v23 = vpop.f32.mrb[60].mxu0 }
 0xb81   : > { %v6672_v53 = vadd.f32 %v11468_v23, %v15374_v22  ;;  %v6663_v55 = vpop.f32.mrb[61].mxu0 }
 0xb82   : > { %v6664_v57 = vadd.f32 %v15374_v22, %v6663_v55  ;;  %v11469_v4 = vpop.f32.mrb[62].mxu0  ;;  %11542 = vmatprep.mubr.bf16.mxu1 %v6854_v26 }
 0xb83   : > { %v6675_v2 = vadd.f32 %v11469_v4, %v15374_v22  ;;  %v6666_v18 = vpop.f32.mrb[63].mxu0  ;;  %11543 = vmatmul.mubr.bf16.gmra.mrb[44].mxu1 %v6855_v48  ;;  %v6812_v32 = vmax.f32 %v6672_v53, 0.0  ;;  %v15444_v4 = vld [vmem:[%s16182_s8 + $0x2] ss:$0 sm:$0xff] }
 0xb84   : > { %v6667_v46 = vadd.f32 %v15374_v22, %v6666_v18  ;;  %v6810_v42 = vmax.f32 %v6664_v57, 0.0 }
 0xb85   : > { %v6813_v47 = vmax.f32 %v6675_v2, 0.0 }
 0xb86   : > { %v6811_v61 = vmax.f32 %v6667_v46, 0.0 }
 0xb87   : > { %v6857_v41 = vpack.c.bf16 %v6813_v47, %v6812_v32 }
 0xb88   : > { %v6856_v52 = vpack.c.bf16 %v6811_v61, %v6810_v42  ;;  %v11472_v7 = vpop.f32.mrb[64].mxu0 }
 0xb89   : > { %v6688_v15 = vadd.f32 %v11472_v7, %v15374_v22  ;;  %v6679_v12 = vpop.f32.mrb[65].mxu0 }
 0xb8a   : > { %v6680_v14 = vadd.f32 %v15374_v22, %v6679_v12  ;;  %v11473_v5 = vpop.f32.mrb[66].mxu0  ;;  %11546 = vmatprep.mubr.bf16.mxu1 %v6856_v52 }
 0xb8b   : > { %v6691_v33 = vadd.f32 %v11473_v5, %v15374_v22  ;;  %v6682_v58 = vpop.f32.mrb[67].mxu0  ;;  %11547 = vmatmul.mubr.bf16.gmra.mrb[48].mxu1 %v6857_v41  ;;  %v6816_v1 = vmax.f32 %v6688_v15, 0.0 }
 0xb8c   : > { %v6683_v8 = vadd.f32 %v15374_v22, %v6682_v58  ;;  %v6814_v30 = vmax.f32 %v6680_v14, 0.0 }
 0xb8d   : > { %v6817_v56 = vmax.f32 %v6691_v33, 0.0 }
 0xb8e   : > { %v6815_v17 = vmax.f32 %v6683_v8, 0.0 }
 0xb8f   : > { %v6859_v50 = vpack.c.bf16 %v6817_v56, %v6816_v1 }
 0xb90   : > { %v6858_v20 = vpack.c.bf16 %v6815_v17, %v6814_v30  ;;  %v11476_v10 = vpop.f32.mrb[68].mxu0 }
 0xb91   : > { %v6704_v54 = vadd.f32 %v11476_v10, %v15374_v22  ;;  %v6695_v13 = vpop.f32.mrb[69].mxu0 }
 0xb92   : > { %v6696_v51 = vadd.f32 %v15374_v22, %v6695_v13  ;;  %v11477_v37 = vpop.f32.mrb[70].mxu0  ;;  %11550 = vmatprep.mubr.bf16.mxu1 %v6858_v20 }
 0xb93   : > { %v6707_v9 = vadd.f32 %v11477_v37, %v15374_v22  ;;  %v6698_v0 = vpop.f32.mrb[71].mxu0  ;;  %11551 = vmatmul.mubr.bf16.gmra.mrb[52].mxu1 %v6859_v50  ;;  %v6820_v60 = vmax.f32 %v6704_v54, 0.0 }
 0xb94   : > { %v6699_v28 = vadd.f32 %v15374_v22, %v6698_v0  ;;  %v6818_v26 = vmax.f32 %v6696_v51, 0.0 }
 0xb95   : > { %v6821_v48 = vmax.f32 %v6707_v9, 0.0 }
 0xb96   : > { %v6819_v23 = vmax.f32 %v6699_v28, 0.0 }
 0xb97   : > { %v6861_v53 = vpack.c.bf16 %v6821_v48, %v6820_v60 }
 0xb98   : > { %v6860_v55 = vpack.c.bf16 %v6819_v23, %v6818_v26  ;;  %v11480_v57 = vpop.f32.mrb[72].mxu0 }
 0xb99   : > { %v6720_v2 = vadd.f32 %v11480_v57, %v15374_v22  ;;  %v6711_v18 = vpop.f32.mrb[73].mxu0 }
 0xb9a   : > { %v6712_v46 = vadd.f32 %v15374_v22, %v6711_v18  ;;  %v11481_v32 = vpop.f32.mrb[74].mxu0  ;;  %v11512_v47 = vpop.f32.mrb[12].mxu1  ;;  %11554 = vmatprep.mubr.bf16.mxu1 %v6860_v55 }
 0xb9b   : > { %v6723_v42 = vadd.f32 %v11481_v32, %v15374_v22  ;;  %v6986_v61 = vadd.f32 %v11512_v47, %v15444_v4  ;;  %v6714_v41 = vpop.f32.mrb[75].mxu0  ;;  %v6977_v52 = vpop.f32.mrb[13].mxu1  ;;  %11555 = vmatmul.mubr.bf16.gmra.mrb[56].mxu1 %v6861_v53  ;;  %v6824_v14 = vmax.f32 %v6720_v2, 0.0 }
 0xb9c   : > { %v6715_v7 = vadd.f32 %v15374_v22, %v6714_v41  ;;  %v6978_v15 = vadd.f32 %v15444_v4, %v6977_v52  ;;  %v11513_v12 = vpop.f32.mrb[14].mxu1  ;;  %v6822_v1 = vmax.f32 %v6712_v46, 0.0 }
 0xb9d   : > { %v6825_v5 = vmax.f32 %v6723_v42, 0.0  ;;  %v7234_v33 = vmax.f32 %v6986_v61, 0.0  ;;  %v6989_v58 = vadd.f32 %v11513_v12, %v15444_v4  ;;  %v6980_v8 = vpop.f32.mrb[15].mxu1 }
 0xb9e   : > { %v6823_v56 = vmax.f32 %v6715_v7, 0.0  ;;  %v7232_v30 = vmax.f32 %v6978_v15, 0.0  ;;  %v6981_v17 = vadd.f32 %v15444_v4, %v6980_v8 }
 0xb9f   : > { %v6863_v50 = vpack.c.bf16 %v6825_v5, %v6824_v14  ;;  %v7235_v20 = vmax.f32 %v6989_v58, 0.0  ;;  %v15455_v51 = vadd.f32 %v7234_v33, %v14451_v62 }
 0xba0   : > { %v6862_v10 = vpack.c.bf16 %v6823_v56, %v6822_v1  ;;  %v7233_v54 = vmax.f32 %v6981_v17, 0.0  ;;  %v11484_v13 = vpop.f32.mrb[76].mxu0  ;;  %v15462_v28 = vadd.f32 %v7232_v30, %v14422_v49  ;;  %v16938_v1 = vld [vmem:[#allocation37_spill] sm:$0xff] }
 0xba1   : > { %v15458_v37 = vadd.f32 %v7235_v20, %v14425_v59  ;;  %v6736_v9 = vadd.f32 %v11484_v13, %v15374_v22  ;;  %v6727_v0 = vpop.f32.mrb[77].mxu0 }
 0xba2   : > { %v15465_v60 = vadd.f32 %v7233_v54, %v16877_v19  ;;  %v6728_v48 = vadd.f32 %v15374_v22, %v6727_v0  ;;  %v11485_v26 = vpop.f32.mrb[78].mxu0  ;;  %v11516_v23 = vpop.f32.mrb[16].mxu1  ;;  %11558 = vmatprep.mubr.bf16.mxu1 %v6862_v10  ;;  %v16940_v10 = vld [vmem:[#allocation12_spill] sm:$0xff] }
 0xba3   : > { %v6739_v62 = vadd.f32 %v11485_v26, %v15374_v22  ;;  %v7002_v53 = vadd.f32 %v11516_v23, %v15444_v4  ;;  %v6730_v59 = vpop.f32.mrb[79].mxu0  ;;  %v6993_v55 = vpop.f32.mrb[17].mxu1  ;;  %11559 = vmatmul.mubr.bf16.gmra.mrb[60].mxu1 %v6863_v50  ;;  %v7489_v57 = vpack.c.bf16 %v15458_v37, %v15455_v51  ;;  %v6828_v46 = vmax.f32 %v6736_v9, 0.0  ;;  %v16939_v50 = vld [vmem:[#allocation53_spill] sm:$0xff] }
 0xba4   : > { %v6731_v49 = vadd.f32 %v15374_v22, %v6730_v59  ;;  %v6994_v19 = vadd.f32 %v15444_v4, %v6993_v55  ;;  %v11517_v2 = vpop.f32.mrb[18].mxu1  ;;  %v7488_v18 = vpack.c.bf16 %v15465_v60, %v15462_v28  ;;  %v6826_v41 = vmax.f32 %v6728_v48, 0.0 }
 0xba5   : > { %v6829_v32 = vmax.f32 %v6739_v62, 0.0  ;;  %v7238_v47 = vmax.f32 %v7002_v53, 0.0  ;;  %v7005_v42 = vadd.f32 %v11517_v2, %v15444_v4  ;;  %v6996_v61 = vpop.f32.mrb[19].mxu1 }
 0xba6   : > { %v6827_v52 = vmax.f32 %v6731_v49, 0.0  ;;  %v7236_v7 = vmax.f32 %v6994_v19, 0.0  ;;  %v6997_v15 = vadd.f32 %v15444_v4, %v6996_v61  ;;  %11574 = vmatprep.subr.bf16.mxu0 %v7488_v18 }
 0xba7   : > { %v6865_v12 = vpack.c.bf16 %v6829_v32, %v6828_v46  ;;  %v7239_v14 = vmax.f32 %v7005_v42, 0.0  ;;  %11575 = vmatpush3.bf16.msra.mxu0 %v7488_v18  ;;  %v15479_v8 = vadd.f32 %v7238_v47, %v16878_v29 }
 0xba8   : > { %v6864_v5 = vpack.c.bf16 %v6827_v52, %v6826_v41  ;;  %v7237_v33 = vmax.f32 %v6997_v15, 0.0  ;;  %v11488_v58 = vpop.f32.mrb[80].mxu0  ;;  %11576 = vmatprep.subr.bf16.mxu0 %v7489_v57  ;;  %v15486_v20 = vadd.f32 %v7236_v7, %v16939_v50 }
 0xba9   : > { %v15482_v56 = vadd.f32 %v7239_v14, %v16938_v1  ;;  %v6752_v30 = vadd.f32 %v11488_v58, %v15374_v22  ;;  %v6743_v17 = vpop.f32.mrb[81].mxu0  ;;  %v16941_v14 = vld [vmem:[#allocation9_spill] sm:$0xff] }
 0xbaa   : > { %v15489_v54 = vadd.f32 %v7237_v33, %v16940_v10  ;;  %v6744_v13 = vadd.f32 %v15374_v22, %v6743_v17  ;;  %v11489_v9 = vpop.f32.mrb[82].mxu0  ;;  %v11520_v0 = vpop.f32.mrb[20].mxu1  ;;  %11562 = vmatprep.mubr.bf16.mxu1 %v6864_v5  ;;  %v16942_v33 = vld [vmem:[#allocation43_spill] sm:$0xff]  ;;  %v16943_v17 = vld [vmem:[#allocation49_spill] sm:$0xff]  ;;  %v16944_v10 = vld [vmem:[#allocation46_spill] sm:$0xff] }
 0xbab   : > { %v6755_v29 = vadd.f32 %v11489_v9, %v15374_v22  ;;  %v7018_v48 = vadd.f32 %v11520_v0, %v15444_v4  ;;  %v6746_v26 = vpop.f32.mrb[83].mxu0  ;;  %v7009_v23 = vpop.f32.mrb[21].mxu1  ;;  %11563 = vmatmul.mubr.bf16.gmra.mrb[64].mxu1 %v6865_v12  ;;  %11577 = vmatpush3.bf16.msra.mxu0 %v7489_v57  ;;  %v7491_v62 = vpack.c.bf16 %v15482_v56, %v15479_v8  ;;  %v6832_v19 = vmax.f32 %v6752_v30, 0.0 }
 0xbac   : > { %v6747_v53 = vadd.f32 %v15374_v22, %v6746_v26  ;;  %v7010_v59 = vadd.f32 %v15444_v4, %v7009_v23  ;;  %v11521_v55 = vpop.f32.mrb[22].mxu1  ;;  %v7490_v49 = vpack.c.bf16 %v15489_v54, %v15486_v20  ;;  %v6830_v47 = vmax.f32 %v6744_v13, 0.0 }
 0xbad   : > { %v6833_v2 = vmax.f32 %v6755_v29, 0.0  ;;  %v7242_v18 = vmax.f32 %v7018_v48, 0.0  ;;  %v7021_v46 = vadd.f32 %v11521_v55, %v15444_v4  ;;  %v7012_v32 = vpop.f32.mrb[23].mxu1 }
 0xbae   : > { %v6831_v42 = vmax.f32 %v6747_v53, 0.0  ;;  %v7240_v57 = vmax.f32 %v7010_v59, 0.0  ;;  %v7013_v61 = vadd.f32 %v15444_v4, %v7012_v32  ;;  %11578 = vmatprep.subr.bf16.mxu0 %v7490_v49 }
 0xbaf   : > { %v6867_v41 = vpack.c.bf16 %v6833_v2, %v6832_v19  ;;  %v7243_v52 = vmax.f32 %v7021_v46, 0.0  ;;  %11579 = vmatpush3.bf16.msra.mxu0 %v7490_v49  ;;  %v15503_v5 = vadd.f32 %v7242_v18, %v16941_v14 }
 0xbb0   : > { %v6866_v7 = vpack.c.bf16 %v6831_v42, %v6830_v47  ;;  %v7241_v15 = vmax.f32 %v7013_v61, 0.0  ;;  %v11492_v12 = vpop.f32.mrb[84].mxu0  ;;  %11580 = vmatprep.subr.bf16.mxu0 %v7491_v62  ;;  %v15510_v50 = vadd.f32 %v7240_v57, %v16943_v17 }
 0xbb1   : > { %v15506_v58 = vadd.f32 %v7243_v52, %v16942_v33  ;;  %v6768_v1 = vadd.f32 %v11492_v12, %v15374_v22  ;;  %v6759_v30 = vpop.f32.mrb[85].mxu0  ;;  %v12135_v52 = vld [vmem:[%s12461_s29 + $0x8] sm:$0xff]  }
 0xbb2   : > { %v15513_v13 = vadd.f32 %v7241_v15, %v16944_v10  ;;  %v6760_v9 = vadd.f32 %v15374_v22, %v6759_v30  ;;  %v11493_v0 = vpop.f32.mrb[86].mxu0  ;;  %v11524_v29 = vpop.f32.mrb[24].mxu1  ;;  %11566 = vmatprep.mubr.bf16.mxu1 %v6866_v7  ;;  %v12136_v15 = vld [vmem:[%s12461_s29 + $0x10] sm:$0xff]   ;;  %v16945_v33 = vld [vmem:[#allocation56_spill] sm:$0xff] }
 0xbb3   : > { %v6771_v48 = vadd.f32 %v11493_v0, %v15374_v22  ;;  %v7034_v26 = vadd.f32 %v11524_v29, %v15444_v4  ;;  %v6762_v23 = vpop.f32.mrb[87].mxu0  ;;  %v7025_v53 = vpop.f32.mrb[25].mxu1  ;;  %11567 = vmatmul.mubr.bf16.gmra.mrb[68].mxu1 %v6867_v41  ;;  %11581 = vmatpush3.bf16.msra.mxu0 %v7491_v62  ;;  %v7493_v59 = vpack.c.bf16 %v15506_v58, %v15503_v5  ;;  %v6836_v18 = vmax.f32 %v6768_v1, 0.0  ;;  %v16946_v30 = vld [vmem:[#allocation57_spill] sm:$0xff]  ;;  %v16947_v10 = vld [vmem:[#allocation16_spill] sm:$0xff]  ;;  %v16948_v0 = vld [vmem:[#allocation39_spill] sm:$0xff] }
 0xbb4   : > { %v6763_v55 = vadd.f32 %v15374_v22, %v6762_v23  ;;  %v7026_v49 = vadd.f32 %v15444_v4, %v7025_v53  ;;  %v11525_v19 = vpop.f32.mrb[26].mxu1  ;;  %v7492_v2 = vpack.c.bf16 %v15513_v13, %v15510_v50  ;;  %v6834_v57 = vmax.f32 %v6760_v9, 0.0  ;;  %v12137_v23 = vld [vmem:[%s12461_s29 + $0x20] sm:$0xff]   ;;  %v12138_v53 = vld [vmem:[%s12461_s29 + $0x18] sm:$0xff]  }
 0xbb5   : > { %v6837_v46 = vmax.f32 %v6771_v48, 0.0  ;;  %v7246_v32 = vmax.f32 %v7034_v26, 0.0  ;;  %v7037_v47 = vadd.f32 %v11525_v19, %v15444_v4  ;;  %v7028_v42 = vpop.f32.mrb[27].mxu1  ;;  %v12142_v19 = vld [vmem:[%s12461_s29 + $0x38] sm:$0xff]  }
 0xbb6   : > { %v6835_v62 = vmax.f32 %v6763_v55, 0.0  ;;  %v7244_v61 = vmax.f32 %v7026_v49, 0.0  ;;  %v7029_v41 = vadd.f32 %v15444_v4, %v7028_v42  ;;  %11583 = vmatmul.mubr.msk.bf16.vlgmr.msra.gmra.mrb[88].mxu0 %vm1453_vm2, %v12135_v52  ;;  %11590 = vmatprep.subr.bf16.mxu1 %v7492_v2  ;;  %v12139_v55 = vld [vmem:[%s12461_s29 + $0x40] sm:$0xff]   ;;  %v12140_v49 = vld [vmem:[%s12461_s29 + $0x28] sm:$0xff]  }
 0xbb7   : > { %v6869_v22 = vpack.c.bf16 %v6837_v46, %v6836_v18  ;;  %v7247_v7 = vmax.f32 %v7037_v47, 0.0  ;;  %11591 = vmatpush3.bf16.msra.mxu1 %v7492_v2  ;;  %11586 = vmatprep.mubr.msk.bf16.mxu0 %vm1453_vm2, %v12136_v15  ;;  %v15531_v1 = vadd.f32 %v7246_v32, %v16945_v33  ;;  %v12143_v2 = vld [vmem:[%s12461_s29 + $0x60] sm:$0xff]  }
 0xbb8   : > { %v6868_v12 = vpack.c.bf16 %v6835_v62, %v6834_v57  ;;  %v7245_v14 = vmax.f32 %v7029_v41, 0.0  ;;  %11592 = vmatprep.subr.bf16.mxu1 %v7493_v59  ;;  %v15537_v9 = vadd.f32 %v7244_v61, %v16947_v10 }
 0xbb9   : > { %v15534_v17 = vadd.f32 %v7247_v7, %v16946_v30 }
 0xbba   : > { %v15540_v29 = vadd.f32 %v7245_v14, %v16948_v0  ;;  %11570 = vmatprep.mubr.bf16.mxu1 %v6868_v12 }
 0xbbb   : > { %11571 = vmatmul.mubr.bf16.gmra.mrb[72].mxu1 %v6869_v22  ;;  %v7495_v48 = vpack.c.bf16 %v15534_v17, %v15531_v1 }
 0xbbc   : > { %11593 = vmatpush3.bf16.msra.mxu1 %v7493_v59  ;;  %v7494_v26 = vpack.c.bf16 %v15540_v29, %v15537_v9  ;;  %11598 = vmatprep.mubr.msk.bf16.mxu1 %vm1453_vm2, %v12137_v23  ;;  %v12141_v59 = vld [vmem:[%s12461_s29 + $0x30] sm:$0xff]  }
 0xbbe   : > { %11587 = vmatmul.mubr.msk.bf16.gmra.mrb[92].mxu0 %vm1453_vm2, %v12138_v53  ;;  %11594 = vmatprep.subr.bf16.mxu1 %v7494_v26 }
 0xbbf   : > { %11614 = vmatprep.mubr.msk.bf16.mxu0 %vm1453_vm2, %v12139_v55 }
 0xbc0   : > { %11595 = vmatpush3.bf16.msra.mxu1 %v7494_v26 }
 0xbc1   : > { %11596 = vmatprep.subr.bf16.mxu1 %v7495_v48 }
 0xbc4   : > { %11597 = vmatpush3.bf16.msra.mxu1 %v7495_v48 }
 0xbc7   : > { %11599 = vmatmul.mubr.msk.bf16.vlgmr.msra.gmra.mrb[76].mxu1 %vm1453_vm2, %v12140_v49 }
 0xbc8   : > { %11602 = vmatprep.mubr.msk.bf16.mxu1 %vm1453_vm2, %v12141_v59 }
 0xbcf   : > { %11603 = vmatmul.mubr.msk.bf16.gmra.mrb[80].mxu1 %vm1453_vm2, %v12142_v19 }
 0xbd0   : > { %11630 = vmatprep.mubr.msk.bf16.mxu1 %vm1453_vm2, %v12143_v2 }
 0xc36   : > { %v11528_v18 = vpop.f32.mrb[28].mxu1 }
 0xc37   : > { %v7050_v46 = vadd.f32 %v11528_v18, %v15444_v4  ;;  %v7041_v32 = vpop.f32.mrb[29].mxu1 }
 0xc38   : > { %v7042_v47 = vadd.f32 %v15444_v4, %v7041_v32  ;;  %v11529_v42 = vpop.f32.mrb[30].mxu1 }
 0xc39   : > { %v7250_v57 = vmax.f32 %v7050_v46, 0.0  ;;  %v7053_v62 = vadd.f32 %v11529_v42, %v15444_v4  ;;  %v7044_v61 = vpop.f32.mrb[31].mxu1 }
 0xc3a   : > { %v7248_v41 = vmax.f32 %v7042_v47, 0.0  ;;  %v7045_v52 = vadd.f32 %v15444_v4, %v7044_v61 }
 0xc3b   : > { %v7251_v22 = vmax.f32 %v7053_v62, 0.0  ;;  %v15565_v15 = vadd.f32 %v7250_v57, %v16907_v27 }
 0xc3c   : > { %v7249_v7 = vmax.f32 %v7045_v52, 0.0  ;;  %v15571_v14 = vadd.f32 %v7248_v41, %v16909_v45 }
 0xc3d   : > { %v15568_v12 = vadd.f32 %v7251_v22, %v16908_v43 }
 0xc3e   : > { %v15574_v33 = vadd.f32 %v7249_v7, %v16910_v3  ;;  %v11532_v30 = vpop.f32.mrb[32].mxu1 }
 0xc3f   : > { %v7066_v10 = vadd.f32 %v11532_v30, %v15444_v4  ;;  %v7057_v0 = vpop.f32.mrb[33].mxu1  ;;  %v7497_v48 = vpack.c.bf16 %v15568_v12, %v15565_v15  ;;  %v16949_v30 = vld [vmem:[#allocation50_spill] sm:$0xff] }
 0xc40   : > { %v7058_v26 = vadd.f32 %v15444_v4, %v7057_v0  ;;  %v11533_v27 = vpop.f32.mrb[34].mxu1  ;;  %v7496_v43 = vpack.c.bf16 %v15574_v33, %v15571_v14  ;;  %v16950_v0 = vld [vmem:[#allocation47_spill] sm:$0xff] }
 0xc41   : > { %v7254_v23 = vmax.f32 %v7066_v10, 0.0  ;;  %v7069_v45 = vadd.f32 %v11533_v27, %v15444_v4  ;;  %v7060_v53 = vpop.f32.mrb[35].mxu1 }
 0xc42   : > { %v7252_v55 = vmax.f32 %v7058_v26, 0.0  ;;  %v7061_v3 = vadd.f32 %v15444_v4, %v7060_v53  ;;  %11606 = vmatprep.subr.bf16.mxu0 %v7496_v43  ;;  %v16951_v26 = vld [vmem:[#allocation45_spill] sm:$0xff] }
 0xc43   : > { %v7255_v49 = vmax.f32 %v7069_v45, 0.0  ;;  %11607 = vmatpush3.bf16.msra.mxu0 %v7496_v43  ;;  %v15585_v19 = vadd.f32 %v7254_v23, %v16911_v39  ;;  %v16952_v43 = vld [vmem:[#allocation41_spill] sm:$0xff] }
 0xc44   : > { %v7253_v59 = vmax.f32 %v7061_v3, 0.0  ;;  %11608 = vmatprep.subr.bf16.mxu0 %v7497_v48  ;;  %v15591_v18 = vadd.f32 %v7252_v55, %v16913_v31 }
 0xc45   : > { %v15588_v2 = vadd.f32 %v7255_v49, %v16912_v38 }
 0xc46   : > { %v15594_v46 = vadd.f32 %v7253_v59, %v16914_v6  ;;  %v11536_v32 = vpop.f32.mrb[36].mxu1 }
 0xc47   : > { %v7082_v47 = vadd.f32 %v11536_v32, %v15444_v4  ;;  %v7073_v42 = vpop.f32.mrb[37].mxu1  ;;  %11609 = vmatpush3.bf16.msra.mxu0 %v7497_v48  ;;  %v7499_v57 = vpack.c.bf16 %v15588_v2, %v15585_v19 }
 0xc48   : > { %v7074_v39 = vadd.f32 %v15444_v4, %v7073_v42  ;;  %v11537_v62 = vpop.f32.mrb[38].mxu1  ;;  %v7498_v38 = vpack.c.bf16 %v15594_v46, %v15591_v18 }
 0xc49   : > { %v7258_v61 = vmax.f32 %v7082_v47, 0.0  ;;  %v7085_v31 = vadd.f32 %v11537_v62, %v15444_v4  ;;  %v7076_v41 = vpop.f32.mrb[39].mxu1 }
 0xc4a   : > { %v7256_v6 = vmax.f32 %v7074_v39, 0.0  ;;  %v7077_v52 = vadd.f32 %v15444_v4, %v7076_v41  ;;  %11610 = vmatprep.subr.bf16.mxu0 %v7498_v38 }
 0xc4b   : > { %v7259_v22 = vmax.f32 %v7085_v31, 0.0  ;;  %11611 = vmatpush3.bf16.msra.mxu0 %v7498_v38  ;;  %v15605_v10 = vadd.f32 %v7258_v61, %v16949_v30  ;;  %v12144_v61 = vld [vmem:[%s12461_s29 + $0x48] sm:$0xff]   ;;  %v12145_v31 = vld [vmem:[%s12461_s29 + $0x50] sm:$0xff]  }
 0xc4c   : > { %v7257_v7 = vmax.f32 %v7077_v52, 0.0  ;;  %11612 = vmatprep.subr.bf16.mxu0 %v7499_v57  ;;  %v15611_v27 = vadd.f32 %v7256_v6, %v16951_v26  ;;  %v16953_v6 = vld [vmem:[#allocation29_spill] sm:$0xff]  ;;  %v16956_v26 = vld [vmem:[#allocation14_spill] sm:$0xff] }
 0xc4d   : > { %v15608_v48 = vadd.f32 %v7259_v22, %v16950_v0  ;;  %v16954_v22 = vld [vmem:[#allocation15_spill] sm:$0xff]  ;;  %v16955_v30 = vld [vmem:[#allocation17_spill] sm:$0xff] }
 0xc4e   : > { %v15614_v23 = vadd.f32 %v7257_v7, %v16952_v43  ;;  %v11540_v45 = vpop.f32.mrb[40].mxu1 }
 0xc4f   : > { %v7098_v53 = vadd.f32 %v11540_v45, %v15444_v4  ;;  %v7089_v55 = vpop.f32.mrb[41].mxu1  ;;  %11613 = vmatpush3.bf16.msra.mxu0 %v7499_v57  ;;  %v7501_v3 = vpack.c.bf16 %v15608_v48, %v15605_v10 }
 0xc50   : > { %v7090_v49 = vadd.f32 %v15444_v4, %v7089_v55  ;;  %v11541_v59 = vpop.f32.mrb[42].mxu1  ;;  %v7500_v32 = vpack.c.bf16 %v15614_v23, %v15611_v27 }
 0xc51   : > { %v7262_v47 = vmax.f32 %v7098_v53, 0.0  ;;  %v7101_v42 = vadd.f32 %v11541_v59, %v15444_v4  ;;  %v7092_v39 = vpop.f32.mrb[43].mxu1 }
 0xc52   : > { %v7260_v62 = vmax.f32 %v7090_v49, 0.0  ;;  %v7093_v38 = vadd.f32 %v15444_v4, %v7092_v39  ;;  %11615 = vmatmul.mubr.msk.bf16.vlgmr.msra.gmra.mrb[96].mxu0 %vm1453_vm2, %v12144_v61  ;;  %11622 = vmatprep.subr.bf16.mxu1 %v7500_v32 }
 0xc53   : > { %v7263_v57 = vmax.f32 %v7101_v42, 0.0  ;;  %11623 = vmatpush3.bf16.msra.mxu1 %v7500_v32  ;;  %11618 = vmatprep.mubr.msk.bf16.mxu0 %vm1453_vm2, %v12145_v31  ;;  %v15629_v52 = vadd.f32 %v7262_v47, %v16953_v6  ;;  %v12147_v31 = vld [vmem:[%s12461_s29 + $0x80] sm:$0xff]  }
 0xc54   : > { %v7261_v41 = vmax.f32 %v7093_v38, 0.0  ;;  %11624 = vmatprep.subr.bf16.mxu1 %v7501_v3  ;;  %v15635_v0 = vadd.f32 %v7260_v62, %v16955_v30 }
 0xc55   : > { %v15632_v7 = vadd.f32 %v7263_v57, %v16954_v22  ;;  %v12146_v57 = vld [vmem:[%s12461_s29 + $0x58] sm:$0xff]  }
 0xc56   : > { %v15638_v43 = vadd.f32 %v7261_v41, %v16956_v26  ;;  %v11544_v45 = vpop.f32.mrb[44].mxu1 }
 0xc57   : > { %v7114_v53 = vadd.f32 %v11544_v45, %v15444_v4  ;;  %v7105_v55 = vpop.f32.mrb[45].mxu1  ;;  %11625 = vmatpush3.bf16.msra.mxu1 %v7501_v3  ;;  %v7503_v49 = vpack.c.bf16 %v15632_v7, %v15629_v52 }
 0xc58   : > { %v7106_v59 = vadd.f32 %v15444_v4, %v7105_v55  ;;  %v11545_v32 = vpop.f32.mrb[46].mxu1  ;;  %v7502_v47 = vpack.c.bf16 %v15638_v43, %v15635_v0 }
 0xc59   : > { %v7266_v42 = vmax.f32 %v7114_v53, 0.0  ;;  %v7117_v39 = vadd.f32 %v11545_v32, %v15444_v4  ;;  %v7108_v62 = vpop.f32.mrb[47].mxu1 }
 0xc5a   : > { %v7264_v38 = vmax.f32 %v7106_v59, 0.0  ;;  %v7109_v61 = vadd.f32 %v15444_v4, %v7108_v62  ;;  %11619 = vmatmul.mubr.msk.bf16.gmra.mrb[100].mxu0 %vm1453_vm2, %v12146_v57  ;;  %11626 = vmatprep.subr.bf16.mxu1 %v7502_v47  ;;  %v12148_v62 = vld [vmem:[%s12461_s29 + $0x68] sm:$0xff]  }
 0xc5b   : > { %v7267_v3 = vmax.f32 %v7117_v39, 0.0  ;;  %11627 = vmatpush3.bf16.msra.mxu1 %v7502_v47  ;;  %11646 = vmatprep.mubr.msk.bf16.mxu0 %vm1453_vm2, %v12147_v31  ;;  %v15653_v6 = vadd.f32 %v7266_v42, %v14730_v35  ;;  %v16957_v31 = vld [vmem:[#allocation26_spill] sm:$0xff] }
 0xc5c   : > { %v7265_v41 = vmax.f32 %v7109_v61, 0.0  ;;  %11628 = vmatprep.subr.bf16.mxu1 %v7503_v49  ;;  %v15659_v30 = vadd.f32 %v7264_v38, %v14697_v21  ;;  %v12149_v38 = vld [vmem:[%s12461_s29 + $0x70] sm:$0xff]  }
 0xc5d   : > { %v15656_v22 = vadd.f32 %v7267_v3, %v14700_v63 }
 0xc5e   : > { %v15662_v26 = vadd.f32 %v7265_v41, %v14684_v16  ;;  %v11548_v45 = vpop.f32.mrb[48].mxu1 }
 0xc5f   : > { %v7130_v53 = vadd.f32 %v11548_v45, %v15444_v4  ;;  %v7121_v55 = vpop.f32.mrb[49].mxu1  ;;  %11629 = vmatpush3.bf16.msra.mxu1 %v7503_v49  ;;  %v7505_v35 = vpack.c.bf16 %v15656_v22, %v15653_v6 }
 0xc60   : > { %v7122_v59 = vadd.f32 %v15444_v4, %v7121_v55  ;;  %v11549_v63 = vpop.f32.mrb[50].mxu1  ;;  %v7504_v32 = vpack.c.bf16 %v15662_v26, %v15659_v30 }
 0xc61   : > { %v7270_v21 = vmax.f32 %v7130_v53, 0.0  ;;  %v7133_v47 = vadd.f32 %v11549_v63, %v15444_v4  ;;  %v7124_v16 = vpop.f32.mrb[51].mxu1 }
 0xc62   : > { %v7268_v42 = vmax.f32 %v7122_v59, 0.0  ;;  %v7125_v39 = vadd.f32 %v15444_v4, %v7124_v16  ;;  %11631 = vmatmul.mubr.msk.bf16.vlgmr.msra.gmra.mrb[84].mxu1 %vm1453_vm2, %v12148_v62  ;;  %11638 = vmatprep.subr.bf16.mxu0 %v7504_v32  ;;  %v12151_v62 = vld [vmem:[%s12461_s29 + $0xa0] sm:$0xff]  }
 0xc63   : > { %v7271_v49 = vmax.f32 %v7133_v47, 0.0  ;;  %11639 = vmatpush3.bf16.msra.mxu0 %v7504_v32  ;;  %11634 = vmatprep.mubr.msk.bf16.mxu1 %vm1453_vm2, %v12149_v38  ;;  %v15677_v57 = vadd.f32 %v7270_v21, %v14778_v34  ;;  %v16958_v38 = vld [vmem:[#allocation48_spill] sm:$0xff] }
 0xc64   : > { %v7269_v61 = vmax.f32 %v7125_v39, 0.0  ;;  %11640 = vmatprep.subr.bf16.mxu0 %v7505_v35  ;;  %v15683_v41 = vadd.f32 %v7268_v42, %v16957_v31  ;;  %v12150_v39 = vld [vmem:[%s12461_s29 + $0x78] sm:$0xff]  }
 0xc65   : > { %v15680_v3 = vadd.f32 %v7271_v49, %v16917_v25  ;;  %v16959_v31 = vld [vmem:[#allocation34_spill] sm:$0xff] }
 0xc66   : > { %v15686_v45 = vadd.f32 %v7269_v61, %v16920_v24  ;;  %v11552_v53 = vpop.f32.mrb[52].mxu1 }
 0xc67   : > { %v7146_v55 = vadd.f32 %v11552_v53, %v15444_v4  ;;  %v7137_v59 = vpop.f32.mrb[53].mxu1  ;;  %11641 = vmatpush3.bf16.msra.mxu0 %v7505_v35  ;;  %v7507_v34 = vpack.c.bf16 %v15680_v3, %v15677_v57 }
 0xc68   : > { %v7138_v63 = vadd.f32 %v15444_v4, %v7137_v59  ;;  %v11553_v25 = vpop.f32.mrb[54].mxu1  ;;  %v7506_v32 = vpack.c.bf16 %v15686_v45, %v15683_v41 }
 0xc69   : > { %v7274_v21 = vmax.f32 %v7146_v55, 0.0  ;;  %v7149_v47 = vadd.f32 %v11553_v25, %v15444_v4  ;;  %v7140_v24 = vpop.f32.mrb[55].mxu1  ;;  %v16961_v55 = vld [vmem:[#allocation33_spill] sm:$0xff] }
 0xc6a   : > { %v7272_v16 = vmax.f32 %v7138_v63, 0.0  ;;  %v7141_v42 = vadd.f32 %v15444_v4, %v7140_v24  ;;  %11635 = vmatmul.mubr.msk.bf16.gmra.mrb[88].mxu1 %vm1453_vm2, %v12150_v39  ;;  %11642 = vmatprep.subr.bf16.mxu0 %v7506_v32  ;;  %v16963_v63 = vld [vmem:[#allocation66_spill] sm:$0xff] }
 0xc6b   : > { %v7275_v35 = vmax.f32 %v7149_v47, 0.0  ;;  %11643 = vmatpush3.bf16.msra.mxu0 %v7506_v32  ;;  %11662 = vmatprep.mubr.msk.bf16.mxu1 %vm1453_vm2, %v12151_v62  ;;  %v15701_v61 = vadd.f32 %v7274_v21, %v16958_v38 }
 0xc6c   : > { %v7273_v49 = vmax.f32 %v7141_v42, 0.0  ;;  %11644 = vmatprep.subr.bf16.mxu0 %v7507_v34  ;;  %v15707_v59 = vadd.f32 %v7272_v16, %v16961_v55  ;;  %v12152_v55 = vld [vmem:[%s12461_s29 + $0x88] sm:$0xff]  }
 0xc6d   : > { %v15704_v53 = vadd.f32 %v7275_v35, %v16959_v31 }
 0xc6e   : > { %16962 = vst [vmem:[#allocation72_spill] sm:$0xff] %v15707_v59  ;;  %v15710_v25 = vadd.f32 %v7273_v49, %v16963_v63  ;;  %v11556_v47 = vpop.f32.mrb[56].mxu1  ;;  %v12153_v63 = vld [vmem:[%s12461_s29 + $0x90] sm:$0xff]  }
 0xc6f   : > { %16960 = vst [vmem:[#allocation71_spill] sm:$0xff] %v15704_v53  ;;  %v7162_v32 = vadd.f32 %v11556_v47, %v15444_v4  ;;  %v7153_v24 = vpop.f32.mrb[57].mxu1  ;;  %11645 = vmatpush3.bf16.msra.mxu0 %v7507_v34  ;;  %v7509_v21 = vpack.c.bf16 %v15704_v53, %v15701_v61 }
 0xc70   : > { %16964 = vst [vmem:[#allocation73_spill] sm:$0xff] %v15710_v25  ;;  %v7154_v42 = vadd.f32 %v15444_v4, %v7153_v24  ;;  %v11557_v39 = vpop.f32.mrb[58].mxu1  ;;  %v7508_v35 = vpack.c.bf16 %v15710_v25, %v15707_v59  ;;  %v16965_v24 = vld [vmem:[#allocation70_spill] sm:$0xff] }
 0xc71   : > { %v7278_v16 = vmax.f32 %v7162_v32, 0.0  ;;  %v7165_v62 = vadd.f32 %v11557_v39, %v15444_v4  ;;  %v7156_v49 = vpop.f32.mrb[59].mxu1  ;;  %v16966_v32 = vld [vmem:[#allocation69_spill] sm:$0xff] }
 0xc72   : > { %v7276_v38 = vmax.f32 %v7154_v42, 0.0  ;;  %v7157_v31 = vadd.f32 %v15444_v4, %v7156_v49  ;;  %11647 = vmatmul.mubr.msk.bf16.vlgmr.msra.gmra.mrb[104].mxu0 %vm1453_vm2, %v12152_v55  ;;  %11654 = vmatprep.subr.bf16.mxu1 %v7508_v35  ;;  %v16968_v42 = vld [vmem:[#allocation44_spill] sm:$0xff] }
 0xc73   : > { %v7279_v34 = vmax.f32 %v7165_v62, 0.0  ;;  %11655 = vmatpush3.bf16.msra.mxu1 %v7508_v35  ;;  %11650 = vmatprep.mubr.msk.bf16.mxu0 %vm1453_vm2, %v12153_v63  ;;  %v15725_v25 = vadd.f32 %v7278_v16, %v16965_v24  ;;  %v16970_v49 = vld [vmem:[#allocation40_spill] sm:$0xff] }
 0xc74   : > { %v7277_v47 = vmax.f32 %v7157_v31, 0.0  ;;  %11656 = vmatprep.subr.bf16.mxu1 %v7509_v21  ;;  %v15731_v53 = vadd.f32 %v7276_v38, %v16968_v42 }
 0xc75   : > { %v15728_v39 = vadd.f32 %v7279_v34, %v16966_v32 }
 0xc76   : > { %16969 = vst [vmem:[#allocation74_spill] sm:$0xff] %v15731_v53  ;;  %v15734_v55 = vadd.f32 %v7277_v47, %v16970_v49  ;;  %v11560_v62 = vpop.f32.mrb[60].mxu1 }
 0xc77   : > { %16967 = vst [vmem:[#allocation58_spill] sm:$0xff] %v15728_v39  ;;  %v7178_v35 = vadd.f32 %v11560_v62, %v15444_v4  ;;  %v7169_v59 = vpop.f32.mrb[61].mxu1  ;;  %11657 = vmatpush3.bf16.msra.mxu1 %v7509_v21  ;;  %v7511_v16 = vpack.c.bf16 %v15728_v39, %v15725_v25  ;;  %v12154_v21 = vld [vmem:[%s12461_s29 + $0x98] sm:$0xff]  }
 0xc78   : > { %16971 = vst [vmem:[#allocation75_spill] sm:$0xff] %v15734_v55  ;;  %v7170_v31 = vadd.f32 %v15444_v4, %v7169_v59  ;;  %v11561_v34 = vpop.f32.mrb[62].mxu1  ;;  %v7510_v38 = vpack.c.bf16 %v15734_v55, %v15731_v53  ;;  %v12155_v59 = vld [vmem:[%s12461_s29 + $0xc0] sm:$0xff]   ;;  %v16977_v53 = vld [vmem:[#allocation20_spill] sm:$0xff] }
 0xc79   : > { %v7282_v63 = vmax.f32 %v7178_v35, 0.0  ;;  %v7181_v24 = vadd.f32 %v11561_v34, %v15444_v4  ;;  %v7172_v47 = vpop.f32.mrb[63].mxu1  ;;  %v16972_v35 = vld [vmem:[#allocation21_spill] sm:$0xff]  ;;  %v16973_v55 = vld [vmem:[#allocation19_spill] sm:$0xff] }
 0xc7a   : > { %v7280_v32 = vmax.f32 %v7170_v31, 0.0  ;;  %v7173_v42 = vadd.f32 %v15444_v4, %v7172_v47  ;;  %11651 = vmatmul.mubr.msk.bf16.gmra.mrb[108].mxu0 %vm1453_vm2, %v12154_v21  ;;  %11658 = vmatprep.subr.bf16.mxu1 %v7510_v38  ;;  %v16975_v31 = vld [vmem:[#allocation59_spill] sm:$0xff] }
 0xc7b   : > { %v7283_v49 = vmax.f32 %v7181_v24, 0.0  ;;  %11659 = vmatpush3.bf16.msra.mxu1 %v7510_v38  ;;  %11678 = vmatprep.mubr.msk.bf16.mxu0 %vm1453_vm2, %v12155_v59  ;;  %v15751_v34 = vadd.f32 %v7282_v63, %v16972_v35 }
 0xc7c   : > { %v7281_v62 = vmax.f32 %v7173_v42, 0.0  ;;  %11660 = vmatprep.subr.bf16.mxu1 %v7511_v16  ;;  %v15757_v47 = vadd.f32 %v7280_v32, %v16975_v31 }
 0xc7d   : > { %v15754_v39 = vadd.f32 %v7283_v49, %v16973_v55 }
 0xc7e   : > { %16976 = vst [vmem:[#allocation77_spill] sm:$0xff] %v15757_v47  ;;  %v15760_v21 = vadd.f32 %v7281_v62, %v16977_v53  ;;  %v11564_v38 = vpop.f32.mrb[64].mxu1 }
 0xc7f   : > { %16974 = vst [vmem:[#allocation76_spill] sm:$0xff] %v15754_v39  ;;  %v7194_v24 = vadd.f32 %v11564_v38, %v15444_v4  ;;  %v7185_v59 = vpop.f32.mrb[65].mxu1  ;;  %11661 = vmatpush3.bf16.msra.mxu1 %v7511_v16  ;;  %v7513_v63 = vpack.c.bf16 %v15754_v39, %v15751_v34  ;;  %v12156_v38 = vld [vmem:[%s12461_s29 + $0xa8] sm:$0xff]   ;;  %v12157_v39 = vld [vmem:[%s12461_s29 + $0xb0] sm:$0xff]  }
 0xc80   : > { %16978 = vst [vmem:[#allocation78_spill] sm:$0xff] %v15760_v21  ;;  %v7186_v42 = vadd.f32 %v15444_v4, %v7185_v59  ;;  %v11565_v55 = vpop.f32.mrb[66].mxu1  ;;  %v7512_v32 = vpack.c.bf16 %v15760_v21, %v15757_v47  ;;  %v12158_v21 = vld [vmem:[%s12461_s29 + $0xb8] sm:$0xff]  }
 0xc81   : > { %v7286_v49 = vmax.f32 %v7194_v24, 0.0  ;;  %v7197_v35 = vadd.f32 %v11565_v55, %v15444_v4  ;;  %v7188_v53 = vpop.f32.mrb[67].mxu1 }
 0xc82   : > { %v7284_v62 = vmax.f32 %v7186_v42, 0.0  ;;  %v7189_v31 = vadd.f32 %v15444_v4, %v7188_v53  ;;  %11663 = vmatmul.mubr.msk.bf16.vlgmr.msra.gmra.mrb[92].mxu1 %vm1453_vm2, %v12156_v38  ;;  %11670 = vmatprep.subr.bf16.mxu0 %v7512_v32  ;;  %v15781_v42 = vstv %s8041_s20  ;;  %s9811_s20 = sshll.u32 %s12339_s25, 7 }
 0xc83   : > { %v7287_v16 = vmax.f32 %v7197_v35, 0.0  ;;  %11671 = vmatpush3.bf16.msra.mxu0 %v7512_v32  ;;  %11666 = vmatprep.mubr.msk.bf16.mxu1 %vm1453_vm2, %v12157_v39  ;;  %v15776_v24 = vadd.f32 %v7286_v49, %v16926_v40  ;;  %s16134_s15 = scalar_lea.hbm %s16186_s12, %s9811_s20 }
 0xc84   : > { %v7285_v59 = vmax.f32 %v7189_v31, 0.0  ;;  %11672 = vmatprep.subr.bf16.mxu0 %v7513_v63  ;;  %v15784_v53 = vadd.f32 %v7284_v62, %v16928_v36  ;;  %v8045_v31 = vmul.f32 %v15781_v42, %v15455_v51  ;;  %v8046_v51 = vmul.f32 %v15781_v42, %v15458_v37  ;;  %v12055_v37 = vld [vmem:[%s16179_s5 + $0xc0] sm:$0xff]  }
 0xc85   : > { %16979 = vst [vmem:[#allocation60_spill] sm:$0xff] %v15776_v24  ;;  %v15779_v55 = vadd.f32 %v7287_v16, %v16927_v44 }
 0xc86   : > { %16981 = vst [vmem:[#allocation62_spill] sm:$0xff] %v15784_v53  ;;  %v15787_v38 = vadd.f32 %v7285_v59, %v16929_v11  ;;  %v11568_v32 = vpop.f32.mrb[68].mxu1 }
 0xc87   : > { %16980 = vst [vmem:[#allocation61_spill] sm:$0xff] %v15779_v55  ;;  %v7210_v35 = vadd.f32 %v11568_v32, %v15444_v4  ;;  %v7201_v39 = vpop.f32.mrb[69].mxu1  ;;  %11673 = vmatpush3.bf16.msra.mxu0 %v7513_v63  ;;  %v7515_v40 = vpack.c.bf16 %v15779_v55, %v15776_v24  ;;  %v8043_v63 = vmul.f32 %v15781_v42, %v15462_v28 }
 0xc88   : > { %16982 = vst [vmem:[#allocation63_spill] sm:$0xff] %v15787_v38  ;;  %v7202_v44 = vadd.f32 %v15444_v4, %v7201_v39  ;;  %v11569_v49 = vpop.f32.mrb[70].mxu1  ;;  %v7514_v36 = vpack.c.bf16 %v15787_v38, %v15784_v53  ;;  %v8044_v28 = vmul.f32 %v15781_v42, %v15465_v60  ;;  %v16987_v60 = vld [vmem:[#allocation67_spill] sm:$0xff] }
 0xc89   : > { %v7290_v11 = vmax.f32 %v7210_v35, 0.0  ;;  %v7213_v62 = vadd.f32 %v11569_v49, %v15444_v4  ;;  %v7204_v16 = vpop.f32.mrb[71].mxu1  ;;  %v11584_v59 = vpop.f32.mrb[88].mxu0 }
 0xc8a   : > { %v7288_v32 = vmax.f32 %v7202_v44, 0.0  ;;  %v7205_v55 = vadd.f32 %v15444_v4, %v7204_v16  ;;  %v15801_v39 = vadd.f32 %v11584_v59, %v8045_v31  ;;  %v7554_v24 = vpop.f32.mrb[89].mxu0  ;;  %11667 = vmatmul.mubr.msk.bf16.gmra.mrb[96].mxu1 %vm1453_vm2, %v12158_v21  ;;  %11674 = vmatprep.subr.bf16.mxu0 %v7514_v36  ;;  %v12159_v44 = vld [vmem:[%s12461_s29 + $0xe0] sm:$0xff]   ;;  %v16983_v21 = vld [vmem:[#allocation38_spill] sm:$0xff] }
 0xc8b   : > { %v7291_v35 = vmax.f32 %v7213_v62, 0.0  ;;  %v15807_v49 = vadd.f32 %v8043_v63, %v7554_v24  ;;  %v11585_v38 = vpop.f32.mrb[90].mxu0  ;;  %11675 = vmatpush3.bf16.msra.mxu0 %v7514_v36  ;;  %11694 = vmatprep.mubr.msk.bf16.mxu1 %vm1453_vm2, %v12159_v44  ;;  %v15819_v24 = vadd.f32 %v7290_v11, %v16983_v21  ;;  %v16985_v62 = vld [vmem:[#allocation31_spill] sm:$0xff] }
 0xc8c   : > { %v7289_v31 = vmax.f32 %v7205_v55, 0.0  ;;  %v15813_v16 = vadd.f32 %v11585_v38, %v8046_v51  ;;  %v7557_v59 = vpop.f32.mrb[91].mxu0  ;;  %11676 = vmatprep.subr.bf16.mxu0 %v7515_v40  ;;  %v15827_v53 = vadd.f32 %v7288_v32, %v16987_v60  ;;  %v16989_v55 = vld [vmem:[#allocation32_spill] sm:$0xff] }
 0xc8d   : > { %16984 = vst [vmem:[#allocation54_spill] sm:$0xff] %v15819_v24  ;;  %v15822_v36 = vadd.f32 %v7291_v35, %v16985_v62  ;;  %v15824_v63 = vadd.f32 %v8044_v28, %v7557_v59  ;;  %v12056_v62 = vld [vmem:[%s16179_s5 + $0xc8] sm:$0xff]  }
 0xc8e   : > { %16988 = vst [vmem:[#allocation64_spill] sm:$0xff] %v15827_v53  ;;  %v15830_v38 = vadd.f32 %v7289_v31, %v16989_v55  ;;  %v11572_v44 = vpop.f32.mrb[72].mxu1  ;;  %v8049_v31 = vmul.f32 %v15781_v42, %v15479_v8 }
 0xc8f   : > { %16986 = vst [vmem:[#allocation36_spill] sm:$0xff] %v15822_v36  ;;  %v7226_v11 = vadd.f32 %v11572_v44, %v15444_v4  ;;  %v7217_v21 = vpop.f32.mrb[73].mxu1  ;;  %11677 = vmatpush3.bf16.msra.mxu0 %v7515_v40  ;;  %v7517_v35 = vpack.c.bf16 %v15822_v36, %v15819_v24 }
 0xc90   : > { %16990 = vst [vmem:[#allocation11_spill] sm:$0xff] %v15830_v38  ;;  %v7218_v32 = vadd.f32 %v15444_v4, %v7217_v21  ;;  %v11573_v28 = vpop.f32.mrb[74].mxu1  ;;  %v7516_v59 = vpack.c.bf16 %v15830_v38, %v15827_v53  ;;  %11702 = vmatprep.subr.bf16.mxu0 %v12055_v37  ;;  %v8047_v21 = vmul.f32 %v15781_v42, %v15486_v20  ;;  %v12160_v38 = vld [vmem:[%s12461_s29 + $0xc8] sm:$0xff]  }
 0xc91   : > { %v7294_v60 = vmax.f32 %v7226_v11, 0.0  ;;  %v7229_v40 = vadd.f32 %v11573_v28, %v15444_v4  ;;  %v7220_v55 = vpop.f32.mrb[75].mxu1  ;;  %v11588_v44 = vpop.f32.mrb[92].mxu0  ;;  %v8050_v11 = vmul.f32 %v15781_v42, %v15482_v56  ;;  %v12057_v56 = vld [vmem:[%s16179_s5 + $0xd0] sm:$0xff]  }
 0xc92   : > { %v7292_v51 = vmax.f32 %v7218_v32, 0.0  ;;  %v7221_v47 = vadd.f32 %v15444_v4, %v7220_v55  ;;  %v15851_v8 = vadd.f32 %v11588_v44, %v8049_v31  ;;  %v7570_v36 = vpop.f32.mrb[93].mxu0  ;;  %11679 = vmatmul.mubr.msk.bf16.vlgmr.msra.gmra.mrb[112].mxu0 %vm1453_vm2, %v12160_v38  ;;  %11686 = vmatprep.subr.bf16.mxu1 %v7516_v59  ;;  %v8048_v4 = vmul.f32 %v15781_v42, %v15489_v54  ;;  %v16991_v38 = vld [vmem:[#allocation68_spill] sm:$0xff]  ;;  %v12161_v54 = vld [vmem:[%s12461_s29 + $0xd0] sm:$0xff]  }
 0xc93   : > { %v7295_v28 = vmax.f32 %v7229_v40, 0.0  ;;  %v15857_v53 = vadd.f32 %v8047_v21, %v7570_v36  ;;  %v11589_v24 = vpop.f32.mrb[94].mxu0  ;;  %11687 = vmatpush3.bf16.msra.mxu1 %v7516_v59  ;;  %11703 = vmatpush3.bf16.msra.mxu0 %v12055_v37  ;;  %v15867_v40 = vadd.f32 %v7294_v60, %v16991_v38  ;;  %v16992_v36 = vld [vmem:[#allocation52_spill] sm:$0xff]  ;;  %v16994_v59 = vld [vmem:[#allocation42_spill] sm:$0xff] }
 0xc94   : > { %v7293_v20 = vmax.f32 %v7221_v47, 0.0  ;;  %v15861_v32 = vadd.f32 %v11589_v24, %v8050_v11  ;;  %v7573_v31 = vpop.f32.mrb[95].mxu0  ;;  %11688 = vmatprep.subr.bf16.mxu1 %v7517_v35  ;;  %11704 = vmatprep.subr.bf16.mxu0 %v12056_v62  ;;  %v16993_v47 = vld [vmem:[#allocation51_spill] sm:$0xff] }
 0xc95   : > { %v15870_v55 = vadd.f32 %v7295_v28, %v16992_v36  ;;  %v15872_v37 = vadd.f32 %v8048_v4, %v7573_v31  ;;  %11682 = vmatprep.mubr.msk.bf16.mxu0 %vm1453_vm2, %v12161_v54  ;;  %v15877_v24 = vadd.f32 %v7292_v51, %v16993_v47  ;;  %v8053_v51 = vmul.f32 %v15781_v42, %v15503_v5  ;;  %v12058_v4 = vld [vmem:[%s16179_s5 + $0xd8] sm:$0xff]  }
 0xc96   : > { %v15880_v44 = vadd.f32 %v7293_v20, %v16994_v59  ;;  %v8174_v21 = vpack.c.bf16 %v15861_v32, %v15851_v8  ;;  %v8051_v31 = vmul.f32 %v15781_v42, %v15510_v50  ;;  %v8054_v36 = vmul.f32 %v15781_v42, %v15506_v58  ;;  %v12059_v59 = vld [vmem:[%s16179_s5 + $0xe0] sm:$0xff]   ;;  %v12068_v32 = vld [vmem:[%s16181_s7 + $0xe8] sm:$0xff]  }
 0xc97   : > { %v8173_v60 = vpack.c.bf16 %v15872_v37, %v15857_v53  ;;  %11689 = vmatpush3.bf16.msra.mxu1 %v7517_v35  ;;  %11705 = vmatpush3.bf16.msra.mxu0 %v12056_v62  ;;  %v7519_v11 = vpack.c.bf16 %v15870_v55, %v15867_v40  ;;  %v12162_v35 = vld [vmem:[%s12461_s29 + $0xd8] sm:$0xff]   ;;  %v16995_v47 = vpack.c.bf16 %v15824_v63, %v15807_v49  ;;  %v12065_v53 = vld [vmem:[%s16181_s7 + $0xd0] sm:$0xff]   ;;  %v12067_v8 = vld [vmem:[%s16181_s7 + $0xe0] sm:$0xff]  }
 0xc98   : > { %v7518_v28 = vpack.c.bf16 %v15880_v44, %v15877_v24  ;;  %11706 = vmatprep.subr.bf16.mxu0 %v12057_v56  ;;  %v8052_v50 = vmul.f32 %v15781_v42, %v15513_v13  ;;  %v12060_v13 = vld [vmem:[%s16179_s5 + $0xe8] sm:$0xff]   ;;  %v8057_v49 = vmul.f32 %v15781_v42, %v15531_v1  ;;  %v8056_v1 = vmul.f32 %v15781_v42, %v15540_v29  ;;  %v12069_v37 = vld [vmem:[%s16181_s7 + $0xf0] sm:$0xff]  }
 0xc99   : > { %v16996_v29 = vpack.c.bf16 %v15813_v16, %v15801_v39  ;;  %v12064_v39 = vld [vmem:[%s16181_s7 + $0xc8] sm:$0xff]   ;;  %v12066_v16 = vld [vmem:[%s16181_s7 + $0xd8] sm:$0xff]  }
 0xc9a   : > { %v11600_v20 = vpop.f32.mrb[76].mxu1  ;;  %11683 = vmatmul.mubr.msk.bf16.gmra.mrb[116].mxu0 %vm1453_vm2, %v12162_v35  ;;  %11690 = vmatprep.subr.bf16.mxu1 %v7518_v28  ;;  %v12163_v35 = vld [vmem:[%s12461_s29 + $0xe8] sm:$0xff]  }
 0xc9b   : > { %v8117_v62 = vadd.f32 %v11600_v20, %v8053_v51  ;;  %v7619_v38 = vpop.f32.mrb[77].mxu1  ;;  %11691 = vmatpush3.bf16.msra.mxu1 %v7518_v28  ;;  %11707 = vmatpush3.bf16.msra.mxu0 %v12057_v56 }
 0xc9c   : > { %v8115_v5 = vadd.f32 %v8051_v31, %v7619_v38  ;;  %v11601_v54 = vpop.f32.mrb[78].mxu1  ;;  %11718 = vmatprep.mubr.bf16.mxu0 %v16995_v47  ;;  %11692 = vmatprep.subr.bf16.mxu1 %v7519_v11  ;;  %v8055_v31 = vmul.f32 %v15781_v42, %v15537_v9  ;;  %v12061_v9 = vld [vmem:[%s16179_s5 + $0xf0] sm:$0xff]  }
 0xc9d   : > { %v8118_v51 = vadd.f32 %v11601_v54, %v8054_v36  ;;  %v7622_v20 = vpop.f32.mrb[79].mxu1  ;;  %11708 = vmatprep.subr.bf16.mxu0 %v12058_v4 }
 0xc9e   : > { %v8116_v58 = vadd.f32 %v8052_v50, %v7622_v20  ;;  %v12165_v20 = vld [vmem:[%s12461_s29 + $0xf8] sm:$0xff]  }
 0xc9f   : > { %v8176_v56 = vpack.c.bf16 %v8118_v51, %v8117_v62  ;;  %11693 = vmatpush3.bf16.msra.mxu1 %v7519_v11  ;;  %11709 = vmatpush3.bf16.msra.mxu0 %v12058_v4  ;;  %v8058_v11 = vmul.f32 %v15781_v42, %v15534_v17  ;;  %v12164_v4 = vld [vmem:[%s12461_s29 + $0xf0] sm:$0xff]   ;;  %s9225_s29 = scalar_lea.sflag [#allocation4], %s17014_s16 }
 0xca0   : > { %v8175_v28 = vpack.c.bf16 %v8116_v58, %v8115_v5  ;;  %11710 = vmatprep.subr.bf16.mxu0 %v12059_v59  ;;  %v12063_v58 = vld [vmem:[%s16181_s7 + $0xc0] sm:$0xff]  }
 0xca1   : > { %11782 = vmatprep.subr.bf16.mxu1 %v12063_v58 }
 0xca2   : > { %v11604_v63 = vpop.f32.mrb[80].mxu1  ;;  %11695 = vmatmul.mubr.msk.bf16.vlgmr.msra.gmra.mrb[100].mxu1 %vm1453_vm2, %v12163_v35 }
 0xca3   : > { %v8121_v38 = vadd.f32 %v11604_v63, %v8057_v49  ;;  %v7635_v62 = vpop.f32.mrb[81].mxu1  ;;  %11711 = vmatpush3.bf16.msra.mxu0 %v12059_v59  ;;  %11698 = vmatprep.mubr.msk.bf16.mxu1 %vm1453_vm2, %v12164_v4  ;;  %v12062_v59 = vld [vmem:[%s16179_s5 + $0xf8] sm:$0xff]   ;;  %v8062_v63 = vmul.f32 %v15781_v42, %v15568_v12 }
 0xca4   : > { %v8119_v36 = vadd.f32 %v8055_v31, %v7635_v62  ;;  %v11605_v5 = vpop.f32.mrb[82].mxu1  ;;  %11712 = vmatprep.subr.bf16.mxu0 %v12060_v13  ;;  %11783 = vmatpush3.bf16.msra.mxu1 %v12063_v58  ;;  %v8067_v58 = vmul.f32 %v15781_v42, %v15611_v27 }
 0xca5   : > { %v8122_v54 = vadd.f32 %v11605_v5, %v8058_v11  ;;  %v7638_v47 = vpop.f32.mrb[83].mxu1  ;;  %11784 = vmatprep.subr.bf16.mxu1 %v12064_v39 }
 0xca6   : > { %v8120_v50 = vadd.f32 %v8056_v1, %v7638_v47 }
 0xca7   : > { %v8178_v51 = vpack.c.bf16 %v8122_v54, %v8121_v38  ;;  %11713 = vmatpush3.bf16.msra.mxu0 %v12060_v13  ;;  %v8060_v38 = vmul.f32 %v15781_v42, %v15574_v33  ;;  %v8066_v54 = vmul.f32 %v15781_v42, %v15588_v2 }
 0xca8   : > { %v8177_v17 = vpack.c.bf16 %v8120_v50, %v8119_v36  ;;  %11714 = vmatprep.subr.bf16.mxu0 %v12061_v9  ;;  %11785 = vmatpush3.bf16.msra.mxu1 %v12064_v39  ;;  %v8064_v50 = vmul.f32 %v15781_v42, %v15594_v46 }
 0xca9   : > { %11786 = vmatprep.subr.bf16.mxu1 %v12065_v53 }
 0xcaa   : > { %11699 = vmatmul.mubr.msk.bf16.gmra.mrb[104].mxu1 %vm1453_vm2, %v12165_v20 }
 0xcab   : > { %11715 = vmatpush3.bf16.msra.mxu0 %v12061_v9 }
 0xcac   : > { %11716 = vmatprep.subr.bf16.mxu0 %v12062_v59  ;;  %11787 = vmatpush3.bf16.msra.mxu1 %v12065_v53  ;;  %v8070_v53 = vmul.f32 %v15781_v42, %v15608_v48 }
 0xcad   : > { %11788 = vmatprep.subr.bf16.mxu1 %v12066_v16 }
 0xcaf   : > { %11717 = vmatpush3.bf16.msra.mxu0 %v12062_v59 }
 0xcb0   : > { %11789 = vmatpush3.bf16.msra.mxu1 %v12066_v16 }
 0xcb1   : > { %11790 = vmatprep.subr.bf16.mxu1 %v12067_v8 }
 0xcb2   : > { %11719 = vmatmul.mubr.bf16.vlgmr.msra.gmra.mrb[120].mxu0 %v16996_v29  ;;  %v8069_v29 = vmul.f32 %v15781_v42, %v15605_v10 }
 0xcb3   : > { %11722 = vmatprep.mubr.bf16.mxu0 %v8173_v60  ;;  %v8061_v60 = vmul.f32 %v15781_v42, %v15565_v15  ;;  %v8065_v15 = vmul.f32 %v15781_v42, %v15585_v19 }
 0xcb4   : > { %11791 = vmatpush3.bf16.msra.mxu1 %v12067_v8  ;;  %v8068_v8 = vmul.f32 %v15781_v42, %v15614_v23 }
 0xcb5   : > { %11792 = vmatprep.subr.bf16.mxu1 %v12068_v32 }
 0xcb8   : > { %11793 = vmatpush3.bf16.msra.mxu1 %v12068_v32 }
 0xcb9   : > { %11794 = vmatprep.subr.bf16.mxu1 %v12069_v37 }
 0xcba   : > { %11723 = vmatmul.mubr.bf16.gmra.mrb[124].mxu0 %v8174_v21  ;;  %v12070_v21 = vld [vmem:[%s16181_s7 + $0xf8] sm:$0xff]  }
 0xcbb   : > { %11726 = vmatprep.mubr.bf16.mxu0 %v8175_v28  ;;  %v8059_v28 = vmul.f32 %v15781_v42, %v15571_v14  ;;  %v8063_v14 = vmul.f32 %v15781_v42, %v15591_v18 }
 0xcbc   : > { %11795 = vmatpush3.bf16.msra.mxu1 %v12069_v37 }
 0xcbd   : > { %11796 = vmatprep.subr.bf16.mxu1 %v12070_v21 }
 0xcc0   : > { %11797 = vmatpush3.bf16.msra.mxu1 %v12070_v21 }
 0xcc2   : > { %11727 = vmatmul.mubr.bf16.gmra.mrb[128].mxu0 %v8176_v56 }
 0xcc3   : > { %11730 = vmatprep.mubr.bf16.mxu0 %v8177_v17 }
 0xcca   : > { %11731 = vmatmul.mubr.bf16.gmra.mrb[132].mxu0 %v8178_v51 }
 0xd25   : > { %v11616_v56 = vpop.f32.mrb[96].mxu0 }
 0xd26   : > { %v8125_v13 = vadd.f32 %v11616_v56, %v8061_v60  ;;  %v7684_v49 = vpop.f32.mrb[97].mxu0  ;;  %v8073_v56 = vmul.f32 %v15781_v42, %v15629_v52 }
 0xd27   : > { %v8123_v31 = vadd.f32 %v8059_v28, %v7684_v49  ;;  %v11617_v35 = vpop.f32.mrb[98].mxu0  ;;  %v8071_v28 = vmul.f32 %v15781_v42, %v15635_v0  ;;  %v8074_v49 = vmul.f32 %v15781_v42, %v15632_v7 }
 0xd28   : > { %v8126_v62 = vadd.f32 %v11617_v35, %v8062_v63  ;;  %v7687_v11 = vpop.f32.mrb[99].mxu0 }
 0xd29   : > { %v8124_v4 = vadd.f32 %v8060_v38, %v7687_v11 }
 0xd2a   : > { %v8180_v36 = vpack.c.bf16 %v8126_v62, %v8125_v13 }
 0xd2b   : > { %v8179_v5 = vpack.c.bf16 %v8124_v4, %v8123_v31  ;;  %v8072_v31 = vmul.f32 %v15781_v42, %v15638_v43  ;;  %v8077_v4 = vmul.f32 %v15781_v42, %v15653_v6 }
 0xd2d   : > { %v11620_v1 = vpop.f32.mrb[100].mxu0  ;;  %11734 = vmatprep.mubr.bf16.mxu0 %v8179_v5 }
 0xd2e   : > { %v8129_v9 = vadd.f32 %v11620_v1, %v8065_v15  ;;  %v7700_v12 = vpop.f32.mrb[101].mxu0  ;;  %11735 = vmatmul.mubr.bf16.gmra.mrb[136].mxu0 %v8180_v36  ;;  %v8075_v36 = vmul.f32 %v15781_v42, %v15659_v30  ;;  %v8078_v15 = vmul.f32 %v15781_v42, %v15656_v22 }
 0xd2f   : > { %v8127_v33 = vadd.f32 %v8063_v14, %v7700_v12  ;;  %v11621_v47 = vpop.f32.mrb[102].mxu0  ;;  %v8076_v14 = vmul.f32 %v15781_v42, %v15662_v26 }
 0xd30   : > { %v8130_v51 = vadd.f32 %v11621_v47, %v8066_v54  ;;  %v7703_v17 = vpop.f32.mrb[103].mxu0  ;;  %v8081_v47 = vmul.f32 %v15781_v42, %v15677_v57 }
 0xd31   : > { %v8128_v59 = vadd.f32 %v8064_v50, %v7703_v17  ;;  %v8079_v50 = vmul.f32 %v15781_v42, %v15683_v41  ;;  %v8082_v17 = vmul.f32 %v15781_v42, %v15680_v3 }
 0xd32   : > { %v8182_v19 = vpack.c.bf16 %v8130_v51, %v8129_v9 }
 0xd33   : > { %v8181_v20 = vpack.c.bf16 %v8128_v59, %v8127_v33 }
 0xd35   : > { %v11632_v18 = vpop.f32.mrb[84].mxu1  ;;  %11738 = vmatprep.mubr.bf16.mxu0 %v8181_v20 }
 0xd36   : > { %v8133_v39 = vadd.f32 %v11632_v18, %v8069_v29  ;;  %v7749_v2 = vpop.f32.mrb[85].mxu1  ;;  %11739 = vmatmul.mubr.bf16.gmra.mrb[140].mxu0 %v8182_v19  ;;  %v8080_v19 = vmul.f32 %v15781_v42, %v15686_v45 }
 0xd37   : > { %v8131_v46 = vadd.f32 %v8067_v58, %v7749_v2  ;;  %v11633_v16 = vpop.f32.mrb[86].mxu1  ;;  %v16997_v2 = vld [vmem:[#allocation72_spill] sm:$0xff] }
 0xd38   : > { %v8134_v32 = vadd.f32 %v11633_v16, %v8070_v53  ;;  %v7752_v37 = vpop.f32.mrb[87].mxu1  ;;  %v8083_v53 = vmul.f32 %v15781_v42, %v16997_v2  ;;  %v16998_v16 = vld [vmem:[#allocation71_spill] sm:$0xff] }
 0xd39   : > { %v8132_v21 = vadd.f32 %v8068_v8, %v7752_v37  ;;  %v8086_v8 = vmul.f32 %v15781_v42, %v16998_v16  ;;  %v16999_v37 = vld [vmem:[#allocation73_spill] sm:$0xff] }
 0xd3a   : > { %v8184_v10 = vpack.c.bf16 %v8134_v32, %v8133_v39  ;;  %v8085_v39 = vmul.f32 %v15781_v42, %v15701_v61 }
 0xd3b   : > { %v8183_v60 = vpack.c.bf16 %v8132_v21, %v8131_v46  ;;  %v8084_v21 = vmul.f32 %v15781_v42, %v16999_v37  ;;  %v17010_v37 = vld [vmem:[#allocation54_spill] sm:$0xff] }
 0xd3d   : > { %v11636_v27 = vpop.f32.mrb[88].mxu1  ;;  %11742 = vmatprep.mubr.bf16.mxu0 %v8183_v60 }
 0xd3e   : > { %v8137_v13 = vadd.f32 %v11636_v27, %v8073_v56  ;;  %v7765_v48 = vpop.f32.mrb[89].mxu1  ;;  %11743 = vmatmul.mubr.bf16.gmra.mrb[144].mxu0 %v8184_v10 }
 0xd3f   : > { %v8135_v23 = vadd.f32 %v8071_v28, %v7765_v48  ;;  %v11637_v63 = vpop.f32.mrb[90].mxu1  ;;  %v8089_v28 = vmul.f32 %v15781_v42, %v15725_v25  ;;  %v17000_v48 = vld [vmem:[#allocation74_spill] sm:$0xff] }
 0xd40   : > { %v8138_v35 = vadd.f32 %v11637_v63, %v8074_v49  ;;  %v7768_v38 = vpop.f32.mrb[91].mxu1  ;;  %v8087_v49 = vmul.f32 %v15781_v42, %v17000_v48 }
 0xd41   : > { %v8136_v62 = vadd.f32 %v8072_v31, %v7768_v38  ;;  %v17001_v31 = vld [vmem:[#allocation58_spill] sm:$0xff] }
 0xd42   : > { %v8186_v52 = vpack.c.bf16 %v8138_v35, %v8137_v13  ;;  %v8090_v35 = vmul.f32 %v15781_v42, %v17001_v31 }
 0xd43   : > { %v8185_v11 = vpack.c.bf16 %v8136_v62, %v8135_v23 }
 0xd45   : > { %v11648_v0 = vpop.f32.mrb[104].mxu0  ;;  %11746 = vmatprep.mubr.bf16.mxu0 %v8185_v11 }
 0xd46   : > { %v8141_v5 = vadd.f32 %v11648_v0, %v8077_v4  ;;  %v7814_v7 = vpop.f32.mrb[105].mxu0  ;;  %11747 = vmatmul.mubr.bf16.gmra.mrb[148].mxu0 %v8186_v52  ;;  %v17002_v52 = vld [vmem:[#allocation75_spill] sm:$0xff] }
 0xd47   : > { %v8139_v43 = vadd.f32 %v8075_v36, %v7814_v7  ;;  %v11649_v1 = vpop.f32.mrb[106].mxu0  ;;  %v8088_v11 = vmul.f32 %v15781_v42, %v17002_v52  ;;  %v8093_v7 = vmul.f32 %v15781_v42, %v15751_v34 }
 0xd48   : > { %v8142_v9 = vadd.f32 %v11649_v1, %v8078_v15  ;;  %v7817_v12 = vpop.f32.mrb[107].mxu0 }
 0xd49   : > { %v8140_v54 = vadd.f32 %v8076_v14, %v7817_v12  ;;  %v17004_v12 = vld [vmem:[#allocation76_spill] sm:$0xff] }
 0xd4a   : > { %v8188_v6 = vpack.c.bf16 %v8142_v9, %v8141_v5 }
 0xd4b   : > { %v8187_v33 = vpack.c.bf16 %v8140_v54, %v8139_v43  ;;  %v17003_v43 = vld [vmem:[#allocation77_spill] sm:$0xff]  ;;  %v8094_v54 = vmul.f32 %v15781_v42, %v17004_v12 }
 0xd4c   : > { %v8091_v1 = vmul.f32 %v15781_v42, %v17003_v43  ;;  %v8104_v43 = vmul.f32 %v15781_v42, %v15880_v44 }
 0xd4d   : > { %v11652_v30 = vpop.f32.mrb[108].mxu0  ;;  %11750 = vmatprep.mubr.bf16.mxu0 %v8187_v33 }
 0xd4e   : > { %v8145_v51 = vadd.f32 %v11652_v30, %v8081_v47  ;;  %v7830_v22 = vpop.f32.mrb[109].mxu0  ;;  %11751 = vmatmul.mubr.bf16.gmra.mrb[152].mxu0 %v8188_v6  ;;  %v17005_v47 = vld [vmem:[#allocation78_spill] sm:$0xff] }
 0xd4f   : > { %v8143_v26 = vadd.f32 %v8079_v50, %v7830_v22  ;;  %v11653_v59 = vpop.f32.mrb[110].mxu0  ;;  %v8092_v30 = vmul.f32 %v15781_v42, %v17005_v47 }
 0xd50   : > { %v8146_v20 = vadd.f32 %v11653_v59, %v8082_v17  ;;  %v7833_v29 = vpop.f32.mrb[111].mxu0 }
 0xd51   : > { %v8144_v18 = vadd.f32 %v8080_v19, %v7833_v29 }
 0xd52   : > { %v8190_v57 = vpack.c.bf16 %v8146_v20, %v8145_v51  ;;  %v17007_v20 = vld [vmem:[#allocation62_spill] sm:$0xff] }
 0xd53   : > { %v8189_v58 = vpack.c.bf16 %v8144_v18, %v8143_v26  ;;  %v17006_v26 = vld [vmem:[#allocation60_spill] sm:$0xff]  ;;  %v8095_v29 = vmul.f32 %v15781_v42, %v17007_v20 }
 0xd54   : > { %v8097_v59 = vmul.f32 %v15781_v42, %v17006_v26 }
 0xd55   : > { %v11664_v41 = vpop.f32.mrb[92].mxu1  ;;  %11754 = vmatprep.mubr.bf16.mxu0 %v8189_v58  ;;  %v17008_v58 = vld [vmem:[#allocation61_spill] sm:$0xff] }
 0xd56   : > { %v8149_v46 = vadd.f32 %v11664_v41, %v8085_v39  ;;  %v7879_v3 = vpop.f32.mrb[93].mxu1  ;;  %11755 = vmatmul.mubr.bf16.gmra.mrb[156].mxu0 %v8190_v57  ;;  %v8098_v39 = vmul.f32 %v15781_v42, %v17008_v58 }
 0xd57   : > { %v8147_v45 = vadd.f32 %v8083_v53, %v7879_v3  ;;  %v11665_v32 = vpop.f32.mrb[94].mxu1  ;;  %v17009_v53 = vld [vmem:[#allocation63_spill] sm:$0xff] }
 0xd58   : > { %v8150_v10 = vadd.f32 %v11665_v32, %v8086_v8  ;;  %v7882_v60 = vpop.f32.mrb[95].mxu1 }
 0xd59   : > { %v8148_v56 = vadd.f32 %v8084_v21, %v7882_v60  ;;  %v8101_v21 = vmul.f32 %v15781_v42, %v17010_v37  ;;  %v17011_v60 = vld [vmem:[#allocation64_spill] sm:$0xff] }
 0xd5a   : > { %v8192_v61 = vpack.c.bf16 %v8150_v10, %v8149_v46  ;;  %v8096_v46 = vmul.f32 %v15781_v42, %v17009_v53 }
 0xd5b   : > { %v8191_v27 = vpack.c.bf16 %v8148_v56, %v8147_v45  ;;  %v8099_v56 = vmul.f32 %v15781_v42, %v17011_v60 }
 0xd5d   : > { %v11668_v13 = vpop.f32.mrb[96].mxu1  ;;  %11758 = vmatprep.mubr.bf16.mxu0 %v8191_v27 }
 0xd5e   : > { %v8153_v23 = vadd.f32 %v11668_v13, %v8089_v28  ;;  %v7895_v63 = vpop.f32.mrb[97].mxu1  ;;  %11759 = vmatmul.mubr.bf16.gmra.mrb[160].mxu0 %v8192_v61  ;;  %v17012_v28 = vld [vmem:[#allocation36_spill] sm:$0xff] }
 0xd5f   : > { %v8151_v38 = vadd.f32 %v8087_v49, %v7895_v63  ;;  %v11669_v62 = vpop.f32.mrb[98].mxu1  ;;  %v8102_v13 = vmul.f32 %v15781_v42, %v17012_v28 }
 0xd60   : > { %v8154_v4 = vadd.f32 %v11669_v62, %v8090_v35  ;;  %v7898_v0 = vpop.f32.mrb[99].mxu1 }
 0xd61   : > { %v8152_v36 = vadd.f32 %v8088_v11, %v7898_v0  ;;  %v8105_v11 = vmul.f32 %v15781_v42, %v15867_v40  ;;  %v8103_v0 = vmul.f32 %v15781_v42, %v15877_v24  ;;  %v16064_v24 = vld [vmem:[%s16180_s6 + $0x3] ss:$0 sm:$0xff] }
 0xd62   : > { %v8194_v25 = vpack.c.bf16 %v8154_v4, %v8153_v23  ;;  %v17013_v23 = vld [vmem:[#allocation11_spill] sm:$0xff] }
 0xd63   : > { %v8193_v5 = vpack.c.bf16 %v8152_v36, %v8151_v38  ;;  %v8100_v63 = vmul.f32 %v15781_v42, %v17013_v23 }
 0xd65   : > { %v11680_v15 = vpop.f32.mrb[112].mxu0  ;;  %11762 = vmatprep.mubr.bf16.mxu0 %v8193_v5  ;;  %v8106_v5 = vmul.f32 %v15781_v42, %v15870_v55 }
 0xd66   : > { %v8157_v14 = vadd.f32 %v11680_v15, %v8093_v7  ;;  %v7944_v9 = vpop.f32.mrb[113].mxu0  ;;  %11763 = vmatmul.mubr.bf16.gmra.mrb[164].mxu0 %v8194_v25 }
 0xd67   : > { %v8155_v6 = vadd.f32 %v8091_v1, %v7944_v9  ;;  %v11681_v33 = vpop.f32.mrb[114].mxu0 }
 0xd68   : > { %v8158_v50 = vadd.f32 %v11681_v33, %v8094_v54  ;;  %v7947_v51 = vpop.f32.mrb[115].mxu0 }
 0xd69   : > { %v8156_v22 = vadd.f32 %v8092_v30, %v7947_v51 }
 0xd6a   : > { %v8196_v34 = vpack.c.bf16 %v8158_v50, %v8157_v14 }
 0xd6b   : > { %v8195_v17 = vpack.c.bf16 %v8156_v22, %v8155_v6 }
 0xd6d   : > { %v11684_v19 = vpop.f32.mrb[116].mxu0  ;;  %11766 = vmatprep.mubr.bf16.mxu0 %v8195_v17 }
 0xd6e   : > { %v8161_v18 = vadd.f32 %v11684_v19, %v8097_v59  ;;  %v7960_v57 = vpop.f32.mrb[117].mxu0  ;;  %11767 = vmatmul.mubr.bf16.gmra.mrb[168].mxu0 %v8196_v34 }
 0xd6f   : > { %v8159_v41 = vadd.f32 %v8095_v29, %v7960_v57  ;;  %v11685_v2 = vpop.f32.mrb[118].mxu0 }
 0xd70   : > { %v8162_v3 = vadd.f32 %v11685_v2, %v8098_v39  ;;  %v7963_v16 = vpop.f32.mrb[119].mxu0 }
 0xd71   : > { %v8160_v8 = vadd.f32 %v8096_v46, %v7963_v16 }
 0xd72   : > { %v8198_v45 = vpack.c.bf16 %v8162_v3, %v8161_v18 }
 0xd73   : > { %v8197_v32 = vpack.c.bf16 %v8160_v8, %v8159_v41 }
 0xd75   : > { %v11696_v10 = vpop.f32.mrb[100].mxu1  ;;  %11770 = vmatprep.mubr.bf16.mxu0 %v8197_v32 }
 0xd76   : > { %v8165_v61 = vadd.f32 %v11696_v10, %v8101_v21  ;;  %v8009_v27 = vpop.f32.mrb[101].mxu1  ;;  %11771 = vmatmul.mubr.bf16.gmra.mrb[172].mxu0 %v8198_v45 }
 0xd77   : > { %v8163_v48 = vadd.f32 %v8099_v56, %v8009_v27  ;;  %v11697_v49 = vpop.f32.mrb[102].mxu1 }
 0xd78   : > { %v8166_v31 = vadd.f32 %v11697_v49, %v8102_v13  ;;  %v8012_v35 = vpop.f32.mrb[103].mxu1 }
 0xd79   : > { %v8164_v38 = vadd.f32 %v8100_v63, %v8012_v35 }
 0xd7a   : > { %v8200_v62 = vpack.c.bf16 %v8166_v31, %v8165_v61 }
 0xd7b   : > { %v8199_v52 = vpack.c.bf16 %v8164_v38, %v8163_v48 }
 0xd7d   : > { %v11700_v4 = vpop.f32.mrb[104].mxu1  ;;  %11774 = vmatprep.mubr.bf16.mxu0 %v8199_v52 }
 0xd7e   : > { %v8169_v36 = vadd.f32 %v11700_v4, %v8105_v11  ;;  %v8025_v25 = vpop.f32.mrb[105].mxu1  ;;  %11775 = vmatmul.mubr.bf16.gmra.mrb[176].mxu0 %v8200_v62 }
 0xd7f   : > { %v8167_v7 = vadd.f32 %v8103_v0, %v8025_v25  ;;  %v11701_v15 = vpop.f32.mrb[106].mxu1 }
 0xd80   : > { %v8170_v1 = vadd.f32 %v11701_v15, %v8106_v5  ;;  %v8028_v14 = vpop.f32.mrb[107].mxu1 }
 0xd81   : > { %v8168_v9 = vadd.f32 %v8104_v43, %v8028_v14 }
 0xd82   : > { %v8202_v40 = vpack.c.bf16 %v8170_v1, %v8169_v36 }
 0xd83   : > { %v8201_v12 = vpack.c.bf16 %v8168_v9, %v8167_v7 }
 0xd85   : > { %v11720_v54 = vpop.f32.mrb[120].mxu0  ;;  %11778 = vmatprep.mubr.bf16.mxu0 %v8201_v12 }
 0xd86   : > { %v8319_v6 = vadd.f32 %v11720_v54, %v16064_v24  ;;  %v8310_v55 = vpop.f32.mrb[121].mxu0  ;;  %11779 = vmatmul.mubr.bf16.gmra.mrb[180].mxu0 %v8202_v40 }
 0xd87   : > { %v8311_v33 = vadd.f32 %v16064_v24, %v8310_v55  ;;  %v11721_v47 = vpop.f32.mrb[122].mxu0 }
 0xd88   : > { %v8322_v42 = vadd.f32 %v11721_v47, %v16064_v24  ;;  %v8313_v44 = vpop.f32.mrb[123].mxu0  ;;  %v8567_v50 = vmax.f32 %v8319_v6, 0.0 }
 0xd89   : > { %v8314_v30 = vadd.f32 %v16064_v24, %v8313_v44  ;;  %v8565_v22 = vmax.f32 %v8311_v33, 0.0 }
 0xd8a   : > { %v8568_v51 = vmax.f32 %v8322_v42, 0.0 }
 0xd8b   : > { %v8566_v34 = vmax.f32 %v8314_v30, 0.0 }
 0xd8c   : > { %v8630_v17 = vpack.c.bf16 %v8568_v51, %v8567_v50 }
 0xd8d   : > { %v8629_v26 = vpack.c.bf16 %v8566_v34, %v8565_v22  ;;  %v11724_v59 = vpop.f32.mrb[124].mxu0 }
 0xd8e   : > { %v8335_v19 = vadd.f32 %v11724_v59, %v16064_v24  ;;  %v8326_v20 = vpop.f32.mrb[125].mxu0 }
 0xd8f   : > { %v8327_v29 = vadd.f32 %v16064_v24, %v8326_v20  ;;  %v11725_v18 = vpop.f32.mrb[126].mxu0  ;;  %11798 = vmatprep.mubr.bf16.mxu1 %v8629_v26 }
 0xd90   : > { %v8338_v57 = vadd.f32 %v11725_v18, %v16064_v24  ;;  %v8329_v58 = vpop.f32.mrb[127].mxu0  ;;  %11799 = vmatmul.mubr.bf16.vlgmr.msra.gmra.mrb[108].mxu1 %v8630_v17  ;;  %v8571_v41 = vmax.f32 %v8335_v19, 0.0 }
 0xd91   : > { %v8330_v39 = vadd.f32 %v16064_v24, %v8329_v58  ;;  %v8569_v53 = vmax.f32 %v8327_v29, 0.0 }
 0xd92   : > { %v8572_v2 = vmax.f32 %v8338_v57, 0.0 }
 0xd93   : > { %v8570_v46 = vmax.f32 %v8330_v39, 0.0 }
 0xd94   : > { %v8632_v3 = vpack.c.bf16 %v8572_v2, %v8571_v41 }
 0xd95   : > { %v8631_v16 = vpack.c.bf16 %v8570_v46, %v8569_v53  ;;  %v11728_v8 = vpop.f32.mrb[128].mxu0 }
 0xd96   : > { %v8351_v45 = vadd.f32 %v11728_v8, %v16064_v24  ;;  %v8342_v32 = vpop.f32.mrb[129].mxu0 }
 0xd97   : > { %v8343_v37 = vadd.f32 %v16064_v24, %v8342_v32  ;;  %v11729_v21 = vpop.f32.mrb[130].mxu0  ;;  %11802 = vmatprep.mubr.bf16.mxu1 %v8631_v16 }
 0xd98   : > { %v8354_v10 = vadd.f32 %v11729_v21, %v16064_v24  ;;  %v8345_v60 = vpop.f32.mrb[131].mxu0  ;;  %11803 = vmatmul.mubr.bf16.gmra.mrb[112].mxu1 %v8632_v3  ;;  %v8575_v61 = vmax.f32 %v8351_v45, 0.0 }
 0xd99   : > { %v8346_v56 = vadd.f32 %v16064_v24, %v8345_v60  ;;  %v8573_v28 = vmax.f32 %v8343_v37, 0.0 }
 0xd9a   : > { %v8576_v27 = vmax.f32 %v8354_v10, 0.0 }
 0xd9b   : > { %v8574_v13 = vmax.f32 %v8346_v56, 0.0 }
 0xd9c   : > { %v8634_v48 = vpack.c.bf16 %v8576_v27, %v8575_v61 }
 0xd9d   : > { %v8633_v49 = vpack.c.bf16 %v8574_v13, %v8573_v28  ;;  %v11732_v23 = vpop.f32.mrb[132].mxu0 }
 0xd9e   : > { %v8367_v63 = vadd.f32 %v11732_v23, %v16064_v24  ;;  %v8358_v31 = vpop.f32.mrb[133].mxu0 }
 0xd9f   : > { %v8359_v35 = vadd.f32 %v16064_v24, %v8358_v31  ;;  %v11733_v38 = vpop.f32.mrb[134].mxu0  ;;  %11806 = vmatprep.mubr.bf16.mxu1 %v8633_v49 }
 0xda0   : > { %v8370_v62 = vadd.f32 %v11733_v38, %v16064_v24  ;;  %v8361_v52 = vpop.f32.mrb[135].mxu0  ;;  %11807 = vmatmul.mubr.bf16.gmra.mrb[116].mxu1 %v8634_v48  ;;  %v8579_v4 = vmax.f32 %v8367_v63, 0.0 }
 0xda1   : > { %v8362_v11 = vadd.f32 %v16064_v24, %v8361_v52  ;;  %v8577_v36 = vmax.f32 %v8359_v35, 0.0 }
 0xda2   : > { %v8580_v0 = vmax.f32 %v8370_v62, 0.0 }
 0xda3   : > { %v8578_v25 = vmax.f32 %v8362_v11, 0.0 }
 0xda4   : > { %v8636_v5 = vpack.c.bf16 %v8580_v0, %v8579_v4 }
 0xda5   : > { %v8635_v7 = vpack.c.bf16 %v8578_v25, %v8577_v36 }
 0xda7   : > { %11810 = vmatprep.mubr.bf16.mxu1 %v8635_v7 }
 0xda8   : > { %11811 = vmatmul.mubr.bf16.gmra.mrb[120].mxu1 %v8636_v5 }
 0xe01   : > { %v11736_v15 = vpop.f32.mrb[136].mxu0 }
 0xe02   : > { %v8383_v43 = vadd.f32 %v11736_v15, %v16064_v24  ;;  %v8374_v1 = vpop.f32.mrb[137].mxu0 }
 0xe03   : > { %v8375_v14 = vadd.f32 %v16064_v24, %v8374_v1  ;;  %v11737_v9 = vpop.f32.mrb[138].mxu0 }
 0xe04   : > { %v8386_v40 = vadd.f32 %v11737_v9, %v16064_v24  ;;  %v8377_v12 = vpop.f32.mrb[139].mxu0  ;;  %v8583_v6 = vmax.f32 %v8383_v43, 0.0 }
 0xe05   : > { %v8378_v54 = vadd.f32 %v16064_v24, %v8377_v12  ;;  %v8581_v33 = vmax.f32 %v8375_v14, 0.0 }
 0xe06   : > { %v8584_v55 = vmax.f32 %v8386_v40, 0.0 }
 0xe07   : > { %v8582_v47 = vmax.f32 %v8378_v54, 0.0 }
 0xe08   : > { %v8638_v42 = vpack.c.bf16 %v8584_v55, %v8583_v6 }
 0xe09   : > { %v8637_v44 = vpack.c.bf16 %v8582_v47, %v8581_v33  ;;  %v11740_v30 = vpop.f32.mrb[140].mxu0 }
 0xe0a   : > { %v8399_v50 = vadd.f32 %v11740_v30, %v16064_v24  ;;  %v8390_v51 = vpop.f32.mrb[141].mxu0 }
 0xe0b   : > { %v8391_v22 = vadd.f32 %v16064_v24, %v8390_v51  ;;  %v11741_v34 = vpop.f32.mrb[142].mxu0  ;;  %11814 = vmatprep.mubr.bf16.mxu1 %v8637_v44 }
 0xe0c   : > { %v8402_v17 = vadd.f32 %v11741_v34, %v16064_v24  ;;  %v8393_v26 = vpop.f32.mrb[143].mxu0  ;;  %11815 = vmatmul.mubr.bf16.gmra.mrb[124].mxu1 %v8638_v42  ;;  %v8587_v19 = vmax.f32 %v8399_v50, 0.0 }
 0xe0d   : > { %v8394_v59 = vadd.f32 %v16064_v24, %v8393_v26  ;;  %v8585_v29 = vmax.f32 %v8391_v22, 0.0 }
 0xe0e   : > { %v8588_v20 = vmax.f32 %v8402_v17, 0.0 }
 0xe0f   : > { %v8586_v18 = vmax.f32 %v8394_v59, 0.0 }
 0xe10   : > { %v8640_v57 = vpack.c.bf16 %v8588_v20, %v8587_v19 }
 0xe11   : > { %v8639_v58 = vpack.c.bf16 %v8586_v18, %v8585_v29  ;;  %v11744_v39 = vpop.f32.mrb[144].mxu0 }
 0xe12   : > { %v8415_v41 = vadd.f32 %v11744_v39, %v16064_v24  ;;  %v8406_v2 = vpop.f32.mrb[145].mxu0 }
 0xe13   : > { %v8407_v53 = vadd.f32 %v16064_v24, %v8406_v2  ;;  %v11745_v46 = vpop.f32.mrb[146].mxu0  ;;  %11818 = vmatprep.mubr.bf16.mxu1 %v8639_v58 }
 0xe14   : > { %v8418_v3 = vadd.f32 %v11745_v46, %v16064_v24  ;;  %v8409_v16 = vpop.f32.mrb[147].mxu0  ;;  %11819 = vmatmul.mubr.bf16.gmra.mrb[128].mxu1 %v8640_v57  ;;  %v8591_v45 = vmax.f32 %v8415_v41, 0.0 }
 0xe15   : > { %v8410_v8 = vadd.f32 %v16064_v24, %v8409_v16  ;;  %v8589_v37 = vmax.f32 %v8407_v53, 0.0 }
 0xe16   : > { %v8592_v32 = vmax.f32 %v8418_v3, 0.0 }
 0xe17   : > { %v8590_v21 = vmax.f32 %v8410_v8, 0.0 }
 0xe18   : > { %v8642_v10 = vpack.c.bf16 %v8592_v32, %v8591_v45 }
 0xe19   : > { %v8641_v60 = vpack.c.bf16 %v8590_v21, %v8589_v37  ;;  %v11748_v56 = vpop.f32.mrb[148].mxu0 }
 0xe1a   : > { %v8431_v61 = vadd.f32 %v11748_v56, %v16064_v24  ;;  %v8422_v27 = vpop.f32.mrb[149].mxu0 }
 0xe1b   : > { %v8423_v28 = vadd.f32 %v16064_v24, %v8422_v27  ;;  %v11749_v13 = vpop.f32.mrb[150].mxu0  ;;  %11822 = vmatprep.mubr.bf16.mxu1 %v8641_v60 }
 0xe1c   : > { %v8434_v48 = vadd.f32 %v11749_v13, %v16064_v24  ;;  %v8425_v49 = vpop.f32.mrb[151].mxu0  ;;  %11823 = vmatmul.mubr.bf16.gmra.mrb[132].mxu1 %v8642_v10  ;;  %v8595_v63 = vmax.f32 %v8431_v61, 0.0 }
 0xe1d   : > { %v8426_v23 = vadd.f32 %v16064_v24, %v8425_v49  ;;  %v8593_v35 = vmax.f32 %v8423_v28, 0.0 }
 0xe1e   : > { %v8596_v31 = vmax.f32 %v8434_v48, 0.0 }
 0xe1f   : > { %v8594_v38 = vmax.f32 %v8426_v23, 0.0 }
 0xe20   : > { %v8644_v62 = vpack.c.bf16 %v8596_v31, %v8595_v63 }
 0xe21   : > { %v8643_v52 = vpack.c.bf16 %v8594_v38, %v8593_v35  ;;  %v11752_v11 = vpop.f32.mrb[152].mxu0 }
 0xe22   : > { %v8447_v4 = vadd.f32 %v11752_v11, %v16064_v24  ;;  %v8438_v0 = vpop.f32.mrb[153].mxu0 }
 0xe23   : > { %v8439_v36 = vadd.f32 %v16064_v24, %v8438_v0  ;;  %v11753_v25 = vpop.f32.mrb[154].mxu0  ;;  %11826 = vmatprep.mubr.bf16.mxu1 %v8643_v52 }
 0xe24   : > { %v8450_v5 = vadd.f32 %v11753_v25, %v16064_v24  ;;  %v8441_v7 = vpop.f32.mrb[155].mxu0  ;;  %11827 = vmatmul.mubr.bf16.gmra.mrb[136].mxu1 %v8644_v62  ;;  %v8599_v43 = vmax.f32 %v8447_v4, 0.0 }
 0xe25   : > { %v8442_v15 = vadd.f32 %v16064_v24, %v8441_v7  ;;  %v8597_v14 = vmax.f32 %v8439_v36, 0.0 }
 0xe26   : > { %v8600_v1 = vmax.f32 %v8450_v5, 0.0 }
 0xe27   : > { %v8598_v9 = vmax.f32 %v8442_v15, 0.0 }
 0xe28   : > { %v8646_v40 = vpack.c.bf16 %v8600_v1, %v8599_v43 }
 0xe29   : > { %v8645_v12 = vpack.c.bf16 %v8598_v9, %v8597_v14  ;;  %v11756_v54 = vpop.f32.mrb[156].mxu0 }
 0xe2a   : > { %v8463_v6 = vadd.f32 %v11756_v54, %v16064_v24  ;;  %v8454_v55 = vpop.f32.mrb[157].mxu0 }
 0xe2b   : > { %v8455_v33 = vadd.f32 %v16064_v24, %v8454_v55  ;;  %v11757_v47 = vpop.f32.mrb[158].mxu0  ;;  %11830 = vmatprep.mubr.bf16.mxu1 %v8645_v12 }
 0xe2c   : > { %v8466_v42 = vadd.f32 %v11757_v47, %v16064_v24  ;;  %v8457_v44 = vpop.f32.mrb[159].mxu0  ;;  %11831 = vmatmul.mubr.bf16.gmra.mrb[140].mxu1 %v8646_v40  ;;  %v8603_v50 = vmax.f32 %v8463_v6, 0.0 }
 0xe2d   : > { %v8458_v30 = vadd.f32 %v16064_v24, %v8457_v44  ;;  %v8601_v22 = vmax.f32 %v8455_v33, 0.0 }
 0xe2e   : > { %v8604_v51 = vmax.f32 %v8466_v42, 0.0 }
 0xe2f   : > { %v8602_v34 = vmax.f32 %v8458_v30, 0.0 }
 0xe30   : > { %v8648_v17 = vpack.c.bf16 %v8604_v51, %v8603_v50 }
 0xe31   : > { %v8647_v26 = vpack.c.bf16 %v8602_v34, %v8601_v22  ;;  %v11760_v59 = vpop.f32.mrb[160].mxu0 }
 0xe32   : > { %v8479_v19 = vadd.f32 %v11760_v59, %v16064_v24  ;;  %v8470_v20 = vpop.f32.mrb[161].mxu0 }
 0xe33   : > { %v8471_v29 = vadd.f32 %v16064_v24, %v8470_v20  ;;  %v11761_v18 = vpop.f32.mrb[162].mxu0  ;;  %11834 = vmatprep.mubr.bf16.mxu1 %v8647_v26 }
 0xe34   : > { %v8482_v57 = vadd.f32 %v11761_v18, %v16064_v24  ;;  %v8473_v58 = vpop.f32.mrb[163].mxu0  ;;  %11835 = vmatmul.mubr.bf16.gmra.mrb[144].mxu1 %v8648_v17  ;;  %v8607_v41 = vmax.f32 %v8479_v19, 0.0 }
 0xe35   : > { %v8474_v39 = vadd.f32 %v16064_v24, %v8473_v58  ;;  %v8605_v53 = vmax.f32 %v8471_v29, 0.0 }
 0xe36   : > { %v8608_v2 = vmax.f32 %v8482_v57, 0.0 }
 0xe37   : > { %v8606_v46 = vmax.f32 %v8474_v39, 0.0 }
 0xe38   : > { %v8650_v3 = vpack.c.bf16 %v8608_v2, %v8607_v41 }
 0xe39   : > { %v8649_v16 = vpack.c.bf16 %v8606_v46, %v8605_v53  ;;  %v11764_v8 = vpop.f32.mrb[164].mxu0 }
 0xe3a   : > { %v8495_v45 = vadd.f32 %v11764_v8, %v16064_v24  ;;  %v8486_v32 = vpop.f32.mrb[165].mxu0 }
 0xe3b   : > { %v8487_v37 = vadd.f32 %v16064_v24, %v8486_v32  ;;  %v11765_v21 = vpop.f32.mrb[166].mxu0  ;;  %11838 = vmatprep.mubr.bf16.mxu1 %v8649_v16 }
 0xe3c   : > { %v8498_v10 = vadd.f32 %v11765_v21, %v16064_v24  ;;  %v8489_v60 = vpop.f32.mrb[167].mxu0  ;;  %11839 = vmatmul.mubr.bf16.gmra.mrb[148].mxu1 %v8650_v3  ;;  %v8611_v61 = vmax.f32 %v8495_v45, 0.0 }
 0xe3d   : > { %v8490_v56 = vadd.f32 %v16064_v24, %v8489_v60  ;;  %v8609_v28 = vmax.f32 %v8487_v37, 0.0 }
 0xe3e   : > { %v8612_v27 = vmax.f32 %v8498_v10, 0.0 }
 0xe3f   : > { %v8610_v13 = vmax.f32 %v8490_v56, 0.0 }
 0xe40   : > { %v8652_v48 = vpack.c.bf16 %v8612_v27, %v8611_v61 }
 0xe41   : > { %v8651_v49 = vpack.c.bf16 %v8610_v13, %v8609_v28  ;;  %v11768_v23 = vpop.f32.mrb[168].mxu0 }
 0xe42   : > { %v8511_v63 = vadd.f32 %v11768_v23, %v16064_v24  ;;  %v8502_v31 = vpop.f32.mrb[169].mxu0 }
 0xe43   : > { %v8503_v35 = vadd.f32 %v16064_v24, %v8502_v31  ;;  %v11769_v38 = vpop.f32.mrb[170].mxu0  ;;  %11842 = vmatprep.mubr.bf16.mxu1 %v8651_v49 }
 0xe44   : > { %v8514_v62 = vadd.f32 %v11769_v38, %v16064_v24  ;;  %v8505_v52 = vpop.f32.mrb[171].mxu0  ;;  %11843 = vmatmul.mubr.bf16.gmra.mrb[152].mxu1 %v8652_v48  ;;  %v8615_v4 = vmax.f32 %v8511_v63, 0.0 }
 0xe45   : > { %v8506_v11 = vadd.f32 %v16064_v24, %v8505_v52  ;;  %v8613_v36 = vmax.f32 %v8503_v35, 0.0 }
 0xe46   : > { %v8616_v0 = vmax.f32 %v8514_v62, 0.0 }
 0xe47   : > { %v8614_v25 = vmax.f32 %v8506_v11, 0.0 }
 0xe48   : > { %v8654_v5 = vpack.c.bf16 %v8616_v0, %v8615_v4 }
 0xe49   : > { %v8653_v7 = vpack.c.bf16 %v8614_v25, %v8613_v36  ;;  %v11772_v15 = vpop.f32.mrb[172].mxu0 }
 0xe4a   : > { %v8527_v43 = vadd.f32 %v11772_v15, %v16064_v24  ;;  %v8518_v1 = vpop.f32.mrb[173].mxu0 }
 0xe4b   : > { %v8519_v14 = vadd.f32 %v16064_v24, %v8518_v1  ;;  %v11773_v9 = vpop.f32.mrb[174].mxu0  ;;  %11846 = vmatprep.mubr.bf16.mxu1 %v8653_v7 }
 0xe4c   : > { %v8530_v40 = vadd.f32 %v11773_v9, %v16064_v24  ;;  %v8521_v12 = vpop.f32.mrb[175].mxu0  ;;  %11847 = vmatmul.mubr.bf16.gmra.mrb[156].mxu1 %v8654_v5  ;;  %v8619_v6 = vmax.f32 %v8527_v43, 0.0 }
 0xe4d   : > { %v8522_v54 = vadd.f32 %v16064_v24, %v8521_v12  ;;  %v8617_v33 = vmax.f32 %v8519_v14, 0.0 }
 0xe4e   : > { %v8620_v55 = vmax.f32 %v8530_v40, 0.0 }
 0xe4f   : > { %v8618_v47 = vmax.f32 %v8522_v54, 0.0 }
 0xe50   : > { %v8656_v42 = vpack.c.bf16 %v8620_v55, %v8619_v6 }
 0xe51   : > { %v8655_v44 = vpack.c.bf16 %v8618_v47, %v8617_v33  ;;  %v11776_v30 = vpop.f32.mrb[176].mxu0 }
 0xe52   : > { %v8543_v50 = vadd.f32 %v11776_v30, %v16064_v24  ;;  %v8534_v51 = vpop.f32.mrb[177].mxu0 }
 0xe53   : > { %v8535_v22 = vadd.f32 %v16064_v24, %v8534_v51  ;;  %v11777_v34 = vpop.f32.mrb[178].mxu0  ;;  %11850 = vmatprep.mubr.bf16.mxu1 %v8655_v44 }
 0xe54   : > { %v8546_v17 = vadd.f32 %v11777_v34, %v16064_v24  ;;  %v8537_v26 = vpop.f32.mrb[179].mxu0  ;;  %11851 = vmatmul.mubr.bf16.gmra.mrb[160].mxu1 %v8656_v42  ;;  %v8623_v19 = vmax.f32 %v8543_v50, 0.0 }
 0xe55   : > { %v8538_v59 = vadd.f32 %v16064_v24, %v8537_v26  ;;  %v8621_v29 = vmax.f32 %v8535_v22, 0.0 }
 0xe56   : > { %v8624_v20 = vmax.f32 %v8546_v17, 0.0 }
 0xe57   : > { %v8622_v18 = vmax.f32 %v8538_v59, 0.0 }
 0xe58   : > { %v8658_v57 = vpack.c.bf16 %v8624_v20, %v8623_v19 }
 0xe59   : > { %v8657_v58 = vpack.c.bf16 %v8622_v18, %v8621_v29  ;;  %v11780_v39 = vpop.f32.mrb[180].mxu0 }
 0xe5a   : > { %v8559_v41 = vadd.f32 %v11780_v39, %v16064_v24  ;;  %v8550_v2 = vpop.f32.mrb[181].mxu0 }
 0xe5b   : > { %v8551_v53 = vadd.f32 %v16064_v24, %v8550_v2  ;;  %v11781_v46 = vpop.f32.mrb[182].mxu0  ;;  %11854 = vmatprep.mubr.bf16.mxu1 %v8657_v58 }
 0xe5c   : > { %v8562_v3 = vadd.f32 %v11781_v46, %v16064_v24  ;;  %v8553_v16 = vpop.f32.mrb[183].mxu0  ;;  %11855 = vmatmul.mubr.bf16.gmra.mrb[164].mxu1 %v8658_v57  ;;  %v8627_v45 = vmax.f32 %v8559_v41, 0.0 }
 0xe5d   : > { %v8554_v8 = vadd.f32 %v16064_v24, %v8553_v16  ;;  %v8625_v37 = vmax.f32 %v8551_v53, 0.0 }
 0xe5e   : > { %v8628_v32 = vmax.f32 %v8562_v3, 0.0 }
 0xe5f   : > { %v8626_v21 = vmax.f32 %v8554_v8, 0.0 }
 0xe60   : > { %v8660_v10 = vpack.c.bf16 %v8628_v32, %v8627_v45 }
 0xe61   : > { %v8659_v60 = vpack.c.bf16 %v8626_v21, %v8625_v37 }
 0xe63   : > { %v11800_v56 = vpop.f32.mrb[108].mxu1  ;;  %11858 = vmatprep.mubr.bf16.mxu1 %v8659_v60 }
 0xe64   : > { %v8768_v61 = vpop.f32.mrb[109].mxu1  ;;  %11859 = vmatmul.mubr.bf16.gmra.mrb[168].mxu1 %v8660_v10 }
 0xe65   : > { %v11801_v27 = vpop.f32.mrb[110].mxu1 }
 0xe66   : > { %v8771_v28 = vpop.f32.mrb[111].mxu1 }
 0xe6b   : > { %v11804_v13 = vpop.f32.mrb[112].mxu1 }
 0xe6c   : > { %v8784_v48 = vpop.f32.mrb[113].mxu1 }
 0xe6d   : > { %v11805_v49 = vpop.f32.mrb[114].mxu1 }
 0xe6e   : > { %v8787_v23 = vpop.f32.mrb[115].mxu1 }
 0xe73   : > { %v11808_v24 = vpop.f32.mrb[116].mxu1 }
 0xe74   : > { %v8800_v63 = vpop.f32.mrb[117].mxu1 }
 0xe75   : > { %v11809_v31 = vpop.f32.mrb[118].mxu1 }
 0xe76   : > { %v8803_v35 = vpop.f32.mrb[119].mxu1 }
 0xe7b   : > { %v11812_v38 = vpop.f32.mrb[120].mxu1 }
 0xe7c   : > { %v8816_v62 = vpop.f32.mrb[121].mxu1 }
 0xe7d   : > { %v11813_v52 = vpop.f32.mrb[122].mxu1 }
 0xe7e   : > { %v8819_v11 = vpop.f32.mrb[123].mxu1 }
 0xe7f   : > { %12194 = shalt.err (!%p12191_p4)
}
 0xe80   : > { %s12195_s25 = scalar_lea.hbm %s16134_s15, 128  ;;  %s12199_s1 = scalar_lea.hbm %s16186_s12, 256 }
 0xe81   : > { %p12196_p7 = scmp.ne.s32.totalorder %s16134_s15, %s12195_s25  ;;  %p12200_p9 = scmp.lt.u32.totalorder %s16134_s15, %s16186_s12 }
 0xe82   : > { %p12201_p10 = scmp.lt.u32.totalorder %s12199_s1, %s12195_s25  ;;  %p12203_p13 = scmp.lt.u32.totalorder %s12195_s25, %s16134_s15 }
 0xe83   : > { %p12197_p8 = pnand %p12196_p7, %p12356_p5 }
 0xe84   : > { %p12202_p12 = por %p12201_p10, %p12200_p9 }
 0xe85   : > { %p12198_p11 = pneg %p12197_p8 }
 0xe86   : > { %p12204_p0 = por %p12203_p13, %p12202_p12 }
 0xe88   : > { %p12205_p1 = pnand %p12204_p0, %p12198_p11 }
 0xe8a   : > { %12208 = shalt.err (!%p12205_p1)
}
 0xe8b   : > { %11867 = dma.vmem_to_hbm [thread:$0]  (%p12356_p5), %s9239_s17, 128, %s16134_s15, %s9225_s29  }
 0xedf   : > { %v11816_v4 = vpop.f32.mrb[124].mxu1 }
 0xee0   : > { %v8832_v0 = vpop.f32.mrb[125].mxu1 }
 0xee1   : > { %v11817_v36 = vpop.f32.mrb[126].mxu1 }
 0xee2   : > { %v8835_v25 = vpop.f32.mrb[127].mxu1 }
 0xee7   : > { %v11820_v5 = vpop.f32.mrb[128].mxu1 }
 0xee8   : > { %v8848_v7 = vpop.f32.mrb[129].mxu1 }
 0xee9   : > { %v11821_v15 = vpop.f32.mrb[130].mxu1 }
 0xeea   : > { %v8851_v43 = vpop.f32.mrb[131].mxu1 }
 0xeef   : > { %v11824_v1 = vpop.f32.mrb[132].mxu1 }
 0xef0   : > { %v8864_v14 = vpop.f32.mrb[133].mxu1 }
 0xef1   : > { %v11825_v9 = vpop.f32.mrb[134].mxu1 }
 0xef2   : > { %v8867_v40 = vpop.f32.mrb[135].mxu1 }
 0xef7   : > { %v11828_v12 = vpop.f32.mrb[136].mxu1 }
 0xef8   : > { %v8880_v54 = vpop.f32.mrb[137].mxu1 }
 0xef9   : > { %v11829_v6 = vpop.f32.mrb[138].mxu1 }
 0xefa   : > { %v8883_v55 = vpop.f32.mrb[139].mxu1 }
 0xeff   : > { %v11832_v33 = vpop.f32.mrb[140].mxu1 }
 0xf00   : > { %v8896_v47 = vpop.f32.mrb[141].mxu1 }
 0xf01   : > { %v11833_v42 = vpop.f32.mrb[142].mxu1 }
 0xf02   : > { %v8899_v44 = vpop.f32.mrb[143].mxu1 }
 0xf07   : > { %v11836_v30 = vpop.f32.mrb[144].mxu1 }
 0xf08   : > { %v8912_v50 = vpop.f32.mrb[145].mxu1 }
 0xf09   : > { %v11837_v51 = vpop.f32.mrb[146].mxu1 }
 0xf0a   : > { %v8915_v22 = vpop.f32.mrb[147].mxu1 }
 0xf0f   : > { %v11840_v34 = vpop.f32.mrb[148].mxu1 }
 0xf10   : > { %v8928_v17 = vpop.f32.mrb[149].mxu1 }
 0xf11   : > { %v11841_v26 = vpop.f32.mrb[150].mxu1 }
 0xf12   : > { %v8931_v59 = vpop.f32.mrb[151].mxu1 }
 0xf17   : > { %v11844_v19 = vpop.f32.mrb[152].mxu1 }
 0xf18   : > { %v8944_v20 = vpop.f32.mrb[153].mxu1 }
 0xf19   : > { %v11845_v29 = vpop.f32.mrb[154].mxu1 }
 0xf1a   : > { %v8947_v18 = vpop.f32.mrb[155].mxu1 }
 0xf1f   : > { %v11848_v57 = vpop.f32.mrb[156].mxu1 }
 0xf20   : > { %v8960_v58 = vpop.f32.mrb[157].mxu1 }
 0xf21   : > { %v11849_v39 = vpop.f32.mrb[158].mxu1 }
 0xf22   : > { %v8963_v41 = vpop.f32.mrb[159].mxu1 }
 0xf27   : > { %v11852_v2 = vpop.f32.mrb[160].mxu1 }
 0xf28   : > { %v8976_v53 = vpop.f32.mrb[161].mxu1 }
 0xf29   : > { %v11853_v46 = vpop.f32.mrb[162].mxu1 }
 0xf2a   : > { %v8979_v3 = vpop.f32.mrb[163].mxu1 }
 0xf2f   : > { %v11856_v16 = vpop.f32.mrb[164].mxu1 }
 0xf30   : > { %v8992_v8 = vpop.f32.mrb[165].mxu1 }
 0xf31   : > { %v11857_v45 = vpop.f32.mrb[166].mxu1 }
 0xf32   : > { %v8995_v32 = vpop.f32.mrb[167].mxu1 }
 0xf37   : > { %v11860_v37 = vpop.f32.mrb[168].mxu1 }
 0xf38   : > { %v9008_v21 = vpop.f32.mrb[169].mxu1 }
 0xf39   : > { %v11861_v10 = vpop.f32.mrb[170].mxu1 }
 0xf3a   : > { %v9011_v60 = vpop.f32.mrb[171].mxu1 }
 0xf3b PF: > { %p11879_p5 = scmp.ge.s32.totalorder %s12247_s24, 2  ;;  %s9250_s3 = sand.u32 1, %s12235_s21  }
 0xf3c   : > { %s9251_s13 = scalar_lea.sflag [#allocation4], %s9250_s3 }
 0xf3d   : > { %p11874_p2 = pnand %p11879_p5, %p12360_p6 }
 0xf3f   : > { %12230 = dma.done.wait (!%p11874_p2), %s9251_s13, 128  }
 0xf40   : > { %12232 = vsyncadd (!%p11874_p2), %s9251_s13, 4294967168  ;;  %p23_p3 = scmp.ge.s32.totalorder %s12343_s27, 4   ;;  %s17015_s21 = smov %s12239_s22 }
 0xf41   : > { %s17016_s22 = smov %s12243_s23  ;;  %s17017_s23 = smov %s12354_s30 }
 0xf42   : > { %s17018_s24 = smov %s12343_s27  ;;  %25 = sbr.rel (!%p23_p3) target bundleno = 9 (0x9), region = 128 }
 0xf49   :  { %9256 = vsyncpa [#allocation4], 1 }
 0xf4a   :  { %9258 = vsyncpa [#allocation4 + $0x1], 1 }
 0xf4b   :  { %9259 = vsyncpa [#allocation5], 1 }
 0xf4c   :  { %9261 = vsyncpa [#allocation5 + $0x1], 1 }

</bundles_post_ra>
